<compile_context>
chip_gen: v6e
topology: v6e:2x2x1
jax: 0.10.0
libtpu: 0.0.40
codegen_flags: <defaults>
</compile_context>

<pallas_src>
import functools

import numpy as np
import jax
import jax.numpy as jnp
from jax.experimental import pallas as pl
from jax.experimental.pallas import tpu as pltpu

SUB = 8      # sublane tile
LANE = 128   # lane tile


def _round_up(x, m):
    return ((x + m - 1) // m) * m


def _graph_conv_kernel(bounds_ref, seg_starts_ref,   # SMEM scalar prefetch
                       msg_ref, w_ref,               # VMEM streams (edge tile, fused weight)
                       out_ref,                      # VMEM (NS, COUT_PAD) resident accumulator
                       *, chunk, tiles_per_core):
    c = pl.program_id(0)          # core ("parallel") axis
    i = pl.program_id(1)          # edge-tile ("arbitrary"/reduction) axis
    tile_idx = c * tiles_per_core + i

    # Initialize this core's resident accumulator once.
    @pl.when(i == 0)
    def _():
        out_ref[...] = jnp.full(out_ref.shape, -jnp.inf, out_ref.dtype)

    # Single fused matmul on the MXU: y = [x_j | rel | 1?] @ [Wx ; Wp ; b?], f32 accumulation.
    y = jnp.dot(msg_ref[...], w_ref[...], preferred_element_type=jnp.float32)  # (TE, COUT_PAD)

    te = y.shape[0]
    n_sub = te // chunk
    neg_inf = jnp.float32(-jnp.inf)
    tile_edge0 = tile_idx * te    # global (sorted) edge offset of this tile

    for c_sub in range(n_sub):                              # static unroll over windows
        y_c = y[c_sub * chunk:(c_sub + 1) * chunk, :]       # (CHUNK, COUT_PAD), static slice
        g0 = tile_edge0 + c_sub * chunk
        edge_iota = g0 + jax.lax.broadcasted_iota(jnp.int32, (chunk, 1), 0)  # global edge idx
        chunk_idx = tile_idx * n_sub + c_sub
        lo = bounds_ref[2 * chunk_idx]                      # first 8-row tile touched
        cnt = bounds_ref[2 * chunk_idx + 1]                 # #tiles touched (0 => padding)

        def seg_tile_body(t, carry, y_c=y_c, edge_iota=edge_iota, lo=lo):
            s0 = (lo + t) * SUB
            # segment boundaries for the 8 rows of this tile, read once from SMEM
            b = [seg_starts_ref[s0 + k] for k in range(SUB + 1)]
            rows = []
            for s in range(SUB):                            # static unroll of 8 rows
                m = (edge_iota >= b[s]) & (edge_iota < b[s + 1])      # (CHUNK, 1)
                rows.append(jnp.max(jnp.where(m, y_c, neg_inf), axis=0, keepdims=True))
            tile_max = jnp.concatenate(rows, axis=0)        # (8, COUT_PAD)
            r0 = pl.multiple_of(s0, SUB)
            out_ref[pl.ds(r0, SUB), :] = jnp.maximum(out_ref[pl.ds(r0, SUB), :], tile_max)
            return carry

        jax.lax.fori_loop(0, cnt, seg_tile_body, 0)


@functools.partial(jax.jit,
                   static_argnames=("edge_tile", "chunk", "num_cores", "use_bf16"))
def _qgc_forward_padded(node, features, edges, weight, bias,
                        *, edge_tile, chunk, num_cores, use_bf16):
    """Jittable core: returns (gathered (N, Cout) rows in torch.unique order, num_unique)."""
    N = node.shape[0]
    E = edges.shape[0]
    Cin = features.shape[1]
    Cout = weight.shape[0]
    mm_dtype = jnp.bfloat16 if use_bf16 else jnp.float32

    COUT_PAD = _round_up(Cout, LANE)
    NS = _round_up(N, SUB)
    n_seg_tiles = NS // SUB

    chunk = _round_up(max(chunk, SUB), SUB)
    edge_tile = _round_up(max(edge_tile, chunk), chunk)
    TE = min(edge_tile, _round_up(E, chunk))
    tiles_total = _round_up(pl.cdiv(E, TE), num_cores)
    tiles_per_core = tiles_total // num_cores
    E_pad = tiles_total * TE
    n_chunks = E_pad // chunk

    # --- sort edges by source so each edge window owns a narrow output-row range ---
    order = jnp.argsort(edges[:, 0])
    e_sorted = edges[order]
    src = e_sorted[:, 0].astype(jnp.int32)
    dst = e_sorted[:, 1].astype(jnp.int32)

    # --- data-dependent gathers + message assembly in the wrapper ---
    pos_i = jnp.take(node, src, axis=0)
    pos_j = jnp.take(node, dst, axis=0)
    x_j = jnp.take(features, dst, axis=0)

    parts = [x_j, pos_j - pos_i]
    w_rows = [weight.T]                                   # (Cin+3, Cout)
    if bias is not None:
        parts.append(jnp.ones((E, 1), jnp.float32))       # bias folded as an extra column/row
        w_rows.append(bias.reshape(1, Cout))
    msg = jnp.concatenate(parts, axis=1)                  # (E, K)
    w_full = jnp.concatenate(w_rows, axis=0)              # (K, Cout)
    K = msg.shape[1]
    K_PAD = _round_up(max(K, SUB), SUB)

    msg_pad = jnp.pad(msg, ((0, E_pad - E), (0, K_PAD - K))).astype(mm_dtype)
    w_pad = jnp.pad(w_full, ((0, K_PAD - K), (0, COUT_PAD - Cout))).astype(mm_dtype)

    # --- SMEM scalar prefetch: per-segment edge ranges + per-chunk touched-tile bounds ---
    # edges of segment s live in [seg_starts[s], seg_starts[s+1]) of the sorted edge order;
    # padded edges (index >= E) never fall in any range.
    seg_starts = jnp.searchsorted(
        src, jnp.arange(NS + 1, dtype=jnp.int32)).astype(jnp.int32)     # (NS+1,)

    cstarts = jnp.arange(n_chunks, dtype=jnp.int32) * chunk
    valid = cstarts < E
    first = jnp.minimum(cstarts, E - 1)
    last = jnp.minimum(cstarts + (chunk - 1), E - 1)
    lo = jnp.clip(src[first] // SUB, 0, n_seg_tiles - 1)
    hi = jnp.clip(src[last] // SUB, 0, n_seg_tiles - 1)
    cnt = jnp.where(valid, hi - lo + 1, 0)
    bounds = jnp.stack([lo, cnt], axis=1).reshape(-1).astype(jnp.int32)  # (2*n_chunks,)

    kernel = functools.partial(_graph_conv_kernel, chunk=chunk,
                               tiles_per_core=tiles_per_core)

    grid_spec = pltpu.PrefetchScalarGridSpec(
        num_scalar_prefetch=2,
        grid=(num_cores, tiles_per_core),
        in_specs=[
            pl.BlockSpec((TE, K_PAD),
                         lambda c, i, b, s: (c * tiles_per_core + i, 0)),   # msg tiles
            pl.BlockSpec((K_PAD, COUT_PAD), lambda c, i, b, s: (0, 0)),     # fused weight
        ],
        out_specs=pl.BlockSpec((NS, COUT_PAD), lambda c, i, b, s: (c, 0)),  # per-core slab
    )

    # Explicit VMEM budget (v5e default scoped limit is only 16 MiB).
    itemsize = 2 if use_bf16 else 4
    acc_bytes = NS * COUT_PAD * 4
    stream_bytes = 2 * TE * K_PAD * itemsize
    w_bytes = 2 * K_PAD * COUT_PAD * itemsize
    y_bytes = TE * COUT_PAD * 4
    vmem_limit = int(min(max(acc_bytes + stream_bytes + w_bytes + 2 * y_bytes + (8 << 20),
                             32 << 20), 100 << 20))

    out_full = pl.pallas_call(
        kernel,
        out_shape=jax.ShapeDtypeStruct((num_cores * NS, COUT_PAD), jnp.float32),
        grid_spec=grid_spec,
        compiler_params=pltpu.CompilerParams(
            dimension_semantics=("parallel", "arbitrary"),
            vmem_limit_bytes=vmem_limit),
    )(bounds, seg_starts, msg_pad, w_pad)

    # Combine the per-core accumulators (no-op copy when num_cores == 1).
    combined = jnp.max(out_full.reshape(num_cores, NS, COUT_PAD), axis=0)

    # torch.unique(edges[:,0]) row selection, statically shaped: N rows, first `num_unique`
    # are the sorted unique sources (torch.unique order), remainder are fill.
    uniq = jnp.unique(src, size=N, fill_value=N)
    num_unique = jnp.sum(uniq < N).astype(jnp.int32)
    gathered = combined[jnp.clip(uniq, 0, NS - 1), :Cout]
    return gathered, num_unique


def quant_graph_conv_forward(node, features, edges, weight, bias=None, *,
                             edge_tile=2048, chunk=128, num_cores=1, use_bf16=True):
    """JAX/Pallas equivalent of QuantGraphConv.forward.

    node: (N,3) f32, features: (N,Cin) f32, edges: (E,2) i32,
    weight: (Cout, Cin+3) f32 (nn.Linear weight), bias: optional (Cout,) f32.
    Returns pooled features (U, Cout), U = #unique edge sources (torch.unique sorted order).

    use_bf16=True feeds bf16 operands to the MXU (f32 accumulation) — ~2x MXU rate and
    half the DMA bytes, at bf16 input-rounding accuracy (the amax path stays f32).
    num_cores=2 splits edge tiles across the two v7x TensorCores (harmless elsewhere).
    """
    node = jnp.asarray(node, jnp.float32)
    features = jnp.asarray(features, jnp.float32)
    edges = jnp.asarray(edges, jnp.int32)
    weight = jnp.asarray(weight, jnp.float32)
    if bias is not None:
        bias = jnp.asarray(bias, jnp.float32)
    Cout = weight.shape[0]
    if edges.shape[0] == 0:
        return jnp.zeros((0, Cout), jnp.float32)

    gathered, num_unique = _qgc_forward_padded(
        node, features, edges, weight, bias,
        edge_tile=int(edge_tile), chunk=int(chunk),
        num_cores=int(num_cores), use_bf16=bool(use_bf16))
    # TODO(synk): the (U, Cout) result has a data-dependent row count (torch.unique); this
    # final slice is the single remaining host sync — everything above is jittable.
    return gathered[:int(num_unique)]


def _reference(node, features, edges, weight):
    """Pure-JAX reference mirroring the torch forward."""
    edges_np = np.asarray(edges)
    uniq, inv = np.unique(edges_np[:, 0], return_inverse=True)
    pos_i = jnp.take(node, edges[:, 0], axis=0)
    pos_j = jnp.take(node, edges[:, 1], axis=0)
    x_j = jnp.take(features, edges[:, 1], axis=0)
    msg = jnp.concatenate([x_j, pos_j - pos_i], axis=1) @ weight.T
    return jax.ops.segment_max(msg, jnp.asarray(inv, jnp.int32),
                               num_segments=int(uniq.shape[0]))


if __name__ == "__main__":
    # Small synthetic graph consistent with QuantGraphConv(input_dim=16, output_dim=32, bias=False)
    N = 64        # nodes
    E = 512       # edges
    Cin = 16      # input_dim
    Cout = 32     # output_dim
    Din = Cin + 3

    key = jax.random.PRNGKey(0)
    k_node, k_feat, k_src, k_dst, k_w = jax.random.split(key, 5)

    node = jax.random.normal(k_node, (N, 3), dtype=jnp.float32)
    features = jax.random.normal(k_feat, (N, Cin), dtype=jnp.float32)
    src = jax.random.randint(k_src, (E, 1), 0, N, dtype=jnp.int32)
    dst = jax.random.randint(k_dst, (E, 1), 0, N, dtype=jnp.int32)
    edges = jnp.concatenate([src, dst], axis=1)

    # nn.Linear(Cin+3, Cout, bias=False) weight, Kaiming-uniform-style init
    bound = 1.0 / np.sqrt(Din)
    weight = jax.random.uniform(k_w, (Cout, Din), dtype=jnp.float32,
                                minval=-bound, maxval=bound)

    ref = jax.block_until_ready(_reference(node, features, edges, weight))

    # 1) exact f32 path, single core / single edge tile
    out_f32 = jax.block_until_ready(
        quant_graph_conv_forward(node, features, edges, weight, use_bf16=False))
    np.testing.assert_allclose(np.asarray(out_f32), np.asarray(ref), rtol=1e-5, atol=1e-5)

    # 2) exact f32 path, multiple edge tiles + 2-way "parallel" core axis (v7x megacore path)
    out_mc = jax.block_until_ready(
        quant_graph_conv_forward(node, features, edges, weight,
                                 edge_tile=128, chunk=64, num_cores=2, use_bf16=False))
    np.testing.assert_allclose(np.asarray(out_mc), np.asarray(ref), rtol=1e-5, atol=1e-5)

    # 3) default bf16 MXU operands (f32 accumulation): looser tolerance by design
    out_bf16 = jax.block_until_ready(
        quant_graph_conv_forward(node, features, edges, weight))
    np.testing.assert_allclose(np.asarray(out_bf16), np.asarray(ref), rtol=5e-2, atol=5e-2)

    print("KERNEL_OK")
</pallas_src>

<mosaic_0001>
module attributes {stable_mosaic.version = 11 : i64} {
  func.func private @main(%arg0: i32) attributes {dimension_semantics = [#tpu.dimension_semantics<core_parallel>], iteration_bounds = array<i64: 2>, tpu.core_type = #tpu.core_type<sc_scalar_subcore>, window_params = []} {
    return
  }
}

module attributes {stable_mosaic.version = 11 : i64} {
  func.func private @main(%arg0: i32) attributes {dimension_semantics = [#tpu.dimension_semantics<core_parallel>], iteration_bounds = array<i64: 2>, tpu.core_type = #tpu.core_type<sc_scalar_subcore>, window_params = []} {
    return
  }
}

module attributes {stable_mosaic.version = 11 : i64} {
  func.func @_graph_conv_kernel(%arg0: i32, %arg1: i32, %arg2: memref<8xi32, #tpu.memory_space<smem>>, %arg3: memref<65xi32, #tpu.memory_space<smem>>, %arg4: memref<512x24xf32, #tpu.memory_space<vmem>>, %arg5: memref<24x128xf32, #tpu.memory_space<vmem>>, %arg6: memref<64x128xf32, #tpu.memory_space<vmem>>) attributes {dimension_semantics = [#tpu.dimension_semantics<parallel>, #tpu.dimension_semantics<arbitrary>], iteration_bounds = array<i64: 1, 1>, scalar_prefetch = 2 : i64, scratch_operands = 0 : i64, tpu.core_type = #tpu.core_type<tc>, window_params = [{transform_indices = @transform_0, window_bounds = array<i64: 512, 24>}, {pipeline_mode = #tpu.pipeline_mode<synchronous>, transform_indices = @transform_1, window_bounds = array<i64: 24, 128>}, {transform_indices = @transform_2, window_bounds = array<i64: 64, 128>}]} {
    %c1_i32 = arith.constant 1 : i32
    %0 = arith.muli %arg0, %c1_i32 : i32
    %1 = arith.addi %0, %arg1 : i32
    %c0_i32 = arith.constant 0 : i32
    %2 = arith.cmpi eq, %arg1, %c0_i32 : i32
    %3 = arith.extui %2 : i1 to i32
    %c0_i32_0 = arith.constant 0 : i32
    %4 = arith.cmpi ne, %3, %c0_i32_0 : i32
    scf.if %4 {
      %cst_38 = arith.constant 0xFF800000 : f32
      %73 = vector.broadcast %cst_38 : f32 to vector<64x128xf32>
      %c0_39 = arith.constant 0 : index
      %c0_40 = arith.constant 0 : index
      %74 = vector.load %arg6[%c0_39, %c0_40] : memref<64x128xf32, #tpu.memory_space<vmem>>, vector<64x128xf32>
      tpu.vector_store %arg6[%c0_39, %c0_40], %73 {strides = array<i32>} : memref<64x128xf32, #tpu.memory_space<vmem>>, vector<64x128xf32>,
    } else {
    }
    %c0 = arith.constant 0 : index
    %c0_1 = arith.constant 0 : index
    %5 = vector.load %arg4[%c0, %c0_1] : memref<512x24xf32, #tpu.memory_space<vmem>>, vector<512x24xf32>
    %c0_2 = arith.constant 0 : index
    %c0_3 = arith.constant 0 : index
    %6 = vector.load %arg5[%c0_2, %c0_3] : memref<24x128xf32, #tpu.memory_space<vmem>>, vector<24x128xf32>
    %cst = arith.constant dense<0.000000e+00> : vector<512x128xf32>
    %7 = tpu.matmul %5, %6, %cst {dimension_numbers = #tpu.dot_dimension_numbers<[1], [0], [0], [1], [0, 0, 1, 1], [], []>} : vector<512x24xf32>, vector<24x128xf32>, vector<512x128xf32> -> vector<512x128xf32>
    %c512_i32 = arith.constant 512 : i32
    %8 = arith.muli %1, %c512_i32 : i32
    %9 = vector.extract_strided_slice %7 {offsets = [0, 0], sizes = [128, 128], strides = [1, 1]} : vector<512x128xf32> to vector<128x128xf32>
    %c0_i32_4 = arith.constant 0 : i32
    %10 = arith.addi %8, %c0_i32_4 : i32
    %11 = tpu.iota {dimensions = array<i32: 0>} : vector<128x1xi32>
    %12 = vector.broadcast %10 : i32 to vector<128x1xi32>
    %13 = arith.addi %12, %11 : vector<128x1xi32>
    %c4_i32 = arith.constant 4 : i32
    %14 = arith.muli %1, %c4_i32 : i32
    %c0_i32_5 = arith.constant 0 : i32
    %15 = arith.addi %14, %c0_i32_5 : i32
    %c2_i32 = arith.constant 2 : i32
    %16 = arith.muli %c2_i32, %15 : i32
    %17 = arith.index_cast %16 : i32 to index
    %18 = memref.load %arg2[%17] : memref<8xi32, #tpu.memory_space<smem>>
    %c2_i32_6 = arith.constant 2 : i32
    %19 = arith.muli %c2_i32_6, %15 : i32
    %c1_i32_7 = arith.constant 1 : i32
    %20 = arith.addi %19, %c1_i32_7 : i32
    %21 = arith.index_cast %20 : i32 to index
    %22 = memref.load %arg2[%21] : memref<8xi32, #tpu.memory_space<smem>>
    %c0_i32_8 = arith.constant 0 : i32
    %cst_9 = arith.constant 0xFF800000 : f32
    %c0_i32_10 = arith.constant 0 : i32
    %23 = arith.subi %22, %c0_i32_10 : i32
    %24 = arith.addi %c0_i32_10, %23 : i32
    %c1_i32_11 = arith.constant 1 : i32
    scf.for %arg7 = %c0_i32_10 to %24 step %c1_i32_11  : i32 {
      %73 = arith.addi %18, %arg7 : i32
      %c8_i32 = arith.constant 8 : i32
      %74 = arith.muli %73, %c8_i32 : i32
      %c0_i32_38 = arith.constant 0 : i32
      %75 = arith.addi %74, %c0_i32_38 : i32
      %76 = arith.index_cast %75 : i32 to index
      %77 = memref.load %arg3[%76] : memref<65xi32, #tpu.memory_space<smem>>
      %c1_i32_39 = arith.constant 1 : i32
      %78 = arith.addi %74, %c1_i32_39 : i32
      %79 = arith.index_cast %78 : i32 to index
      %80 = memref.load %arg3[%79] : memref<65xi32, #tpu.memory_space<smem>>
      %c2_i32_40 = arith.constant 2 : i32
      %81 = arith.addi %74, %c2_i32_40 : i32
      %82 = arith.index_cast %81 : i32 to index
      %83 = memref.load %arg3[%82] : memref<65xi32, #tpu.memory_space<smem>>
      %c3_i32_41 = arith.constant 3 : i32
      %84 = arith.addi %74, %c3_i32_41 : i32
      %85 = arith.index_cast %84 : i32 to index
      %86 = memref.load %arg3[%85] : memref<65xi32, #tpu.memory_space<smem>>
      %c4_i32_42 = arith.constant 4 : i32
      %87 = arith.addi %74, %c4_i32_42 : i32
      %88 = arith.index_cast %87 : i32 to index
      %89 = memref.load %arg3[%88] : memref<65xi32, #tpu.memory_space<smem>>
      %c5_i32 = arith.constant 5 : i32
      %90 = arith.addi %74, %c5_i32 : i32
      %91 = arith.index_cast %90 : i32 to index
      %92 = memref.load %arg3[%91] : memref<65xi32, #tpu.memory_space<smem>>
      %c6_i32 = arith.constant 6 : i32
      %93 = arith.addi %74, %c6_i32 : i32
      %94 = arith.index_cast %93 : i32 to index
      %95 = memref.load %arg3[%94] : memref<65xi32, #tpu.memory_space<smem>>
      %c7_i32 = arith.constant 7 : i32
      %96 = arith.addi %74, %c7_i32 : i32
      %97 = arith.index_cast %96 : i32 to index
      %98 = memref.load %arg3[%97] : memref<65xi32, #tpu.memory_space<smem>>
      %c8_i32_43 = arith.constant 8 : i32
      %99 = arith.addi %74, %c8_i32_43 : i32
      %100 = arith.index_cast %99 : i32 to index
      %101 = memref.load %arg3[%100] : memref<65xi32, #tpu.memory_space<smem>>
      %102 = vector.broadcast %77 : i32 to vector<128x1xi32>
      %103 = arith.cmpi sge, %13, %102 : vector<128x1xi32>
      %104 = vector.broadcast %80 : i32 to vector<128x1xi32>
      %105 = arith.cmpi slt, %13, %104 : vector<128x1xi32>
      %106 = arith.andi %103, %105 : vector<128x1xi1>
      %107 = vector.shape_cast %106 : vector<128x1xi1> to vector<128x1xi1>
      %108 = vector.broadcast %107 : vector<128x1xi1> to vector<128x128xi1>
      %109 = vector.broadcast %cst_9 : f32 to vector<128x128xf32>
      %110 = arith.select %108, %9, %109 : vector<128x128xi1>, vector<128x128xf32>
      %cst_44 = arith.constant dense<0xFF800000> : vector<128xf32>
      %111 = vector.multi_reduction <maximumf>, %110, %cst_44 [0] : vector<128x128xf32> to vector<128xf32>
      %112 = vector.shape_cast %111 : vector<128xf32> to vector<1x128xf32>
      %113 = vector.broadcast %80 : i32 to vector<128x1xi32>
      %114 = arith.cmpi sge, %13, %113 : vector<128x1xi32>
      %115 = vector.broadcast %83 : i32 to vector<128x1xi32>
      %116 = arith.cmpi slt, %13, %115 : vector<128x1xi32>
      %117 = arith.andi %114, %116 : vector<128x1xi1>
      %118 = vector.shape_cast %117 : vector<128x1xi1> to vector<128x1xi1>
      %119 = vector.broadcast %118 : vector<128x1xi1> to vector<128x128xi1>
      %120 = vector.broadcast %cst_9 : f32 to vector<128x128xf32>
      %121 = arith.select %119, %9, %120 : vector<128x128xi1>, vector<128x128xf32>
      %cst_45 = arith.constant dense<0xFF800000> : vector<128xf32>
      %122 = vector.multi_reduction <maximumf>, %121, %cst_45 [0] : vector<128x128xf32> to vector<128xf32>
      %123 = vector.shape_cast %122 : vector<128xf32> to vector<1x128xf32>
      %124 = vector.broadcast %83 : i32 to vector<128x1xi32>
      %125 = arith.cmpi sge, %13, %124 : vector<128x1xi32>
      %126 = vector.broadcast %86 : i32 to vector<128x1xi32>
      %127 = arith.cmpi slt, %13, %126 : vector<128x1xi32>
      %128 = arith.andi %125, %127 : vector<128x1xi1>
      %129 = vector.shape_cast %128 : vector<128x1xi1> to vector<128x1xi1>
      %130 = vector.broadcast %129 : vector<128x1xi1> to vector<128x128xi1>
      %131 = vector.broadcast %cst_9 : f32 to vector<128x128xf32>
      %132 = arith.select %130, %9, %131 : vector<128x128xi1>, vector<128x128xf32>
      %cst_46 = arith.constant dense<0xFF800000> : vector<128xf32>
      %133 = vector.multi_reduction <maximumf>, %132, %cst_46 [0] : vector<128x128xf32> to vector<128xf32>
      %134 = vector.shape_cast %133 : vector<128xf32> to vector<1x128xf32>
      %135 = vector.broadcast %86 : i32 to vector<128x1xi32>
      %136 = arith.cmpi sge, %13, %135 : vector<128x1xi32>
      %137 = vector.broadcast %89 : i32 to vector<128x1xi32>
      %138 = arith.cmpi slt, %13, %137 : vector<128x1xi32>
      %139 = arith.andi %136, %138 : vector<128x1xi1>
      %140 = vector.shape_cast %139 : vector<128x1xi1> to vector<128x1xi1>
      %141 = vector.broadcast %140 : vector<128x1xi1> to vector<128x128xi1>
      %142 = vector.broadcast %cst_9 : f32 to vector<128x128xf32>
      %143 = arith.select %141, %9, %142 : vector<128x128xi1>, vector<128x128xf32>
      %cst_47 = arith.constant dense<0xFF800000> : vector<128xf32>
      %144 = vector.multi_reduction <maximumf>, %143, %cst_47 [0] : vector<128x128xf32> to vector<128xf32>
      %145 = vector.shape_cast %144 : vector<128xf32> to vector<1x128xf32>
      %146 = vector.broadcast %89 : i32 to vector<128x1xi32>
      %147 = arith.cmpi sge, %13, %146 : vector<128x1xi32>
      %148 = vector.broadcast %92 : i32 to vector<128x1xi32>
      %149 = arith.cmpi slt, %13, %148 : vector<128x1xi32>
      %150 = arith.andi %147, %149 : vector<128x1xi1>
      %151 = vector.shape_cast %150 : vector<128x1xi1> to vector<128x1xi1>
      %152 = vector.broadcast %151 : vector<128x1xi1> to vector<128x128xi1>
      %153 = vector.broadcast %cst_9 : f32 to vector<128x128xf32>
      %154 = arith.select %152, %9, %153 : vector<128x128xi1>, vector<128x128xf32>
      %cst_48 = arith.constant dense<0xFF800000> : vector<128xf32>
      %155 = vector.multi_reduction <maximumf>, %154, %cst_48 [0] : vector<128x128xf32> to vector<128xf32>
      %156 = vector.shape_cast %155 : vector<128xf32> to vector<1x128xf32>
      %157 = vector.broadcast %92 : i32 to vector<128x1xi32>
      %158 = arith.cmpi sge, %13, %157 : vector<128x1xi32>
      %159 = vector.broadcast %95 : i32 to vector<128x1xi32>
      %160 = arith.cmpi slt, %13, %159 : vector<128x1xi32>
      %161 = arith.andi %158, %160 : vector<128x1xi1>
      %162 = vector.shape_cast %161 : vector<128x1xi1> to vector<128x1xi1>
      %163 = vector.broadcast %162 : vector<128x1xi1> to vector<128x128xi1>
      %164 = vector.broadcast %cst_9 : f32 to vector<128x128xf32>
      %165 = arith.select %163, %9, %164 : vector<128x128xi1>, vector<128x128xf32>
      %cst_49 = arith.constant dense<0xFF800000> : vector<128xf32>
      %166 = vector.multi_reduction <maximumf>, %165, %cst_49 [0] : vector<128x128xf32> to vector<128xf32>
      %167 = vector.shape_cast %166 : vector<128xf32> to vector<1x128xf32>
      %168 = vector.broadcast %95 : i32 to vector<128x1xi32>
      %169 = arith.cmpi sge, %13, %168 : vector<128x1xi32>
      %170 = vector.broadcast %98 : i32 to vector<128x1xi32>
      %171 = arith.cmpi slt, %13, %170 : vector<128x1xi32>
      %172 = arith.andi %169, %171 : vector<128x1xi1>
      %173 = vector.shape_cast %172 : vector<128x1xi1> to vector<128x1xi1>
      %174 = vector.broadcast %173 : vector<128x1xi1> to vector<128x128xi1>
      %175 = vector.broadcast %cst_9 : f32 to vector<128x128xf32>
      %176 = arith.select %174, %9, %175 : vector<128x128xi1>, vector<128x128xf32>
      %cst_50 = arith.constant dense<0xFF800000> : vector<128xf32>
      %177 = vector.multi_reduction <maximumf>, %176, %cst_50 [0] : vector<128x128xf32> to vector<128xf32>
      %178 = vector.shape_cast %177 : vector<128xf32> to vector<1x128xf32>
      %179 = vector.broadcast %98 : i32 to vector<128x1xi32>
      %180 = arith.cmpi sge, %13, %179 : vector<128x1xi32>
      %181 = vector.broadcast %101 : i32 to vector<128x1xi32>
      %182 = arith.cmpi slt, %13, %181 : vector<128x1xi32>
      %183 = arith.andi %180, %182 : vector<128x1xi1>
      %184 = vector.shape_cast %183 : vector<128x1xi1> to vector<128x1xi1>
      %185 = vector.broadcast %184 : vector<128x1xi1> to vector<128x128xi1>
      %186 = vector.broadcast %cst_9 : f32 to vector<128x128xf32>
      %187 = arith.select %185, %9, %186 : vector<128x128xi1>, vector<128x128xf32>
      %cst_51 = arith.constant dense<0xFF800000> : vector<128xf32>
      %188 = vector.multi_reduction <maximumf>, %187, %cst_51 [0] : vector<128x128xf32> to vector<128xf32>
      %189 = vector.shape_cast %188 : vector<128xf32> to vector<1x128xf32>
      %190 = tpu.concatenate %112, %123, %134, %145, %156, %167, %178, %189 in 0 : vector<1x128xf32>, vector<1x128xf32>, vector<1x128xf32>, vector<1x128xf32>, vector<1x128xf32>, vector<1x128xf32>, vector<1x128xf32>, vector<1x128xf32> -> vector<8x128xf32>
      %191 = tpu.assume_multiple %74, 8 : i32
      %192 = arith.index_cast %191 : i32 to index
      %c0_52 = arith.constant 0 : index
      %193 = vector.load %arg6[%192, %c0_52] : memref<64x128xf32, #tpu.memory_space<vmem>>, vector<8x128xf32>
      %194 = arith.maximumf %193, %190 : vector<8x128xf32>
      %195 = arith.index_cast %191 : i32 to index
      %c0_53 = arith.constant 0 : index
      %196 = vector.load %arg6[%195, %c0_53] : memref<64x128xf32, #tpu.memory_space<vmem>>, vector<8x128xf32>
      tpu.vector_store %arg6[%195, %c0_53], %194 {strides = array<i32>} : memref<64x128xf32, #tpu.memory_space<vmem>>, vector<8x128xf32>,
    }
    %25 = vector.extract_strided_slice %7 {offsets = [128, 0], sizes = [128, 128], strides = [1, 1]} : vector<512x128xf32> to vector<128x128xf32>
    %c128_i32 = arith.constant 128 : i32
    %26 = arith.addi %8, %c128_i32 : i32
    %27 = tpu.iota {dimensions = array<i32: 0>} : vector<128x1xi32>
    %28 = vector.broadcast %26 : i32 to vector<128x1xi32>
    %29 = arith.addi %28, %27 : vector<128x1xi32>
    %c4_i32_12 = arith.constant 4 : i32
    %30 = arith.muli %1, %c4_i32_12 : i32
    %c1_i32_13 = arith.constant 1 : i32
    %31 = arith.addi %30, %c1_i32_13 : i32
    %c2_i32_14 = arith.constant 2 : i32
    %32 = arith.muli %c2_i32_14, %31 : i32
    %33 = arith.index_cast %32 : i32 to index
    %34 = memref.load %arg2[%33] : memref<8xi32, #tpu.memory_space<smem>>
    %c2_i32_15 = arith.constant 2 : i32
    %35 = arith.muli %c2_i32_15, %31 : i32
    %c1_i32_16 = arith.constant 1 : i32
    %36 = arith.addi %35, %c1_i32_16 : i32
    %37 = arith.index_cast %36 : i32 to index
    %38 = memref.load %arg2[%37] : memref<8xi32, #tpu.memory_space<smem>>
    %c0_i32_17 = arith.constant 0 : i32
    %cst_18 = arith.constant 0xFF800000 : f32
    %c0_i32_19 = arith.constant 0 : i32
    %39 = arith.subi %38, %c0_i32_19 : i32
    %40 = arith.addi %c0_i32_19, %39 : i32
    %c1_i32_20 = arith.constant 1 : i32
    scf.for %arg7 = %c0_i32_19 to %40 step %c1_i32_20  : i32 {
      %73 = arith.addi %34, %arg7 : i32
      %c8_i32 = arith.constant 8 : i32
      %74 = arith.muli %73, %c8_i32 : i32
      %c0_i32_38 = arith.constant 0 : i32
      %75 = arith.addi %74, %c0_i32_38 : i32
      %76 = arith.index_cast %75 : i32 to index
      %77 = memref.load %arg3[%76] : memref<65xi32, #tpu.memory_space<smem>>
      %c1_i32_39 = arith.constant 1 : i32
      %78 = arith.addi %74, %c1_i32_39 : i32
      %79 = arith.index_cast %78 : i32 to index
      %80 = memref.load %arg3[%79] : memref<65xi32, #tpu.memory_space<smem>>
      %c2_i32_40 = arith.constant 2 : i32
      %81 = arith.addi %74, %c2_i32_40 : i32
      %82 = arith.index_cast %81 : i32 to index
      %83 = memref.load %arg3[%82] : memref<65xi32, #tpu.memory_space<smem>>
      %c3_i32_41 = arith.constant 3 : i32
      %84 = arith.addi %74, %c3_i32_41 : i32
      %85 = arith.index_cast %84 : i32 to index
      %86 = memref.load %arg3[%85] : memref<65xi32, #tpu.memory_space<smem>>
      %c4_i32_42 = arith.constant 4 : i32
      %87 = arith.addi %74, %c4_i32_42 : i32
      %88 = arith.index_cast %87 : i32 to index
      %89 = memref.load %arg3[%88] : memref<65xi32, #tpu.memory_space<smem>>
      %c5_i32 = arith.constant 5 : i32
      %90 = arith.addi %74, %c5_i32 : i32
      %91 = arith.index_cast %90 : i32 to index
      %92 = memref.load %arg3[%91] : memref<65xi32, #tpu.memory_space<smem>>
      %c6_i32 = arith.constant 6 : i32
      %93 = arith.addi %74, %c6_i32 : i32
      %94 = arith.index_cast %93 : i32 to index
      %95 = memref.load %arg3[%94] : memref<65xi32, #tpu.memory_space<smem>>
      %c7_i32 = arith.constant 7 : i32
      %96 = arith.addi %74, %c7_i32 : i32
      %97 = arith.index_cast %96 : i32 to index
      %98 = memref.load %arg3[%97] : memref<65xi32, #tpu.memory_space<smem>>
      %c8_i32_43 = arith.constant 8 : i32
      %99 = arith.addi %74, %c8_i32_43 : i32
      %100 = arith.index_cast %99 : i32 to index
      %101 = memref.load %arg3[%100] : memref<65xi32, #tpu.memory_space<smem>>
      %102 = vector.broadcast %77 : i32 to vector<128x1xi32>
      %103 = arith.cmpi sge, %29, %102 : vector<128x1xi32>
      %104 = vector.broadcast %80 : i32 to vector<128x1xi32>
      %105 = arith.cmpi slt, %29, %104 : vector<128x1xi32>
      %106 = arith.andi %103, %105 : vector<128x1xi1>
      %107 = vector.shape_cast %106 : vector<128x1xi1> to vector<128x1xi1>
      %108 = vector.broadcast %107 : vector<128x1xi1> to vector<128x128xi1>
      %109 = vector.broadcast %cst_18 : f32 to vector<128x128xf32>
      %110 = arith.select %108, %25, %109 : vector<128x128xi1>, vector<128x128xf32>
      %cst_44 = arith.constant dense<0xFF800000> : vector<128xf32>
      %111 = vector.multi_reduction <maximumf>, %110, %cst_44 [0] : vector<128x128xf32> to vector<128xf32>
      %112 = vector.shape_cast %111 : vector<128xf32> to vector<1x128xf32>
      %113 = vector.broadcast %80 : i32 to vector<128x1xi32>
      %114 = arith.cmpi sge, %29, %113 : vector<128x1xi32>
      %115 = vector.broadcast %83 : i32 to vector<128x1xi32>
      %116 = arith.cmpi slt, %29, %115 : vector<128x1xi32>
      %117 = arith.andi %114, %116 : vector<128x1xi1>
      %118 = vector.shape_cast %117 : vector<128x1xi1> to vector<128x1xi1>
      %119 = vector.broadcast %118 : vector<128x1xi1> to vector<128x128xi1>
      %120 = vector.broadcast %cst_18 : f32 to vector<128x128xf32>
      %121 = arith.select %119, %25, %120 : vector<128x128xi1>, vector<128x128xf32>
      %cst_45 = arith.constant dense<0xFF800000> : vector<128xf32>
      %122 = vector.multi_reduction <maximumf>, %121, %cst_45 [0] : vector<128x128xf32> to vector<128xf32>
      %123 = vector.shape_cast %122 : vector<128xf32> to vector<1x128xf32>
      %124 = vector.broadcast %83 : i32 to vector<128x1xi32>
      %125 = arith.cmpi sge, %29, %124 : vector<128x1xi32>
      %126 = vector.broadcast %86 : i32 to vector<128x1xi32>
      %127 = arith.cmpi slt, %29, %126 : vector<128x1xi32>
      %128 = arith.andi %125, %127 : vector<128x1xi1>
      %129 = vector.shape_cast %128 : vector<128x1xi1> to vector<128x1xi1>
      %130 = vector.broadcast %129 : vector<128x1xi1> to vector<128x128xi1>
      %131 = vector.broadcast %cst_18 : f32 to vector<128x128xf32>
      %132 = arith.select %130, %25, %131 : vector<128x128xi1>, vector<128x128xf32>
      %cst_46 = arith.constant dense<0xFF800000> : vector<128xf32>
      %133 = vector.multi_reduction <maximumf>, %132, %cst_46 [0] : vector<128x128xf32> to vector<128xf32>
      %134 = vector.shape_cast %133 : vector<128xf32> to vector<1x128xf32>
      %135 = vector.broadcast %86 : i32 to vector<128x1xi32>
      %136 = arith.cmpi sge, %29, %135 : vector<128x1xi32>
      %137 = vector.broadcast %89 : i32 to vector<128x1xi32>
      %138 = arith.cmpi slt, %29, %137 : vector<128x1xi32>
      %139 = arith.andi %136, %138 : vector<128x1xi1>
      %140 = vector.shape_cast %139 : vector<128x1xi1> to vector<128x1xi1>
      %141 = vector.broadcast %140 : vector<128x1xi1> to vector<128x128xi1>
      %142 = vector.broadcast %cst_18 : f32 to vector<128x128xf32>
      %143 = arith.select %141, %25, %142 : vector<128x128xi1>, vector<128x128xf32>
      %cst_47 = arith.constant dense<0xFF800000> : vector<128xf32>
      %144 = vector.multi_reduction <maximumf>, %143, %cst_47 [0] : vector<128x128xf32> to vector<128xf32>
      %145 = vector.shape_cast %144 : vector<128xf32> to vector<1x128xf32>
      %146 = vector.broadcast %89 : i32 to vector<128x1xi32>
      %147 = arith.cmpi sge, %29, %146 : vector<128x1xi32>
      %148 = vector.broadcast %92 : i32 to vector<128x1xi32>
      %149 = arith.cmpi slt, %29, %148 : vector<128x1xi32>
      %150 = arith.andi %147, %149 : vector<128x1xi1>
      %151 = vector.shape_cast %150 : vector<128x1xi1> to vector<128x1xi1>
      %152 = vector.broadcast %151 : vector<128x1xi1> to vector<128x128xi1>
      %153 = vector.broadcast %cst_18 : f32 to vector<128x128xf32>
      %154 = arith.select %152, %25, %153 : vector<128x128xi1>, vector<128x128xf32>
      %cst_48 = arith.constant dense<0xFF800000> : vector<128xf32>
      %155 = vector.multi_reduction <maximumf>, %154, %cst_48 [0] : vector<128x128xf32> to vector<128xf32>
      %156 = vector.shape_cast %155 : vector<128xf32> to vector<1x128xf32>
      %157 = vector.broadcast %92 : i32 to vector<128x1xi32>
      %158 = arith.cmpi sge, %29, %157 : vector<128x1xi32>
      %159 = vector.broadcast %95 : i32 to vector<128x1xi32>
      %160 = arith.cmpi slt, %29, %159 : vector<128x1xi32>
      %161 = arith.andi %158, %160 : vector<128x1xi1>
      %162 = vector.shape_cast %161 : vector<128x1xi1> to vector<128x1xi1>
      %163 = vector.broadcast %162 : vector<128x1xi1> to vector<128x128xi1>
      %164 = vector.broadcast %cst_18 : f32 to vector<128x128xf32>
      %165 = arith.select %163, %25, %164 : vector<128x128xi1>, vector<128x128xf32>
      %cst_49 = arith.constant dense<0xFF800000> : vector<128xf32>
      %166 = vector.multi_reduction <maximumf>, %165, %cst_49 [0] : vector<128x128xf32> to vector<128xf32>
      %167 = vector.shape_cast %166 : vector<128xf32> to vector<1x128xf32>
      %168 = vector.broadcast %95 : i32 to vector<128x1xi32>
      %169 = arith.cmpi sge, %29, %168 : vector<128x1xi32>
      %170 = vector.broadcast %98 : i32 to vector<128x1xi32>
      %171 = arith.cmpi slt, %29, %170 : vector<128x1xi32>
      %172 = arith.andi %169, %171 : vector<128x1xi1>
      %173 = vector.shape_cast %172 : vector<128x1xi1> to vector<128x1xi1>
      %174 = vector.broadcast %173 : vector<128x1xi1> to vector<128x128xi1>
      %175 = vector.broadcast %cst_18 : f32 to vector<128x128xf32>
      %176 = arith.select %174, %25, %175 : vector<128x128xi1>, vector<128x128xf32>
      %cst_50 = arith.constant dense<0xFF800000> : vector<128xf32>
      %177 = vector.multi_reduction <maximumf>, %176, %cst_50 [0] : vector<128x128xf32> to vector<128xf32>
      %178 = vector.shape_cast %177 : vector<128xf32> to vector<1x128xf32>
      %179 = vector.broadcast %98 : i32 to vector<128x1xi32>
      %180 = arith.cmpi sge, %29, %179 : vector<128x1xi32>
      %181 = vector.broadcast %101 : i32 to vector<128x1xi32>
      %182 = arith.cmpi slt, %29, %181 : vector<128x1xi32>
      %183 = arith.andi %180, %182 : vector<128x1xi1>
      %184 = vector.shape_cast %183 : vector<128x1xi1> to vector<128x1xi1>
      %185 = vector.broadcast %184 : vector<128x1xi1> to vector<128x128xi1>
      %186 = vector.broadcast %cst_18 : f32 to vector<128x128xf32>
      %187 = arith.select %185, %25, %186 : vector<128x128xi1>, vector<128x128xf32>
      %cst_51 = arith.constant dense<0xFF800000> : vector<128xf32>
      %188 = vector.multi_reduction <maximumf>, %187, %cst_51 [0] : vector<128x128xf32> to vector<128xf32>
      %189 = vector.shape_cast %188 : vector<128xf32> to vector<1x128xf32>
      %190 = tpu.concatenate %112, %123, %134, %145, %156, %167, %178, %189 in 0 : vector<1x128xf32>, vector<1x128xf32>, vector<1x128xf32>, vector<1x128xf32>, vector<1x128xf32>, vector<1x128xf32>, vector<1x128xf32>, vector<1x128xf32> -> vector<8x128xf32>
      %191 = tpu.assume_multiple %74, 8 : i32
      %192 = arith.index_cast %191 : i32 to index
      %c0_52 = arith.constant 0 : index
      %193 = vector.load %arg6[%192, %c0_52] : memref<64x128xf32, #tpu.memory_space<vmem>>, vector<8x128xf32>
      %194 = arith.maximumf %193, %190 : vector<8x128xf32>
      %195 = arith.index_cast %191 : i32 to index
      %c0_53 = arith.constant 0 : index
      %196 = vector.load %arg6[%195, %c0_53] : memref<64x128xf32, #tpu.memory_space<vmem>>, vector<8x128xf32>
      tpu.vector_store %arg6[%195, %c0_53], %194 {strides = array<i32>} : memref<64x128xf32, #tpu.memory_space<vmem>>, vector<8x128xf32>,
    }
    %41 = vector.extract_strided_slice %7 {offsets = [256, 0], sizes = [128, 128], strides = [1, 1]} : vector<512x128xf32> to vector<128x128xf32>
    %c256_i32 = arith.constant 256 : i32
    %42 = arith.addi %8, %c256_i32 : i32
    %43 = tpu.iota {dimensions = array<i32: 0>} : vector<128x1xi32>
    %44 = vector.broadcast %42 : i32 to vector<128x1xi32>
    %45 = arith.addi %44, %43 : vector<128x1xi32>
    %c4_i32_21 = arith.constant 4 : i32
    %46 = arith.muli %1, %c4_i32_21 : i32
    %c2_i32_22 = arith.constant 2 : i32
    %47 = arith.addi %46, %c2_i32_22 : i32
    %c2_i32_23 = arith.constant 2 : i32
    %48 = arith.muli %c2_i32_23, %47 : i32
    %49 = arith.index_cast %48 : i32 to index
    %50 = memref.load %arg2[%49] : memref<8xi32, #tpu.memory_space<smem>>
    %c2_i32_24 = arith.constant 2 : i32
    %51 = arith.muli %c2_i32_24, %47 : i32
    %c1_i32_25 = arith.constant 1 : i32
    %52 = arith.addi %51, %c1_i32_25 : i32
    %53 = arith.index_cast %52 : i32 to index
    %54 = memref.load %arg2[%53] : memref<8xi32, #tpu.memory_space<smem>>
    %c0_i32_26 = arith.constant 0 : i32
    %cst_27 = arith.constant 0xFF800000 : f32
    %c0_i32_28 = arith.constant 0 : i32
    %55 = arith.subi %54, %c0_i32_28 : i32
    %56 = arith.addi %c0_i32_28, %55 : i32
    %c1_i32_29 = arith.constant 1 : i32
    scf.for %arg7 = %c0_i32_28 to %56 step %c1_i32_29  : i32 {
      %73 = arith.addi %50, %arg7 : i32
      %c8_i32 = arith.constant 8 : i32
      %74 = arith.muli %73, %c8_i32 : i32
      %c0_i32_38 = arith.constant 0 : i32
      %75 = arith.addi %74, %c0_i32_38 : i32
      %76 = arith.index_cast %75 : i32 to index
      %77 = memref.load %arg3[%76] : memref<65xi32, #tpu.memory_space<smem>>
      %c1_i32_39 = arith.constant 1 : i32
      %78 = arith.addi %74, %c1_i32_39 : i32
      %79 = arith.index_cast %78 : i32 to index
      %80 = memref.load %arg3[%79] : memref<65xi32, #tpu.memory_space<smem>>
      %c2_i32_40 = arith.constant 2 : i32
      %81 = arith.addi %74, %c2_i32_40 : i32
      %82 = arith.index_cast %81 : i32 to index
      %83 = memref.load %arg3[%82] : memref<65xi32, #tpu.memory_space<smem>>
      %c3_i32_41 = arith.constant 3 : i32
      %84 = arith.addi %74, %c3_i32_41 : i32
      %85 = arith.index_cast %84 : i32 to index
      %86 = memref.load %arg3[%85] : memref<65xi32, #tpu.memory_space<smem>>
      %c4_i32_42 = arith.constant 4 : i32
      %87 = arith.addi %74, %c4_i32_42 : i32
      %88 = arith.index_cast %87 : i32 to index
      %89 = memref.load %arg3[%88] : memref<65xi32, #tpu.memory_space<smem>>
      %c5_i32 = arith.constant 5 : i32
      %90 = arith.addi %74, %c5_i32 : i32
      %91 = arith.index_cast %90 : i32 to index
      %92 = memref.load %arg3[%91] : memref<65xi32, #tpu.memory_space<smem>>
      %c6_i32 = arith.constant 6 : i32
      %93 = arith.addi %74, %c6_i32 : i32
      %94 = arith.index_cast %93 : i32 to index
      %95 = memref.load %arg3[%94] : memref<65xi32, #tpu.memory_space<smem>>
      %c7_i32 = arith.constant 7 : i32
      %96 = arith.addi %74, %c7_i32 : i32
      %97 = arith.index_cast %96 : i32 to index
      %98 = memref.load %arg3[%97] : memref<65xi32, #tpu.memory_space<smem>>
      %c8_i32_43 = arith.constant 8 : i32
      %99 = arith.addi %74, %c8_i32_43 : i32
      %100 = arith.index_cast %99 : i32 to index
      %101 = memref.load %arg3[%100] : memref<65xi32, #tpu.memory_space<smem>>
      %102 = vector.broadcast %77 : i32 to vector<128x1xi32>
      %103 = arith.cmpi sge, %45, %102 : vector<128x1xi32>
      %104 = vector.broadcast %80 : i32 to vector<128x1xi32>
      %105 = arith.cmpi slt, %45, %104 : vector<128x1xi32>
      %106 = arith.andi %103, %105 : vector<128x1xi1>
      %107 = vector.shape_cast %106 : vector<128x1xi1> to vector<128x1xi1>
      %108 = vector.broadcast %107 : vector<128x1xi1> to vector<128x128xi1>
      %109 = vector.broadcast %cst_27 : f32 to vector<128x128xf32>
      %110 = arith.select %108, %41, %109 : vector<128x128xi1>, vector<128x128xf32>
      %cst_44 = arith.constant dense<0xFF800000> : vector<128xf32>
      %111 = vector.multi_reduction <maximumf>, %110, %cst_44 [0] : vector<128x128xf32> to vector<128xf32>
      %112 = vector.shape_cast %111 : vector<128xf32> to vector<1x128xf32>
      %113 = vector.broadcast %80 : i32 to vector<128x1xi32>
      %114 = arith.cmpi sge, %45, %113 : vector<128x1xi32>
      %115 = vector.broadcast %83 : i32 to vector<128x1xi32>
      %116 = arith.cmpi slt, %45, %115 : vector<128x1xi32>
      %117 = arith.andi %114, %116 : vector<128x1xi1>
      %118 = vector.shape_cast %117 : vector<128x1xi1> to vector<128x1xi1>
      %119 = vector.broadcast %118 : vector<128x1xi1> to vector<128x128xi1>
      %120 = vector.broadcast %cst_27 : f32 to vector<128x128xf32>
      %121 = arith.select %119, %41, %120 : vector<128x128xi1>, vector<128x128xf32>
      %cst_45 = arith.constant dense<0xFF800000> : vector<128xf32>
      %122 = vector.multi_reduction <maximumf>, %121, %cst_45 [0] : vector<128x128xf32> to vector<128xf32>
      %123 = vector.shape_cast %122 : vector<128xf32> to vector<1x128xf32>
      %124 = vector.broadcast %83 : i32 to vector<128x1xi32>
      %125 = arith.cmpi sge, %45, %124 : vector<128x1xi32>
      %126 = vector.broadcast %86 : i32 to vector<128x1xi32>
      %127 = arith.cmpi slt, %45, %126 : vector<128x1xi32>
      %128 = arith.andi %125, %127 : vector<128x1xi1>
      %129 = vector.shape_cast %128 : vector<128x1xi1> to vector<128x1xi1>
      %130 = vector.broadcast %129 : vector<128x1xi1> to vector<128x128xi1>
      %131 = vector.broadcast %cst_27 : f32 to vector<128x128xf32>
      %132 = arith.select %130, %41, %131 : vector<128x128xi1>, vector<128x128xf32>
      %cst_46 = arith.constant dense<0xFF800000> : vector<128xf32>
      %133 = vector.multi_reduction <maximumf>, %132, %cst_46 [0] : vector<128x128xf32> to vector<128xf32>
      %134 = vector.shape_cast %133 : vector<128xf32> to vector<1x128xf32>
      %135 = vector.broadcast %86 : i32 to vector<128x1xi32>
      %136 = arith.cmpi sge, %45, %135 : vector<128x1xi32>
      %137 = vector.broadcast %89 : i32 to vector<128x1xi32>
      %138 = arith.cmpi slt, %45, %137 : vector<128x1xi32>
      %139 = arith.andi %136, %138 : vector<128x1xi1>
      %140 = vector.shape_cast %139 : vector<128x1xi1> to vector<128x1xi1>
      %141 = vector.broadcast %140 : vector<128x1xi1> to vector<128x128xi1>
      %142 = vector.broadcast %cst_27 : f32 to vector<128x128xf32>
      %143 = arith.select %141, %41, %142 : vector<128x128xi1>, vector<128x128xf32>
      %cst_47 = arith.constant dense<0xFF800000> : vector<128xf32>
      %144 = vector.multi_reduction <maximumf>, %143, %cst_47 [0] : vector<128x128xf32> to vector<128xf32>
      %145 = vector.shape_cast %144 : vector<128xf32> to vector<1x128xf32>
      %146 = vector.broadcast %89 : i32 to vector<128x1xi32>
      %147 = arith.cmpi sge, %45, %146 : vector<128x1xi32>
      %148 = vector.broadcast %92 : i32 to vector<128x1xi32>
      %149 = arith.cmpi slt, %45, %148 : vector<128x1xi32>
      %150 = arith.andi %147, %149 : vector<128x1xi1>
      %151 = vector.shape_cast %150 : vector<128x1xi1> to vector<128x1xi1>
      %152 = vector.broadcast %151 : vector<128x1xi1> to vector<128x128xi1>
      %153 = vector.broadcast %cst_27 : f32 to vector<128x128xf32>
      %154 = arith.select %152, %41, %153 : vector<128x128xi1>, vector<128x128xf32>
      %cst_48 = arith.constant dense<0xFF800000> : vector<128xf32>
      %155 = vector.multi_reduction <maximumf>, %154, %cst_48 [0] : vector<128x128xf32> to vector<128xf32>
      %156 = vector.shape_cast %155 : vector<128xf32> to vector<1x128xf32>
      %157 = vector.broadcast %92 : i32 to vector<128x1xi32>
      %158 = arith.cmpi sge, %45, %157 : vector<128x1xi32>
      %159 = vector.broadcast %95 : i32 to vector<128x1xi32>
      %160 = arith.cmpi slt, %45, %159 : vector<128x1xi32>
      %161 = arith.andi %158, %160 : vector<128x1xi1>
      %162 = vector.shape_cast %161 : vector<128x1xi1> to vector<128x1xi1>
      %163 = vector.broadcast %162 : vector<128x1xi1> to vector<128x128xi1>
      %164 = vector.broadcast %cst_27 : f32 to vector<128x128xf32>
      %165 = arith.select %163, %41, %164 : vector<128x128xi1>, vector<128x128xf32>
      %cst_49 = arith.constant dense<0xFF800000> : vector<128xf32>
      %166 = vector.multi_reduction <maximumf>, %165, %cst_49 [0] : vector<128x128xf32> to vector<128xf32>
      %167 = vector.shape_cast %166 : vector<128xf32> to vector<1x128xf32>
      %168 = vector.broadcast %95 : i32 to vector<128x1xi32>
      %169 = arith.cmpi sge, %45, %168 : vector<128x1xi32>
      %170 = vector.broadcast %98 : i32 to vector<128x1xi32>
      %171 = arith.cmpi slt, %45, %170 : vector<128x1xi32>
      %172 = arith.andi %169, %171 : vector<128x1xi1>
      %173 = vector.shape_cast %172 : vector<128x1xi1> to vector<128x1xi1>
      %174 = vector.broadcast %173 : vector<128x1xi1> to vector<128x128xi1>
      %175 = vector.broadcast %cst_27 : f32 to vector<128x128xf32>
      %176 = arith.select %174, %41, %175 : vector<128x128xi1>, vector<128x128xf32>
      %cst_50 = arith.constant dense<0xFF800000> : vector<128xf32>
      %177 = vector.multi_reduction <maximumf>, %176, %cst_50 [0] : vector<128x128xf32> to vector<128xf32>
      %178 = vector.shape_cast %177 : vector<128xf32> to vector<1x128xf32>
      %179 = vector.broadcast %98 : i32 to vector<128x1xi32>
      %180 = arith.cmpi sge, %45, %179 : vector<128x1xi32>
      %181 = vector.broadcast %101 : i32 to vector<128x1xi32>
      %182 = arith.cmpi slt, %45, %181 : vector<128x1xi32>
      %183 = arith.andi %180, %182 : vector<128x1xi1>
      %184 = vector.shape_cast %183 : vector<128x1xi1> to vector<128x1xi1>
      %185 = vector.broadcast %184 : vector<128x1xi1> to vector<128x128xi1>
      %186 = vector.broadcast %cst_27 : f32 to vector<128x128xf32>
      %187 = arith.select %185, %41, %186 : vector<128x128xi1>, vector<128x128xf32>
      %cst_51 = arith.constant dense<0xFF800000> : vector<128xf32>
      %188 = vector.multi_reduction <maximumf>, %187, %cst_51 [0] : vector<128x128xf32> to vector<128xf32>
      %189 = vector.shape_cast %188 : vector<128xf32> to vector<1x128xf32>
      %190 = tpu.concatenate %112, %123, %134, %145, %156, %167, %178, %189 in 0 : vector<1x128xf32>, vector<1x128xf32>, vector<1x128xf32>, vector<1x128xf32>, vector<1x128xf32>, vector<1x128xf32>, vector<1x128xf32>, vector<1x128xf32> -> vector<8x128xf32>
      %191 = tpu.assume_multiple %74, 8 : i32
      %192 = arith.index_cast %191 : i32 to index
      %c0_52 = arith.constant 0 : index
      %193 = vector.load %arg6[%192, %c0_52] : memref<64x128xf32, #tpu.memory_space<vmem>>, vector<8x128xf32>
      %194 = arith.maximumf %193, %190 : vector<8x128xf32>
      %195 = arith.index_cast %191 : i32 to index
      %c0_53 = arith.constant 0 : index
      %196 = vector.load %arg6[%195, %c0_53] : memref<64x128xf32, #tpu.memory_space<vmem>>, vector<8x128xf32>
      tpu.vector_store %arg6[%195, %c0_53], %194 {strides = array<i32>} : memref<64x128xf32, #tpu.memory_space<vmem>>, vector<8x128xf32>,
    }
    %57 = vector.extract_strided_slice %7 {offsets = [384, 0], sizes = [128, 128], strides = [1, 1]} : vector<512x128xf32> to vector<128x128xf32>
    %c384_i32 = arith.constant 384 : i32
    %58 = arith.addi %8, %c384_i32 : i32
    %59 = tpu.iota {dimensions = array<i32: 0>} : vector<128x1xi32>
    %60 = vector.broadcast %58 : i32 to vector<128x1xi32>
    %61 = arith.addi %60, %59 : vector<128x1xi32>
    %c4_i32_30 = arith.constant 4 : i32
    %62 = arith.muli %1, %c4_i32_30 : i32
    %c3_i32 = arith.constant 3 : i32
    %63 = arith.addi %62, %c3_i32 : i32
    %c2_i32_31 = arith.constant 2 : i32
    %64 = arith.muli %c2_i32_31, %63 : i32
    %65 = arith.index_cast %64 : i32 to index
    %66 = memref.load %arg2[%65] : memref<8xi32, #tpu.memory_space<smem>>
    %c2_i32_32 = arith.constant 2 : i32
    %67 = arith.muli %c2_i32_32, %63 : i32
    %c1_i32_33 = arith.constant 1 : i32
    %68 = arith.addi %67, %c1_i32_33 : i32
    %69 = arith.index_cast %68 : i32 to index
    %70 = memref.load %arg2[%69] : memref<8xi32, #tpu.memory_space<smem>>
    %c0_i32_34 = arith.constant 0 : i32
    %cst_35 = arith.constant 0xFF800000 : f32
    %c0_i32_36 = arith.constant 0 : i32
    %71 = arith.subi %70, %c0_i32_36 : i32
    %72 = arith.addi %c0_i32_36, %71 : i32
    %c1_i32_37 = arith.constant 1 : i32
    scf.for %arg7 = %c0_i32_36 to %72 step %c1_i32_37  : i32 {
      %73 = arith.addi %66, %arg7 : i32
      %c8_i32 = arith.constant 8 : i32
      %74 = arith.muli %73, %c8_i32 : i32
      %c0_i32_38 = arith.constant 0 : i32
      %75 = arith.addi %74, %c0_i32_38 : i32
      %76 = arith.index_cast %75 : i32 to index
      %77 = memref.load %arg3[%76] : memref<65xi32, #tpu.memory_space<smem>>
      %c1_i32_39 = arith.constant 1 : i32
      %78 = arith.addi %74, %c1_i32_39 : i32
      %79 = arith.index_cast %78 : i32 to index
      %80 = memref.load %arg3[%79] : memref<65xi32, #tpu.memory_space<smem>>
      %c2_i32_40 = arith.constant 2 : i32
      %81 = arith.addi %74, %c2_i32_40 : i32
      %82 = arith.index_cast %81 : i32 to index
      %83 = memref.load %arg3[%82] : memref<65xi32, #tpu.memory_space<smem>>
      %c3_i32_41 = arith.constant 3 : i32
      %84 = arith.addi %74, %c3_i32_41 : i32
      %85 = arith.index_cast %84 : i32 to index
      %86 = memref.load %arg3[%85] : memref<65xi32, #tpu.memory_space<smem>>
      %c4_i32_42 = arith.constant 4 : i32
      %87 = arith.addi %74, %c4_i32_42 : i32
      %88 = arith.index_cast %87 : i32 to index
      %89 = memref.load %arg3[%88] : memref<65xi32, #tpu.memory_space<smem>>
      %c5_i32 = arith.constant 5 : i32
      %90 = arith.addi %74, %c5_i32 : i32
      %91 = arith.index_cast %90 : i32 to index
      %92 = memref.load %arg3[%91] : memref<65xi32, #tpu.memory_space<smem>>
      %c6_i32 = arith.constant 6 : i32
      %93 = arith.addi %74, %c6_i32 : i32
      %94 = arith.index_cast %93 : i32 to index
      %95 = memref.load %arg3[%94] : memref<65xi32, #tpu.memory_space<smem>>
      %c7_i32 = arith.constant 7 : i32
      %96 = arith.addi %74, %c7_i32 : i32
      %97 = arith.index_cast %96 : i32 to index
      %98 = memref.load %arg3[%97] : memref<65xi32, #tpu.memory_space<smem>>
      %c8_i32_43 = arith.constant 8 : i32
      %99 = arith.addi %74, %c8_i32_43 : i32
      %100 = arith.index_cast %99 : i32 to index
      %101 = memref.load %arg3[%100] : memref<65xi32, #tpu.memory_space<smem>>
      %102 = vector.broadcast %77 : i32 to vector<128x1xi32>
      %103 = arith.cmpi sge, %61, %102 : vector<128x1xi32>
      %104 = vector.broadcast %80 : i32 to vector<128x1xi32>
      %105 = arith.cmpi slt, %61, %104 : vector<128x1xi32>
      %106 = arith.andi %103, %105 : vector<128x1xi1>
      %107 = vector.shape_cast %106 : vector<128x1xi1> to vector<128x1xi1>
      %108 = vector.broadcast %107 : vector<128x1xi1> to vector<128x128xi1>
      %109 = vector.broadcast %cst_35 : f32 to vector<128x128xf32>
      %110 = arith.select %108, %57, %109 : vector<128x128xi1>, vector<128x128xf32>
      %cst_44 = arith.constant dense<0xFF800000> : vector<128xf32>
      %111 = vector.multi_reduction <maximumf>, %110, %cst_44 [0] : vector<128x128xf32> to vector<128xf32>
      %112 = vector.shape_cast %111 : vector<128xf32> to vector<1x128xf32>
      %113 = vector.broadcast %80 : i32 to vector<128x1xi32>
      %114 = arith.cmpi sge, %61, %113 : vector<128x1xi32>
      %115 = vector.broadcast %83 : i32 to vector<128x1xi32>
      %116 = arith.cmpi slt, %61, %115 : vector<128x1xi32>
      %117 = arith.andi %114, %116 : vector<128x1xi1>
      %118 = vector.shape_cast %117 : vector<128x1xi1> to vector<128x1xi1>
      %119 = vector.broadcast %118 : vector<128x1xi1> to vector<128x128xi1>
      %120 = vector.broadcast %cst_35 : f32 to vector<128x128xf32>
      %121 = arith.select %119, %57, %120 : vector<128x128xi1>, vector<128x128xf32>
      %cst_45 = arith.constant dense<0xFF800000> : vector<128xf32>
      %122 = vector.multi_reduction <maximumf>, %121, %cst_45 [0] : vector<128x128xf32> to vector<128xf32>
      %123 = vector.shape_cast %122 : vector<128xf32> to vector<1x128xf32>
      %124 = vector.broadcast %83 : i32 to vector<128x1xi32>
      %125 = arith.cmpi sge, %61, %124 : vector<128x1xi32>
      %126 = vector.broadcast %86 : i32 to vector<128x1xi32>
      %127 = arith.cmpi slt, %61, %126 : vector<128x1xi32>
      %128 = arith.andi %125, %127 : vector<128x1xi1>
      %129 = vector.shape_cast %128 : vector<128x1xi1> to vector<128x1xi1>
      %130 = vector.broadcast %129 : vector<128x1xi1> to vector<128x128xi1>
      %131 = vector.broadcast %cst_35 : f32 to vector<128x128xf32>
      %132 = arith.select %130, %57, %131 : vector<128x128xi1>, vector<128x128xf32>
      %cst_46 = arith.constant dense<0xFF800000> : vector<128xf32>
      %133 = vector.multi_reduction <maximumf>, %132, %cst_46 [0] : vector<128x128xf32> to vector<128xf32>
      %134 = vector.shape_cast %133 : vector<128xf32> to vector<1x128xf32>
      %135 = vector.broadcast %86 : i32 to vector<128x1xi32>
      %136 = arith.cmpi sge, %61, %135 : vector<128x1xi32>
      %137 = vector.broadcast %89 : i32 to vector<128x1xi32>
      %138 = arith.cmpi slt, %61, %137 : vector<128x1xi32>
      %139 = arith.andi %136, %138 : vector<128x1xi1>
      %140 = vector.shape_cast %139 : vector<128x1xi1> to vector<128x1xi1>
      %141 = vector.broadcast %140 : vector<128x1xi1> to vector<128x128xi1>
      %142 = vector.broadcast %cst_35 : f32 to vector<128x128xf32>
      %143 = arith.select %141, %57, %142 : vector<128x128xi1>, vector<128x128xf32>
      %cst_47 = arith.constant dense<0xFF800000> : vector<128xf32>
      %144 = vector.multi_reduction <maximumf>, %143, %cst_47 [0] : vector<128x128xf32> to vector<128xf32>
      %145 = vector.shape_cast %144 : vector<128xf32> to vector<1x128xf32>
      %146 = vector.broadcast %89 : i32 to vector<128x1xi32>
      %147 = arith.cmpi sge, %61, %146 : vector<128x1xi32>
      %148 = vector.broadcast %92 : i32 to vector<128x1xi32>
      %149 = arith.cmpi slt, %61, %148 : vector<128x1xi32>
      %150 = arith.andi %147, %149 : vector<128x1xi1>
      %151 = vector.shape_cast %150 : vector<128x1xi1> to vector<128x1xi1>
      %152 = vector.broadcast %151 : vector<128x1xi1> to vector<128x128xi1>
      %153 = vector.broadcast %cst_35 : f32 to vector<128x128xf32>
      %154 = arith.select %152, %57, %153 : vector<128x128xi1>, vector<128x128xf32>
      %cst_48 = arith.constant dense<0xFF800000> : vector<128xf32>
      %155 = vector.multi_reduction <maximumf>, %154, %cst_48 [0] : vector<128x128xf32> to vector<128xf32>
      %156 = vector.shape_cast %155 : vector<128xf32> to vector<1x128xf32>
      %157 = vector.broadcast %92 : i32 to vector<128x1xi32>
      %158 = arith.cmpi sge, %61, %157 : vector<128x1xi32>
      %159 = vector.broadcast %95 : i32 to vector<128x1xi32>
      %160 = arith.cmpi slt, %61, %159 : vector<128x1xi32>
      %161 = arith.andi %158, %160 : vector<128x1xi1>
      %162 = vector.shape_cast %161 : vector<128x1xi1> to vector<128x1xi1>
      %163 = vector.broadcast %162 : vector<128x1xi1> to vector<128x128xi1>
      %164 = vector.broadcast %cst_35 : f32 to vector<128x128xf32>
      %165 = arith.select %163, %57, %164 : vector<128x128xi1>, vector<128x128xf32>
      %cst_49 = arith.constant dense<0xFF800000> : vector<128xf32>
      %166 = vector.multi_reduction <maximumf>, %165, %cst_49 [0] : vector<128x128xf32> to vector<128xf32>
      %167 = vector.shape_cast %166 : vector<128xf32> to vector<1x128xf32>
      %168 = vector.broadcast %95 : i32 to vector<128x1xi32>
      %169 = arith.cmpi sge, %61, %168 : vector<128x1xi32>
      %170 = vector.broadcast %98 : i32 to vector<128x1xi32>
      %171 = arith.cmpi slt, %61, %170 : vector<128x1xi32>
      %172 = arith.andi %169, %171 : vector<128x1xi1>
      %173 = vector.shape_cast %172 : vector<128x1xi1> to vector<128x1xi1>
      %174 = vector.broadcast %173 : vector<128x1xi1> to vector<128x128xi1>
      %175 = vector.broadcast %cst_35 : f32 to vector<128x128xf32>
      %176 = arith.select %174, %57, %175 : vector<128x128xi1>, vector<128x128xf32>
      %cst_50 = arith.constant dense<0xFF800000> : vector<128xf32>
      %177 = vector.multi_reduction <maximumf>, %176, %cst_50 [0] : vector<128x128xf32> to vector<128xf32>
      %178 = vector.shape_cast %177 : vector<128xf32> to vector<1x128xf32>
      %179 = vector.broadcast %98 : i32 to vector<128x1xi32>
      %180 = arith.cmpi sge, %61, %179 : vector<128x1xi32>
      %181 = vector.broadcast %101 : i32 to vector<128x1xi32>
      %182 = arith.cmpi slt, %61, %181 : vector<128x1xi32>
      %183 = arith.andi %180, %182 : vector<128x1xi1>
      %184 = vector.shape_cast %183 : vector<128x1xi1> to vector<128x1xi1>
      %185 = vector.broadcast %184 : vector<128x1xi1> to vector<128x128xi1>
      %186 = vector.broadcast %cst_35 : f32 to vector<128x128xf32>
      %187 = arith.select %185, %57, %186 : vector<128x128xi1>, vector<128x128xf32>
      %cst_51 = arith.constant dense<0xFF800000> : vector<128xf32>
      %188 = vector.multi_reduction <maximumf>, %187, %cst_51 [0] : vector<128x128xf32> to vector<128xf32>
      %189 = vector.shape_cast %188 : vector<128xf32> to vector<1x128xf32>
      %190 = tpu.concatenate %112, %123, %134, %145, %156, %167, %178, %189 in 0 : vector<1x128xf32>, vector<1x128xf32>, vector<1x128xf32>, vector<1x128xf32>, vector<1x128xf32>, vector<1x128xf32>, vector<1x128xf32>, vector<1x128xf32> -> vector<8x128xf32>
      %191 = tpu.assume_multiple %74, 8 : i32
      %192 = arith.index_cast %191 : i32 to index
      %c0_52 = arith.constant 0 : index
      %193 = vector.load %arg6[%192, %c0_52] : memref<64x128xf32, #tpu.memory_space<vmem>>, vector<8x128xf32>
      %194 = arith.maximumf %193, %190 : vector<8x128xf32>
      %195 = arith.index_cast %191 : i32 to index
      %c0_53 = arith.constant 0 : index
      %196 = vector.load %arg6[%195, %c0_53] : memref<64x128xf32, #tpu.memory_space<vmem>>, vector<8x128xf32>
      tpu.vector_store %arg6[%195, %c0_53], %194 {strides = array<i32>} : memref<64x128xf32, #tpu.memory_space<vmem>>, vector<8x128xf32>,
    }
    return
  }
  func.func @transform_0(%arg0: i32, %arg1: i32, %arg2: memref<8xi32, #tpu.memory_space<smem>>, %arg3: memref<65xi32, #tpu.memory_space<smem>>) -> (i32, i32) {
    %c1_i32 = arith.constant 1 : i32
    %0 = arith.muli %arg0, %c1_i32 : i32
    %1 = arith.addi %0, %arg1 : i32
    %c0_i32 = arith.constant 0 : i32
    %c0_i32_0 = arith.constant 0 : i32
    return %1, %c0_i32 : i32, i32
  }
  func.func @transform_1(%arg0: i32, %arg1: i32, %arg2: memref<8xi32, #tpu.memory_space<smem>>, %arg3: memref<65xi32, #tpu.memory_space<smem>>) -> (i32, i32) {
    %c0_i32 = arith.constant 0 : i32
    %c0_i32_0 = arith.constant 0 : i32
    %c0_i32_1 = arith.constant 0 : i32
    return %c0_i32, %c0_i32_0 : i32, i32
  }
  func.func @transform_2(%arg0: i32, %arg1: i32, %arg2: memref<8xi32, #tpu.memory_space<smem>>, %arg3: memref<65xi32, #tpu.memory_space<smem>>) -> (i32, i32) {
    %c0_i32 = arith.constant 0 : i32
    %c0_i32_0 = arith.constant 0 : i32
    return %arg0, %c0_i32 : i32, i32
  }
}

</mosaic_0001>

<bundles_post_ra>
// kernel: custom-call
= control target key start
LH: loop header
LB: loop body
LE: loop exit
PB: predicated region body
PF: predicated region fallthrough
CT: control target
= control target key end

     0   :  { %s6_s0 = inlined_call_operand.vmem [shape: u32[65], index: 0, kind: output, shape index: {}]  }

// kernel: custom-call.20
= control target key start
LH: loop header
LB: loop body
LE: loop exit
PB: predicated region body
PF: predicated region fallthrough
CT: control target
= control target key end

     0   :  { %s6_s0 = inlined_call_operand.vmem [shape: f32[64,32], index: 0, kind: output, shape index: {}]  }

// kernel: _qgc_forward_padded.1
= control target key start
LH: loop header
LB: loop body
LE: loop exit
PB: predicated region body
PF: predicated region fallthrough
CT: control target
= control target key end

     0   :  { %s13227_s0 = inlined_call_operand.vmem [shape: s32[8], index: 0, kind: input, shape index: {}]   ;;  %s13228_s2 = inlined_call_operand.vmem [shape: f32[512,24], index: 2, kind: input, shape index: {}]   ;;  %s13229_s3 = inlined_call_operand.vmem [shape: f32[24,128], index: 3, kind: input, shape index: {}]   ;;  %s13230_s4 = inlined_call_operand.vmem [shape: f32[64,128], index: 4, kind: output, shape index: {}]   ;;  %s13231_s1 = inlined_call_operand.vmem [shape: s32[65], index: 1, kind: input, shape index: {}]  }
   0x1   :  { %s9_s17 = sshll.u32 %s13227_s0, 4  ;;  %s13_s20 = sshll.u32 %s13231_s1, 4  ;;  %s10_s17 = int_to_ptr.vmem [resolvable:$true] %s9_s17  ;;  %s14_s20 = int_to_ptr.vmem [resolvable:$true] %s13_s20 }
   0x2   :  { %s5095_s21 = scalar_lea.vmem %s10_s17, 16  ;;  %p5100_p1 = scmp.lt.s32.totalorder %s10_s17, %s10_s17 }
   0x3   :  { %p5096_p0 = scmp.ne.s32.totalorder %s10_s17, %s5095_s21  ;;  %p5101_p2 = scmp.lt.s32.totalorder %s5095_s21, %s5095_s21 }
   0x5   :  { %p5102_p3 = por %p5101_p2, %p5100_p1 }
   0x7   :  { %p5103_p4 = pnand %p5102_p3, %p5096_p0 }
   0x9   :  { %5106 = shalt.err (!%p5103_p4)  }
   0xa   :  { %s5153_s22 = smov [#allocation3]   ;;  %s5107_s23 = scalar_lea.vmem %s14_s20, 16 }
   0xb   :  { %12 = dma.vmem_to_smem %s10_s17, 16, %s5153_s22, [#allocation2] }
   0xc   :  { %p5108_p5 = scmp.ne.s32.totalorder %s14_s20, %s5107_s23  ;;  %p5112_p6 = scmp.lt.s32.totalorder %s14_s20, %s14_s20 }
   0xd   :  { %p5113_p7 = scmp.lt.s32.totalorder %s5107_s23, %s5107_s23 }
   0xf   :  { %p5114_p8 = por %p5113_p7, %p5112_p6 }
  0x11   :  { %p5115_p9 = pnand %p5114_p8, %p5108_p5 }
  0x13   :  { %5118 = shalt.err (!%p5115_p9)  }
  0x14   :  { %s5154_s0 = smov [#allocation4]  }
  0x15   :  { %16 = dma.vmem_to_smem %s14_s20, 16, %s5154_s0, [#allocation2] }
  0x16   :  { %5135 = dma.done.wait [#allocation2], 32 }
  0x17   :  { %5136 = vsyncadd [#allocation2], 4294967264 }
  0x18   :  { %18 = sfence }
  0x19   :  { %v124_v0 = vld [vmem:[%s13229_s3 + $0x10] sm:$0xff]  ;;  %v123_v1 = vld [vmem:[%s13229_s3 + $0x8] sm:$0xff]  ;;  %v5155_v2 = vmov -inf   ;;  %v122_v3 = vld [vmem:[%s13229_s3] sm:$0xff]  ;;  %vm125_vm0 = vcmask 195584   ;;  %s5504_s28 = sld [smem:[#allocation3 + $0x1]] }
  0x1a   :  { %50 = vst [vmem:[%s13230_s4] sm:$0xff] %v5155_v2  ;;  %51 = vst [vmem:[%s13230_s4 + $0x8] sm:$0xff] %v5155_v2  ;;  %4952 = vmatprep.subr.mxu0 %v124_v0  ;;  %5054 = vmatprep.subr.mxu1 %v124_v0  ;;  %v58_v4 = vld [vmem:[%s13228_s2] sm:$0xff]  ;;  %v59_v6 = vld [vmem:[%s13228_s2 + $0x8] sm:$0xff] }
  0x1b   :  { %52 = vst [vmem:[%s13230_s4 + $0x10] sm:$0xff] %v5155_v2  ;;  %53 = vst [vmem:[%s13230_s4 + $0x18] sm:$0xff] %v5155_v2  ;;  %4953 = vmatpush3.msra.mxu0 %v124_v0  ;;  %5057 = vmatpush3.msra.mxu1 %v124_v0  ;;  %v90_v5 = vld [vmem:[%s13228_s2 + $0x100] sm:$0xff]  ;;  %v91_v7 = vld [vmem:[%s13228_s2 + $0x108] sm:$0xff] }
  0x1c   :  { %54 = vst [vmem:[%s13230_s4 + $0x20] sm:$0xff] %v5155_v2  ;;  %55 = vst [vmem:[%s13230_s4 + $0x28] sm:$0xff] %v5155_v2  ;;  %4954 = vmatprep.subr.mxu0 %v123_v1  ;;  %5055 = vmatprep.subr.mxu1 %v123_v1  ;;  %v60_v8 = vld [vmem:[%s13228_s2 + $0x10] sm:$0xff]  ;;  %v61_v10 = vld [vmem:[%s13228_s2 + $0x18] sm:$0xff] }
  0x1d   :  { %56 = vst [vmem:[%s13230_s4 + $0x30] sm:$0xff] %v5155_v2  ;;  %57 = vst [vmem:[%s13230_s4 + $0x38] sm:$0xff] %v5155_v2  ;;  %4955 = vmatpush3.msra.mxu0 %v123_v1  ;;  %5058 = vmatpush3.msra.mxu1 %v123_v1  ;;  %v92_v9 = vld [vmem:[%s13228_s2 + $0x110] sm:$0xff]  ;;  %v93_v11 = vld [vmem:[%s13228_s2 + $0x118] sm:$0xff] }
  0x1e   :  { %4956 = vmatprep.subr.mxu0 %v122_v3  ;;  %5056 = vmatprep.subr.mxu1 %v122_v3  ;;  %v62_v12 = vld [vmem:[%s13228_s2 + $0x20] sm:$0xff]  ;;  %v63_v14 = vld [vmem:[%s13228_s2 + $0x28] sm:$0xff]  ;;  %v64_v16 = vld [vmem:[%s13228_s2 + $0x30] sm:$0xff] }
  0x1f   :  { %4957 = vmatpush3.msra.mxu0 %v122_v3  ;;  %5059 = vmatpush3.msra.mxu1 %v122_v3  ;;  %v94_v13 = vld [vmem:[%s13228_s2 + $0x120] sm:$0xff]  ;;  %v95_v15 = vld [vmem:[%s13228_s2 + $0x128] sm:$0xff]  ;;  %v96_v17 = vld [vmem:[%s13228_s2 + $0x130] sm:$0xff]  ;;  %p4871_p10 = scmp.le.s32.totalorder %s5504_s28, 0 }
  0x20   :  { %4958 = vmatprep.mubr.msk.f32.mxu0 %vm125_vm0, %v58_v4  ;;  %5006 = vmatprep.mubr.msk.f32.mxu1 %vm125_vm0, %v90_v5  ;;  %v65_v18 = vld [vmem:[%s13228_s2 + $0x38] sm:$0xff]  ;;  %v66_v20 = vld [vmem:[%s13228_s2 + $0x40] sm:$0xff]  ;;  %v67_v22 = vld [vmem:[%s13228_s2 + $0x48] sm:$0xff]  ;;  %v704_v4 = vlaneseq  ;;  %s5656_s29 = smov (!%p4871_p10), 0  }
  0x21   :  { %4959 = vmatmul.mubr.msk.f32.vlgmr.msra.gmra.mxu0 %vm125_vm0, %v59_v6  ;;  %5007 = vmatmul.mubr.msk.f32.vlgmr.msra.gmra.mxu1 %vm125_vm0, %v91_v7  ;;  %v97_v19 = vld [vmem:[%s13228_s2 + $0x138] sm:$0xff]  ;;  %v98_v21 = vld [vmem:[%s13228_s2 + $0x140] sm:$0xff]  ;;  %v99_v23 = vld [vmem:[%s13228_s2 + $0x148] sm:$0xff] }
  0x22   :  { %4961 = vmatprep.mubr.msk.f32.mxu0 %vm125_vm0, %v60_v8  ;;  %5009 = vmatprep.mubr.msk.f32.mxu1 %vm125_vm0, %v92_v9  ;;  %v68_v24 = vld [vmem:[%s13228_s2 + $0x50] sm:$0xff]  ;;  %v69_v26 = vld [vmem:[%s13228_s2 + $0x58] sm:$0xff]  ;;  %v70_v28 = vld [vmem:[%s13228_s2 + $0x60] sm:$0xff]  ;;  %v5476_v5 = vshrl.u32 %v704_v4, 7 }
  0x23   :  { %v100_v25 = vld [vmem:[%s13228_s2 + $0x150] sm:$0xff]  ;;  %v101_v27 = vld [vmem:[%s13228_s2 + $0x158] sm:$0xff]  ;;  %v102_v29 = vld [vmem:[%s13228_s2 + $0x160] sm:$0xff] }
  0x24   :  { %v71_v30 = vld [vmem:[%s13228_s2 + $0x68] sm:$0xff]  ;;  %v72_v32 = vld [vmem:[%s13228_s2 + $0x70] sm:$0xff]  ;;  %v73_v34 = vld [vmem:[%s13228_s2 + $0x78] sm:$0xff]  ;;  %v5479_v6 = vadd.s32 8, %v5476_v5  ;;  %v5482_v7 = vadd.s32 16, %v5476_v5  ;;  %v5485_v8 = vadd.s32 24, %v5476_v5 }
  0x25   :  { %4962 = vmatmul.mubr.msk.f32.gmra.mxu0 %vm125_vm0, %v61_v10  ;;  %5010 = vmatmul.mubr.msk.f32.gmra.mxu1 %vm125_vm0, %v93_v11  ;;  %v103_v31 = vld [vmem:[%s13228_s2 + $0x168] sm:$0xff]  ;;  %v104_v33 = vld [vmem:[%s13228_s2 + $0x170] sm:$0xff]  ;;  %v105_v35 = vld [vmem:[%s13228_s2 + $0x178] sm:$0xff]  ;;  %v5488_v9 = vadd.s32 32, %v5476_v5  ;;  %v5493_v10 = vadd.s32 40, %v5476_v5  ;;  %v5496_v11 = vadd.s32 48, %v5476_v5 }
  0x26   :  { %4964 = vmatprep.mubr.msk.f32.mxu0 %vm125_vm0, %v62_v12  ;;  %5012 = vmatprep.mubr.msk.f32.mxu1 %vm125_vm0, %v94_v13  ;;  %v74_v36 = vld [vmem:[%s13228_s2 + $0x80] sm:$0xff]  ;;  %v75_v38 = vld [vmem:[%s13228_s2 + $0x88] sm:$0xff]  ;;  %v76_v40 = vld [vmem:[%s13228_s2 + $0x90] sm:$0xff]  ;;  %v5499_v12 = vadd.s32 56, %v5476_v5  ;;  %v5502_v13 = vadd.s32 64, %v5476_v5 }
  0x27   :  { %v106_v37 = vld [vmem:[%s13228_s2 + $0x180] sm:$0xff]  ;;  %v107_v39 = vld [vmem:[%s13228_s2 + $0x188] sm:$0xff]  ;;  %v108_v41 = vld [vmem:[%s13228_s2 + $0x190] sm:$0xff] }
  0x28   :  { %v77_v42 = vld [vmem:[%s13228_s2 + $0x98] sm:$0xff]  ;;  %v78_v44 = vld [vmem:[%s13228_s2 + $0xa0] sm:$0xff]  ;;  %v79_v46 = vld [vmem:[%s13228_s2 + $0xa8] sm:$0xff]  ;;  %13298 = vst [vmem:[#allocation6_spill] sm:$0xff] %v5502_v13 }
  0x29   :  { %4965 = vmatmul.mubr.msk.f32.gmra.mxu0 %vm125_vm0, %v63_v14  ;;  %5013 = vmatmul.mubr.msk.f32.gmra.mxu1 %vm125_vm0, %v95_v15  ;;  %v109_v43 = vld [vmem:[%s13228_s2 + $0x198] sm:$0xff]  ;;  %v110_v45 = vld [vmem:[%s13228_s2 + $0x1a0] sm:$0xff]  ;;  %v111_v47 = vld [vmem:[%s13228_s2 + $0x1a8] sm:$0xff]  ;;  %v5507_v14 = vadd.s32 72, %v5476_v5  ;;  %v5510_v15 = vadd.s32 80, %v5476_v5 }
  0x2a   :  { %4967 = vmatprep.mubr.msk.f32.mxu0 %vm125_vm0, %v64_v16  ;;  %5015 = vmatprep.mubr.msk.f32.mxu1 %vm125_vm0, %v96_v17  ;;  %v80_v48 = vld [vmem:[%s13228_s2 + $0xb0] sm:$0xff]  ;;  %v81_v50 = vld [vmem:[%s13228_s2 + $0xb8] sm:$0xff]  ;;  %v82_v52 = vld [vmem:[%s13228_s2 + $0xc0] sm:$0xff]  ;;  %v5513_v16 = vadd.s32 88, %v5476_v5  ;;  %v5516_v17 = vadd.s32 96, %v5476_v5 }
  0x2b   :  { %v112_v49 = vld [vmem:[%s13228_s2 + $0x1b0] sm:$0xff]  ;;  %v113_v51 = vld [vmem:[%s13228_s2 + $0x1b8] sm:$0xff]  ;;  %v114_v53 = vld [vmem:[%s13228_s2 + $0x1c0] sm:$0xff]  ;;  %13299 = vst [vmem:[#allocation7_spill] sm:$0xff] %v5507_v14 }
  0x2c   :  { %v83_v54 = vld [vmem:[%s13228_s2 + $0xc8] sm:$0xff]  ;;  %v84_v56 = vld [vmem:[%s13228_s2 + $0xd0] sm:$0xff]  ;;  %v85_v58 = vld [vmem:[%s13228_s2 + $0xd8] sm:$0xff]  ;;  %13300 = vst [vmem:[#allocation8_spill] sm:$0xff] %v5510_v15 }
  0x2d   :  { %4968 = vmatmul.mubr.msk.f32.gmra.mxu0 %vm125_vm0, %v65_v18  ;;  %5016 = vmatmul.mubr.msk.f32.gmra.mxu1 %vm125_vm0, %v97_v19  ;;  %v115_v55 = vld [vmem:[%s13228_s2 + $0x1c8] sm:$0xff]  ;;  %v116_v57 = vld [vmem:[%s13228_s2 + $0x1d0] sm:$0xff]  ;;  %v117_v59 = vld [vmem:[%s13228_s2 + $0x1d8] sm:$0xff]  ;;  %13301 = vst [vmem:[#allocation9_spill] sm:$0xff] %v5513_v16  ;;  %v5519_v18 = vadd.s32 104, %v5476_v5  ;;  %v5522_v19 = vadd.s32 112, %v5476_v5 }
  0x2e   :  { %4970 = vmatprep.mubr.msk.f32.mxu0 %vm125_vm0, %v66_v20  ;;  %5018 = vmatprep.mubr.msk.f32.mxu1 %vm125_vm0, %v98_v21  ;;  %v86_v60 = vld [vmem:[%s13228_s2 + $0xe0] sm:$0xff]  ;;  %v87_v62 = vld [vmem:[%s13228_s2 + $0xe8] sm:$0xff]  ;;  %v88_v0 = vld [vmem:[%s13228_s2 + $0xf0] sm:$0xff]  ;;  %13302 = vst [vmem:[#allocation10_spill] sm:$0xff] %v5516_v17  ;;  %v5525_v20 = vadd.s32 120, %v5476_v5 }
  0x2f   :  { %v118_v61 = vld [vmem:[%s13228_s2 + $0x1e0] sm:$0xff]  ;;  %v119_v63 = vld [vmem:[%s13228_s2 + $0x1e8] sm:$0xff]  ;;  %v120_v1 = vld [vmem:[%s13228_s2 + $0x1f0] sm:$0xff]  ;;  %13303 = vst [vmem:[#allocation11_spill] sm:$0xff] %v5519_v18 }
  0x30   :  { %v89_v2 = vld [vmem:[%s13228_s2 + $0xf8] sm:$0xff]  ;;  %13304 = vst [vmem:[#allocation12_spill] sm:$0xff] %v5522_v19  ;;  %13305 = vst [vmem:[#allocation13_spill] sm:$0xff] %v5525_v20 }
  0x31   :  { %4971 = vmatmul.mubr.msk.f32.gmra.mxu0 %vm125_vm0, %v67_v22  ;;  %5019 = vmatmul.mubr.msk.f32.gmra.mxu1 %vm125_vm0, %v99_v23  ;;  %v121_v3 = vld [vmem:[%s13228_s2 + $0x1f8] sm:$0xff]  ;;  %s5490_s2 = sld [smem:[#allocation3]] }
  0x32   :  { %4973 = vmatprep.mubr.msk.f32.mxu0 %vm125_vm0, %v68_v24  ;;  %5021 = vmatprep.mubr.msk.f32.mxu1 %vm125_vm0, %v100_v25 }
  0x35   :  { %4974 = vmatmul.mubr.msk.f32.gmra.mxu0 %vm125_vm0, %v69_v26  ;;  %5022 = vmatmul.mubr.msk.f32.gmra.mxu1 %vm125_vm0, %v101_v27 }
  0x36   :  { %4976 = vmatprep.mubr.msk.f32.mxu0 %vm125_vm0, %v70_v28  ;;  %5024 = vmatprep.mubr.msk.f32.mxu1 %vm125_vm0, %v102_v29 }
  0x39   :  { %4977 = vmatmul.mubr.msk.f32.gmra.mxu0 %vm125_vm0, %v71_v30  ;;  %5025 = vmatmul.mubr.msk.f32.gmra.mxu1 %vm125_vm0, %v103_v31 }
  0x3a   :  { %4979 = vmatprep.mubr.msk.f32.mxu0 %vm125_vm0, %v72_v32  ;;  %5027 = vmatprep.mubr.msk.f32.mxu1 %vm125_vm0, %v104_v33 }
  0x3d   :  { %4980 = vmatmul.mubr.msk.f32.gmra.mxu0 %vm125_vm0, %v73_v34  ;;  %5028 = vmatmul.mubr.msk.f32.gmra.mxu1 %vm125_vm0, %v105_v35 }
  0x3e   :  { %4982 = vmatprep.mubr.msk.f32.mxu0 %vm125_vm0, %v74_v36  ;;  %5030 = vmatprep.mubr.msk.f32.mxu1 %vm125_vm0, %v106_v37 }
  0x41   :  { %4983 = vmatmul.mubr.msk.f32.gmra.mxu0 %vm125_vm0, %v75_v38  ;;  %5031 = vmatmul.mubr.msk.f32.gmra.mxu1 %vm125_vm0, %v107_v39 }
  0x42   :  { %4985 = vmatprep.mubr.msk.f32.mxu0 %vm125_vm0, %v76_v40  ;;  %5033 = vmatprep.mubr.msk.f32.mxu1 %vm125_vm0, %v108_v41 }
  0x45   :  { %4986 = vmatmul.mubr.msk.f32.gmra.mxu0 %vm125_vm0, %v77_v42  ;;  %5034 = vmatmul.mubr.msk.f32.gmra.mxu1 %vm125_vm0, %v109_v43 }
  0x46   :  { %4988 = vmatprep.mubr.msk.f32.mxu0 %vm125_vm0, %v78_v44  ;;  %5036 = vmatprep.mubr.msk.f32.mxu1 %vm125_vm0, %v110_v45 }
  0x49   :  { %4989 = vmatmul.mubr.msk.f32.gmra.mxu0 %vm125_vm0, %v79_v46  ;;  %5037 = vmatmul.mubr.msk.f32.gmra.mxu1 %vm125_vm0, %v111_v47 }
  0x4a   :  { %4991 = vmatprep.mubr.msk.f32.mxu0 %vm125_vm0, %v80_v48  ;;  %5039 = vmatprep.mubr.msk.f32.mxu1 %vm125_vm0, %v112_v49 }
  0x4d   :  { %4992 = vmatmul.mubr.msk.f32.gmra.mxu0 %vm125_vm0, %v81_v50  ;;  %5040 = vmatmul.mubr.msk.f32.gmra.mxu1 %vm125_vm0, %v113_v51 }
  0x4e   :  { %4994 = vmatprep.mubr.msk.f32.mxu0 %vm125_vm0, %v82_v52  ;;  %5042 = vmatprep.mubr.msk.f32.mxu1 %vm125_vm0, %v114_v53 }
  0x51   :  { %4995 = vmatmul.mubr.msk.f32.gmra.mxu0 %vm125_vm0, %v83_v54  ;;  %5043 = vmatmul.mubr.msk.f32.gmra.mxu1 %vm125_vm0, %v115_v55 }
  0x52   :  { %4997 = vmatprep.mubr.msk.f32.mxu0 %vm125_vm0, %v84_v56  ;;  %5045 = vmatprep.mubr.msk.f32.mxu1 %vm125_vm0, %v116_v57 }
  0x55   :  { %4998 = vmatmul.mubr.msk.f32.gmra.mxu0 %vm125_vm0, %v85_v58  ;;  %5046 = vmatmul.mubr.msk.f32.gmra.mxu1 %vm125_vm0, %v117_v59 }
  0x56   :  { %5000 = vmatprep.mubr.msk.f32.mxu0 %vm125_vm0, %v86_v60  ;;  %5048 = vmatprep.mubr.msk.f32.mxu1 %vm125_vm0, %v118_v61 }
  0x59   :  { %5001 = vmatmul.mubr.msk.f32.gmra.mxu0 %vm125_vm0, %v87_v62  ;;  %5049 = vmatmul.mubr.msk.f32.gmra.mxu1 %vm125_vm0, %v119_v63 }
  0x5a   :  { %5003 = vmatprep.mubr.msk.f32.mxu0 %vm125_vm0, %v88_v0  ;;  %5051 = vmatprep.mubr.msk.f32.mxu1 %vm125_vm0, %v120_v1 }
  0x5d   :  { %5004 = vmatmul.mubr.msk.f32.gmra.mxu0 %vm125_vm0, %v89_v2  ;;  %5052 = vmatmul.mubr.msk.f32.gmra.mxu1 %vm125_vm0, %v121_v3 }
  0xe1   :  { %v5527_v21 = vpop.f32.mrf.mxu0  ;;  %v5529_v22 = vpop.f32.mrf.mxu1 }
  0xe2   :  { %13306 = vst [vmem:[#allocation14_spill] sm:$0xff] %v5527_v21  ;;  %13307 = vst [vmem:[#allocation15_spill] sm:$0xff] %v5529_v22 }
  0xe3   :  { %v5531_v23 = vpop.f32.mrf.mxu0  ;;  %v5533_v24 = vpop.f32.mrf.mxu1 }
  0xe4   :  { %13308 = vst [vmem:[#allocation16_spill] sm:$0xff] %v5531_v23  ;;  %13309 = vst [vmem:[#allocation17_spill] sm:$0xff] %v5533_v24 }
  0xe5   :  { %v5535_v25 = vpop.f32.mrf.mxu0  ;;  %v5537_v26 = vpop.f32.mrf.mxu1 }
  0xe6   :  { %13310 = vst [vmem:[#allocation18_spill] sm:$0xff] %v5535_v25  ;;  %13311 = vst [vmem:[#allocation19_spill] sm:$0xff] %v5537_v26 }
  0xe7   :  { %v5539_v27 = vpop.f32.mrf.mxu0  ;;  %v5541_v28 = vpop.f32.mrf.mxu1 }
  0xe8   :  { %13312 = vst [vmem:[#allocation20_spill] sm:$0xff] %v5539_v27  ;;  %13313 = vst [vmem:[#allocation21_spill] sm:$0xff] %v5541_v28 }
  0xe9   :  { %v5543_v29 = vpop.f32.mrf.mxu0  ;;  %v5545_v30 = vpop.f32.mrf.mxu1 }
  0xea   :  { %13314 = vst [vmem:[#allocation22_spill] sm:$0xff] %v5543_v29  ;;  %13315 = vst [vmem:[#allocation23_spill] sm:$0xff] %v5545_v30 }
  0xeb   :  { %v5547_v31 = vpop.f32.mrf.mxu0  ;;  %v5549_v32 = vpop.f32.mrf.mxu1 }
  0xec   :  { %13316 = vst [vmem:[#allocation24_spill] sm:$0xff] %v5547_v31  ;;  %13317 = vst [vmem:[#allocation25_spill] sm:$0xff] %v5549_v32 }
  0xed   :  { %v5551_v33 = vpop.f32.mrf.mxu0  ;;  %v5553_v34 = vpop.f32.mrf.mxu1 }
  0xee   :  { %13318 = vst [vmem:[#allocation26_spill] sm:$0xff] %v5553_v34 }
  0xef   :  { %v5555_v35 = vpop.f32.mrf.mxu0  ;;  %v5557_v36 = vpop.f32.mrf.mxu1 }
  0xf0   :  { %13319 = vst [vmem:[#allocation27_spill] sm:$0xff] %v5557_v36 }
  0xf1   :  { %v5559_v37 = vpop.f32.mrf.mxu0  ;;  %v5561_v38 = vpop.f32.mrf.mxu1 }
  0xf2   :  { %13320 = vst [vmem:[#allocation28_spill] sm:$0xff] %v5561_v38 }
  0xf3   :  { %v5563_v39 = vpop.f32.mrf.mxu0  ;;  %v5565_v40 = vpop.f32.mrf.mxu1 }
  0xf4   :  { %13321 = vst [vmem:[#allocation29_spill] sm:$0xff] %v5565_v40 }
  0xf5   :  { %v5567_v41 = vpop.f32.mrf.mxu0  ;;  %v5569_v42 = vpop.f32.mrf.mxu1 }
  0xf6   :  { %13322 = vst [vmem:[#allocation30_spill] sm:$0xff] %v5569_v42 }
  0xf7   :  { %v5571_v43 = vpop.f32.mrf.mxu0  ;;  %v5573_v44 = vpop.f32.mrf.mxu1 }
  0xf8   :  { %13323 = vst [vmem:[#allocation31_spill] sm:$0xff] %v5573_v44 }
  0xf9   :  { %v5575_v45 = vpop.f32.mrf.mxu0  ;;  %v5577_v46 = vpop.f32.mrf.mxu1 }
  0xfa   :  { %13324 = vst [vmem:[#allocation32_spill] sm:$0xff] %v5577_v46 }
  0xfb   :  { %v5579_v47 = vpop.f32.mrf.mxu0  ;;  %v5581_v48 = vpop.f32.mrf.mxu1 }
  0xfc   :  { %13325 = vst [vmem:[#allocation33_spill] sm:$0xff] %v5581_v48 }
  0xfd   :  { %v5583_v49 = vpop.f32.mrf.mxu0  ;;  %v5585_v50 = vpop.f32.mrf.mxu1 }
  0xfe   :  { %13326 = vst [vmem:[#allocation34_spill] sm:$0xff] %v5585_v50 }
  0xff   :  { %v5587_v51 = vpop.f32.mrf.mxu0  ;;  %v5589_v52 = vpop.f32.mrf.mxu1 }
 0x100   :  { %13327 = vst [vmem:[#allocation35_spill] sm:$0xff] %v5589_v52 }
 0x101   :  { %v5591_v53 = vpop.f32.mrf.mxu0  ;;  %v5593_v54 = vpop.f32.mrf.mxu1 }
 0x102   :  { %13328 = vst [vmem:[#allocation36_spill] sm:$0xff] %v5593_v54 }
 0x103   :  { %v5595_v55 = vpop.f32.mrf.mxu0  ;;  %v5597_v56 = vpop.f32.mrf.mxu1 }
 0x104   :  { %13329 = vst [vmem:[#allocation37_spill] sm:$0xff] %v5597_v56 }
 0x105   :  { %v5599_v57 = vpop.f32.mrf.mxu0  ;;  %v5601_v58 = vpop.f32.mrf.mxu1 }
 0x106   :  { %13330 = vst [vmem:[#allocation38_spill] sm:$0xff] %v5601_v58 }
 0x107   :  { %v5603_v59 = vpop.f32.mrf.mxu0  ;;  %v5605_v60 = vpop.f32.mrf.mxu1 }
 0x108   :  { %13331 = vst [vmem:[#allocation39_spill] sm:$0xff] %v5605_v60 }
 0x109   :  { %v5607_v61 = vpop.f32.mrf.mxu0  ;;  %v5609_v62 = vpop.f32.mrf.mxu1 }
 0x10a   :  { %13332 = vst [vmem:[#allocation40_spill] sm:$0xff] %v5609_v62 }
 0x10b   :  { %v5611_v63 = vpop.f32.mrf.mxu0  ;;  %v5613_v0 = vpop.f32.mrf.mxu1 }
 0x10c   :  { %13333 = vst [vmem:[#allocation41_spill] sm:$0xff] %v5613_v0 }
 0x10d   :  { %v5615_v1 = vpop.f32.mrf.mxu0  ;;  %v5617_v2 = vpop.f32.mrf.mxu1 }
 0x10e   :  { %13334 = vst [vmem:[#allocation42_spill] sm:$0xff] %v5615_v1  ;;  %13335 = vst [vmem:[#allocation43_spill] sm:$0xff] %v5617_v2 }
 0x10f   :  { %v5619_v3 = vpop.f32.mrf.mxu0  ;;  %v5621_v4 = vpop.f32.mrf.mxu1 }
 0x110   :  { %13336 = vst [vmem:[#allocation44_spill] sm:$0xff] %v5619_v3  ;;  %13337 = vst [vmem:[#allocation45_spill] sm:$0xff] %v5621_v4 }
 0x111   :  { %v5623_v58 = vpop.f32.mrf.mxu0  ;;  %v5625_v54 = vpop.f32.mrf.mxu1 }
 0x112   :  { %13338 = vst [vmem:[#allocation46_spill] sm:$0xff] %v5623_v58  ;;  %13339 = vst [vmem:[#allocation47_spill] sm:$0xff] %v5625_v54 }
 0x113   :  { %v5627_v60 = vpop.f32.mrf.mxu0  ;;  %v5629_v56 = vpop.f32.mrf.mxu1 }
 0x114   :  { %13340 = vst [vmem:[#allocation48_spill] sm:$0xff] %v5627_v60  ;;  %13341 = vst [vmem:[#allocation49_spill] sm:$0xff] %v5629_v56 }
 0x115   :  { %v5631_v62 = vpop.f32.mrf.mxu0  ;;  %v5633_v50 = vpop.f32.mrf.mxu1 }
 0x116   :  { %13342 = vst [vmem:[#allocation50_spill] sm:$0xff] %v5631_v62  ;;  %13343 = vst [vmem:[#allocation51_spill] sm:$0xff] %v5633_v50 }
 0x117   :  { %v5635_v0 = vpop.f32.mrf.mxu0  ;;  %v5637_v52 = vpop.f32.mrf.mxu1 }
 0x118   :  { %13344 = vst [vmem:[#allocation52_spill] sm:$0xff] %v5635_v0  ;;  %13345 = vst [vmem:[#allocation53_spill] sm:$0xff] %v5637_v52 }
 0x119   :  { %v5639_v2 = vpop.f32.mrf.mxu0  ;;  %v5641_v46 = vpop.f32.mrf.mxu1 }
 0x11a   :  { %13346 = vst [vmem:[#allocation54_spill] sm:$0xff] %v5639_v2  ;;  %13347 = vst [vmem:[#allocation55_spill] sm:$0xff] %v5641_v46 }
 0x11b   :  { %v5643_v4 = vpop.f32.mrf.mxu0  ;;  %v5645_v48 = vpop.f32.mrf.mxu1 }
 0x11c   :  { %13348 = vst [vmem:[#allocation56_spill] sm:$0xff] %v5643_v4  ;;  %13349 = vst [vmem:[#allocation57_spill] sm:$0xff] %v5645_v48  ;;  %4788 = sbr.rel (%p4871_p10) target bundleno = 456 (0x1c8), region = 61 }
 0x11d   :  { %v5647_v54 = vpop.f32.mrf.mxu0  ;;  %v5649_v42 = vpop.f32.mrf.mxu1 }
 0x11e   :  { %13350 = vst [vmem:[#allocation58_spill] sm:$0xff] %v5647_v54  ;;  %13351 = vst [vmem:[#allocation59_spill] sm:$0xff] %v5649_v42 }
 0x11f   :  { %v5651_v56 = vpop.f32.mrf.mxu0  ;;  %v5653_v44 = vpop.f32.mrf.mxu1 }
 0x120   :  { %13352 = vst [vmem:[#allocation60_spill] sm:$0xff] %v5651_v56  ;;  %13353 = vst [vmem:[#allocation61_spill] sm:$0xff] %v5653_v44 }
 0x121 LB: > { %v13354_v31 = vld [vmem:[#allocation24_spill] sm:$0xff]  ;;  %v13355_v29 = vld [vmem:[#allocation22_spill] sm:$0xff]  ;;  %s748_s30 = sadd.s32 %s5139_s29, %s5490_s2  ;;  %s745_s29 = sadd.s32 1, %s5139_s29   ;;  %s5139_s29 = sphi %s5656_s29, %s745_s29  }
 0x122   : > { %v13356_v27 = vld [vmem:[#allocation20_spill] sm:$0xff]  ;;  %v13357_v25 = vld [vmem:[#allocation18_spill] sm:$0xff]  ;;  %s5663_s5 = sshll.u32 %s748_s30, 3  ;;  %p744_p11 = scmp.ge.s32.totalorder %s745_s29, %s5504_s28 }
 0x123   : > { %v13358_v23 = vld [vmem:[#allocation16_spill] sm:$0xff]  ;;  %v13359_v21 = vld [vmem:[#allocation14_spill] sm:$0xff]  ;;  %s750_s6 = sld [smem:[#allocation4 + %s5663_s5]]  ;;  %s751_s7 = sadd.s32 1, %s5663_s5 }
 0x124   : > { %s752_s8 = sld [smem:[#allocation4 + %s751_s7]]  ;;  %s753_s9 = sadd.s32 2, %s5663_s5 }
 0x125   : > { %s755_s10 = sadd.s32 3, %s5663_s5  ;;  %s5671_s11 = sld [smem:[#allocation4 + %s753_s9]] }
 0x126   : > { %s5673_s12 = sld [smem:[#allocation4 + %s755_s10]]  ;;  %s757_s13 = sadd.s32 4, %s5663_s5 }
 0x127   : > { %s5690_s14 = sld [smem:[#allocation4 + %s757_s13]]  ;;  %s759_s15 = sadd.s32 5, %s5663_s5 }
 0x128   : > { %s6573_s16 = sld [smem:[#allocation4 + %s759_s15]]  ;;  %s761_s17 = sadd.s32 6, %s5663_s5 }
 0x129   : > { %v5669_v42 = vstv %s750_s6  ;;  %s6694_s18 = sld [smem:[#allocation4 + %s761_s17]]  ;;  %s763_s19 = sadd.s32 7, %s5663_s5 }
 0x12a   : > { %vm768_vm1 = vcmp.ge.s32.totalorder %v5476_v5, %v5669_v42  ;;  %vm769_vm2 = vcmp.ge.s32.totalorder %v5479_v6, %v5669_v42  ;;  %v5680_v44 = vstv %s752_s8  ;;  %vm770_vm3 = vcmp.ge.s32.totalorder %v5482_v7, %v5669_v42  ;;  %s6970_s20 = sld [smem:[#allocation4 + %s763_s19]]  ;;  %s765_s21 = sadd.s32 8, %s5663_s5 }
 0x12b   : > { %vm785_vm4 = vcmp.lt.s32.totalorder %v5476_v5, %v5680_v44  ;;  %vm786_vm5 = vcmp.lt.s32.totalorder %v5479_v6, %v5680_v44  ;;  %vm787_vm6 = vcmp.lt.s32.totalorder %v5482_v7, %v5680_v44  ;;  %vm771_vm7 = vcmp.ge.s32.totalorder %v5485_v8, %v5669_v42  ;;  %s7200_s22 = sld [smem:[#allocation4 + %s765_s21]]  ;;  %s1726_s3 = scalar_lea.vmem %s13230_s4, %s5663_s5 }
 0x12c   : > { %vm788_vm8 = vcmp.lt.s32.totalorder %v5485_v8, %v5680_v44  ;;  %vm5696_vm9 = vmand %vm768_vm1, %vm785_vm4  ;;  %vm772_vm10 = vcmp.ge.s32.totalorder %v5488_v9, %v5669_v42  ;;  %vm773_vm11 = vcmp.ge.s32.totalorder %v5493_v10, %v5669_v42  ;;  %vm774_vm12 = vcmp.ge.s32.totalorder %v5496_v11, %v5669_v42 }
 0x12d   : > { %vm789_vm13 = vcmp.lt.s32.totalorder %v5488_v9, %v5680_v44  ;;  %vm5708_vm14 = vmand %vm769_vm2, %vm786_vm5  ;;  %vm790_vm4 = vcmp.lt.s32.totalorder %v5493_v10, %v5680_v44  ;;  %vm791_vm15 = vcmp.lt.s32.totalorder %v5496_v11, %v5680_v44  ;;  %vm792_vm5 = vcmp.lt.s32.totalorder %v5499_v12, %v5680_v44 }
 0x12e   : > { %vm5723_vm2 = vmand %vm770_vm3, %vm787_vm6  ;;  %vm781_vm6 = vcmp.ge.s32.totalorder %v5519_v18, %v5669_v42  ;;  %vm794_vm0 = vcmp.lt.s32.totalorder %v5507_v14, %v5680_v44  ;;  %v5775_v34 = vstv %s5671_s11  ;;  %v5778_v36 = vstv %s5673_s12 }
 0x12f   : > { %vm5741_vm3 = vmand %vm771_vm7, %vm788_vm8  ;;  %vm793_vm8 = vcmp.lt.s32.totalorder %v5502_v13, %v5680_v44  ;;  %v849_v26 = vsel %vm5696_vm9, %v13358_v23, -inf  ;;  %v850_v28 = vsel %vm5708_vm14, %v13359_v21, -inf  ;;  %v851_v46 = vsel %vm5723_vm2, %v13356_v27, -inf }
 0x130   : > { %vm5759_vm7 = vmand %vm772_vm10, %vm789_vm13  ;;  %vm795_vm10 = vcmp.lt.s32.totalorder %v5510_v15, %v5680_v44  ;;  %v852_v48 = vsel %vm5741_vm3, %v13357_v25, -inf  ;;  %vm796_vm9 = vcmp.lt.s32.totalorder %v5513_v16, %v5680_v44  ;;  %vm13377_vm14 = vcmp.ge.s32.totalorder %v5502_v13, %v5669_v42 }
 0x131   : > { %vm5770_vm1 = vmand %vm773_vm11, %vm790_vm4  ;;  %v853_v32 = vsel %vm5759_vm7, %v13354_v31, -inf  ;;  %vm13374_vm11 = vcmp.ge.s32.totalorder %v5499_v12, %v5669_v42  ;;  %v5835_v40 = vstv %s5690_s14  ;;  %vm799_vm2 = vcmp.lt.s32.totalorder %v5522_v19, %v5680_v44 }
 0x132   : > { %vm5785_vm13 = vmand %vm774_vm12, %vm791_vm15  ;;  %v854_v38 = vsel %vm5770_vm1, %v13355_v29, -inf  ;;  %vm797_vm12 = vcmp.lt.s32.totalorder %v5516_v17, %v5680_v44  ;;  %vm798_vm1 = vcmp.lt.s32.totalorder %v5519_v18, %v5680_v44  ;;  %vm13380_vm3 = vcmp.ge.s32.totalorder %v5507_v14, %v5669_v42 }
 0x133   : > { %vm5801_vm4 = vmand %vm13374_vm11, %vm792_vm5  ;;  %v855_v24 = vsel %vm5785_vm13, %v5555_v35, -inf  ;;  %vm800_vm5 = vcmp.lt.s32.totalorder %v5525_v20, %v5680_v44  ;;  %v865_v52 = vmax.f32 %v849_v26, %v853_v32  ;;  %v866_v2 = vmax.f32 %v850_v28, %v854_v38 }
 0x134   : > { %vm5827_vm15 = vmand %vm13377_vm14, %vm793_vm8  ;;  %v856_v30 = vsel %vm5801_vm4, %v5551_v33, -inf  ;;  %vm13383_vm8 = vcmp.ge.s32.totalorder %v5510_v15, %v5669_v42  ;;  %v867_v4 = vmax.f32 %v851_v46, %v855_v24  ;;  %vm887_vm4 = vcmp.ge.s32.totalorder %v5479_v6, %v5680_v44 }
 0x135   : > { %vm5849_vm7 = vmand %vm13380_vm3, %vm794_vm0  ;;  %v857_v56 = vsel %vm5827_vm15, %v5563_v39, -inf  ;;  %v868_v62 = vmax.f32 %v852_v48, %v856_v30  ;;  %vm13386_vm0 = vcmp.ge.s32.totalorder %v5513_v16, %v5669_v42  ;;  %vm888_vm15 = vcmp.ge.s32.totalorder %v5482_v7, %v5680_v44 }
 0x136   : > { %vm5859_vm13 = vmand %vm13383_vm8, %vm795_vm10  ;;  %v858_v32 = vsel %vm5849_vm7, %v5559_v37, -inf  ;;  %vm886_vm10 = vcmp.ge.s32.totalorder %v5476_v5, %v5680_v44  ;;  %vm889_vm3 = vcmp.ge.s32.totalorder %v5485_v8, %v5680_v44  ;;  %vm890_vm7 = vcmp.ge.s32.totalorder %v5488_v9, %v5680_v44 }
 0x137   : > { %vm5872_vm11 = vmand %vm13386_vm0, %vm796_vm9  ;;  %v859_v28 = vsel %vm5859_vm13, %v5571_v43, -inf  ;;  %vm13389_vm9 = vcmp.ge.s32.totalorder %v5516_v17, %v5669_v42  ;;  %v869_v48 = vmax.f32 %v865_v52, %v857_v56  ;;  %vm891_vm8 = vcmp.ge.s32.totalorder %v5493_v10, %v5680_v44 }
 0x138   : > { %vm5892_vm14 = vmand %vm13389_vm9, %vm797_vm12  ;;  %v860_v54 = vsel %vm5872_vm11, %v5567_v41, -inf  ;;  %vm903_vm0 = vcmp.lt.s32.totalorder %v5476_v5, %v5775_v34  ;;  %vm13394_vm11 = vcmp.ge.s32.totalorder %v5522_v19, %v5669_v42  ;;  %v870_v56 = vmax.f32 %v866_v2, %v858_v32 }
 0x139   : > { %vm5911_vm12 = vmand %vm781_vm6, %vm798_vm1  ;;  %v871_v50 = vmax.f32 %v867_v4, %v859_v28  ;;  %v872_v30 = vmax.f32 %v868_v62, %v860_v54  ;;  %vm904_vm1 = vcmp.lt.s32.totalorder %v5479_v6, %v5775_v34  ;;  %vm13397_vm9 = vcmp.ge.s32.totalorder %v5525_v20, %v5669_v42 }
 0x13a   : > { %vm5927_vm6 = vmand %vm13394_vm11, %vm799_vm2  ;;  %v861_v52 = vsel %vm5892_vm14, %v5579_v47, -inf  ;;  %v862_v62 = vsel %vm5911_vm12, %v5575_v45, -inf  ;;  %vm905_vm2 = vcmp.lt.s32.totalorder %v5482_v7, %v5775_v34  ;;  %vm906_vm12 = vcmp.lt.s32.totalorder %v5485_v8, %v5775_v34 }
 0x13b   : > { %vm5939_vm13 = vmand %vm13397_vm9, %vm800_vm5  ;;  %v863_v2 = vsel %vm5927_vm6, %v5587_v51, -inf  ;;  %vm893_vm5 = vcmp.ge.s32.totalorder %v5499_v12, %v5680_v44  ;;  %vm907_vm9 = vcmp.lt.s32.totalorder %v5488_v9, %v5775_v34  ;;  %vm908_vm14 = vcmp.lt.s32.totalorder %v5493_v10, %v5775_v34 }
 0x13c   : > { %v864_v42 = vsel %vm5939_vm13, %v5583_v49, -inf  ;;  %vm5969_vm11 = vmand %vm886_vm10, %vm903_vm0  ;;  %v873_v32 = vmax.f32 %v869_v48, %v861_v52  ;;  %v874_v28 = vmax.f32 %v870_v56, %v862_v62  ;;  %v875_v24 = vmax.f32 %v871_v50, %v863_v2 }
 0x13d   : > { %vm5987_vm10 = vmand %vm887_vm4, %vm904_vm1  ;;  %v876_v54 = vmax.f32 %v872_v30, %v864_v42  ;;  %vm909_vm13 = vcmp.lt.s32.totalorder %v5496_v11, %v5775_v34  ;;  %vm910_vm6 = vcmp.lt.s32.totalorder %v5499_v12, %v5775_v34  ;;  %vm13412_vm4 = vcmp.ge.s32.totalorder %v5496_v11, %v5680_v44 }
 0x13e   : > { %vm5997_vm0 = vmand %vm888_vm15, %vm905_vm2  ;;  %v877_v50 = vmax.f32 %v873_v32, %v874_v28  ;;  %vm917_vm2 = vcmp.lt.s32.totalorder %v5522_v19, %v5775_v34  ;;  %v967_v62 = vsel %vm5969_vm11, %v13358_v23, -inf  ;;  %v968_v2 = vsel %vm5987_vm10, %v13359_v21, -inf }
 0x13f   : > { %vm6015_vm15 = vmand %vm889_vm3, %vm906_vm12  ;;  %vm912_vm12 = vcmp.lt.s32.totalorder %v5507_v14, %v5775_v34  ;;  %v878_v30 = vmax.f32 %v875_v24, %v876_v54  ;;  %vm13418_vm11 = vcmp.ge.s32.totalorder %v5502_v13, %v5680_v44  ;;  %v969_v26 = vsel %vm5997_vm0, %v13356_v27, -inf }
 0x140   : > { %vm6033_vm3 = vmand %vm890_vm7, %vm907_vm9  ;;  %vm916_vm9 = vcmp.lt.s32.totalorder %v5519_v18, %v5775_v34  ;;  %vm13421_vm10 = vcmp.ge.s32.totalorder %v5507_v14, %v5680_v44  ;;  %v970_v54 = vsel %vm6015_vm15, %v13357_v25, -inf  ;;  %vm1005_vm0 = vcmp.ge.s32.totalorder %v5479_v6, %v5775_v34 }
 0x141   : > { %vm6051_vm7 = vmand %vm891_vm8, %vm908_vm14  ;;  %v971_v42 = vsel %vm6033_vm3, %v13354_v31, -inf  ;;  %vm13417_vm14 = vcmp.lt.s32.totalorder %v5502_v13, %v5775_v34  ;;  %v879_v38 = vmax.f32 %v877_v50, %v878_v30  ;;  %vm13424_vm3 = vcmp.lt.s32.totalorder %v5510_v15, %v5775_v34 }
 0x142   : > { %vm6065_vm1 = vmand %vm13412_vm4, %vm909_vm13  ;;  %v972_v32 = vsel %vm6051_vm7, %v13355_v29, -inf  ;;  %v983_v56 = vmax.f32 %v967_v62, %v971_v42  ;;  %vm1007_vm15 = vcmp.ge.s32.totalorder %v5485_v8, %v5775_v34 }
 0x143   : > { %vm6072_vm8 = vmand %vm893_vm5, %vm910_vm6  ;;  %vm918_vm5 = vcmp.lt.s32.totalorder %v5525_v20, %v5775_v34  ;;  %v973_v28 = vsel %vm6065_vm1, %v5555_v35, -inf  ;;  %vm1004_vm6 = vcmp.ge.s32.totalorder %v5476_v5, %v5775_v34  ;;  %vm1006_vm1 = vcmp.ge.s32.totalorder %v5482_v7, %v5775_v34 }
 0x144   : > { %vm6096_vm13 = vmand %vm13418_vm11, %vm13417_vm14  ;;  %v974_v46 = vsel %vm6072_vm8, %v5551_v33, -inf  ;;  %v984_v22 = vmax.f32 %v968_v2, %v972_v32  ;;  %vm13428_vm8 = vcmp.lt.s32.totalorder %v5513_v16, %v5775_v34  ;;  %vm13429_vm14 = vcmp.ge.s32.totalorder %v5513_v16, %v5680_v44 }
 0x145   : > { %vm6114_vm4 = vmand %vm13421_vm10, %vm912_vm12  ;;  %vm13425_vm12 = vcmp.ge.s32.totalorder %v5510_v15, %v5680_v44  ;;  %v975_v30 = vsel %vm6096_vm13, %v5563_v39, -inf  ;;  %v985_v62 = vmax.f32 %v969_v26, %v973_v28  ;;  %vm1008_vm10 = vcmp.ge.s32.totalorder %v5488_v9, %v5775_v34 }
 0x146   : > { %vm6134_vm7 = vmand %vm13425_vm12, %vm13424_vm3  ;;  %v976_v52 = vsel %vm6114_vm4, %v5559_v37, -inf  ;;  %vm13432_vm3 = vcmp.lt.s32.totalorder %v5516_v17, %v5775_v34  ;;  %vm13433_vm12 = vcmp.ge.s32.totalorder %v5516_v17, %v5680_v44  ;;  %v986_v32 = vmax.f32 %v970_v54, %v974_v46 }
 0x147   : > { %vm6146_vm11 = vmand %vm13429_vm14, %vm13428_vm8  ;;  %v977_v42 = vsel %vm6134_vm7, %v5571_v43, -inf  ;;  %vm1009_vm13 = vcmp.ge.s32.totalorder %v5493_v10, %v5775_v34  ;;  %vm13436_vm14 = vcmp.ge.s32.totalorder %v5519_v18, %v5680_v44  ;;  %vm1021_vm4 = vcmp.lt.s32.totalorder %v5476_v5, %v5778_v36 }
 0x148   : > { %vm6164_vm8 = vmand %vm13433_vm12, %vm13432_vm3  ;;  %v978_v26 = vsel %vm6146_vm11, %v5567_v41, -inf  ;;  %v880_v28 = vrot.slane %v879_v38, 4  ;;  %v987_v54 = vmax.f32 %v983_v56, %v975_v30  ;;  %v988_v46 = vmax.f32 %v984_v22, %v976_v52 }
 0x149   : > { %vm6181_vm3 = vmand %vm13436_vm14, %vm916_vm9  ;;  %vm13439_vm9 = vcmp.ge.s32.totalorder %v5522_v19, %v5680_v44  ;;  %vm1022_vm11 = vcmp.lt.s32.totalorder %v5479_v6, %v5778_v36  ;;  %vm13442_vm12 = vcmp.ge.s32.totalorder %v5525_v20, %v5680_v44  ;;  %v979_v50 = vsel %vm6164_vm8, %v5579_v47, -inf }
 0x14a   : > { %vm6200_vm14 = vmand %vm13439_vm9, %vm917_vm2  ;;  %v980_v56 = vsel %vm6181_vm3, %v5575_v45, -inf  ;;  %v989_v22 = vmax.f32 %v985_v62, %v977_v42  ;;  %vm1023_vm2 = vcmp.lt.s32.totalorder %v5482_v7, %v5778_v36  ;;  %v990_v30 = vmax.f32 %v986_v32, %v978_v26 }
 0x14b   : > { %vm6212_vm7 = vmand %vm13442_vm12, %vm918_vm5  ;;  %v981_v44 = vsel %vm6200_vm14, %v5587_v51, -inf  ;;  %vm1013_vm5 = vcmp.ge.s32.totalorder %v5507_v14, %v5775_v34  ;;  %vm1024_vm12 = vcmp.lt.s32.totalorder %v5485_v8, %v5778_v36  ;;  %vm1014_vm3 = vcmp.ge.s32.totalorder %v5510_v15, %v5775_v34 }
 0x14c   : > { %vm6237_vm8 = vmand %vm1004_vm6, %vm1021_vm4  ;;  %v982_v62 = vsel %vm6212_vm7, %v5583_v49, -inf  ;;  %vm1025_vm14 = vcmp.lt.s32.totalorder %v5488_v9, %v5778_v36  ;;  %v991_v42 = vmax.f32 %v987_v54, %v979_v50  ;;  %v992_v32 = vmax.f32 %v988_v46, %v980_v56 }
 0x14d   : > { %vm6256_vm6 = vmand %vm1005_vm0, %vm1022_vm11  ;;  %vm1026_vm7 = vcmp.lt.s32.totalorder %v5493_v10, %v5778_v36  ;;  %v6274_v26 = vmax.f32 %v879_v38, %v880_v28  ;;  %v993_v24 = vmax.f32 %v989_v22, %v981_v44  ;;  %vm1017_vm0 = vcmp.ge.s32.totalorder %v5519_v18, %v5775_v34 }
 0x14e   : > { %vm6270_vm9 = vmand %vm1006_vm1, %vm1023_vm2  ;;  %vm1027_vm11 = vcmp.lt.s32.totalorder %v5496_v11, %v5778_v36  ;;  %v994_v46 = vmax.f32 %v990_v30, %v982_v62  ;;  %vm1028_vm1 = vcmp.lt.s32.totalorder %v5499_v12, %v5778_v36  ;;  %v1085_v28 = vsel %vm6237_vm8, %v13358_v23, -inf }
 0x14f   : > { %vm6286_vm4 = vmand %vm1007_vm15, %vm1024_vm12  ;;  %v1086_v48 = vsel %vm6256_vm6, %v13359_v21, -inf  ;;  %vm1018_vm15 = vcmp.ge.s32.totalorder %v5522_v19, %v5775_v34  ;;  %vm1029_vm12 = vcmp.lt.s32.totalorder %v5502_v13, %v5778_v36  ;;  %v1087_v50 = vsel %vm6270_vm9, %v13356_v27, -inf }
 0x150   : > { %vm6295_vm2 = vmand %vm1008_vm10, %vm1025_vm14  ;;  %v995_v22 = vmax.f32 %v991_v42, %v992_v32  ;;  %vm1030_vm8 = vcmp.lt.s32.totalorder %v5507_v14, %v5778_v36  ;;  %vm13455_vm14 = vcmp.ge.s32.totalorder %v5496_v11, %v5775_v34  ;;  %v1088_v44 = vsel %vm6286_vm4, %v13357_v25, -inf }
 0x151   : > { %vm1042_vm10 = vmand %vm1009_vm13, %vm1026_vm7  ;;  %v1089_v56 = vsel %vm6295_vm2, %v13354_v31, -inf  ;;  %vm1031_vm13 = vcmp.lt.s32.totalorder %v5510_v15, %v5778_v36  ;;  %vm13456_vm9 = vcmp.ge.s32.totalorder %v5499_v12, %v5775_v34  ;;  %v996_v42 = vmax.f32 %v993_v24, %v994_v46 }
 0x152   : > { %vm1043_vm6 = vmand %vm13455_vm14, %vm1027_vm11  ;;  %v1090_v30 = vsel %vm1042_vm10, %v13355_v29, -inf  ;;  %v1101_v62 = vmax.f32 %v1085_v28, %v1089_v56  ;;  %vm1032_vm4 = vcmp.lt.s32.totalorder %v5513_v16, %v5778_v36  ;;  %vm13457_vm11 = vcmp.ge.s32.totalorder %v5502_v13, %v5775_v34 }
 0x153   : > { %vm1044_vm7 = vmand %vm13456_vm9, %vm1028_vm1  ;;  %v1091_v52 = vsel %vm1043_vm6, %v5555_v35, -inf  ;;  %v1102_v2 = vmax.f32 %v1086_v48, %v1090_v30  ;;  %vm1019_vm1 = vcmp.ge.s32.totalorder %v5525_v20, %v5775_v34  ;;  %vm1033_vm10 = vcmp.lt.s32.totalorder %v5516_v17, %v5778_v36 }
 0x154   : > { %vm6344_vm2 = vmand %vm13457_vm11, %vm1029_vm12  ;;  %v1092_v4 = vsel %vm1044_vm7, %v5551_v33, -inf  ;;  %v1103_v54 = vmax.f32 %v1087_v50, %v1091_v52  ;;  %vm1034_vm12 = vcmp.lt.s32.totalorder %v5519_v18, %v5778_v36  ;;  %vm1035_vm6 = vcmp.lt.s32.totalorder %v5522_v19, %v5778_v36 }
 0x155   : > { %vm1046_vm14 = vmand %vm1013_vm5, %vm1030_vm8  ;;  %v1093_v24 = vsel %vm6344_vm2, %v5563_v39, -inf  ;;  %v1104_v46 = vmax.f32 %v1088_v44, %v1092_v4  ;;  %vm1036_vm8 = vcmp.lt.s32.totalorder %v5525_v20, %v5778_v36  ;;  %vm13460_vm9 = vcmp.ge.s32.totalorder %v5513_v16, %v5775_v34 }
 0x156   : > { %vm1047_vm5 = vmand %vm1014_vm3, %vm1031_vm13  ;;  %v1094_v28 = vsel %vm1046_vm14, %v5559_v37, -inf  ;;  %v1105_v50 = vmax.f32 %v1101_v62, %v1093_v24  ;;  %v6383_v44 = vmax.f32 %v995_v22, %v996_v42  ;;  %vm13461_vm3 = vcmp.ge.s32.totalorder %v5516_v17, %v5775_v34 }
 0x157   : > { %vm1048_vm7 = vmand %vm13460_vm9, %vm1032_vm4  ;;  %v1095_v48 = vsel %vm1047_vm5, %v5571_v43, -inf  ;;  %v1106_v56 = vmax.f32 %v1102_v2, %v1094_v28  ;;  %vm1122_vm4 = vcmp.ge.s32.totalorder %v5476_v5, %v5778_v36  ;;  %vm1123_vm2 = vcmp.ge.s32.totalorder %v5479_v6, %v5778_v36 }
 0x158   : > { %vm6391_vm13 = vmand %vm13461_vm3, %vm1033_vm10  ;;  %v1096_v52 = vsel %vm1048_vm7, %v5567_v41, -inf  ;;  %v1107_v32 = vmax.f32 %v1103_v54, %v1095_v48  ;;  %vm1124_vm10 = vcmp.ge.s32.totalorder %v5482_v7, %v5778_v36  ;;  %vm1139_vm5 = vcmp.lt.s32.totalorder %v5476_v5, %v5835_v40 }
 0x159   : > { %vm1050_vm11 = vmand %vm1017_vm0, %vm1034_vm12  ;;  %v1097_v22 = vsel %vm6391_vm13, %v5579_v47, -inf  ;;  %v1108_v62 = vmax.f32 %v1104_v46, %v1096_v52  ;;  %vm1125_vm0 = vcmp.ge.s32.totalorder %v5485_v8, %v5778_v36  ;;  %vm1126_vm12 = vcmp.ge.s32.totalorder %v5488_v9, %v5778_v36 }
 0x15a   : > { %vm1051_vm14 = vmand %vm1018_vm15, %vm1035_vm6  ;;  %v1098_v2 = vsel %vm1050_vm11, %v5575_v45, -inf  ;;  %v1109_v4 = vmax.f32 %v1105_v50, %v1097_v22  ;;  %vm1140_vm15 = vcmp.lt.s32.totalorder %v5479_v6, %v5835_v40  ;;  %vm1141_vm6 = vcmp.lt.s32.totalorder %v5482_v7, %v5835_v40 }
 0x15b   : > { %vm1052_vm9 = vmand %vm1019_vm1, %vm1036_vm8  ;;  %v1099_v42 = vsel %vm1051_vm14, %v5587_v51, -inf  ;;  %v1110_v54 = vmax.f32 %v1106_v56, %v1098_v2  ;;  %vm1142_vm7 = vcmp.lt.s32.totalorder %v5485_v8, %v5835_v40  ;;  %v998_v28 = vrot.slane %v6383_v44, 4 }
 0x15c   : > { %v1100_v24 = vsel %vm1052_vm9, %v5583_v49, -inf  ;;  %v1111_v46 = vmax.f32 %v1107_v32, %v1099_v42  ;;  %vm6438_vm1 = vmand %vm1122_vm4, %vm1139_vm5  ;;  %vm1127_vm8 = vcmp.ge.s32.totalorder %v5493_v10, %v5778_v36  ;;  %vm1143_vm3 = vcmp.lt.s32.totalorder %v5488_v9, %v5835_v40 }
 0x15d   : > { %v1112_v48 = vmax.f32 %v1108_v62, %v1100_v24  ;;  %vm6450_vm13 = vmand %vm1123_vm2, %vm1140_vm15  ;;  %vm1128_vm4 = vcmp.ge.s32.totalorder %v5496_v11, %v5778_v36  ;;  %vm1144_vm5 = vcmp.lt.s32.totalorder %v5493_v10, %v5835_v40  ;;  %v1113_v30 = vmax.f32 %v1109_v4, %v1110_v54 }
 0x15e   : > { %vm6465_vm9 = vmand %vm1124_vm10, %vm1141_vm6  ;;  %vm1145_vm15 = vcmp.lt.s32.totalorder %v5496_v11, %v5835_v40  ;;  %vm1132_vm10 = vcmp.ge.s32.totalorder %v5510_v15, %v5778_v36  ;;  %vm1133_vm6 = vcmp.ge.s32.totalorder %v5513_v16, %v5778_v36  ;;  %vm1146_vm11 = vcmp.lt.s32.totalorder %v5499_v12, %v5835_v40 }
 0x15f   : > { %v1114_v52 = vmax.f32 %v1111_v46, %v1112_v48  ;;  %vm6479_vm14 = vmand %vm1125_vm0, %vm1142_vm7  ;;  %vm1147_vm7 = vcmp.lt.s32.totalorder %v5502_v13, %v5835_v40  ;;  %v1203_v2 = vsel %vm6438_vm1, %v13358_v23, -inf  ;;  %v1204_v42 = vsel %vm6450_vm13, %v13359_v21, -inf }
 0x160   : > { %vm6497_vm0 = vmand %vm1126_vm12, %vm1143_vm3  ;;  %v1205_v4 = vsel %vm6465_vm9, %v13356_v27, -inf  ;;  %vm1148_vm12 = vcmp.lt.s32.totalorder %v5507_v14, %v5835_v40  ;;  %v1206_v54 = vsel %vm6479_vm14, %v13357_v25, -inf  ;;  %vm1149_vm1 = vcmp.lt.s32.totalorder %v5510_v15, %v5835_v40 }
 0x161   : > { %vm6506_vm2 = vmand %vm1127_vm8, %vm1144_vm5  ;;  %v1207_v24 = vsel %vm6497_vm0, %v13354_v31, -inf  ;;  %v1115_v34 = vmax.f32 %v1113_v30, %v1114_v52  ;;  %vm1150_vm3 = vcmp.lt.s32.totalorder %v5513_v16, %v5835_v40  ;;  %vm13476_vm13 = vcmp.ge.s32.totalorder %v5499_v12, %v5778_v36 }
 0x162   : > { %vm1161_vm8 = vmand %vm1128_vm4, %vm1145_vm15  ;;  %v1208_v46 = vsel %vm6506_vm2, %v13355_v29, -inf  ;;  %vm13477_vm14 = vcmp.ge.s32.totalorder %v5502_v13, %v5778_v36  ;;  %v1219_v30 = vmax.f32 %v1203_v2, %v1207_v24  ;;  %vm1151_vm9 = vcmp.lt.s32.totalorder %v5516_v17, %v5835_v40 }
 0x163   : > { %vm1162_vm4 = vmand %vm13476_vm13, %vm1146_vm11  ;;  %v1209_v48 = vsel %vm1161_vm8, %v5555_v35, -inf  ;;  %v1220_v52 = vmax.f32 %v1204_v42, %v1208_v46  ;;  %vm1135_vm11 = vcmp.ge.s32.totalorder %v5519_v18, %v5778_v36  ;;  %vm13480_vm2 = vcmp.ge.s32.totalorder %v5507_v14, %v5778_v36 }
 0x164   : > { %vm6551_vm5 = vmand %vm13477_vm14, %vm1147_vm7  ;;  %v1210_v56 = vsel %vm1162_vm4, %v5551_v33, -inf  ;;  %v1221_v32 = vmax.f32 %v1205_v4, %v1209_v48  ;;  %vm1136_vm0 = vcmp.ge.s32.totalorder %v5522_v19, %v5778_v36  ;;  %vm1137_vm7 = vcmp.ge.s32.totalorder %v5525_v20, %v5778_v36 }
 0x165   : > { %vm6566_vm15 = vmand %vm13480_vm2, %vm1148_vm12  ;;  %v1211_v62 = vsel %vm6551_vm5, %v5563_v39, -inf  ;;  %v1222_v2 = vmax.f32 %v1206_v54, %v1210_v56  ;;  %vm1152_vm8 = vcmp.lt.s32.totalorder %v5519_v18, %v5835_v40  ;;  %v1116_v4 = vrot.slane %v1115_v34, 4 }
 0x166   : > { %vm1165_vm12 = vmand %vm1132_vm10, %vm1149_vm1  ;;  %v1212_v42 = vsel %vm6566_vm15, %v5559_v37, -inf  ;;  %vm1153_vm13 = vcmp.lt.s32.totalorder %v5522_v19, %v5835_v40  ;;  %vm1154_vm4 = vcmp.lt.s32.totalorder %v5525_v20, %v5835_v40  ;;  %vm13483_vm10 = vcmp.ge.s32.totalorder %v5516_v17, %v5778_v36 }
 0x167   : > { %vm1166_vm14 = vmand %vm1133_vm6, %vm1150_vm3  ;;  %v1213_v54 = vsel %vm1165_vm12, %v5571_v43, -inf  ;;  %v1223_v48 = vmax.f32 %v1219_v30, %v1211_v62  ;;  %v1224_v50 = vmax.f32 %v1220_v52, %v1212_v42  ;;  %v999_v22 = vmax.f32 %v6383_v44, %v998_v28 }
 0x168   : > { %vm6607_vm1 = vmand %vm13483_vm10, %vm1151_vm9  ;;  %v1214_v46 = vsel %vm1166_vm14, %v5567_v41, -inf  ;;  %v1225_v56 = vmax.f32 %v1221_v32, %v1213_v54  ;;  %v13486_v58 = vrot.slane %v6274_v26, 2  ;;  %v1117_v28 = vmax.f32 %v1115_v34, %v1116_v4 }
 0x169   : > { %vm1168_vm6 = vmand %vm1135_vm11, %vm1152_vm8  ;;  %v1215_v38 = vsel %vm6607_vm1, %v5579_v47, -inf  ;;  %v1226_v0 = vmax.f32 %v1222_v2, %v1214_v46  ;;  %v1000_v62 = vrot.slane %v999_v22, 2  ;;  %vm1240_vm11 = vcmp.ge.s32.totalorder %v5476_v5, %v5835_v40 }
 0x16a   : > { %v6622_v60 = vmax.f32 %v6274_v26, %v13486_v58  ;;  %vm1169_vm3 = vmand %vm1136_vm0, %vm1153_vm13  ;;  %v1216_v44 = vsel %vm1168_vm6, %v5575_v45, -inf  ;;  %v1227_v26 = vmax.f32 %v1223_v48, %v1215_v38  ;;  %vm1241_vm9 = vcmp.ge.s32.totalorder %v5479_v6, %v5835_v40 }
 0x16b   : > { %vm1170_vm5 = vmand %vm1137_vm7, %vm1154_vm4  ;;  %v1217_v30 = vsel %vm1169_vm3, %v5587_v51, -inf  ;;  %v1228_v52 = vmax.f32 %v1224_v50, %v1216_v44  ;;  %vm1242_vm2 = vcmp.ge.s32.totalorder %v5482_v7, %v5835_v40  ;;  %v6644_v36 = vstv %s6573_s16 }
 0x16c   : > { %v1218_v58 = vsel %vm1170_vm5, %v5583_v49, -inf  ;;  %v1229_v32 = vmax.f32 %v1225_v56, %v1217_v30  ;;  %v1118_v42 = vrot.slane %v1117_v28, 2  ;;  %vm1257_vm15 = vcmp.lt.s32.totalorder %v5476_v5, %v6644_v36 }
 0x16d   : > { %v1230_v2 = vmax.f32 %v1226_v0, %v1218_v58  ;;  %vm1258_vm0 = vcmp.lt.s32.totalorder %v5479_v6, %v6644_v36  ;;  %vm1259_vm7 = vcmp.lt.s32.totalorder %v5482_v7, %v6644_v36  ;;  %v1231_v0 = vmax.f32 %v1227_v26, %v1228_v52  ;;  %vm6657_vm13 = vmand %vm1240_vm11, %vm1257_vm15 }
 0x16e   : > { %vm1243_vm8 = vcmp.ge.s32.totalorder %v5485_v8, %v5835_v40  ;;  %vm1260_vm12 = vcmp.lt.s32.totalorder %v5485_v8, %v6644_v36  ;;  %v6661_v54 = vmax.f32 %v999_v22, %v1000_v62  ;;  %vm1244_vm4 = vcmp.ge.s32.totalorder %v5488_v9, %v5835_v40  ;;  %vm6672_vm1 = vmand %vm1241_vm9, %vm1258_vm0 }
 0x16f   : > { %v1232_v38 = vmax.f32 %v1229_v32, %v1230_v2  ;;  %vm1245_vm14 = vcmp.ge.s32.totalorder %v5493_v10, %v5835_v40  ;;  %vm1261_vm10 = vcmp.lt.s32.totalorder %v5488_v9, %v6644_v36  ;;  %vm1246_vm6 = vcmp.ge.s32.totalorder %v5496_v11, %v5835_v40  ;;  %vm6690_vm9 = vmand %vm1242_vm2, %vm1259_vm7 }
 0x170   : > { %vm1247_vm3 = vcmp.ge.s32.totalorder %v5499_v12, %v5835_v40  ;;  %vm1262_vm11 = vcmp.lt.s32.totalorder %v5493_v10, %v6644_v36  ;;  %v6696_v48 = vmax.f32 %v1117_v28, %v1118_v42  ;;  %vm1263_vm5 = vcmp.lt.s32.totalorder %v5496_v11, %v6644_v36  ;;  %vm6710_vm2 = vmand %vm1243_vm8, %vm1260_vm12 }
 0x171   : > { %v1233_v56 = vmax.f32 %v1231_v0, %v1232_v38  ;;  %vm1251_vm7 = vcmp.ge.s32.totalorder %v5513_v16, %v5835_v40  ;;  %vm1264_vm15 = vcmp.lt.s32.totalorder %v5499_v12, %v6644_v36  ;;  %vm6726_vm8 = vmand %vm1244_vm4, %vm1261_vm10  ;;  %vm1265_vm12 = vcmp.lt.s32.totalorder %v5502_v13, %v6644_v36 }
 0x172   : > { %vm6735_vm0 = vmand %vm1245_vm14, %vm1262_vm11  ;;  %v1321_v28 = vsel %vm6657_vm13, %v13358_v23, -inf  ;;  %v1322_v30 = vsel %vm6672_vm1, %v13359_v21, -inf  ;;  %v1325_v58 = vsel %vm6726_vm8, %v13354_v31, -inf  ;;  %vm1266_vm4 = vcmp.lt.s32.totalorder %v5507_v14, %v6644_v36 }
 0x173   : > { %vm6753_vm14 = vmand %vm1246_vm6, %vm1263_vm5  ;;  %v1323_v52 = vsel %vm6690_vm9, %v13356_v27, -inf  ;;  %v1324_v32 = vsel %vm6710_vm2, %v13357_v25, -inf  ;;  %v1326_v62 = vsel %vm6735_vm0, %v13355_v29, -inf  ;;  %vm1253_vm13 = vcmp.ge.s32.totalorder %v5519_v18, %v5835_v40 }
 0x174   : > { %vm1267_vm10 = vcmp.lt.s32.totalorder %v5510_v15, %v6644_v36  ;;  %vm1268_vm1 = vcmp.lt.s32.totalorder %v5513_v16, %v6644_v36  ;;  %vm1280_vm6 = vmand %vm1247_vm3, %vm1264_vm15  ;;  %v1327_v2 = vsel %vm6753_vm14, %v5555_v35, -inf  ;;  %vm1269_vm5 = vcmp.lt.s32.totalorder %v5516_v17, %v6644_v36 }
 0x175   : > { %vm13501_vm11 = vcmp.ge.s32.totalorder %v5502_v13, %v5835_v40  ;;  %v1328_v0 = vsel %vm1280_vm6, %v5551_v33, -inf  ;;  %v1337_v38 = vmax.f32 %v1321_v28, %v1325_v58  ;;  %v1338_v4 = vmax.f32 %v1322_v30, %v1326_v62 }
 0x176   : > { %vm6789_vm9 = vmand %vm13501_vm11, %vm1265_vm12  ;;  %v1234_v24 = vrot.slane %v1233_v56, 4  ;;  %vm13504_vm3 = vcmp.ge.s32.totalorder %v5507_v14, %v5835_v40  ;;  %v1339_v22 = vmax.f32 %v1323_v52, %v1327_v2  ;;  %v1340_v44 = vmax.f32 %v1324_v32, %v1328_v0 }
 0x177   : > { %vm6800_vm15 = vmand %vm13504_vm3, %vm1266_vm4  ;;  %v1329_v50 = vsel %vm6789_vm9, %v5563_v39, -inf  ;;  %vm1254_vm0 = vcmp.ge.s32.totalorder %v5522_v19, %v5835_v40  ;;  %vm1255_vm2 = vcmp.ge.s32.totalorder %v5525_v20, %v5835_v40  ;;  %vm1270_vm8 = vcmp.lt.s32.totalorder %v5519_v18, %v6644_v36 }
 0x178   : > { %vm13507_vm12 = vcmp.ge.s32.totalorder %v5510_v15, %v5835_v40  ;;  %v1330_v28 = vsel %vm6800_vm15, %v5559_v37, -inf  ;;  %vm1271_vm14 = vcmp.lt.s32.totalorder %v5522_v19, %v6644_v36  ;;  %vm1272_vm6 = vcmp.lt.s32.totalorder %v5525_v20, %v6644_v36  ;;  %vm1284_vm11 = vmand %vm1251_vm7, %vm1268_vm1 }
 0x179   : > { %vm1283_vm4 = vmand %vm13507_vm12, %vm1267_vm10  ;;  %v6834_v58 = vstv %s6694_s18  ;;  %vm13508_vm10 = vcmp.ge.s32.totalorder %v5516_v17, %v5835_v40  ;;  %v1332_v52 = vsel %vm1284_vm11, %v5567_v41, -inf  ;;  %v1341_v32 = vmax.f32 %v1337_v38, %v1329_v50 }
 0x17a   : > { %v1331_v30 = vsel %vm1283_vm4, %v5571_v43, -inf  ;;  %vm6842_vm9 = vmand %vm13508_vm10, %vm1269_vm5  ;;  %v1342_v62 = vmax.f32 %v1338_v4, %v1330_v28  ;;  %vm1358_vm7 = vcmp.ge.s32.totalorder %v5476_v5, %v6644_v36  ;;  %v6849_v2 = vmax.f32 %v1233_v56, %v1234_v24 }
 0x17b   : > { %vm6854_vm1 = vmand %vm1253_vm13, %vm1270_vm8  ;;  %v1333_v0 = vsel %vm6842_vm9, %v5579_v47, -inf  ;;  %v1343_v46 = vmax.f32 %v1339_v22, %v1331_v30  ;;  %v1344_v34 = vmax.f32 %v1340_v44, %v1332_v52  ;;  %vm1359_vm13 = vcmp.ge.s32.totalorder %v5479_v6, %v6644_v36 }
 0x17c   : > { %vm6867_vm5 = vmand %vm1254_vm0, %vm1271_vm14  ;;  %v1334_v38 = vsel %vm6854_vm1, %v5575_v45, -inf  ;;  %vm1360_vm3 = vcmp.ge.s32.totalorder %v5482_v7, %v6644_v36  ;;  %vm1375_vm15 = vcmp.lt.s32.totalorder %v5476_v5, %v6834_v58  ;;  %vm1361_vm8 = vcmp.ge.s32.totalorder %v5485_v8, %v6644_v36 }
 0x17d   : > { %vm1288_vm0 = vmand %vm1255_vm2, %vm1272_vm6  ;;  %v1335_v4 = vsel %vm6867_vm5, %v5587_v51, -inf  ;;  %vm1376_vm12 = vcmp.lt.s32.totalorder %v5479_v6, %v6834_v58  ;;  %vm1377_vm4 = vcmp.lt.s32.totalorder %v5482_v7, %v6834_v58  ;;  %v1345_v50 = vmax.f32 %v1341_v32, %v1333_v0 }
 0x17e   : > { %v1336_v24 = vsel %vm1288_vm0, %v5583_v49, -inf  ;;  %v1346_v22 = vmax.f32 %v1342_v62, %v1334_v38  ;;  %vm1378_vm2 = vcmp.lt.s32.totalorder %v5485_v8, %v6834_v58  ;;  %vm6901_vm14 = vmand %vm1358_vm7, %vm1375_vm15  ;;  %v1347_v44 = vmax.f32 %v1343_v46, %v1335_v4 }
 0x17f   : > { %v1348_v28 = vmax.f32 %v1344_v34, %v1336_v24  ;;  %vm1362_vm6 = vcmp.ge.s32.totalorder %v5488_v9, %v6644_v36  ;;  %vm1379_vm11 = vcmp.lt.s32.totalorder %v5488_v9, %v6834_v58  ;;  %vm6912_vm10 = vmand %vm1359_vm13, %vm1376_vm12  ;;  %vm1363_vm9 = vcmp.ge.s32.totalorder %v5493_v10, %v6644_v36 }
 0x180   : > { %vm1364_vm7 = vcmp.ge.s32.totalorder %v5496_v11, %v6644_v36  ;;  %vm1380_vm5 = vcmp.lt.s32.totalorder %v5493_v10, %v6834_v58  ;;  %vm6931_vm13 = vmand %vm1360_vm3, %vm1377_vm4  ;;  %vm1366_vm15 = vcmp.ge.s32.totalorder %v5502_v13, %v6644_v36  ;;  %vm1381_vm1 = vcmp.lt.s32.totalorder %v5496_v11, %v6834_v58 }
 0x181   : > { %vm6949_vm3 = vmand %vm1361_vm8, %vm1378_vm2  ;;  %v1349_v52 = vmax.f32 %v1345_v50, %v1346_v22  ;;  %vm1382_vm4 = vcmp.lt.s32.totalorder %v5499_v12, %v6834_v58  ;;  %vm1383_vm12 = vcmp.lt.s32.totalorder %v5502_v13, %v6834_v58  ;;  %v1439_v62 = vsel %vm6901_vm14, %v13358_v23, -inf }
 0x182   : > { %vm6963_vm0 = vmand %vm1362_vm6, %vm1379_vm11  ;;  %v1350_v42 = vmax.f32 %v1347_v44, %v1348_v28  ;;  %v1440_v46 = vsel %vm6912_vm10, %v13359_v21, -inf  ;;  %v1441_v56 = vsel %vm6931_vm13, %v13356_v27, -inf  ;;  %vm1369_vm2 = vcmp.ge.s32.totalorder %v5513_v16, %v6644_v36 }
 0x183   : > { %vm6975_vm8 = vmand %vm1363_vm9, %vm1380_vm5  ;;  %v1443_v38 = vsel %vm6963_vm0, %v13354_v31, -inf  ;;  %vm1384_vm14 = vcmp.lt.s32.totalorder %v5507_v14, %v6834_v58  ;;  %v1442_v4 = vsel %vm6949_vm3, %v13357_v25, -inf  ;;  %vm1370_vm11 = vcmp.ge.s32.totalorder %v5516_v17, %v6644_v36 }
 0x184   : > { %vm1397_vm6 = vmand %vm1364_vm7, %vm1381_vm1  ;;  %v1444_v24 = vsel %vm6975_vm8, %v13355_v29, -inf  ;;  %vm1385_vm10 = vcmp.lt.s32.totalorder %v5510_v15, %v6834_v58  ;;  %vm13527_vm9 = vcmp.ge.s32.totalorder %v5499_v12, %v6644_v36  ;;  %v1455_v22 = vmax.f32 %v1439_v62, %v1443_v38 }
 0x185   : > { %vm1398_vm7 = vmand %vm13527_vm9, %vm1382_vm4  ;;  %v1445_v50 = vsel %vm1397_vm6, %v5555_v35, -inf  ;;  %vm1386_vm1 = vcmp.lt.s32.totalorder %v5513_v16, %v6834_v58  ;;  %v1456_v28 = vmax.f32 %v1440_v46, %v1444_v24  ;;  %v1351_v34 = vmax.f32 %v1349_v52, %v1350_v42 }
 0x186   : > { %vm7023_vm5 = vmand %vm1366_vm15, %vm1383_vm12  ;;  %v1446_v44 = vsel %vm1398_vm7, %v5551_v33, -inf  ;;  %v1457_v30 = vmax.f32 %v1441_v56, %v1445_v50  ;;  %vm1387_vm13 = vcmp.lt.s32.totalorder %v5516_v17, %v6834_v58  ;;  %vm13530_vm0 = vcmp.ge.s32.totalorder %v5507_v14, %v6644_v36 }
 0x187   : > { %vm7036_vm3 = vmand %vm13530_vm0, %vm1384_vm14  ;;  %v1447_v32 = vsel %vm7023_vm5, %v5563_v39, -inf  ;;  %v1458_v62 = vmax.f32 %v1442_v4, %v1446_v44  ;;  %vm1371_vm15 = vcmp.ge.s32.totalorder %v5519_v18, %v6644_v36  ;;  %vm1372_vm12 = vcmp.ge.s32.totalorder %v5522_v19, %v6644_v36 }
 0x188   : > { %vm1388_vm4 = vcmp.lt.s32.totalorder %v5519_v18, %v6834_v58  ;;  %vm13533_vm8 = vcmp.ge.s32.totalorder %v5510_v15, %v6644_v36  ;;  %v1448_v52 = vsel %vm7036_vm3, %v5559_v37, -inf  ;;  %vm1373_vm6 = vcmp.ge.s32.totalorder %v5525_v20, %v6644_v36  ;;  %vm1402_vm7 = vmand %vm1369_vm2, %vm1386_vm1 }
 0x189   : > { %vm1401_vm14 = vmand %vm13533_vm8, %vm1385_vm10  ;;  %vm1389_vm9 = vcmp.lt.s32.totalorder %v5522_v19, %v6834_v58  ;;  %v1459_v0 = vmax.f32 %v1455_v22, %v1447_v32  ;;  %vm1390_vm10 = vcmp.lt.s32.totalorder %v5525_v20, %v6834_v58  ;;  %v1450_v56 = vsel %vm1402_vm7, %v5567_v41, -inf }
 0x18a   : > { %v1449_v42 = vsel %vm1401_vm14, %v5571_v43, -inf  ;;  %vm7077_vm5 = vmand %vm1370_vm11, %vm1387_vm13  ;;  %v1460_v38 = vmax.f32 %v1456_v28, %v1448_v52  ;;  %v1352_v24 = vrot.slane %v1351_v34, 4  ;;  %v1462_v22 = vmax.f32 %v1458_v62, %v1450_v56 }
 0x18b   : > { %v1461_v4 = vmax.f32 %v1457_v30, %v1449_v42  ;;  %vm1404_vm2 = vmand %vm1371_vm15, %vm1388_vm4  ;;  %v1451_v50 = vsel %vm7077_vm5, %v5579_v47, -inf  ;;  %v7089_v40 = vstv %s6970_s20  ;;  %v1236_v44 = vrot.slane %v6849_v2, 2 }
 0x18c   : > { %vm1405_vm11 = vmand %vm1372_vm12, %vm1389_vm9  ;;  %v1452_v28 = vsel %vm1404_vm2, %v5575_v45, -inf  ;;  %vm1476_vm1 = vcmp.ge.s32.totalorder %v5476_v5, %v6834_v58  ;;  %vm1477_vm13 = vcmp.ge.s32.totalorder %v5479_v6, %v6834_v58  ;;  %v1463_v26 = vmax.f32 %v1459_v0, %v1451_v50 }
 0x18d   : > { %vm1406_vm0 = vmand %vm1373_vm6, %vm1390_vm10  ;;  %v1453_v30 = vsel %vm1405_vm11, %v5587_v51, -inf  ;;  %vm1478_vm3 = vcmp.ge.s32.totalorder %v5482_v7, %v6834_v58  ;;  %vm1479_vm15 = vcmp.ge.s32.totalorder %v5485_v8, %v6834_v58  ;;  %v1464_v62 = vmax.f32 %v1460_v38, %v1452_v28 }
 0x18e   : > { %v1454_v32 = vsel %vm1406_vm0, %v5583_v49, -inf  ;;  %v1465_v52 = vmax.f32 %v1461_v4, %v1453_v30  ;;  %vm1493_vm12 = vcmp.lt.s32.totalorder %v5476_v5, %v7089_v40  ;;  %v7117_v42 = vmax.f32 %v1351_v34, %v1352_v24 }
 0x18f   : > { %v1466_v36 = vmax.f32 %v1462_v22, %v1454_v32  ;;  %vm1480_vm4 = vcmp.ge.s32.totalorder %v5488_v9, %v6834_v58  ;;  %vm1494_vm8 = vcmp.lt.s32.totalorder %v5479_v6, %v7089_v40  ;;  %vm7126_vm14 = vmand %vm1476_vm1, %vm1493_vm12  ;;  %vm1481_vm6 = vcmp.ge.s32.totalorder %v5493_v10, %v6834_v58 }
 0x190   : > { %vm1495_vm9 = vcmp.lt.s32.totalorder %v5482_v7, %v7089_v40  ;;  %vm1496_vm7 = vcmp.lt.s32.totalorder %v5485_v8, %v7089_v40  ;;  %vm1497_vm10 = vcmp.lt.s32.totalorder %v5488_v9, %v7089_v40  ;;  %vm7141_vm5 = vmand %vm1477_vm13, %vm1494_vm8  ;;  %vm1482_vm2 = vcmp.ge.s32.totalorder %v5496_v11, %v6834_v58 }
 0x191   : > { %vm1498_vm0 = vcmp.lt.s32.totalorder %v5493_v10, %v7089_v40  ;;  %vm7156_vm12 = vmand %vm1478_vm3, %vm1495_vm9  ;;  %v1467_v56 = vmax.f32 %v1463_v26, %v1464_v62  ;;  %v1468_v38 = vmax.f32 %v1465_v52, %v1466_v36  ;;  %vm1499_vm8 = vcmp.lt.s32.totalorder %v5496_v11, %v7089_v40 }
 0x192   : > { %vm7168_vm1 = vmand %vm1479_vm15, %vm1496_vm7  ;;  %vm1486_vm3 = vcmp.ge.s32.totalorder %v5510_v15, %v6834_v58  ;;  %vm1500_vm11 = vcmp.lt.s32.totalorder %v5499_v12, %v7089_v40  ;;  %vm1501_vm13 = vcmp.lt.s32.totalorder %v5502_v13, %v7089_v40  ;;  %vm1502_vm7 = vcmp.lt.s32.totalorder %v5507_v14, %v7089_v40 }
 0x193   : > { %vm1513_vm15 = vmand %vm1480_vm4, %vm1497_vm10  ;;  %v1557_v24 = vsel %vm7126_vm14, %v13358_v23, -inf  ;;  %v1558_v50 = vsel %vm7141_vm5, %v13359_v21, -inf  ;;  %v1559_v22 = vsel %vm7156_vm12, %v13356_v27, -inf  ;;  %vm1503_vm4 = vcmp.lt.s32.totalorder %v5510_v15, %v7089_v40 }
 0x194   : > { %vm1514_vm9 = vmand %vm1481_vm6, %vm1498_vm0  ;;  %v1560_v28 = vsel %vm7168_vm1, %v13357_v25, -inf  ;;  %v1561_v30 = vsel %vm1513_vm15, %v13354_v31, -inf  ;;  %v1469_v32 = vmax.f32 %v1467_v56, %v1468_v38  ;;  %vm13544_vm14 = vcmp.ge.s32.totalorder %v5499_v12, %v6834_v58 }
 0x195   : > { %vm1515_vm6 = vmand %vm1482_vm2, %vm1499_vm8  ;;  %v1562_v26 = vsel %vm1514_vm9, %v13355_v29, -inf  ;;  %v1573_v52 = vmax.f32 %v1557_v24, %v1561_v30  ;;  %vm1488_vm5 = vcmp.ge.s32.totalorder %v5516_v17, %v6834_v58  ;;  %vm1504_vm2 = vcmp.lt.s32.totalorder %v5513_v16, %v7089_v40 }
 0x196   : > { %vm1516_vm10 = vmand %vm13544_vm14, %vm1500_vm11  ;;  %v1563_v62 = vsel %vm1515_vm6, %v5555_v35, -inf  ;;  %v1574_v36 = vmax.f32 %v1558_v50, %v1562_v26  ;;  %vm13545_vm1 = vcmp.ge.s32.totalorder %v5502_v13, %v6834_v58  ;;  %vm1489_vm11 = vcmp.ge.s32.totalorder %v5519_v18, %v6834_v58 }
 0x197   : > { %vm1517_vm0 = vmand %vm13545_vm1, %vm1501_vm13  ;;  %v1564_v0 = vsel %vm1516_vm10, %v5551_v33, -inf  ;;  %v1575_v34 = vmax.f32 %v1559_v22, %v1563_v62  ;;  %vm1505_vm12 = vcmp.lt.s32.totalorder %v5516_v17, %v7089_v40  ;;  %vm13546_vm8 = vcmp.ge.s32.totalorder %v5507_v14, %v6834_v58 }
 0x198   : > { %vm1518_vm9 = vmand %vm13546_vm8, %vm1502_vm7  ;;  %v1565_v46 = vsel %vm1517_vm0, %v5563_v39, -inf  ;;  %v1576_v56 = vmax.f32 %v1560_v28, %v1564_v0  ;;  %vm1490_vm13 = vcmp.ge.s32.totalorder %v5522_v19, %v6834_v58  ;;  %vm1506_vm15 = vcmp.lt.s32.totalorder %v5519_v18, %v7089_v40 }
 0x199   : > { %vm1519_vm6 = vmand %vm1486_vm3, %vm1503_vm4  ;;  %v1566_v38 = vsel %vm1518_vm9, %v5559_v37, -inf  ;;  %v1577_v4 = vmax.f32 %v1573_v52, %v1565_v46  ;;  %v1470_v24 = vrot.slane %v1469_v32, 4  ;;  %vm1507_vm7 = vcmp.lt.s32.totalorder %v5522_v19, %v7089_v40 }
 0x19a   : > { %vm13547_vm14 = vcmp.ge.s32.totalorder %v5513_v16, %v6834_v58  ;;  %v1567_v50 = vsel %vm1519_vm6, %v5571_v43, -inf  ;;  %v1578_v22 = vmax.f32 %v1574_v36, %v1566_v38  ;;  %vm1491_vm3 = vcmp.ge.s32.totalorder %v5525_v20, %v6834_v58  ;;  %vm1521_vm1 = vmand %vm1488_vm5, %vm1505_vm12 }
 0x19b   : > { %vm1520_vm10 = vmand %vm13547_vm14, %vm1504_vm2  ;;  %vm1508_vm4 = vcmp.lt.s32.totalorder %v5525_v20, %v7089_v40  ;;  %v1579_v30 = vmax.f32 %v1575_v34, %v1567_v50  ;;  %v1002_v26 = vrot.slane %v6661_v54, 1  ;;  %v1569_v52 = vsel %vm1521_vm1, %v5579_v47, -inf }
 0x19c   : > { %v1568_v28 = vsel %vm1520_vm10, %v5567_v41, -inf  ;;  %vm1522_vm2 = vmand %vm1489_vm11, %vm1506_vm15  ;;  %v7284_v0 = vmax.f32 %v6849_v2, %v1236_v44  ;;  %v1581_v46 = vmax.f32 %v1577_v4, %v1569_v52  ;;  %v7294_v38 = vstv %s7200_s22 }
 0x19d   : > { %v1580_v36 = vmax.f32 %v1576_v56, %v1568_v28  ;;  %vm1523_vm5 = vmand %vm1490_vm13, %vm1507_vm7  ;;  %v1570_v34 = vsel %vm1522_vm2, %v5575_v45, -inf  ;;  %v7296_v50 = vmax.f32 %v1469_v32, %v1470_v24  ;;  %vm1594_vm11 = vcmp.ge.s32.totalorder %v5476_v5, %v7089_v40 }
 0x19e   : > { %vm1524_vm0 = vmand %vm1491_vm3, %vm1508_vm4  ;;  %v1571_v2 = vsel %vm1523_vm5, %v5587_v51, -inf  ;;  %v1582_v44 = vmax.f32 %v1578_v22, %v1570_v34  ;;  %v1354_v56 = vrot.slane %v7117_v42, 2  ;;  %vm1595_vm12 = vcmp.ge.s32.totalorder %v5479_v6, %v7089_v40 }
 0x19f   : > { %v1572_v4 = vsel %vm1524_vm0, %v5583_v49, -inf  ;;  %v1583_v28 = vmax.f32 %v1579_v30, %v1571_v2  ;;  %vm1596_vm8 = vcmp.ge.s32.totalorder %v5482_v7, %v7089_v40  ;;  %vm1597_vm9 = vcmp.ge.s32.totalorder %v5485_v8, %v7089_v40 }
 0x1a0   : > { %v1584_v32 = vmax.f32 %v1580_v36, %v1572_v4  ;;  %vm1611_vm13 = vcmp.lt.s32.totalorder %v5476_v5, %v7294_v38  ;;  %v1585_v58 = vmax.f32 %v1581_v46, %v1582_v44  ;;  %vm1612_vm15 = vcmp.lt.s32.totalorder %v5479_v6, %v7294_v38 }
 0x1a1   : > { %vm1613_vm6 = vcmp.lt.s32.totalorder %v5482_v7, %v7294_v38  ;;  %vm1614_vm7 = vcmp.lt.s32.totalorder %v5485_v8, %v7294_v38  ;;  %vm7323_vm14 = vmand %vm1594_vm11, %vm1611_vm13  ;;  %vm1598_vm10 = vcmp.ge.s32.totalorder %v5488_v9, %v7089_v40  ;;  %vm1615_vm3 = vcmp.lt.s32.totalorder %v5488_v9, %v7294_v38 }
 0x1a2   : > { %v1586_v30 = vmax.f32 %v1583_v28, %v1584_v32  ;;  %vm7332_vm4 = vmand %vm1595_vm12, %vm1612_vm15  ;;  %vm1599_vm1 = vcmp.ge.s32.totalorder %v5493_v10, %v7089_v40  ;;  %vm1600_vm2 = vcmp.ge.s32.totalorder %v5496_v11, %v7089_v40  ;;  %vm1616_vm0 = vcmp.lt.s32.totalorder %v5493_v10, %v7294_v38 }
 0x1a3   : > { %vm7347_vm11 = vmand %vm1596_vm8, %vm1613_vm6  ;;  %vm1602_vm12 = vcmp.ge.s32.totalorder %v5502_v13, %v7089_v40  ;;  %vm1617_vm5 = vcmp.lt.s32.totalorder %v5496_v11, %v7294_v38  ;;  %vm1618_vm6 = vcmp.lt.s32.totalorder %v5499_v12, %v7294_v38  ;;  %v1675_v2 = vsel %vm7323_vm14, %v13358_v23, -inf }
 0x1a4   : > { %vm7365_vm8 = vmand %vm1597_vm9, %vm1614_vm7  ;;  %v1587_v46 = vmax.f32 %v1585_v58, %v1586_v30  ;;  %v1676_v44 = vsel %vm7332_vm4, %v13359_v21, -inf  ;;  %vm1605_vm9 = vcmp.ge.s32.totalorder %v5513_v16, %v7089_v40  ;;  %vm1619_vm7 = vcmp.lt.s32.totalorder %v5502_v13, %v7294_v38 }
 0x1a5   : > { %vm1631_vm15 = vmand %vm1598_vm10, %vm1615_vm3  ;;  %v1677_v4 = vsel %vm7347_vm11, %v13356_v27, -inf  ;;  %vm1620_vm14 = vcmp.lt.s32.totalorder %v5507_v14, %v7294_v38  ;;  %v1678_v32 = vsel %vm7365_vm8, %v13357_v25, -inf  ;;  %vm1606_vm3 = vcmp.ge.s32.totalorder %v5516_v17, %v7089_v40 }
 0x1a6   : > { %vm1632_vm13 = vmand %vm1599_vm1, %vm1616_vm0  ;;  %v1679_v28 = vsel %vm1631_vm15, %v13354_v31, -inf  ;;  %vm1621_vm4 = vcmp.lt.s32.totalorder %v5510_v15, %v7294_v38  ;;  %vm13556_vm1 = vcmp.ge.s32.totalorder %v5499_v12, %v7089_v40  ;;  %v1588_v36 = vrot.slane %v1587_v46, 4 }
 0x1a7   : > { %vm1633_vm10 = vmand %vm1600_vm2, %vm1617_vm5  ;;  %v1680_v58 = vsel %vm1632_vm13, %v13355_v29, -inf  ;;  %v1691_v24 = vmax.f32 %v1675_v2, %v1679_v28  ;;  %vm1622_vm5 = vcmp.lt.s32.totalorder %v5513_v16, %v7294_v38  ;;  %vm1607_vm11 = vcmp.ge.s32.totalorder %v5519_v18, %v7089_v40 }
 0x1a8   : > { %vm1634_vm2 = vmand %vm13556_vm1, %vm1618_vm6  ;;  %v1681_v30 = vsel %vm1633_vm10, %v5555_v35, -inf  ;;  %v1692_v52 = vmax.f32 %v1676_v44, %v1680_v58  ;;  %vm1623_vm13 = vcmp.lt.s32.totalorder %v5516_v17, %v7294_v38  ;;  %vm13557_vm15 = vcmp.ge.s32.totalorder %v5507_v14, %v7089_v40 }
 0x1a9   : > { %vm1635_vm0 = vmand %vm1602_vm12, %vm1619_vm7  ;;  %v1682_v34 = vsel %vm1634_vm2, %v5551_v33, -inf  ;;  %v1693_v2 = vmax.f32 %v1677_v4, %v1681_v30  ;;  %vm1608_vm12 = vcmp.ge.s32.totalorder %v5522_v19, %v7089_v40  ;;  %vm1624_vm6 = vcmp.lt.s32.totalorder %v5519_v18, %v7294_v38 }
 0x1aa   : > { %vm1636_vm8 = vmand %vm13557_vm15, %vm1620_vm14  ;;  %v1683_v44 = vsel %vm1635_vm0, %v5563_v39, -inf  ;;  %v1694_v28 = vmax.f32 %v1678_v32, %v1682_v34  ;;  %vm13558_vm7 = vcmp.ge.s32.totalorder %v5510_v15, %v7089_v40  ;;  %vm1609_vm14 = vcmp.ge.s32.totalorder %v5525_v20, %v7089_v40 }
 0x1ab   : > { %vm1637_vm10 = vmand %vm13558_vm7, %vm1621_vm4  ;;  %v1684_v4 = vsel %vm1636_vm8, %v5559_v37, -inf  ;;  %v1695_v58 = vmax.f32 %v1691_v24, %v1683_v44  ;;  %vm1625_vm1 = vcmp.lt.s32.totalorder %v5522_v19, %v7294_v38  ;;  %v1589_v34 = vmax.f32 %v1587_v46, %v1588_v36 }
 0x1ac   : > { %vm1638_vm2 = vmand %vm1605_vm9, %vm1622_vm5  ;;  %v1685_v32 = vsel %vm1637_vm10, %v5571_v43, -inf  ;;  %v1696_v30 = vmax.f32 %v1692_v52, %v1684_v4  ;;  %vm1626_vm4 = vcmp.lt.s32.totalorder %v5525_v20, %v7294_v38  ;;  %v13559_v22 = vrot.slane %v6622_v60, 1 }
 0x1ad   : > { %vm1639_vm0 = vmand %vm1606_vm3, %vm1623_vm13  ;;  %v1686_v24 = vsel %vm1638_vm2, %v5567_v41, -inf  ;;  %v1697_v44 = vmax.f32 %v1693_v2, %v1685_v32  ;;  %v1003_v46 = vmax.f32 %v6661_v54, %v1002_v26  ;;  %v1355_v2 = vmax.f32 %v7117_v42, %v1354_v56 }
 0x1ae   : > { %v885_v62 = vmax.f32 %v6622_v60, %v13559_v22  ;;  %vm1640_vm9 = vmand %vm1607_vm11, %vm1624_vm6  ;;  %v1687_v52 = vsel %vm1639_vm0, %v5579_v47, -inf  ;;  %v1698_v36 = vmax.f32 %v1694_v28, %v1686_v24  ;;  %vm1712_vm5 = vcmask 1040384  }
 0x1af   : > { %vm1641_vm3 = vmand %vm1608_vm12, %vm1625_vm1  ;;  %v1688_v60 = vsel %vm1640_vm9, %v5575_v45, -inf  ;;  %v1699_v54 = vmax.f32 %v1695_v58, %v1687_v52  ;;  %v13560_v26 = vrot.slane %v6696_v48, 1  ;;  %v1238_v28 = vrot.slane %v7284_v0, 1 }
 0x1b0   : > { %vm1642_vm11 = vmand %vm1609_vm14, %vm1626_vm4  ;;  %v1689_v42 = vsel %vm1641_vm3, %v5587_v51, -inf  ;;  %v1700_v56 = vmax.f32 %v1696_v30, %v1688_v60  ;;  %v13561_v4 = vrot.slane %v7296_v50, 2  ;;  %v1590_v32 = vrot.slane %v1589_v34, 2 }
 0x1b1   : > { %v1121_v22 = vmax.f32 %v6696_v48, %v13560_v26  ;;  %v1690_v24 = vsel %vm1642_vm11, %v5583_v49, -inf  ;;  %v1701_v48 = vmax.f32 %v1697_v44, %v1689_v42  ;;  %v1713_v21 = vsel %vm1712_vm5, %v885_v62, %v1003_v46 }
 0x1b2   : > { %v1473_v58 = vmax.f32 %v7296_v50, %v13561_v4  ;;  %v1702_v52 = vmax.f32 %v1698_v36, %v1690_v24  ;;  %v1703_v26 = vmax.f32 %v1699_v54, %v1700_v56  ;;  %vm1714_vm13 = vcmask 1041408  }
 0x1b3   : > { %v1356_v38 = vrot.slane %v1355_v2, 1  ;;  %v1239_v23 = vmax.f32 %v7284_v0, %v1238_v28  ;;  %v1591_v25 = vmax.f32 %v1589_v34, %v1590_v32  ;;  %v1715_v27 = vsel %vm1714_vm13, %v1713_v21, %v1121_v22 }
 0x1b4   : > { %v1704_v40 = vmax.f32 %v1701_v48, %v1702_v52  ;;  %vm1716_vm15 = vcmask 1042432   ;;  %v1474_v30 = vrot.slane %v1473_v58, 1  ;;  %vm1718_vm8 = vcmask 1043456  }
 0x1b5   : > { %v1357_v29 = vmax.f32 %v1355_v2, %v1356_v38  ;;  %v1717_v4 = vsel %vm1716_vm15, %v1715_v27, %v1239_v23  ;;  %v1592_v31 = vrot.slane %v1591_v25, 1  ;;  %vm1720_vm12 = vcmask 1044480   ;;  %v1727_v23 = vld [vmem:[%s1726_s3] sm:$0xff] }
 0x1b6   : > { %v1705_v60 = vmax.f32 %v1703_v26, %v1704_v40  ;;  %v1475_v44 = vmax.f32 %v1473_v58, %v1474_v30  ;;  %vm1722_vm6 = vcmask 1045504   ;;  %vm1724_vm7 = vcmask 1046528  }
 0x1b7   : > { %v1719_v54 = vsel %vm1718_vm8, %v1717_v4, %v1357_v29  ;;  %v1593_v46 = vmax.f32 %v1591_v25, %v1592_v31 }
 0x1b8   : > { %v1706_v50 = vrot.slane %v1705_v60, 4  ;;  %v1721_v0 = vsel %vm1720_vm12, %v1719_v54, %v1475_v44 }
 0x1b9   : > { %v1723_v34 = vsel %vm1722_vm6, %v1721_v0, %v1593_v46 }
 0x1ba   : > { %v1707_v36 = vmax.f32 %v1705_v60, %v1706_v50 }
 0x1bc   : > { %v1708_v62 = vrot.slane %v1707_v36, 2 }
 0x1be   : > { %v1709_v42 = vmax.f32 %v1707_v36, %v1708_v62 }
 0x1c0   : > { %v1710_v21 = vrot.slane %v1709_v42, 1 }
 0x1c2   : > { %v1711_v2 = vmax.f32 %v1709_v42, %v1710_v21 }
 0x1c3   :  { %747 = sbr.rel (!%p744_p11) target bundleno = 289 (0x121), region = 67 }
 0x1c4   : > { %v1725_v27 = vsel %vm1724_vm7, %v1723_v34, %v1711_v2 }
 0x1c5   : > { %v1728_v22 = vmax.f32 %v1727_v23, %v1725_v27 }
 0x1c7   : > { %1729 = vst [vmem:[%s1726_s3] sm:$0xff] %v1728_v22 }
 0x1c8 PF:  { %v7510_v25 = vadd.s32 128, %v5476_v5  ;;  %v7513_v29 = vadd.s32 128, %v5479_v6  ;;  %v7516_v31 = vadd.s32 128, %v5482_v7  ;;  %v7519_v28 = vadd.s32 128, %v5485_v8  ;;  %s7521_s1 = sld [smem:[#allocation3 + $0x2]] }
 0x1c9   :  { %v7524_v56 = vadd.s32 128, %v5488_v9  ;;  %v7527_v58 = vadd.s32 128, %v5493_v10  ;;  %v7530_v33 = vadd.s32 128, %v5496_v11  ;;  %v7533_v35 = vadd.s32 128, %v5499_v12  ;;  %s7535_s24 = sld [smem:[#allocation3 + $0x3]] }
 0x1ca   :  { %13562 = vst [vmem:[#allocation14_spill] sm:$0xff] %v7510_v25  ;;  %13563 = vst [vmem:[#allocation16_spill] sm:$0xff] %v7513_v29  ;;  %v7538_v37 = vadd.s32 128, %v5502_v13  ;;  %v7541_v39 = vadd.s32 128, %v5507_v14  ;;  %v7544_v41 = vadd.s32 128, %v5510_v15  ;;  %v7547_v43 = vadd.s32 128, %v5513_v16 }
 0x1cb   :  { %13564 = vst [vmem:[#allocation18_spill] sm:$0xff] %v7519_v28  ;;  %v7550_v45 = vadd.s32 128, %v5516_v17  ;;  %v7553_v47 = vadd.s32 128, %v5519_v18  ;;  %v7556_v49 = vadd.s32 128, %v5522_v19  ;;  %v7559_v51 = vadd.s32 128, %v5525_v20 }
 0x1cf   :  { %p4875_p12 = scmp.le.s32.totalorder %s7535_s24, 0 }
 0x1d0   :  { %s7562_s25 = smov (!%p4875_p12), 0  }
 0x1d1   :  { %4793 = sbr.rel (%p4875_p12) target bundleno = 637 (0x27d), region = 72 }
 0x1d6 LB: > { %v13565_v29 = vld [vmem:[#allocation16_spill] sm:$0xff]  ;;  %v13566_v28 = vld [vmem:[#allocation18_spill] sm:$0xff]  ;;  %s1760_s26 = sadd.s32 %s5143_s25, %s7521_s1  ;;  %s1757_s25 = sadd.s32 1, %s5143_s25   ;;  %s5143_s25 = sphi %s7562_s25, %s1757_s25  }
 0x1d7   : > { %v13567_v25 = vld [vmem:[#allocation14_spill] sm:$0xff]  ;;  %v13568_v3 = vld [vmem:[#allocation44_spill] sm:$0xff]  ;;  %s7569_s27 = sshll.u32 %s1760_s26, 3  ;;  %p1756_p13 = scmp.ge.s32.totalorder %s1757_s25, %s7535_s24 }
 0x1d8   : > { %v13569_v1 = vld [vmem:[#allocation42_spill] sm:$0xff]  ;;  %s1762_s2 = sld [smem:[#allocation4 + %s7569_s27]]  ;;  %s1763_s28 = sadd.s32 1, %s7569_s27  ;;  %v13596_v52 = vld [vmem:[#allocation48_spill] sm:$0xff] }
 0x1d9   : > { %s1764_s29 = sld [smem:[#allocation4 + %s1763_s28]]  ;;  %s1765_s30 = sadd.s32 2, %s7569_s27  ;;  %v13601_v62 = vld [vmem:[#allocation52_spill] sm:$0xff] }
 0x1da   : > { %s1767_s5 = sadd.s32 3, %s7569_s27  ;;  %s7577_s6 = sld [smem:[#allocation4 + %s1765_s30]]  ;;  %v13614_v4 = vld [vmem:[#allocation56_spill] sm:$0xff] }
 0x1db   : > { %s7579_s7 = sld [smem:[#allocation4 + %s1767_s5]]  ;;  %s1769_s8 = sadd.s32 4, %s7569_s27 }
 0x1dc   : > { %s7596_s9 = sld [smem:[#allocation4 + %s1769_s8]]  ;;  %s1771_s10 = sadd.s32 5, %s7569_s27 }
 0x1dd   : > { %s8479_s11 = sld [smem:[#allocation4 + %s1771_s10]]  ;;  %s1773_s12 = sadd.s32 6, %s7569_s27 }
 0x1de   : > { %v7575_v32 = vstv %s1762_s2  ;;  %s8600_s13 = sld [smem:[#allocation4 + %s1773_s12]]  ;;  %s1775_s14 = sadd.s32 7, %s7569_s27 }
 0x1df   : > { %vm1780_vm10 = vcmp.ge.s32.totalorder %v13567_v25, %v7575_v32  ;;  %vm1781_vm14 = vcmp.ge.s32.totalorder %v13565_v29, %v7575_v32  ;;  %v7586_v24 = vstv %s1764_s29  ;;  %vm1782_vm1 = vcmp.ge.s32.totalorder %v7516_v31, %v7575_v32  ;;  %s8876_s15 = sld [smem:[#allocation4 + %s1775_s14]]  ;;  %s1777_s16 = sadd.s32 8, %s7569_s27 }
 0x1e0   : > { %vm1797_vm2 = vcmp.lt.s32.totalorder %v13567_v25, %v7586_v24  ;;  %vm1798_vm4 = vcmp.lt.s32.totalorder %v13565_v29, %v7586_v24  ;;  %vm1799_vm0 = vcmp.lt.s32.totalorder %v7516_v31, %v7586_v24  ;;  %vm1783_vm9 = vcmp.ge.s32.totalorder %v13566_v28, %v7575_v32  ;;  %s9106_s17 = sld [smem:[#allocation4 + %s1777_s16]]  ;;  %s2738_s20 = scalar_lea.vmem %s13230_s4, %s7569_s27 }
 0x1e1   : > { %vm1800_vm3 = vcmp.lt.s32.totalorder %v13566_v28, %v7586_v24  ;;  %vm7602_vm5 = vmand %vm1780_vm10, %vm1797_vm2  ;;  %vm1784_vm11 = vcmp.ge.s32.totalorder %v7524_v56, %v7575_v32  ;;  %vm1785_vm13 = vcmp.ge.s32.totalorder %v7527_v58, %v7575_v32  ;;  %vm1786_vm15 = vcmp.ge.s32.totalorder %v7530_v33, %v7575_v32 }
 0x1e2   : > { %vm1801_vm8 = vcmp.lt.s32.totalorder %v7524_v56, %v7586_v24  ;;  %vm7614_vm12 = vmand %vm1781_vm14, %vm1798_vm4  ;;  %vm1802_vm2 = vcmp.lt.s32.totalorder %v7527_v58, %v7586_v24  ;;  %vm1803_vm6 = vcmp.lt.s32.totalorder %v7530_v33, %v7586_v24  ;;  %vm1804_vm4 = vcmp.lt.s32.totalorder %v7533_v35, %v7586_v24 }
 0x1e3   : > { %vm7629_vm14 = vmand %vm1782_vm1, %vm1799_vm0  ;;  %vm1793_vm0 = vcmp.ge.s32.totalorder %v7553_v47, %v7575_v32  ;;  %vm1806_vm7 = vcmp.lt.s32.totalorder %v7541_v39, %v7586_v24  ;;  %v7681_v60 = vstv %s7577_s6  ;;  %v7684_v50 = vstv %s7579_s7 }
 0x1e4   : > { %vm7647_vm1 = vmand %vm1783_vm9, %vm1800_vm3  ;;  %vm1805_vm3 = vcmp.lt.s32.totalorder %v7538_v37, %v7586_v24  ;;  %v1861_v44 = vsel %vm7602_vm5, %v5595_v55, -inf  ;;  %v1862_v36 = vsel %vm7614_vm12, %v5591_v53, -inf  ;;  %v1863_v46 = vsel %vm7629_vm14, %v5603_v59, -inf }
 0x1e5   : > { %vm7665_vm9 = vmand %vm1784_vm11, %vm1801_vm8  ;;  %vm1807_vm11 = vcmp.lt.s32.totalorder %v7544_v41, %v7586_v24  ;;  %v1864_v42 = vsel %vm7647_vm1, %v5599_v57, -inf  ;;  %vm1808_vm5 = vcmp.lt.s32.totalorder %v7547_v43, %v7586_v24  ;;  %vm13587_vm12 = vcmp.ge.s32.totalorder %v7538_v37, %v7575_v32 }
 0x1e6   : > { %vm7676_vm10 = vmand %vm1785_vm13, %vm1802_vm2  ;;  %v1865_v54 = vsel %vm7665_vm9, %v5611_v63, -inf  ;;  %vm13584_vm13 = vcmp.ge.s32.totalorder %v7533_v35, %v7575_v32  ;;  %v7741_v23 = vstv %s7596_s9  ;;  %vm1811_vm14 = vcmp.lt.s32.totalorder %v7556_v49, %v7586_v24 }
 0x1e7   : > { %vm7691_vm8 = vmand %vm1786_vm15, %vm1803_vm6  ;;  %v1866_v0 = vsel %vm7676_vm10, %v5607_v61, -inf  ;;  %vm1809_vm15 = vcmp.lt.s32.totalorder %v7550_v45, %v7586_v24  ;;  %vm1810_vm10 = vcmp.lt.s32.totalorder %v7553_v47, %v7586_v24  ;;  %vm13590_vm1 = vcmp.ge.s32.totalorder %v7541_v39, %v7575_v32 }
 0x1e8   : > { %vm7707_vm2 = vmand %vm13584_vm13, %vm1804_vm4  ;;  %v1867_v21 = vsel %vm7691_vm8, %v13568_v3, -inf  ;;  %vm1812_vm4 = vcmp.lt.s32.totalorder %v7559_v51, %v7586_v24  ;;  %v1877_v22 = vmax.f32 %v1861_v44, %v1865_v54  ;;  %v1878_v38 = vmax.f32 %v1862_v36, %v1866_v0  ;;  %v13600_v44 = vld [vmem:[#allocation46_spill] sm:$0xff] }
 0x1e9   : > { %vm7733_vm6 = vmand %vm13587_vm12, %vm1805_vm3  ;;  %v1868_v2 = vsel %vm7707_vm2, %v13569_v1, -inf  ;;  %vm13593_vm3 = vcmp.ge.s32.totalorder %v7544_v41, %v7575_v32  ;;  %v1879_v40 = vmax.f32 %v1863_v46, %v1867_v21  ;;  %vm1899_vm2 = vcmp.ge.s32.totalorder %v13565_v29, %v7586_v24 }
 0x1ea   : > { %vm7755_vm9 = vmand %vm13590_vm1, %vm1806_vm7  ;;  %v1869_v26 = vsel %vm7733_vm6, %v13596_v52, -inf  ;;  %v1880_v30 = vmax.f32 %v1864_v42, %v1868_v2  ;;  %vm13597_vm7 = vcmp.ge.s32.totalorder %v7547_v43, %v7575_v32  ;;  %v13605_v42 = vld [vmem:[#allocation50_spill] sm:$0xff]  ;;  %vm1900_vm6 = vcmp.ge.s32.totalorder %v7516_v31, %v7586_v24 }
 0x1eb   : > { %vm7765_vm8 = vmand %vm13593_vm3, %vm1807_vm11  ;;  %v1870_v54 = vsel %vm7755_vm9, %v13600_v44, -inf  ;;  %vm1898_vm11 = vcmp.ge.s32.totalorder %v13567_v25, %v7586_v24  ;;  %vm1901_vm1 = vcmp.ge.s32.totalorder %v13566_v28, %v7586_v24  ;;  %vm1902_vm9 = vcmp.ge.s32.totalorder %v7524_v56, %v7586_v24 }
 0x1ec   : > { %vm7778_vm13 = vmand %vm13597_vm7, %vm1808_vm5  ;;  %v1871_v36 = vsel %vm7765_vm8, %v13601_v62, -inf  ;;  %vm13602_vm5 = vcmp.ge.s32.totalorder %v7550_v45, %v7575_v32  ;;  %v1881_v34 = vmax.f32 %v1877_v22, %v1869_v26  ;;  %vm1903_vm3 = vcmp.ge.s32.totalorder %v7527_v58, %v7586_v24 }
 0x1ed   : > { %vm7798_vm12 = vmand %vm13602_vm5, %vm1809_vm15  ;;  %v1872_v0 = vsel %vm7778_vm13, %v13605_v42, -inf  ;;  %vm1915_vm7 = vcmp.lt.s32.totalorder %v13567_v25, %v7681_v60  ;;  %vm13608_vm13 = vcmp.ge.s32.totalorder %v7556_v49, %v7575_v32  ;;  %v1882_v27 = vmax.f32 %v1878_v38, %v1870_v54  ;;  %v13615_v38 = vld [vmem:[#allocation54_spill] sm:$0xff] }
 0x1ee   : > { %vm7817_vm15 = vmand %vm1793_vm0, %vm1810_vm10  ;;  %v1883_v22 = vmax.f32 %v1879_v40, %v1871_v36  ;;  %v1884_v48 = vmax.f32 %v1880_v30, %v1872_v0  ;;  %vm1916_vm10 = vcmp.lt.s32.totalorder %v13565_v29, %v7681_v60  ;;  %vm13611_vm5 = vcmp.ge.s32.totalorder %v7559_v51, %v7575_v32  ;;  %v13616_v30 = vld [vmem:[#allocation60_spill] sm:$0xff]  ;;  %v13617_v32 = vld [vmem:[#allocation58_spill] sm:$0xff] }
 0x1ef   : > { %vm7833_vm0 = vmand %vm13608_vm13, %vm1811_vm14  ;;  %v1873_v20 = vsel %vm7798_vm12, %v13614_v4, -inf  ;;  %v1874_v40 = vsel %vm7817_vm15, %v13615_v38, -inf  ;;  %vm1917_vm14 = vcmp.lt.s32.totalorder %v7516_v31, %v7681_v60  ;;  %vm1918_vm15 = vcmp.lt.s32.totalorder %v13566_v28, %v7681_v60 }
 0x1f0   : > { %vm7845_vm8 = vmand %vm13611_vm5, %vm1812_vm4  ;;  %v1875_v54 = vsel %vm7833_vm0, %v13616_v30, -inf  ;;  %vm1905_vm4 = vcmp.ge.s32.totalorder %v7533_v35, %v7586_v24  ;;  %vm1919_vm5 = vcmp.lt.s32.totalorder %v7524_v56, %v7681_v60  ;;  %vm1920_vm12 = vcmp.lt.s32.totalorder %v7527_v58, %v7681_v60 }
 0x1f1   : > { %v1876_v36 = vsel %vm7845_vm8, %v13617_v32, -inf  ;;  %vm7875_vm13 = vmand %vm1898_vm11, %vm1915_vm7  ;;  %v1885_v21 = vmax.f32 %v1881_v34, %v1873_v20  ;;  %v1886_v2 = vmax.f32 %v1882_v27, %v1874_v40  ;;  %v1887_v26 = vmax.f32 %v1883_v22, %v1875_v54 }
 0x1f2   : > { %vm7893_vm11 = vmand %vm1899_vm2, %vm1916_vm10  ;;  %v1888_v19 = vmax.f32 %v1884_v48, %v1876_v36  ;;  %vm1921_vm8 = vcmp.lt.s32.totalorder %v7530_v33, %v7681_v60  ;;  %vm1922_vm0 = vcmp.lt.s32.totalorder %v7533_v35, %v7681_v60  ;;  %vm13630_vm2 = vcmp.ge.s32.totalorder %v7530_v33, %v7586_v24 }
 0x1f3   : > { %vm7903_vm7 = vmand %vm1900_vm6, %vm1917_vm14  ;;  %v1889_v22 = vmax.f32 %v1885_v21, %v1886_v2  ;;  %vm1929_vm14 = vcmp.lt.s32.totalorder %v7556_v49, %v7681_v60  ;;  %v1979_v54 = vsel %vm7875_vm13, %v5595_v55, -inf  ;;  %v1980_v36 = vsel %vm7893_vm11, %v5591_v53, -inf }
 0x1f4   : > { %vm7921_vm6 = vmand %vm1901_vm1, %vm1918_vm15  ;;  %vm1924_vm15 = vcmp.lt.s32.totalorder %v7541_v39, %v7681_v60  ;;  %v1890_v48 = vmax.f32 %v1887_v26, %v1888_v19  ;;  %vm13636_vm13 = vcmp.ge.s32.totalorder %v7538_v37, %v7586_v24  ;;  %v1981_v0 = vsel %vm7903_vm7, %v5603_v59, -inf }
 0x1f5   : > { %vm7939_vm1 = vmand %vm1902_vm9, %vm1919_vm5  ;;  %vm1928_vm5 = vcmp.lt.s32.totalorder %v7553_v47, %v7681_v60  ;;  %vm13639_vm11 = vcmp.ge.s32.totalorder %v7541_v39, %v7586_v24  ;;  %v1982_v18 = vsel %vm7921_vm6, %v5599_v57, -inf  ;;  %vm2017_vm7 = vcmp.ge.s32.totalorder %v13565_v29, %v7681_v60 }
 0x1f6   : > { %vm7957_vm9 = vmand %vm1903_vm3, %vm1920_vm12  ;;  %v1983_v21 = vsel %vm7939_vm1, %v5611_v63, -inf  ;;  %vm13635_vm12 = vcmp.lt.s32.totalorder %v7538_v37, %v7681_v60  ;;  %v1891_v40 = vmax.f32 %v1889_v22, %v1890_v48  ;;  %vm13642_vm1 = vcmp.lt.s32.totalorder %v7544_v41, %v7681_v60 }
 0x1f7   : > { %vm7971_vm10 = vmand %vm13630_vm2, %vm1921_vm8  ;;  %v1984_v2 = vsel %vm7957_vm9, %v5607_v61, -inf  ;;  %v1995_v17 = vmax.f32 %v1979_v54, %v1983_v21  ;;  %vm2019_vm6 = vcmp.ge.s32.totalorder %v13566_v28, %v7681_v60 }
 0x1f8   : > { %vm7978_vm3 = vmand %vm1905_vm4, %vm1922_vm0  ;;  %vm1930_vm4 = vcmp.lt.s32.totalorder %v7559_v51, %v7681_v60  ;;  %v1985_v26 = vsel %vm7971_vm10, %v13568_v3, -inf  ;;  %vm2016_vm0 = vcmp.ge.s32.totalorder %v13567_v25, %v7681_v60  ;;  %vm2018_vm10 = vcmp.ge.s32.totalorder %v7516_v31, %v7681_v60 }
 0x1f9   : > { %vm8002_vm8 = vmand %vm13636_vm13, %vm13635_vm12  ;;  %v1986_v27 = vsel %vm7978_vm3, %v13569_v1, -inf  ;;  %v1996_v19 = vmax.f32 %v1980_v36, %v1984_v2  ;;  %vm13646_vm3 = vcmp.lt.s32.totalorder %v7547_v43, %v7681_v60  ;;  %vm13647_vm12 = vcmp.ge.s32.totalorder %v7547_v43, %v7586_v24 }
 0x1fa   : > { %vm8020_vm2 = vmand %vm13639_vm11, %vm1924_vm15  ;;  %vm13643_vm15 = vcmp.ge.s32.totalorder %v7544_v41, %v7586_v24  ;;  %v1987_v48 = vsel %vm8002_vm8, %v13596_v52, -inf  ;;  %v1997_v36 = vmax.f32 %v1981_v0, %v1985_v26  ;;  %vm2020_vm11 = vcmp.ge.s32.totalorder %v7524_v56, %v7681_v60 }
 0x1fb   : > { %vm8040_vm9 = vmand %vm13643_vm15, %vm13642_vm1  ;;  %v1988_v54 = vsel %vm8020_vm2, %v13600_v44, -inf  ;;  %vm13650_vm1 = vcmp.lt.s32.totalorder %v7550_v45, %v7681_v60  ;;  %vm13651_vm15 = vcmp.ge.s32.totalorder %v7550_v45, %v7586_v24  ;;  %v1998_v46 = vmax.f32 %v1982_v18, %v1986_v27 }
 0x1fc   : > { %vm8052_vm13 = vmand %vm13647_vm12, %vm13646_vm3  ;;  %v1989_v2 = vsel %vm8040_vm9, %v13601_v62, -inf  ;;  %vm2021_vm8 = vcmp.ge.s32.totalorder %v7527_v58, %v7681_v60  ;;  %vm13654_vm12 = vcmp.ge.s32.totalorder %v7553_v47, %v7586_v24  ;;  %vm2033_vm2 = vcmp.lt.s32.totalorder %v13567_v25, %v7684_v50 }
 0x1fd   : > { %vm8070_vm3 = vmand %vm13651_vm15, %vm13650_vm1  ;;  %v1990_v26 = vsel %vm8052_vm13, %v13605_v42, -inf  ;;  %v1892_v34 = vrot.slane %v1891_v40, 4  ;;  %v1999_v27 = vmax.f32 %v1995_v17, %v1987_v48  ;;  %v2000_v20 = vmax.f32 %v1996_v19, %v1988_v54 }
 0x1fe   : > { %vm8087_vm1 = vmand %vm13654_vm12, %vm1928_vm5  ;;  %vm13657_vm5 = vcmp.ge.s32.totalorder %v7556_v49, %v7586_v24  ;;  %vm2034_vm13 = vcmp.lt.s32.totalorder %v13565_v29, %v7684_v50  ;;  %vm13660_vm15 = vcmp.ge.s32.totalorder %v7559_v51, %v7586_v24  ;;  %v1991_v16 = vsel %vm8070_vm3, %v13614_v4, -inf }
 0x1ff   : > { %vm8106_vm12 = vmand %vm13657_vm5, %vm1929_vm14  ;;  %v1992_v17 = vsel %vm8087_vm1, %v13615_v38, -inf  ;;  %v2001_v19 = vmax.f32 %v1997_v36, %v1989_v2  ;;  %vm2035_vm14 = vcmp.lt.s32.totalorder %v7516_v31, %v7684_v50  ;;  %v2002_v48 = vmax.f32 %v1998_v46, %v1990_v26 }
 0x200   : > { %vm8118_vm9 = vmand %vm13660_vm15, %vm1930_vm4  ;;  %v1993_v24 = vsel %vm8106_vm12, %v13616_v30, -inf  ;;  %vm2025_vm4 = vcmp.ge.s32.totalorder %v7541_v39, %v7681_v60  ;;  %vm2036_vm15 = vcmp.lt.s32.totalorder %v13566_v28, %v7684_v50  ;;  %vm2026_vm1 = vcmp.ge.s32.totalorder %v7544_v41, %v7681_v60 }
 0x201   : > { %vm8143_vm3 = vmand %vm2016_vm0, %vm2033_vm2  ;;  %v1994_v36 = vsel %vm8118_vm9, %v13617_v32, -inf  ;;  %vm2037_vm12 = vcmp.lt.s32.totalorder %v7524_v56, %v7684_v50  ;;  %v2003_v2 = vmax.f32 %v1999_v27, %v1991_v16  ;;  %v2004_v46 = vmax.f32 %v2000_v20, %v1992_v17 }
 0x202   : > { %vm8162_vm0 = vmand %vm2017_vm7, %vm2034_vm13  ;;  %vm2038_vm9 = vcmp.lt.s32.totalorder %v7527_v58, %v7684_v50  ;;  %v8180_v26 = vmax.f32 %v1891_v40, %v1892_v34  ;;  %v2005_v16 = vmax.f32 %v2001_v19, %v1993_v24  ;;  %vm2029_vm7 = vcmp.ge.s32.totalorder %v7553_v47, %v7681_v60 }
 0x203   : > { %vm8176_vm5 = vmand %vm2018_vm10, %vm2035_vm14  ;;  %vm2039_vm13 = vcmp.lt.s32.totalorder %v7530_v33, %v7684_v50  ;;  %v2006_v27 = vmax.f32 %v2002_v48, %v1994_v36  ;;  %vm2040_vm10 = vcmp.lt.s32.totalorder %v7533_v35, %v7684_v50  ;;  %v2097_v34 = vsel %vm8143_vm3, %v5595_v55, -inf }
 0x204   : > { %vm8192_vm2 = vmand %vm2019_vm6, %vm2036_vm15  ;;  %v2098_v20 = vsel %vm8162_vm0, %v5591_v53, -inf  ;;  %vm2030_vm6 = vcmp.ge.s32.totalorder %v7556_v49, %v7681_v60  ;;  %vm2041_vm15 = vcmp.lt.s32.totalorder %v7538_v37, %v7684_v50  ;;  %v2099_v22 = vsel %vm8176_vm5, %v5603_v59, -inf }
 0x205   : > { %vm8201_vm14 = vmand %vm2020_vm11, %vm2037_vm12  ;;  %v2007_v19 = vmax.f32 %v2003_v2, %v2004_v46  ;;  %vm2042_vm3 = vcmp.lt.s32.totalorder %v7541_v39, %v7684_v50  ;;  %vm13673_vm12 = vcmp.ge.s32.totalorder %v7530_v33, %v7681_v60  ;;  %v2100_v24 = vsel %vm8192_vm2, %v5599_v57, -inf }
 0x206   : > { %vm2054_vm11 = vmand %vm2021_vm8, %vm2038_vm9  ;;  %v2101_v17 = vsel %vm8201_vm14, %v5611_v63, -inf  ;;  %vm2043_vm8 = vcmp.lt.s32.totalorder %v7544_v41, %v7684_v50  ;;  %vm13674_vm5 = vcmp.ge.s32.totalorder %v7533_v35, %v7681_v60  ;;  %v2008_v2 = vmax.f32 %v2005_v16, %v2006_v27 }
 0x207   : > { %vm2055_vm0 = vmand %vm13673_vm12, %vm2039_vm13  ;;  %v2102_v48 = vsel %vm2054_vm11, %v5607_v61, -inf  ;;  %v2113_v36 = vmax.f32 %v2097_v34, %v2101_v17  ;;  %vm2044_vm2 = vcmp.lt.s32.totalorder %v7547_v43, %v7684_v50  ;;  %vm13675_vm13 = vcmp.ge.s32.totalorder %v7538_v37, %v7681_v60 }
 0x208   : > { %vm2056_vm9 = vmand %vm13674_vm5, %vm2040_vm10  ;;  %v2103_v54 = vsel %vm2055_vm0, %v13568_v3, -inf  ;;  %v2114_v21 = vmax.f32 %v2098_v20, %v2102_v48  ;;  %vm2031_vm10 = vcmp.ge.s32.totalorder %v7559_v51, %v7681_v60  ;;  %vm2045_vm11 = vcmp.lt.s32.totalorder %v7550_v45, %v7684_v50 }
 0x209   : > { %vm8250_vm14 = vmand %vm13675_vm13, %vm2041_vm15  ;;  %v2104_v0 = vsel %vm2056_vm9, %v13569_v1, -inf  ;;  %v2115_v18 = vmax.f32 %v2099_v22, %v2103_v54  ;;  %vm2046_vm15 = vcmp.lt.s32.totalorder %v7553_v47, %v7684_v50  ;;  %vm2047_vm0 = vcmp.lt.s32.totalorder %v7556_v49, %v7684_v50 }
 0x20a   : > { %vm2058_vm12 = vmand %vm2025_vm4, %vm2042_vm3  ;;  %v2105_v16 = vsel %vm8250_vm14, %v13596_v52, -inf  ;;  %v2116_v27 = vmax.f32 %v2100_v24, %v2104_v0  ;;  %vm2048_vm3 = vcmp.lt.s32.totalorder %v7559_v51, %v7684_v50  ;;  %vm13678_vm5 = vcmp.ge.s32.totalorder %v7547_v43, %v7681_v60 }
 0x20b   : > { %vm2059_vm4 = vmand %vm2026_vm1, %vm2043_vm8  ;;  %v2106_v34 = vsel %vm2058_vm12, %v13600_v44, -inf  ;;  %v2117_v22 = vmax.f32 %v2113_v36, %v2105_v16  ;;  %v8289_v24 = vmax.f32 %v2007_v19, %v2008_v2  ;;  %vm13679_vm1 = vcmp.ge.s32.totalorder %v7550_v45, %v7681_v60 }
 0x20c   : > { %vm2060_vm9 = vmand %vm13678_vm5, %vm2044_vm2  ;;  %v2107_v20 = vsel %vm2059_vm4, %v13601_v62, -inf  ;;  %v2118_v17 = vmax.f32 %v2114_v21, %v2106_v34  ;;  %vm2134_vm2 = vcmp.ge.s32.totalorder %v13567_v25, %v7684_v50  ;;  %vm2135_vm14 = vcmp.ge.s32.totalorder %v13565_v29, %v7684_v50 }
 0x20d   : > { %vm8297_vm8 = vmand %vm13679_vm1, %vm2045_vm11  ;;  %v2108_v54 = vsel %vm2060_vm9, %v13605_v42, -inf  ;;  %v2119_v46 = vmax.f32 %v2115_v18, %v2107_v20  ;;  %vm2136_vm11 = vcmp.ge.s32.totalorder %v7516_v31, %v7684_v50  ;;  %vm2151_vm4 = vcmp.lt.s32.totalorder %v13567_v25, %v7741_v23 }
 0x20e   : > { %vm2062_vm13 = vmand %vm2029_vm7, %vm2046_vm15  ;;  %v2109_v19 = vsel %vm8297_vm8, %v13614_v4, -inf  ;;  %v2120_v36 = vmax.f32 %v2116_v27, %v2108_v54  ;;  %vm2137_vm7 = vcmp.ge.s32.totalorder %v13566_v28, %v7684_v50  ;;  %vm2138_vm15 = vcmp.ge.s32.totalorder %v7524_v56, %v7684_v50 }
 0x20f   : > { %vm2063_vm12 = vmand %vm2030_vm6, %vm2047_vm0  ;;  %v2110_v21 = vsel %vm2062_vm13, %v13615_v38, -inf  ;;  %v2121_v0 = vmax.f32 %v2117_v22, %v2109_v19  ;;  %vm2152_vm6 = vcmp.lt.s32.totalorder %v13565_v29, %v7741_v23  ;;  %vm2153_vm0 = vcmp.lt.s32.totalorder %v7516_v31, %v7741_v23 }
 0x210   : > { %vm2064_vm5 = vmand %vm2031_vm10, %vm2048_vm3  ;;  %v2111_v2 = vsel %vm2063_vm12, %v13616_v30, -inf  ;;  %v2122_v18 = vmax.f32 %v2118_v17, %v2110_v21  ;;  %vm2154_vm9 = vcmp.lt.s32.totalorder %v13566_v28, %v7741_v23  ;;  %v2010_v34 = vrot.slane %v8289_v24, 4 }
 0x211   : > { %v2112_v16 = vsel %vm2064_vm5, %v13617_v32, -inf  ;;  %v2123_v27 = vmax.f32 %v2119_v46, %v2111_v2  ;;  %vm8344_vm10 = vmand %vm2134_vm2, %vm2151_vm4  ;;  %vm2139_vm3 = vcmp.ge.s32.totalorder %v7527_v58, %v7684_v50  ;;  %vm2155_vm1 = vcmp.lt.s32.totalorder %v7524_v56, %v7741_v23 }
 0x212   : > { %v2124_v20 = vmax.f32 %v2120_v36, %v2112_v16  ;;  %vm8356_vm8 = vmand %vm2135_vm14, %vm2152_vm6  ;;  %vm2140_vm2 = vcmp.ge.s32.totalorder %v7530_v33, %v7684_v50  ;;  %vm2156_vm4 = vcmp.lt.s32.totalorder %v7527_v58, %v7741_v23  ;;  %v2125_v48 = vmax.f32 %v2121_v0, %v2122_v18 }
 0x213   : > { %vm8371_vm5 = vmand %vm2136_vm11, %vm2153_vm0  ;;  %vm2157_vm6 = vcmp.lt.s32.totalorder %v7530_v33, %v7741_v23  ;;  %vm2144_vm11 = vcmp.ge.s32.totalorder %v7544_v41, %v7684_v50  ;;  %vm2145_vm0 = vcmp.ge.s32.totalorder %v7547_v43, %v7684_v50  ;;  %vm2158_vm13 = vcmp.lt.s32.totalorder %v7533_v35, %v7741_v23 }
 0x214   : > { %v2126_v54 = vmax.f32 %v2123_v27, %v2124_v20  ;;  %vm8385_vm12 = vmand %vm2137_vm7, %vm2154_vm9  ;;  %vm2159_vm9 = vcmp.lt.s32.totalorder %v7538_v37, %v7741_v23  ;;  %v2215_v21 = vsel %vm8344_vm10, %v5595_v55, -inf  ;;  %v2216_v2 = vsel %vm8356_vm8, %v5591_v53, -inf }
 0x215   : > { %vm8403_vm7 = vmand %vm2138_vm15, %vm2155_vm1  ;;  %v2217_v0 = vsel %vm8371_vm5, %v5603_v59, -inf  ;;  %vm2160_vm15 = vcmp.lt.s32.totalorder %v7541_v39, %v7741_v23  ;;  %v2218_v18 = vsel %vm8385_vm12, %v5599_v57, -inf  ;;  %vm2161_vm10 = vcmp.lt.s32.totalorder %v7544_v41, %v7741_v23 }
 0x216   : > { %vm8412_vm14 = vmand %vm2139_vm3, %vm2156_vm4  ;;  %v2219_v16 = vsel %vm8403_vm7, %v5611_v63, -inf  ;;  %v2127_v60 = vmax.f32 %v2125_v48, %v2126_v54  ;;  %vm2162_vm1 = vcmp.lt.s32.totalorder %v7547_v43, %v7741_v23  ;;  %vm13694_vm8 = vcmp.ge.s32.totalorder %v7533_v35, %v7684_v50 }
 0x217   : > { %vm2173_vm3 = vmand %vm2140_vm2, %vm2157_vm6  ;;  %v2220_v27 = vsel %vm8412_vm14, %v5607_v61, -inf  ;;  %vm13695_vm12 = vcmp.ge.s32.totalorder %v7538_v37, %v7684_v50  ;;  %v2231_v48 = vmax.f32 %v2215_v21, %v2219_v16  ;;  %vm2163_vm5 = vcmp.lt.s32.totalorder %v7550_v45, %v7741_v23 }
 0x218   : > { %vm2174_vm2 = vmand %vm13694_vm8, %vm2158_vm13  ;;  %v2221_v20 = vsel %vm2173_vm3, %v13568_v3, -inf  ;;  %v2232_v54 = vmax.f32 %v2216_v2, %v2220_v27  ;;  %vm2147_vm13 = vcmp.ge.s32.totalorder %v7553_v47, %v7684_v50  ;;  %vm13698_vm14 = vcmp.ge.s32.totalorder %v7541_v39, %v7684_v50 }
 0x219   : > { %vm8457_vm4 = vmand %vm13695_vm12, %vm2159_vm9  ;;  %v2222_v17 = vsel %vm2174_vm2, %v13569_v1, -inf  ;;  %v2233_v46 = vmax.f32 %v2217_v0, %v2221_v20  ;;  %vm2148_vm7 = vcmp.ge.s32.totalorder %v7556_v49, %v7684_v50  ;;  %vm2149_vm9 = vcmp.ge.s32.totalorder %v7559_v51, %v7684_v50 }
 0x21a   : > { %vm8472_vm6 = vmand %vm13698_vm14, %vm2160_vm15  ;;  %v2223_v36 = vsel %vm8457_vm4, %v13596_v52, -inf  ;;  %v2234_v21 = vmax.f32 %v2218_v18, %v2222_v17  ;;  %vm2164_vm3 = vcmp.lt.s32.totalorder %v7553_v47, %v7741_v23  ;;  %v2128_v0 = vrot.slane %v2127_v60, 4 }
 0x21b   : > { %vm2177_vm15 = vmand %vm2144_vm11, %vm2161_vm10  ;;  %v2224_v2 = vsel %vm8472_vm6, %v13600_v44, -inf  ;;  %vm2165_vm8 = vcmp.lt.s32.totalorder %v7556_v49, %v7741_v23  ;;  %vm2166_vm2 = vcmp.lt.s32.totalorder %v7559_v51, %v7741_v23  ;;  %vm13701_vm11 = vcmp.ge.s32.totalorder %v7550_v45, %v7684_v50 }
 0x21c   : > { %vm2178_vm12 = vmand %vm2145_vm0, %vm2162_vm1  ;;  %v2225_v18 = vsel %vm2177_vm15, %v13601_v62, -inf  ;;  %v2235_v20 = vmax.f32 %v2231_v48, %v2223_v36  ;;  %v2236_v22 = vmax.f32 %v2232_v54, %v2224_v2  ;;  %v2011_v19 = vmax.f32 %v8289_v24, %v2010_v34 }
 0x21d   : > { %vm8513_vm10 = vmand %vm13701_vm11, %vm2163_vm5  ;;  %v2226_v27 = vsel %vm2178_vm12, %v13605_v42, -inf  ;;  %v2237_v17 = vmax.f32 %v2233_v46, %v2225_v18  ;;  %v13704_v14 = vrot.slane %v8180_v26, 2  ;;  %v2129_v34 = vmax.f32 %v2127_v60, %v2128_v0 }
 0x21e   : > { %vm2180_vm0 = vmand %vm2147_vm13, %vm2164_vm3  ;;  %v2227_v40 = vsel %vm8513_vm10, %v13614_v4, -inf  ;;  %v2238_v15 = vmax.f32 %v2234_v21, %v2226_v27  ;;  %v2012_v36 = vrot.slane %v2011_v19, 2  ;;  %vm2252_vm13 = vcmp.ge.s32.totalorder %v13567_v25, %v7741_v23 }
 0x21f   : > { %v8528_v13 = vmax.f32 %v8180_v26, %v13704_v14  ;;  %vm2181_vm1 = vmand %vm2148_vm7, %vm2165_vm8  ;;  %v2228_v24 = vsel %vm2180_vm0, %v13615_v38, -inf  ;;  %v2239_v26 = vmax.f32 %v2235_v20, %v2227_v40  ;;  %vm2253_vm5 = vcmp.ge.s32.totalorder %v13565_v29, %v7741_v23 }
 0x220   : > { %vm2182_vm4 = vmand %vm2149_vm9, %vm2166_vm2  ;;  %v2229_v48 = vsel %vm2181_vm1, %v13616_v30, -inf  ;;  %v2240_v54 = vmax.f32 %v2236_v22, %v2228_v24  ;;  %vm2254_vm14 = vcmp.ge.s32.totalorder %v7516_v31, %v7741_v23  ;;  %v8550_v50 = vstv %s8479_s11 }
 0x221   : > { %v2230_v14 = vsel %vm2182_vm4, %v13617_v32, -inf  ;;  %v2241_v46 = vmax.f32 %v2237_v17, %v2229_v48  ;;  %v2130_v2 = vrot.slane %v2129_v34, 2  ;;  %vm2269_vm6 = vcmp.lt.s32.totalorder %v13567_v25, %v8550_v50 }
 0x222   : > { %v2242_v21 = vmax.f32 %v2238_v15, %v2230_v14  ;;  %vm2270_vm7 = vcmp.lt.s32.totalorder %v13565_v29, %v8550_v50  ;;  %vm2271_vm9 = vcmp.lt.s32.totalorder %v7516_v31, %v8550_v50  ;;  %v2243_v15 = vmax.f32 %v2239_v26, %v2240_v54  ;;  %vm8563_vm8 = vmand %vm2252_vm13, %vm2269_vm6 }
 0x223   : > { %vm2255_vm3 = vcmp.ge.s32.totalorder %v13566_v28, %v7741_v23  ;;  %vm2272_vm15 = vcmp.lt.s32.totalorder %v13566_v28, %v8550_v50  ;;  %v8567_v18 = vmax.f32 %v2011_v19, %v2012_v36  ;;  %vm2256_vm2 = vcmp.ge.s32.totalorder %v7524_v56, %v7741_v23  ;;  %vm8578_vm10 = vmand %vm2253_vm5, %vm2270_vm7 }
 0x224   : > { %v2244_v40 = vmax.f32 %v2241_v46, %v2242_v21  ;;  %vm2257_vm12 = vcmp.ge.s32.totalorder %v7527_v58, %v7741_v23  ;;  %vm2273_vm11 = vcmp.lt.s32.totalorder %v7524_v56, %v8550_v50  ;;  %vm2258_vm0 = vcmp.ge.s32.totalorder %v7530_v33, %v7741_v23  ;;  %vm8596_vm5 = vmand %vm2254_vm14, %vm2271_vm9 }
 0x225   : > { %vm2259_vm1 = vcmp.ge.s32.totalorder %v7533_v35, %v7741_v23  ;;  %vm2274_vm13 = vcmp.lt.s32.totalorder %v7527_v58, %v8550_v50  ;;  %v8602_v20 = vmax.f32 %v2129_v34, %v2130_v2  ;;  %vm2275_vm4 = vcmp.lt.s32.totalorder %v7530_v33, %v8550_v50  ;;  %vm8616_vm14 = vmand %vm2255_vm3, %vm2272_vm15 }
 0x226   : > { %v2245_v17 = vmax.f32 %v2243_v15, %v2244_v40  ;;  %vm2263_vm9 = vcmp.ge.s32.totalorder %v7547_v43, %v7741_v23  ;;  %vm2276_vm6 = vcmp.lt.s32.totalorder %v7533_v35, %v8550_v50  ;;  %vm8632_vm3 = vmand %vm2256_vm2, %vm2273_vm11  ;;  %vm2277_vm15 = vcmp.lt.s32.totalorder %v7538_v37, %v8550_v50 }
 0x227   : > { %vm8641_vm7 = vmand %vm2257_vm12, %vm2274_vm13  ;;  %v2333_v34 = vsel %vm8563_vm8, %v5595_v55, -inf  ;;  %v2334_v48 = vsel %vm8578_vm10, %v5591_v53, -inf  ;;  %v2337_v14 = vsel %vm8632_vm3, %v5611_v63, -inf  ;;  %vm2278_vm2 = vcmp.lt.s32.totalorder %v7541_v39, %v8550_v50 }
 0x228   : > { %vm8659_vm12 = vmand %vm2258_vm0, %vm2275_vm4  ;;  %v2335_v54 = vsel %vm8596_vm5, %v5603_v59, -inf  ;;  %v2336_v46 = vsel %vm8616_vm14, %v5599_v57, -inf  ;;  %v2338_v36 = vsel %vm8641_vm7, %v5607_v61, -inf  ;;  %vm2265_vm8 = vcmp.ge.s32.totalorder %v7553_v47, %v7741_v23 }
 0x229   : > { %vm2279_vm11 = vcmp.lt.s32.totalorder %v7544_v41, %v8550_v50  ;;  %vm2280_vm10 = vcmp.lt.s32.totalorder %v7547_v43, %v8550_v50  ;;  %vm2292_vm0 = vmand %vm2259_vm1, %vm2276_vm6  ;;  %v2339_v21 = vsel %vm8659_vm12, %v13568_v3, -inf  ;;  %vm2281_vm4 = vcmp.lt.s32.totalorder %v7550_v45, %v8550_v50 }
 0x22a   : > { %vm13719_vm13 = vcmp.ge.s32.totalorder %v7538_v37, %v7741_v23  ;;  %v2340_v15 = vsel %vm2292_vm0, %v13569_v1, -inf  ;;  %v2349_v40 = vmax.f32 %v2333_v34, %v2337_v14  ;;  %v2350_v0 = vmax.f32 %v2334_v48, %v2338_v36 }
 0x22b   : > { %vm8695_vm5 = vmand %vm13719_vm13, %vm2277_vm15  ;;  %v2246_v16 = vrot.slane %v2245_v17, 4  ;;  %vm13722_vm1 = vcmp.ge.s32.totalorder %v7541_v39, %v7741_v23  ;;  %v2351_v19 = vmax.f32 %v2335_v54, %v2339_v21  ;;  %v2352_v24 = vmax.f32 %v2336_v46, %v2340_v15 }
 0x22c   : > { %vm8706_vm6 = vmand %vm13722_vm1, %vm2278_vm2  ;;  %v2341_v22 = vsel %vm8695_vm5, %v13596_v52, -inf  ;;  %vm2266_vm7 = vcmp.ge.s32.totalorder %v7556_v49, %v7741_v23  ;;  %vm2267_vm14 = vcmp.ge.s32.totalorder %v7559_v51, %v7741_v23  ;;  %vm2282_vm3 = vcmp.lt.s32.totalorder %v7553_v47, %v8550_v50 }
 0x22d   : > { %vm13725_vm15 = vcmp.ge.s32.totalorder %v7544_v41, %v7741_v23  ;;  %v2342_v34 = vsel %vm8706_vm6, %v13600_v44, -inf  ;;  %vm2283_vm12 = vcmp.lt.s32.totalorder %v7556_v49, %v8550_v50  ;;  %vm2284_vm0 = vcmp.lt.s32.totalorder %v7559_v51, %v8550_v50  ;;  %vm2296_vm13 = vmand %vm2263_vm9, %vm2280_vm10 }
 0x22e   : > { %vm2295_vm2 = vmand %vm13725_vm15, %vm2279_vm11  ;;  %v8740_v14 = vstv %s8600_s13  ;;  %vm13726_vm11 = vcmp.ge.s32.totalorder %v7550_v45, %v7741_v23  ;;  %v2344_v54 = vsel %vm2296_vm13, %v13605_v42, -inf  ;;  %v2353_v46 = vmax.f32 %v2349_v40, %v2341_v22 }
 0x22f   : > { %v2343_v48 = vsel %vm2295_vm2, %v13601_v62, -inf  ;;  %vm8748_vm5 = vmand %vm13726_vm11, %vm2281_vm4  ;;  %v2354_v36 = vmax.f32 %v2350_v0, %v2342_v34  ;;  %vm2370_vm9 = vcmp.ge.s32.totalorder %v13567_v25, %v8550_v50  ;;  %v8755_v21 = vmax.f32 %v2245_v17, %v2246_v16 }
 0x230   : > { %vm8760_vm10 = vmand %vm2265_vm8, %vm2282_vm3  ;;  %v2345_v15 = vsel %vm8748_vm5, %v13614_v4, -inf  ;;  %v2355_v27 = vmax.f32 %v2351_v19, %v2343_v48  ;;  %v2356_v60 = vmax.f32 %v2352_v24, %v2344_v54  ;;  %vm2371_vm8 = vcmp.ge.s32.totalorder %v13565_v29, %v8550_v50 }
 0x231   : > { %vm8773_vm4 = vmand %vm2266_vm7, %vm2283_vm12  ;;  %v2346_v40 = vsel %vm8760_vm10, %v13615_v38, -inf  ;;  %vm2372_vm1 = vcmp.ge.s32.totalorder %v7516_v31, %v8550_v50  ;;  %vm2387_vm6 = vcmp.lt.s32.totalorder %v13567_v25, %v8740_v14  ;;  %vm2373_vm3 = vcmp.ge.s32.totalorder %v13566_v28, %v8550_v50 }
 0x232   : > { %vm2300_vm7 = vmand %vm2267_vm14, %vm2284_vm0  ;;  %v2347_v0 = vsel %vm8773_vm4, %v13616_v30, -inf  ;;  %vm2388_vm15 = vcmp.lt.s32.totalorder %v13565_v29, %v8740_v14  ;;  %vm2389_vm2 = vcmp.lt.s32.totalorder %v7516_v31, %v8740_v14  ;;  %v2357_v22 = vmax.f32 %v2353_v46, %v2345_v15 }
 0x233   : > { %v2348_v16 = vsel %vm2300_vm7, %v13617_v32, -inf  ;;  %v2358_v19 = vmax.f32 %v2354_v36, %v2346_v40  ;;  %vm2390_vm14 = vcmp.lt.s32.totalorder %v13566_v28, %v8740_v14  ;;  %vm8807_vm12 = vmand %vm2370_vm9, %vm2387_vm6  ;;  %v2359_v24 = vmax.f32 %v2355_v27, %v2347_v0 }
 0x234   : > { %v2360_v34 = vmax.f32 %v2356_v60, %v2348_v16  ;;  %vm2374_vm0 = vcmp.ge.s32.totalorder %v7524_v56, %v8550_v50  ;;  %vm2391_vm13 = vcmp.lt.s32.totalorder %v7524_v56, %v8740_v14  ;;  %vm8818_vm11 = vmand %vm2371_vm8, %vm2388_vm15  ;;  %vm2375_vm5 = vcmp.ge.s32.totalorder %v7527_v58, %v8550_v50 }
 0x235   : > { %vm2376_vm9 = vcmp.ge.s32.totalorder %v7530_v33, %v8550_v50  ;;  %vm2392_vm4 = vcmp.lt.s32.totalorder %v7527_v58, %v8740_v14  ;;  %vm8837_vm8 = vmand %vm2372_vm1, %vm2389_vm2  ;;  %vm2378_vm6 = vcmp.ge.s32.totalorder %v7538_v37, %v8550_v50  ;;  %vm2393_vm10 = vcmp.lt.s32.totalorder %v7530_v33, %v8740_v14 }
 0x236   : > { %vm8855_vm1 = vmand %vm2373_vm3, %vm2390_vm14  ;;  %v2361_v54 = vmax.f32 %v2357_v22, %v2358_v19  ;;  %vm2394_vm2 = vcmp.lt.s32.totalorder %v7533_v35, %v8740_v14  ;;  %vm2395_vm15 = vcmp.lt.s32.totalorder %v7538_v37, %v8740_v14  ;;  %v2451_v36 = vsel %vm8807_vm12, %v5595_v55, -inf }
 0x237   : > { %vm8869_vm7 = vmand %vm2374_vm0, %vm2391_vm13  ;;  %v2362_v2 = vmax.f32 %v2359_v24, %v2360_v34  ;;  %v2452_v27 = vsel %vm8818_vm11, %v5591_v53, -inf  ;;  %v2453_v17 = vsel %vm8837_vm8, %v5603_v59, -inf  ;;  %vm2381_vm14 = vcmp.ge.s32.totalorder %v7547_v43, %v8550_v50 }
 0x238   : > { %vm8881_vm3 = vmand %vm2375_vm5, %vm2392_vm4  ;;  %v2455_v40 = vsel %vm8869_vm7, %v5611_v63, -inf  ;;  %vm2396_vm12 = vcmp.lt.s32.totalorder %v7541_v39, %v8740_v14  ;;  %v2454_v0 = vsel %vm8855_vm1, %v5599_v57, -inf  ;;  %vm2382_vm13 = vcmp.ge.s32.totalorder %v7550_v45, %v8550_v50 }
 0x239   : > { %vm2409_vm0 = vmand %vm2376_vm9, %vm2393_vm10  ;;  %v2456_v16 = vsel %vm8881_vm3, %v5607_v61, -inf  ;;  %vm2397_vm11 = vcmp.lt.s32.totalorder %v7544_v41, %v8740_v14  ;;  %vm13745_vm5 = vcmp.ge.s32.totalorder %v7533_v35, %v8550_v50  ;;  %v2467_v19 = vmax.f32 %v2451_v36, %v2455_v40 }
 0x23a   : > { %vm2410_vm9 = vmand %vm13745_vm5, %vm2394_vm2  ;;  %v2457_v22 = vsel %vm2409_vm0, %v13568_v3, -inf  ;;  %vm2398_vm10 = vcmp.lt.s32.totalorder %v7547_v43, %v8740_v14  ;;  %v2468_v34 = vmax.f32 %v2452_v27, %v2456_v16  ;;  %v2363_v60 = vmax.f32 %v2361_v54, %v2362_v2 }
 0x23b   : > { %vm8929_vm4 = vmand %vm2378_vm6, %vm2395_vm15  ;;  %v2458_v24 = vsel %vm2410_vm9, %v13569_v1, -inf  ;;  %v2469_v48 = vmax.f32 %v2453_v17, %v2457_v22  ;;  %vm2399_vm8 = vcmp.lt.s32.totalorder %v7550_v45, %v8740_v14  ;;  %vm13748_vm7 = vcmp.ge.s32.totalorder %v7541_v39, %v8550_v50 }
 0x23c   : > { %vm8942_vm1 = vmand %vm13748_vm7, %vm2396_vm12  ;;  %v2459_v46 = vsel %vm8929_vm4, %v13596_v52, -inf  ;;  %v2470_v36 = vmax.f32 %v2454_v0, %v2458_v24  ;;  %vm2383_vm6 = vcmp.ge.s32.totalorder %v7553_v47, %v8550_v50  ;;  %vm2384_vm15 = vcmp.ge.s32.totalorder %v7556_v49, %v8550_v50 }
 0x23d   : > { %vm2400_vm2 = vcmp.lt.s32.totalorder %v7553_v47, %v8740_v14  ;;  %vm13751_vm3 = vcmp.ge.s32.totalorder %v7544_v41, %v8550_v50  ;;  %v2460_v54 = vsel %vm8942_vm1, %v13600_v44, -inf  ;;  %vm2385_vm0 = vcmp.ge.s32.totalorder %v7559_v51, %v8550_v50  ;;  %vm2414_vm9 = vmand %vm2381_vm14, %vm2398_vm10 }
 0x23e   : > { %vm2413_vm12 = vmand %vm13751_vm3, %vm2397_vm11  ;;  %vm2401_vm5 = vcmp.lt.s32.totalorder %v7556_v49, %v8740_v14  ;;  %v2471_v15 = vmax.f32 %v2467_v19, %v2459_v46  ;;  %vm2402_vm11 = vcmp.lt.s32.totalorder %v7559_v51, %v8740_v14  ;;  %v2462_v17 = vsel %vm2414_vm9, %v13605_v42, -inf }
 0x23f   : > { %v2461_v2 = vsel %vm2413_vm12, %v13601_v62, -inf  ;;  %vm8983_vm4 = vmand %vm2382_vm13, %vm2399_vm8  ;;  %v2472_v40 = vmax.f32 %v2468_v34, %v2460_v54  ;;  %v2364_v16 = vrot.slane %v2363_v60, 4  ;;  %v2474_v19 = vmax.f32 %v2470_v36, %v2462_v17 }
 0x240   : > { %v2473_v0 = vmax.f32 %v2469_v48, %v2461_v2  ;;  %vm2416_vm14 = vmand %vm2383_vm6, %vm2400_vm2  ;;  %v2463_v22 = vsel %vm8983_vm4, %v13614_v4, -inf  ;;  %v8995_v23 = vstv %s8876_s15  ;;  %v2248_v24 = vrot.slane %v8755_v21, 2 }
 0x241   : > { %vm2417_vm13 = vmand %vm2384_vm15, %vm2401_vm5  ;;  %v2464_v34 = vsel %vm2416_vm14, %v13615_v38, -inf  ;;  %vm2488_vm10 = vcmp.ge.s32.totalorder %v13567_v25, %v8740_v14  ;;  %vm2489_vm8 = vcmp.ge.s32.totalorder %v13565_v29, %v8740_v14  ;;  %v2475_v26 = vmax.f32 %v2471_v15, %v2463_v22 }
 0x242   : > { %vm2418_vm7 = vmand %vm2385_vm0, %vm2402_vm11  ;;  %v2465_v48 = vsel %vm2417_vm13, %v13616_v30, -inf  ;;  %vm2490_vm1 = vcmp.ge.s32.totalorder %v7516_v31, %v8740_v14  ;;  %vm2491_vm6 = vcmp.ge.s32.totalorder %v13566_v28, %v8740_v14  ;;  %v2476_v36 = vmax.f32 %v2472_v40, %v2464_v34 }
 0x243   : > { %v2466_v46 = vsel %vm2418_vm7, %v13617_v32, -inf  ;;  %v2477_v54 = vmax.f32 %v2473_v0, %v2465_v48  ;;  %vm2505_vm15 = vcmp.lt.s32.totalorder %v13567_v25, %v8995_v23  ;;  %v9023_v2 = vmax.f32 %v2363_v60, %v2364_v16 }
 0x244   : > { %v2478_v50 = vmax.f32 %v2474_v19, %v2466_v46  ;;  %vm2492_vm2 = vcmp.ge.s32.totalorder %v7524_v56, %v8740_v14  ;;  %vm2506_vm3 = vcmp.lt.s32.totalorder %v13565_v29, %v8995_v23  ;;  %vm9032_vm12 = vmand %vm2488_vm10, %vm2505_vm15  ;;  %vm2493_vm0 = vcmp.ge.s32.totalorder %v7527_v58, %v8740_v14 }
 0x245   : > { %vm2507_vm5 = vcmp.lt.s32.totalorder %v7516_v31, %v8995_v23  ;;  %vm2508_vm9 = vcmp.lt.s32.totalorder %v13566_v28, %v8995_v23  ;;  %vm2509_vm11 = vcmp.lt.s32.totalorder %v7524_v56, %v8995_v23  ;;  %vm9047_vm4 = vmand %vm2489_vm8, %vm2506_vm3  ;;  %vm2494_vm14 = vcmp.ge.s32.totalorder %v7530_v33, %v8740_v14 }
 0x246   : > { %vm2510_vm7 = vcmp.lt.s32.totalorder %v7527_v58, %v8995_v23  ;;  %vm9062_vm15 = vmand %vm2490_vm1, %vm2507_vm5  ;;  %v2479_v17 = vmax.f32 %v2475_v26, %v2476_v36  ;;  %v2480_v40 = vmax.f32 %v2477_v54, %v2478_v50  ;;  %vm2511_vm3 = vcmp.lt.s32.totalorder %v7530_v33, %v8995_v23 }
 0x247   : > { %vm9074_vm10 = vmand %vm2491_vm6, %vm2508_vm9  ;;  %vm2498_vm1 = vcmp.ge.s32.totalorder %v7544_v41, %v8740_v14  ;;  %vm2512_vm13 = vcmp.lt.s32.totalorder %v7533_v35, %v8995_v23  ;;  %vm2513_vm8 = vcmp.lt.s32.totalorder %v7538_v37, %v8995_v23  ;;  %vm2514_vm9 = vcmp.lt.s32.totalorder %v7541_v39, %v8995_v23 }
 0x248   : > { %vm2525_vm6 = vmand %vm2492_vm2, %vm2509_vm11  ;;  %v2569_v16 = vsel %vm9032_vm12, %v5595_v55, -inf  ;;  %v2570_v22 = vsel %vm9047_vm4, %v5591_v53, -inf  ;;  %v2571_v19 = vsel %vm9062_vm15, %v5603_v59, -inf  ;;  %vm2515_vm2 = vcmp.lt.s32.totalorder %v7544_v41, %v8995_v23 }
 0x249   : > { %vm2526_vm5 = vmand %vm2493_vm0, %vm2510_vm7  ;;  %v2572_v34 = vsel %vm9074_vm10, %v5599_v57, -inf  ;;  %v2573_v48 = vsel %vm2525_vm6, %v5611_v63, -inf  ;;  %v2481_v46 = vmax.f32 %v2479_v17, %v2480_v40  ;;  %vm13762_vm12 = vcmp.ge.s32.totalorder %v7533_v35, %v8740_v14 }
 0x24a   : > { %vm2527_vm0 = vmand %vm2494_vm14, %vm2511_vm3  ;;  %v2574_v26 = vsel %vm2526_vm5, %v5607_v61, -inf  ;;  %v2585_v54 = vmax.f32 %v2569_v16, %v2573_v48  ;;  %vm2500_vm4 = vcmp.ge.s32.totalorder %v7550_v45, %v8740_v14  ;;  %vm2516_vm14 = vcmp.lt.s32.totalorder %v7547_v43, %v8995_v23 }
 0x24b   : > { %vm2528_vm11 = vmand %vm13762_vm12, %vm2512_vm13  ;;  %v2575_v36 = vsel %vm2527_vm0, %v13568_v3, -inf  ;;  %v2586_v50 = vmax.f32 %v2570_v22, %v2574_v26  ;;  %vm13763_vm10 = vcmp.ge.s32.totalorder %v7538_v37, %v8740_v14  ;;  %vm2501_vm13 = vcmp.ge.s32.totalorder %v7553_v47, %v8740_v14 }
 0x24c   : > { %vm2529_vm7 = vmand %vm13763_vm10, %vm2513_vm8  ;;  %v2576_v15 = vsel %vm2528_vm11, %v13569_v1, -inf  ;;  %v2587_v60 = vmax.f32 %v2571_v19, %v2575_v36  ;;  %vm2517_vm15 = vcmp.lt.s32.totalorder %v7550_v45, %v8995_v23  ;;  %vm13764_vm3 = vcmp.ge.s32.totalorder %v7541_v39, %v8740_v14 }
 0x24d   : > { %vm2530_vm5 = vmand %vm13764_vm3, %vm2514_vm9  ;;  %v2577_v27 = vsel %vm2529_vm7, %v13596_v52, -inf  ;;  %v2588_v17 = vmax.f32 %v2572_v34, %v2576_v15  ;;  %vm2502_vm8 = vcmp.ge.s32.totalorder %v7556_v49, %v8740_v14  ;;  %vm2518_vm6 = vcmp.lt.s32.totalorder %v7553_v47, %v8995_v23 }
 0x24e   : > { %vm2531_vm0 = vmand %vm2498_vm1, %vm2515_vm2  ;;  %v2578_v40 = vsel %vm2530_vm5, %v13600_v44, -inf  ;;  %v2589_v0 = vmax.f32 %v2585_v54, %v2577_v27  ;;  %v2482_v16 = vrot.slane %v2481_v46, 4  ;;  %vm2519_vm9 = vcmp.lt.s32.totalorder %v7556_v49, %v8995_v23 }
 0x24f   : > { %vm13765_vm12 = vcmp.ge.s32.totalorder %v7547_v43, %v8740_v14  ;;  %v2579_v22 = vsel %vm2531_vm0, %v13601_v62, -inf  ;;  %v2590_v19 = vmax.f32 %v2586_v50, %v2578_v40  ;;  %vm2503_vm1 = vcmp.ge.s32.totalorder %v7559_v51, %v8740_v14  ;;  %vm2533_vm10 = vmand %vm2500_vm4, %vm2517_vm15 }
 0x250   : > { %vm2532_vm11 = vmand %vm13765_vm12, %vm2516_vm14  ;;  %vm2520_vm2 = vcmp.lt.s32.totalorder %v7559_v51, %v8995_v23  ;;  %v2591_v48 = vmax.f32 %v2587_v60, %v2579_v22  ;;  %v2014_v26 = vrot.slane %v8567_v18, 1  ;;  %v2581_v54 = vsel %vm2533_vm10, %v13614_v4, -inf }
 0x251   : > { %v2580_v34 = vsel %vm2532_vm11, %v13605_v42, -inf  ;;  %vm2534_vm14 = vmand %vm2501_vm13, %vm2518_vm6  ;;  %v9190_v15 = vmax.f32 %v8755_v21, %v2248_v24  ;;  %v2593_v27 = vmax.f32 %v2589_v0, %v2581_v54  ;;  %v9200_v40 = vstv %s9106_s17 }
 0x252   : > { %v2592_v50 = vmax.f32 %v2588_v17, %v2580_v34  ;;  %vm2535_vm4 = vmand %vm2502_vm8, %vm2519_vm9  ;;  %v2582_v60 = vsel %vm2534_vm14, %v13615_v38, -inf  ;;  %v9202_v22 = vmax.f32 %v2481_v46, %v2482_v16  ;;  %vm2606_vm13 = vcmp.ge.s32.totalorder %v13567_v25, %v8995_v23 }
 0x253   : > { %vm2536_vm7 = vmand %vm2503_vm1, %vm2520_vm2  ;;  %v2583_v21 = vsel %vm2535_vm4, %v13616_v30, -inf  ;;  %v2594_v24 = vmax.f32 %v2590_v19, %v2582_v60  ;;  %v2366_v17 = vrot.slane %v9023_v2, 2  ;;  %vm2607_vm15 = vcmp.ge.s32.totalorder %v13565_v29, %v8995_v23 }
 0x254   : > { %v2584_v0 = vsel %vm2536_vm7, %v13617_v32, -inf  ;;  %v2595_v34 = vmax.f32 %v2591_v48, %v2583_v21  ;;  %vm2608_vm3 = vcmp.ge.s32.totalorder %v7516_v31, %v8995_v23  ;;  %vm2609_vm5 = vcmp.ge.s32.totalorder %v13566_v28, %v8995_v23 }
 0x255   : > { %v2596_v46 = vmax.f32 %v2592_v50, %v2584_v0  ;;  %vm2623_vm8 = vcmp.lt.s32.totalorder %v13567_v25, %v9200_v40  ;;  %v2597_v14 = vmax.f32 %v2593_v27, %v2594_v24  ;;  %vm2624_vm6 = vcmp.lt.s32.totalorder %v13565_v29, %v9200_v40 }
 0x256   : > { %vm2625_vm0 = vcmp.lt.s32.totalorder %v7516_v31, %v9200_v40  ;;  %vm2626_vm9 = vcmp.lt.s32.totalorder %v13566_v28, %v9200_v40  ;;  %vm9229_vm12 = vmand %vm2606_vm13, %vm2623_vm8  ;;  %vm2610_vm11 = vcmp.ge.s32.totalorder %v7524_v56, %v8995_v23  ;;  %vm2627_vm1 = vcmp.lt.s32.totalorder %v7524_v56, %v9200_v40 }
 0x257   : > { %v2598_v48 = vmax.f32 %v2595_v34, %v2596_v46  ;;  %vm9238_vm2 = vmand %vm2607_vm15, %vm2624_vm6  ;;  %vm2611_vm10 = vcmp.ge.s32.totalorder %v7527_v58, %v8995_v23  ;;  %vm2612_vm14 = vcmp.ge.s32.totalorder %v7530_v33, %v8995_v23  ;;  %vm2628_vm7 = vcmp.lt.s32.totalorder %v7527_v58, %v9200_v40 }
 0x258   : > { %vm9253_vm13 = vmand %vm2608_vm3, %vm2625_vm0  ;;  %vm2614_vm15 = vcmp.ge.s32.totalorder %v7538_v37, %v8995_v23  ;;  %vm2629_vm4 = vcmp.lt.s32.totalorder %v7530_v33, %v9200_v40  ;;  %vm2630_vm0 = vcmp.lt.s32.totalorder %v7533_v35, %v9200_v40  ;;  %v2687_v21 = vsel %vm9229_vm12, %v5595_v55, -inf }
 0x259   : > { %vm9271_vm3 = vmand %vm2609_vm5, %vm2626_vm9  ;;  %v2599_v27 = vmax.f32 %v2597_v14, %v2598_v48  ;;  %v2688_v24 = vsel %vm9238_vm2, %v5591_v53, -inf  ;;  %vm2617_vm5 = vcmp.ge.s32.totalorder %v7547_v43, %v8995_v23  ;;  %vm2631_vm9 = vcmp.lt.s32.totalorder %v7538_v37, %v9200_v40 }
 0x25a   : > { %vm2643_vm6 = vmand %vm2610_vm11, %vm2627_vm1  ;;  %v2689_v0 = vsel %vm9253_vm13, %v5603_v59, -inf  ;;  %vm2632_vm12 = vcmp.lt.s32.totalorder %v7541_v39, %v9200_v40  ;;  %v2690_v46 = vsel %vm9271_vm3, %v5599_v57, -inf  ;;  %vm2618_vm1 = vcmp.ge.s32.totalorder %v7550_v45, %v8995_v23 }
 0x25b   : > { %vm2644_vm8 = vmand %vm2611_vm10, %vm2628_vm7  ;;  %v2691_v34 = vsel %vm2643_vm6, %v5611_v63, -inf  ;;  %vm2633_vm2 = vcmp.lt.s32.totalorder %v7544_v41, %v9200_v40  ;;  %vm13774_vm10 = vcmp.ge.s32.totalorder %v7533_v35, %v8995_v23  ;;  %v2600_v50 = vrot.slane %v2599_v27, 4 }
 0x25c   : > { %vm2645_vm11 = vmand %vm2612_vm14, %vm2629_vm4  ;;  %v2692_v14 = vsel %vm2644_vm8, %v5607_v61, -inf  ;;  %v2703_v16 = vmax.f32 %v2687_v21, %v2691_v34  ;;  %vm2634_vm4 = vcmp.lt.s32.totalorder %v7547_v43, %v9200_v40  ;;  %vm2619_vm13 = vcmp.ge.s32.totalorder %v7553_v47, %v8995_v23 }
 0x25d   : > { %vm2646_vm14 = vmand %vm13774_vm10, %vm2630_vm0  ;;  %v2693_v48 = vsel %vm2645_vm11, %v13568_v3, -inf  ;;  %v2704_v54 = vmax.f32 %v2688_v24, %v2692_v14  ;;  %vm2635_vm8 = vcmp.lt.s32.totalorder %v7550_v45, %v9200_v40  ;;  %vm13775_vm6 = vcmp.ge.s32.totalorder %v7541_v39, %v8995_v23 }
 0x25e   : > { %vm2647_vm7 = vmand %vm2614_vm15, %vm2631_vm9  ;;  %v2694_v60 = vsel %vm2646_vm14, %v13569_v1, -inf  ;;  %v2705_v21 = vmax.f32 %v2689_v0, %v2693_v48  ;;  %vm2620_vm15 = vcmp.ge.s32.totalorder %v7556_v49, %v8995_v23  ;;  %vm2636_vm0 = vcmp.lt.s32.totalorder %v7553_v47, %v9200_v40 }
 0x25f   : > { %vm2648_vm3 = vmand %vm13775_vm6, %vm2632_vm12  ;;  %v2695_v24 = vsel %vm2647_vm7, %v13596_v52, -inf  ;;  %v2706_v34 = vmax.f32 %v2690_v46, %v2694_v60  ;;  %vm13776_vm9 = vcmp.ge.s32.totalorder %v7544_v41, %v8995_v23  ;;  %vm2621_vm12 = vcmp.ge.s32.totalorder %v7559_v51, %v8995_v23 }
 0x260   : > { %vm2649_vm11 = vmand %vm13776_vm9, %vm2633_vm2  ;;  %v2696_v0 = vsel %vm2648_vm3, %v13600_v44, -inf  ;;  %v2707_v14 = vmax.f32 %v2703_v16, %v2695_v24  ;;  %vm2637_vm10 = vcmp.lt.s32.totalorder %v7556_v49, %v9200_v40  ;;  %v2601_v60 = vmax.f32 %v2599_v27, %v2600_v50 }
 0x261   : > { %vm2650_vm14 = vmand %vm2617_vm5, %vm2634_vm4  ;;  %v2697_v46 = vsel %vm2649_vm11, %v13601_v62, -inf  ;;  %v2708_v48 = vmax.f32 %v2704_v54, %v2696_v0  ;;  %vm2638_vm2 = vcmp.lt.s32.totalorder %v7559_v51, %v9200_v40  ;;  %v13777_v19 = vrot.slane %v8528_v13, 1 }
 0x262   : > { %vm2651_vm7 = vmand %vm2618_vm1, %vm2635_vm8  ;;  %v2698_v16 = vsel %vm2650_vm14, %v13605_v42, -inf  ;;  %v2709_v24 = vmax.f32 %v2705_v21, %v2697_v46  ;;  %v2015_v27 = vmax.f32 %v8567_v18, %v2014_v26  ;;  %v2367_v21 = vmax.f32 %v9023_v2, %v2366_v17 }
 0x263   : > { %v1897_v36 = vmax.f32 %v8528_v13, %v13777_v19  ;;  %vm2652_vm5 = vmand %vm2619_vm13, %vm2636_vm0  ;;  %v2699_v54 = vsel %vm2651_vm7, %v13614_v4, -inf  ;;  %v2710_v50 = vmax.f32 %v2706_v34, %v2698_v16  ;;  %vm2724_vm4 = vcmask 1040384  }
 0x264   : > { %vm2653_vm1 = vmand %vm2620_vm15, %vm2637_vm10  ;;  %v2700_v13 = vsel %vm2652_vm5, %v13615_v38, -inf  ;;  %v2711_v18 = vmax.f32 %v2707_v14, %v2699_v54  ;;  %v13778_v26 = vrot.slane %v8602_v20, 1  ;;  %v2250_v34 = vrot.slane %v9190_v15, 1 }
 0x265   : > { %vm2654_vm13 = vmand %vm2621_vm12, %vm2638_vm2  ;;  %v2701_v2 = vsel %vm2653_vm1, %v13616_v30, -inf  ;;  %v2712_v17 = vmax.f32 %v2708_v48, %v2700_v13  ;;  %v13779_v0 = vrot.slane %v9202_v22, 2  ;;  %v2602_v46 = vrot.slane %v2601_v60, 2 }
 0x266   : > { %v2133_v19 = vmax.f32 %v8602_v20, %v13778_v26  ;;  %v2702_v16 = vsel %vm2654_vm13, %v13617_v32, -inf  ;;  %v2713_v20 = vmax.f32 %v2709_v24, %v2701_v2  ;;  %v2725_v1 = vsel %vm2724_vm4, %v1897_v36, %v2015_v27 }
 0x267   : > { %v2485_v14 = vmax.f32 %v9202_v22, %v13779_v0  ;;  %v2714_v54 = vmax.f32 %v2710_v50, %v2702_v16  ;;  %v2715_v26 = vmax.f32 %v2711_v18, %v2712_v17  ;;  %vm2726_vm8 = vcmask 1041408  }
 0x268   : > { %v2368_v40 = vrot.slane %v2367_v21, 1  ;;  %v2251_v3 = vmax.f32 %v9190_v15, %v2250_v34  ;;  %v2603_v4 = vmax.f32 %v2601_v60, %v2602_v46  ;;  %v2727_v25 = vsel %vm2726_vm8, %v2725_v1, %v2133_v19 }
 0x269   : > { %v2716_v23 = vmax.f32 %v2713_v20, %v2714_v54  ;;  %vm2728_vm6 = vcmask 1042432   ;;  %v2486_v48 = vrot.slane %v2485_v14, 1  ;;  %vm2730_vm3 = vcmask 1043456  }
 0x26a   : > { %v2369_v28 = vmax.f32 %v2367_v21, %v2368_v40  ;;  %v2729_v0 = vsel %vm2728_vm6, %v2727_v25, %v2251_v3  ;;  %v2604_v29 = vrot.slane %v2603_v4, 1  ;;  %vm2732_vm15 = vcmask 1044480   ;;  %v2739_v3 = vld [vmem:[%s2738_s20] sm:$0xff] }
 0x26b   : > { %v2717_v13 = vmax.f32 %v2715_v26, %v2716_v23  ;;  %v2487_v24 = vmax.f32 %v2485_v14, %v2486_v48  ;;  %vm2734_vm0 = vcmask 1045504   ;;  %vm2736_vm9 = vcmask 1046528  }
 0x26c   : > { %v2731_v18 = vsel %vm2730_vm3, %v2729_v0, %v2369_v28  ;;  %v2605_v27 = vmax.f32 %v2603_v4, %v2604_v29 }
 0x26d   : > { %v2718_v22 = vrot.slane %v2717_v13, 4  ;;  %v2733_v15 = vsel %vm2732_vm15, %v2731_v18, %v2487_v24 }
 0x26e   : > { %v2735_v60 = vsel %vm2734_vm0, %v2733_v15, %v2605_v27 }
 0x26f   : > { %v2719_v50 = vmax.f32 %v2717_v13, %v2718_v22 }
 0x271   : > { %v2720_v36 = vrot.slane %v2719_v50, 2 }
 0x273   : > { %v2721_v2 = vmax.f32 %v2719_v50, %v2720_v36 }
 0x275   : > { %v2722_v1 = vrot.slane %v2721_v2, 1 }
 0x277   : > { %v2723_v21 = vmax.f32 %v2721_v2, %v2722_v1 }
 0x278   :  { %1759 = sbr.rel (!%p1756_p13) target bundleno = 470 (0x1d6), region = 78 }
 0x279   : > { %v2737_v25 = vsel %vm2736_vm9, %v2735_v60, %v2723_v21 }
 0x27a   : > { %v2740_v19 = vmax.f32 %v2739_v3, %v2737_v25 }
 0x27c   : > { %2741 = vst [vmem:[%s2738_s20] sm:$0xff] %v2740_v19 }
 0x27d PF:  { %v9416_v29 = vadd.s32 256, %v5476_v5  ;;  %v9419_v28 = vadd.s32 256, %v5479_v6  ;;  %v9422_v4 = vadd.s32 256, %v5482_v7  ;;  %v9425_v34 = vadd.s32 256, %v5485_v8  ;;  %s9427_s21 = sld [smem:[#allocation3 + $0x4]]  ;;  %v13783_v57 = vld [vmem:[#allocation6_spill] sm:$0xff] }
 0x27e   :  { %v9430_v17 = vadd.s32 256, %v5488_v9  ;;  %v9433_v14 = vadd.s32 256, %v5493_v10  ;;  %v9436_v53 = vadd.s32 256, %v5496_v11  ;;  %v9439_v55 = vadd.s32 256, %v5499_v12  ;;  %s9441_s22 = sld [smem:[#allocation3 + $0x5]]  ;;  %v13784_v61 = vld [vmem:[#allocation7_spill] sm:$0xff] }
 0x27f   :  { %13780 = vst [vmem:[#allocation20_spill] sm:$0xff] %v9422_v4  ;;  %v9444_v59 = vadd.s32 256, %v13783_v57  ;;  %v9447_v63 = vadd.s32 256, %v13784_v61  ;;  %v13785_v31 = vld [vmem:[#allocation8_spill] sm:$0xff]  ;;  %v13786_v58 = vld [vmem:[#allocation9_spill] sm:$0xff]  ;;  %v13787_v35 = vld [vmem:[#allocation10_spill] sm:$0xff] }
 0x280   :  { %13781 = vst [vmem:[#allocation22_spill] sm:$0xff] %v9430_v17  ;;  %13782 = vst [vmem:[#allocation24_spill] sm:$0xff] %v9433_v14  ;;  %v9450_v56 = vadd.s32 256, %v13785_v31  ;;  %v9453_v33 = vadd.s32 256, %v13786_v58  ;;  %v9456_v37 = vadd.s32 256, %v13787_v35  ;;  %v13788_v39 = vld [vmem:[#allocation11_spill] sm:$0xff] }
 0x281   :  { %v9459_v41 = vadd.s32 256, %v13788_v39  ;;  %v13789_v43 = vld [vmem:[#allocation12_spill] sm:$0xff]  ;;  %v13790_v47 = vld [vmem:[#allocation13_spill] sm:$0xff] }
 0x282   :  { %v9462_v45 = vadd.s32 256, %v13789_v43  ;;  %v9465_v49 = vadd.s32 256, %v13790_v47 }
 0x284   :  { %p4879_p0 = scmp.le.s32.totalorder %s9441_s22, 0 }
 0x285   :  { %s9468_s23 = smov (!%p4879_p0), 0  }
 0x286   :  { %4798 = sbr.rel (%p4879_p0) target bundleno = 818 (0x332), region = 83 }
 0x28b LB: > { %v13791_v17 = vld [vmem:[#allocation22_spill] sm:$0xff]  ;;  %v13792_v14 = vld [vmem:[#allocation24_spill] sm:$0xff]  ;;  %s2771_s0 = sadd.s32 %s5147_s23, %s9427_s21  ;;  %v13808_v54 = vld [vmem:[#allocation17_spill] sm:$0xff]  ;;  %s2768_s23 = sadd.s32 1, %s5147_s23   ;;  %s5147_s23 = sphi %s9468_s23, %s2768_s23  }
 0x28c   : > { %v13793_v4 = vld [vmem:[#allocation20_spill] sm:$0xff]  ;;  %s9475_s3 = sshll.u32 %s2771_s0, 3  ;;  %v13809_v40 = vld [vmem:[#allocation15_spill] sm:$0xff]  ;;  %v13810_v48 = vld [vmem:[#allocation25_spill] sm:$0xff]  ;;  %p2767_p1 = scmp.ge.s32.totalorder %s2768_s23, %s9441_s22 }
 0x28d   : > { %s2773_s1 = sld [smem:[#allocation4 + %s9475_s3]]  ;;  %s2774_s24 = sadd.s32 1, %s9475_s3  ;;  %v13814_v0 = vld [vmem:[#allocation21_spill] sm:$0xff]  ;;  %v13815_v50 = vld [vmem:[#allocation19_spill] sm:$0xff]  ;;  %v13821_v60 = vld [vmem:[#allocation26_spill] sm:$0xff] }
 0x28e   : > { %s2775_s25 = sld [smem:[#allocation4 + %s2774_s24]]  ;;  %s2776_s26 = sadd.s32 2, %s9475_s3  ;;  %v13816_v36 = vld [vmem:[#allocation23_spill] sm:$0xff]  ;;  %v13828_v61 = vld [vmem:[#allocation29_spill] sm:$0xff]  ;;  %v13832_v47 = vld [vmem:[#allocation28_spill] sm:$0xff] }
 0x28f   : > { %s2778_s27 = sadd.s32 3, %s9475_s3  ;;  %s9483_s2 = sld [smem:[#allocation4 + %s2776_s26]]  ;;  %v13817_v2 = vld [vmem:[#allocation27_spill] sm:$0xff]  ;;  %v13837_v30 = vld [vmem:[#allocation30_spill] sm:$0xff]  ;;  %v13847_v1 = vld [vmem:[#allocation32_spill] sm:$0xff] }
 0x290   : > { %s9485_s28 = sld [smem:[#allocation4 + %s2778_s27]]  ;;  %s2780_s29 = sadd.s32 4, %s9475_s3  ;;  %v13833_v62 = vld [vmem:[#allocation31_spill] sm:$0xff] }
 0x291   : > { %s9502_s30 = sld [smem:[#allocation4 + %s2780_s29]]  ;;  %v13848_v25 = vld [vmem:[#allocation35_spill] sm:$0xff]  ;;  %s2782_s5 = sadd.s32 5, %s9475_s3 }
 0x292   : > { %s10385_s6 = sld [smem:[#allocation4 + %s2782_s5]]  ;;  %s2784_s7 = sadd.s32 6, %s9475_s3 }
 0x293   : > { %v9481_v51 = vstv %s2773_s1  ;;  %s10506_s8 = sld [smem:[#allocation4 + %s2784_s7]]  ;;  %s2786_s9 = sadd.s32 7, %s9475_s3 }
 0x294   : > { %vm2791_vm11 = vcmp.ge.s32.totalorder %v9416_v29, %v9481_v51  ;;  %vm2792_vm12 = vcmp.ge.s32.totalorder %v9419_v28, %v9481_v51  ;;  %v9492_v52 = vstv %s2775_s25  ;;  %vm2793_vm10 = vcmp.ge.s32.totalorder %v13793_v4, %v9481_v51  ;;  %s10782_s10 = sld [smem:[#allocation4 + %s2786_s9]]  ;;  %s2788_s11 = sadd.s32 8, %s9475_s3 }
 0x295   : > { %vm2808_vm14 = vcmp.lt.s32.totalorder %v9416_v29, %v9492_v52  ;;  %vm2809_vm2 = vcmp.lt.s32.totalorder %v9419_v28, %v9492_v52  ;;  %vm2810_vm7 = vcmp.lt.s32.totalorder %v13793_v4, %v9492_v52  ;;  %vm2794_vm5 = vcmp.ge.s32.totalorder %v9425_v34, %v9481_v51  ;;  %s11012_s12 = sld [smem:[#allocation4 + %s2788_s11]]  ;;  %s3749_s15 = scalar_lea.vmem %s13230_s4, %s9475_s3 }
 0x296   : > { %vm2811_vm1 = vcmp.lt.s32.totalorder %v9425_v34, %v9492_v52  ;;  %vm9508_vm4 = vmand %vm2791_vm11, %vm2808_vm14  ;;  %vm2795_vm13 = vcmp.ge.s32.totalorder %v13791_v17, %v9481_v51  ;;  %vm2796_vm8 = vcmp.ge.s32.totalorder %v13792_v14, %v9481_v51  ;;  %vm2797_vm6 = vcmp.ge.s32.totalorder %v9436_v53, %v9481_v51 }
 0x297   : > { %vm2812_vm3 = vcmp.lt.s32.totalorder %v13791_v17, %v9492_v52  ;;  %vm9520_vm15 = vmand %vm2792_vm12, %vm2809_vm2  ;;  %vm2813_vm14 = vcmp.lt.s32.totalorder %v13792_v14, %v9492_v52  ;;  %vm2814_vm0 = vcmp.lt.s32.totalorder %v9436_v53, %v9492_v52  ;;  %vm2815_vm2 = vcmp.lt.s32.totalorder %v9439_v55, %v9492_v52 }
 0x298   : > { %vm9535_vm12 = vmand %vm2793_vm10, %vm2810_vm7  ;;  %vm2804_vm7 = vcmp.ge.s32.totalorder %v9459_v41, %v9481_v51  ;;  %vm2817_vm9 = vcmp.lt.s32.totalorder %v9447_v63, %v9492_v52  ;;  %v9587_v46 = vstv %s9483_s2  ;;  %v9590_v16 = vstv %s9485_s28 }
 0x299   : > { %vm9553_vm10 = vmand %vm2794_vm5, %vm2811_vm1  ;;  %vm2816_vm1 = vcmp.lt.s32.totalorder %v9444_v59, %v9492_v52  ;;  %v2872_v26 = vsel %vm9508_vm4, %v13808_v54, -inf  ;;  %v2873_v23 = vsel %vm9520_vm15, %v13809_v40, -inf  ;;  %v2874_v24 = vsel %vm9535_vm12, %v13814_v0, -inf }
 0x29a   : > { %vm9571_vm5 = vmand %vm2795_vm13, %vm2812_vm3  ;;  %vm2818_vm13 = vcmp.lt.s32.totalorder %v9450_v56, %v9492_v52  ;;  %v2875_v18 = vsel %vm9553_vm10, %v13815_v50, -inf  ;;  %vm2819_vm4 = vcmp.lt.s32.totalorder %v9453_v33, %v9492_v52  ;;  %vm13818_vm15 = vcmp.ge.s32.totalorder %v9444_v59, %v9481_v51 }
 0x29b   : > { %vm9582_vm11 = vmand %vm2796_vm8, %vm2813_vm14  ;;  %v2876_v13 = vsel %vm9571_vm5, %v13810_v48, -inf  ;;  %vm13811_vm8 = vcmp.ge.s32.totalorder %v9439_v55, %v9481_v51  ;;  %v9647_v3 = vstv %s9502_s30  ;;  %vm2822_vm12 = vcmp.lt.s32.totalorder %v9462_v45, %v9492_v52 }
 0x29c   : > { %vm9597_vm3 = vmand %vm2797_vm6, %vm2814_vm0  ;;  %v2877_v27 = vsel %vm9582_vm11, %v13816_v36, -inf  ;;  %vm2820_vm6 = vcmp.lt.s32.totalorder %v9456_v37, %v9492_v52  ;;  %vm2821_vm11 = vcmp.lt.s32.totalorder %v9459_v41, %v9492_v52  ;;  %vm13822_vm10 = vcmp.ge.s32.totalorder %v9447_v63, %v9481_v51 }
 0x29d   : > { %vm9613_vm14 = vmand %vm13811_vm8, %vm2815_vm2  ;;  %v2878_v15 = vsel %vm9597_vm3, %v13817_v2, -inf  ;;  %vm2823_vm2 = vcmp.lt.s32.totalorder %v9465_v49, %v9492_v52  ;;  %v2888_v19 = vmax.f32 %v2872_v26, %v2876_v13  ;;  %v2889_v58 = vmax.f32 %v2873_v23, %v2877_v27  ;;  %v13846_v27 = vld [vmem:[#allocation33_spill] sm:$0xff] }
 0x29e   : > { %vm9639_vm0 = vmand %vm13818_vm15, %vm2816_vm1  ;;  %v2879_v21 = vsel %vm9613_vm14, %v13821_v60, -inf  ;;  %vm13825_vm1 = vcmp.ge.s32.totalorder %v9450_v56, %v9481_v51  ;;  %v2890_v35 = vmax.f32 %v2874_v24, %v2878_v15  ;;  %vm2910_vm14 = vcmp.ge.s32.totalorder %v9419_v28, %v9492_v52 }
 0x29f   : > { %vm9661_vm5 = vmand %vm13822_vm10, %vm2817_vm9  ;;  %v2880_v31 = vsel %vm9639_vm0, %v13828_v61, -inf  ;;  %v2891_v39 = vmax.f32 %v2875_v18, %v2879_v21  ;;  %vm13829_vm9 = vcmp.ge.s32.totalorder %v9453_v33, %v9481_v51  ;;  %vm2911_vm0 = vcmp.ge.s32.totalorder %v13793_v4, %v9492_v52 }
 0x2a0   : > { %vm9671_vm3 = vmand %vm13825_vm1, %vm2818_vm13  ;;  %v2881_v44 = vsel %vm9661_vm5, %v13832_v47, -inf  ;;  %vm2909_vm13 = vcmp.ge.s32.totalorder %v9416_v29, %v9492_v52  ;;  %vm2912_vm10 = vcmp.ge.s32.totalorder %v9425_v34, %v9492_v52  ;;  %vm2913_vm5 = vcmp.ge.s32.totalorder %v13791_v17, %v9492_v52 }
 0x2a1   : > { %vm9684_vm8 = vmand %vm13829_vm9, %vm2819_vm4  ;;  %v2882_v42 = vsel %vm9671_vm3, %v13833_v62, -inf  ;;  %vm13834_vm4 = vcmp.ge.s32.totalorder %v9456_v37, %v9481_v51  ;;  %v2892_v26 = vmax.f32 %v2888_v19, %v2880_v31  ;;  %vm2914_vm1 = vcmp.ge.s32.totalorder %v13792_v14, %v9492_v52 }
 0x2a2   : > { %vm9704_vm15 = vmand %vm13834_vm4, %vm2820_vm6  ;;  %v2883_v32 = vsel %vm9684_vm8, %v13837_v30, -inf  ;;  %vm2926_vm9 = vcmp.lt.s32.totalorder %v9416_v29, %v9587_v46  ;;  %vm13840_vm8 = vcmp.ge.s32.totalorder %v9462_v45, %v9481_v51  ;;  %v2893_v13 = vmax.f32 %v2889_v58, %v2881_v44 }
 0x2a3   : > { %vm9723_vm6 = vmand %vm2804_vm7, %vm2821_vm11  ;;  %v2894_v22 = vmax.f32 %v2890_v35, %v2882_v42  ;;  %v2895_v24 = vmax.f32 %v2891_v39, %v2883_v32  ;;  %vm2927_vm11 = vcmp.lt.s32.totalorder %v9419_v28, %v9587_v46  ;;  %vm13843_vm4 = vcmp.ge.s32.totalorder %v9465_v49, %v9481_v51  ;;  %v13849_v51 = vld [vmem:[#allocation34_spill] sm:$0xff] }
 0x2a4   : > { %vm9739_vm7 = vmand %vm13840_vm8, %vm2822_vm12  ;;  %v2884_v15 = vsel %vm9704_vm15, %v13846_v27, -inf  ;;  %v2885_v21 = vsel %vm9723_vm6, %v13847_v1, -inf  ;;  %vm2928_vm12 = vcmp.lt.s32.totalorder %v13793_v4, %v9587_v46  ;;  %vm2929_vm6 = vcmp.lt.s32.totalorder %v9425_v34, %v9587_v46 }
 0x2a5   : > { %vm9751_vm3 = vmand %vm13843_vm4, %vm2823_vm2  ;;  %v2886_v19 = vsel %vm9739_vm7, %v13848_v25, -inf  ;;  %vm2916_vm2 = vcmp.ge.s32.totalorder %v9439_v55, %v9492_v52  ;;  %vm2930_vm4 = vcmp.lt.s32.totalorder %v13791_v17, %v9587_v46  ;;  %vm2931_vm15 = vcmp.lt.s32.totalorder %v13792_v14, %v9587_v46 }
 0x2a6   : > { %v2887_v57 = vsel %vm9751_vm3, %v13849_v51, -inf  ;;  %vm9781_vm8 = vmand %vm2909_vm13, %vm2926_vm9  ;;  %v2896_v35 = vmax.f32 %v2892_v26, %v2884_v15  ;;  %v2897_v39 = vmax.f32 %v2893_v13, %v2885_v21  ;;  %v2898_v43 = vmax.f32 %v2894_v22, %v2886_v19 }
 0x2a7   : > { %vm9799_vm13 = vmand %vm2910_vm14, %vm2927_vm11  ;;  %v2899_v44 = vmax.f32 %v2895_v24, %v2887_v57  ;;  %vm2932_vm3 = vcmp.lt.s32.totalorder %v9436_v53, %v9587_v46  ;;  %vm2933_vm7 = vcmp.lt.s32.totalorder %v9439_v55, %v9587_v46  ;;  %vm13862_vm14 = vcmp.ge.s32.totalorder %v9436_v53, %v9492_v52 }
 0x2a8   : > { %vm9809_vm9 = vmand %vm2911_vm0, %vm2928_vm12  ;;  %v2900_v26 = vmax.f32 %v2896_v35, %v2897_v39  ;;  %vm2940_vm12 = vcmp.lt.s32.totalorder %v9462_v45, %v9587_v46  ;;  %v2990_v24 = vsel %vm9781_vm8, %v13808_v54, -inf  ;;  %v2991_v18 = vsel %vm9799_vm13, %v13809_v40, -inf }
 0x2a9   : > { %vm9827_vm0 = vmand %vm2912_vm10, %vm2929_vm6  ;;  %vm2935_vm6 = vcmp.lt.s32.totalorder %v9447_v63, %v9587_v46  ;;  %v2901_v23 = vmax.f32 %v2898_v43, %v2899_v44  ;;  %vm13868_vm8 = vcmp.ge.s32.totalorder %v9444_v59, %v9492_v52  ;;  %v2992_v57 = vsel %vm9809_vm9, %v13814_v0, -inf }
 0x2aa   : > { %vm9845_vm10 = vmand %vm2913_vm5, %vm2930_vm4  ;;  %vm2939_vm4 = vcmp.lt.s32.totalorder %v9459_v41, %v9587_v46  ;;  %vm13871_vm13 = vcmp.ge.s32.totalorder %v9447_v63, %v9492_v52  ;;  %v2993_v35 = vsel %vm9827_vm0, %v13815_v50, -inf  ;;  %vm3028_vm9 = vcmp.ge.s32.totalorder %v9419_v28, %v9587_v46 }
 0x2ab   : > { %vm9863_vm5 = vmand %vm2914_vm1, %vm2931_vm15  ;;  %v2994_v15 = vsel %vm9845_vm10, %v13810_v48, -inf  ;;  %vm13867_vm15 = vcmp.lt.s32.totalorder %v9444_v59, %v9587_v46  ;;  %v2902_v43 = vmax.f32 %v2900_v26, %v2901_v23  ;;  %vm13874_vm10 = vcmp.lt.s32.totalorder %v9450_v56, %v9587_v46 }
 0x2ac   : > { %vm9877_vm11 = vmand %vm13862_vm14, %vm2932_vm3  ;;  %v2995_v21 = vsel %vm9863_vm5, %v13816_v36, -inf  ;;  %v3006_v42 = vmax.f32 %v2990_v24, %v2994_v15  ;;  %vm3030_vm0 = vcmp.ge.s32.totalorder %v9425_v34, %v9587_v46 }
 0x2ad   : > { %vm9884_vm1 = vmand %vm2916_vm2, %vm2933_vm7  ;;  %vm2941_vm2 = vcmp.lt.s32.totalorder %v9465_v49, %v9587_v46  ;;  %v2996_v31 = vsel %vm9877_vm11, %v13817_v2, -inf  ;;  %vm3027_vm7 = vcmp.ge.s32.totalorder %v9416_v29, %v9587_v46  ;;  %vm3029_vm11 = vcmp.ge.s32.totalorder %v13793_v4, %v9587_v46 }
 0x2ae   : > { %vm9908_vm3 = vmand %vm13868_vm8, %vm13867_vm15  ;;  %v2997_v39 = vsel %vm9884_vm1, %v13821_v60, -inf  ;;  %v3007_v38 = vmax.f32 %v2991_v18, %v2995_v21  ;;  %vm13878_vm1 = vcmp.lt.s32.totalorder %v9453_v33, %v9587_v46  ;;  %vm13879_vm15 = vcmp.ge.s32.totalorder %v9453_v33, %v9492_v52 }
 0x2af   : > { %vm9926_vm14 = vmand %vm13871_vm13, %vm2935_vm6  ;;  %vm13875_vm6 = vcmp.ge.s32.totalorder %v9450_v56, %v9492_v52  ;;  %v2998_v20 = vsel %vm9908_vm3, %v13828_v61, -inf  ;;  %v3008_v23 = vmax.f32 %v2992_v57, %v2996_v31  ;;  %vm3031_vm13 = vcmp.ge.s32.totalorder %v13791_v17, %v9587_v46 }
 0x2b0   : > { %vm9946_vm5 = vmand %vm13875_vm6, %vm13874_vm10  ;;  %v2999_v26 = vsel %vm9926_vm14, %v13832_v47, -inf  ;;  %vm13882_vm10 = vcmp.lt.s32.totalorder %v9456_v37, %v9587_v46  ;;  %vm13883_vm6 = vcmp.ge.s32.totalorder %v9456_v37, %v9492_v52  ;;  %v3009_v24 = vmax.f32 %v2993_v35, %v2997_v39 }
 0x2b1   : > { %vm9958_vm8 = vmand %vm13879_vm15, %vm13878_vm1  ;;  %v3000_v22 = vsel %vm9946_vm5, %v13833_v62, -inf  ;;  %vm3032_vm3 = vcmp.ge.s32.totalorder %v13792_v14, %v9587_v46  ;;  %vm13886_vm15 = vcmp.ge.s32.totalorder %v9459_v41, %v9492_v52  ;;  %vm3044_vm14 = vcmp.lt.s32.totalorder %v9416_v29, %v9590_v16 }
 0x2b2   : > { %vm9976_vm1 = vmand %vm13883_vm6, %vm13882_vm10  ;;  %v3001_v15 = vsel %vm9958_vm8, %v13837_v30, -inf  ;;  %v2903_v21 = vrot.slane %v2902_v43, 4  ;;  %v3010_v57 = vmax.f32 %v3006_v42, %v2998_v20  ;;  %v3011_v31 = vmax.f32 %v3007_v38, %v2999_v26 }
 0x2b3   : > { %vm9993_vm10 = vmand %vm13886_vm15, %vm2939_vm4  ;;  %vm13889_vm4 = vcmp.ge.s32.totalorder %v9462_v45, %v9492_v52  ;;  %vm3045_vm8 = vcmp.lt.s32.totalorder %v9419_v28, %v9590_v16  ;;  %vm13892_vm6 = vcmp.ge.s32.totalorder %v9465_v49, %v9492_v52  ;;  %v3002_v35 = vsel %vm9976_vm1, %v13846_v27, -inf }
 0x2b4   : > { %vm10012_vm15 = vmand %vm13889_vm4, %vm2940_vm12  ;;  %v3003_v39 = vsel %vm9993_vm10, %v13847_v1, -inf  ;;  %v3012_v44 = vmax.f32 %v3008_v23, %v3000_v22  ;;  %vm3046_vm12 = vcmp.lt.s32.totalorder %v13793_v4, %v9590_v16  ;;  %v3013_v42 = vmax.f32 %v3009_v24, %v3001_v15 }
 0x2b5   : > { %vm10024_vm5 = vmand %vm13892_vm6, %vm2941_vm2  ;;  %v3004_v52 = vsel %vm10012_vm15, %v13848_v25, -inf  ;;  %vm3036_vm2 = vcmp.ge.s32.totalorder %v9447_v63, %v9587_v46  ;;  %vm3047_vm6 = vcmp.lt.s32.totalorder %v9425_v34, %v9590_v16  ;;  %vm3037_vm10 = vcmp.ge.s32.totalorder %v9450_v56, %v9587_v46 }
 0x2b6   : > { %vm10049_vm1 = vmand %vm3027_vm7, %vm3044_vm14  ;;  %v3005_v32 = vsel %vm10024_vm5, %v13849_v51, -inf  ;;  %vm3048_vm15 = vcmp.lt.s32.totalorder %v13791_v17, %v9590_v16  ;;  %v3014_v26 = vmax.f32 %v3010_v57, %v3002_v35  ;;  %v3015_v23 = vmax.f32 %v3011_v31, %v3003_v39 }
 0x2b7   : > { %vm10068_vm7 = vmand %vm3028_vm9, %vm3045_vm8  ;;  %vm3049_vm5 = vcmp.lt.s32.totalorder %v13792_v14, %v9590_v16  ;;  %v10086_v22 = vmax.f32 %v2902_v43, %v2903_v21  ;;  %v3016_v24 = vmax.f32 %v3012_v44, %v3004_v52  ;;  %vm3040_vm9 = vcmp.ge.s32.totalorder %v9459_v41, %v9587_v46 }
 0x2b8   : > { %vm10082_vm4 = vmand %vm3029_vm11, %vm3046_vm12  ;;  %vm3050_vm8 = vcmp.lt.s32.totalorder %v9436_v53, %v9590_v16  ;;  %v3017_v15 = vmax.f32 %v3013_v42, %v3005_v32  ;;  %vm3051_vm11 = vcmp.lt.s32.totalorder %v9439_v55, %v9590_v16  ;;  %v3108_v21 = vsel %vm10049_vm1, %v13808_v54, -inf }
 0x2b9   : > { %vm10098_vm14 = vmand %vm3030_vm0, %vm3047_vm6  ;;  %v3109_v19 = vsel %vm10068_vm7, %v13809_v40, -inf  ;;  %vm3041_vm0 = vcmp.ge.s32.totalorder %v9462_v45, %v9587_v46  ;;  %vm3052_vm6 = vcmp.lt.s32.totalorder %v9444_v59, %v9590_v16  ;;  %v3110_v57 = vsel %vm10082_vm4, %v13814_v0, -inf }
 0x2ba   : > { %vm10107_vm12 = vmand %vm3031_vm13, %vm3048_vm15  ;;  %v3018_v58 = vmax.f32 %v3014_v26, %v3015_v23  ;;  %vm3053_vm1 = vcmp.lt.s32.totalorder %v9447_v63, %v9590_v16  ;;  %vm13905_vm15 = vcmp.ge.s32.totalorder %v9436_v53, %v9587_v46  ;;  %v3111_v35 = vsel %vm10098_vm14, %v13815_v50, -inf }
 0x2bb   : > { %vm3065_vm13 = vmand %vm3032_vm3, %vm3049_vm5  ;;  %v3112_v31 = vsel %vm10107_vm12, %v13810_v48, -inf  ;;  %vm3054_vm3 = vcmp.lt.s32.totalorder %v9450_v56, %v9590_v16  ;;  %vm13906_vm4 = vcmp.ge.s32.totalorder %v9439_v55, %v9587_v46  ;;  %v3019_v38 = vmax.f32 %v3016_v24, %v3017_v15 }
 0x2bc   : > { %vm3066_vm7 = vmand %vm13905_vm15, %vm3050_vm8  ;;  %v3113_v39 = vsel %vm3065_vm13, %v13816_v36, -inf  ;;  %v3124_v52 = vmax.f32 %v3108_v21, %v3112_v31  ;;  %vm3055_vm14 = vcmp.lt.s32.totalorder %v9453_v33, %v9590_v16  ;;  %vm13907_vm8 = vcmp.ge.s32.totalorder %v9444_v59, %v9587_v46 }
 0x2bd   : > { %vm3067_vm5 = vmand %vm13906_vm4, %vm3051_vm11  ;;  %v3114_v44 = vsel %vm3066_vm7, %v13817_v2, -inf  ;;  %v3125_v42 = vmax.f32 %v3109_v19, %v3113_v39  ;;  %vm3042_vm11 = vcmp.ge.s32.totalorder %v9465_v49, %v9587_v46  ;;  %vm3056_vm13 = vcmp.lt.s32.totalorder %v9456_v37, %v9590_v16 }
 0x2be   : > { %vm10156_vm12 = vmand %vm13907_vm8, %vm3052_vm6  ;;  %v3115_v20 = vsel %vm3067_vm5, %v13821_v60, -inf  ;;  %v3126_v26 = vmax.f32 %v3110_v57, %v3114_v44  ;;  %v2905_v24 = vrot.slane %v10086_v22, 2  ;;  %vm3057_vm6 = vcmp.lt.s32.totalorder %v9459_v41, %v9590_v16 }
 0x2bf   : > { %vm3069_vm15 = vmand %vm3036_vm2, %vm3053_vm1  ;;  %v3116_v23 = vsel %vm10156_vm12, %v13828_v61, -inf  ;;  %v3127_v13 = vmax.f32 %v3111_v35, %v3115_v20  ;;  %vm3058_vm7 = vcmp.lt.s32.totalorder %v9462_v45, %v9590_v16  ;;  %vm3059_vm1 = vcmp.lt.s32.totalorder %v9465_v49, %v9590_v16 }
 0x2c0   : > { %vm3070_vm2 = vmand %vm3037_vm10, %vm3054_vm3  ;;  %v3117_v18 = vsel %vm3069_vm15, %v13832_v47, -inf  ;;  %vm13910_vm4 = vcmp.ge.s32.totalorder %v9453_v33, %v9587_v46  ;;  %v3128_v43 = vmax.f32 %v3124_v52, %v3116_v23  ;;  %v10195_v19 = vmax.f32 %v3018_v58, %v3019_v38 }
 0x2c1   : > { %vm3071_vm5 = vmand %vm13910_vm4, %vm3055_vm14  ;;  %v3118_v15 = vsel %vm3070_vm2, %v13833_v62, -inf  ;;  %v3129_v21 = vmax.f32 %v3125_v42, %v3117_v18  ;;  %vm13911_vm10 = vcmp.ge.s32.totalorder %v9456_v37, %v9587_v46  ;;  %vm3145_vm14 = vcmp.ge.s32.totalorder %v9416_v29, %v9590_v16 }
 0x2c2   : > { %vm10203_vm3 = vmand %vm13911_vm10, %vm3056_vm13  ;;  %v3119_v31 = vsel %vm3071_vm5, %v13837_v30, -inf  ;;  %v3130_v35 = vmax.f32 %v3126_v26, %v3118_v15  ;;  %vm3146_vm12 = vcmp.ge.s32.totalorder %v9419_v28, %v9590_v16  ;;  %vm3147_vm13 = vcmp.ge.s32.totalorder %v13793_v4, %v9590_v16 }
 0x2c3   : > { %vm3073_vm8 = vmand %vm3040_vm9, %vm3057_vm6  ;;  %v3120_v58 = vsel %vm10203_vm3, %v13846_v27, -inf  ;;  %v3131_v39 = vmax.f32 %v3127_v13, %v3119_v31  ;;  %vm3148_vm9 = vcmp.ge.s32.totalorder %v9425_v34, %v9590_v16  ;;  %vm3149_vm6 = vcmp.ge.s32.totalorder %v13791_v17, %v9590_v16 }
 0x2c4   : > { %vm3074_vm15 = vmand %vm3041_vm0, %vm3058_vm7  ;;  %v3121_v44 = vsel %vm3073_vm8, %v13847_v1, -inf  ;;  %vm3162_vm2 = vcmp.lt.s32.totalorder %v9416_v29, %v9647_v3  ;;  %v3132_v42 = vmax.f32 %v3128_v43, %v3120_v58  ;;  %vm3163_vm0 = vcmp.lt.s32.totalorder %v9419_v28, %v9647_v3 }
 0x2c5   : > { %vm3075_vm4 = vmand %vm3042_vm11, %vm3059_vm1  ;;  %v3122_v52 = vsel %vm3074_vm15, %v13848_v25, -inf  ;;  %v3133_v38 = vmax.f32 %v3129_v21, %v3121_v44  ;;  %vm3164_vm7 = vcmp.lt.s32.totalorder %v13793_v4, %v9647_v3  ;;  %vm3165_vm5 = vcmp.lt.s32.totalorder %v9425_v34, %v9647_v3 }
 0x2c6   : > { %v3123_v32 = vsel %vm3075_vm4, %v13849_v51, -inf  ;;  %v3134_v20 = vmax.f32 %v3130_v35, %v3122_v52  ;;  %vm10250_vm11 = vmand %vm3145_vm14, %vm3162_vm2  ;;  %v3021_v26 = vrot.slane %v10195_v19, 4  ;;  %vm3150_vm1 = vcmp.ge.s32.totalorder %v13792_v14, %v9590_v16 }
 0x2c7   : > { %v3135_v23 = vmax.f32 %v3131_v39, %v3123_v32  ;;  %vm3166_vm10 = vcmp.lt.s32.totalorder %v13791_v17, %v9647_v3  ;;  %vm10262_vm3 = vmand %vm3146_vm12, %vm3163_vm0  ;;  %vm3151_vm14 = vcmp.ge.s32.totalorder %v9436_v53, %v9590_v16  ;;  %vm3167_vm2 = vcmp.lt.s32.totalorder %v13792_v14, %v9647_v3 }
 0x2c8   : > { %vm10277_vm4 = vmand %vm3147_vm13, %vm3164_vm7  ;;  %v3136_v15 = vmax.f32 %v3132_v42, %v3133_v38  ;;  %vm3168_vm0 = vcmp.lt.s32.totalorder %v9436_v53, %v9647_v3  ;;  %vm3155_vm13 = vcmp.ge.s32.totalorder %v9450_v56, %v9590_v16  ;;  %vm3156_vm7 = vcmp.ge.s32.totalorder %v9453_v33, %v9590_v16 }
 0x2c9   : > { %v3137_v43 = vmax.f32 %v3134_v20, %v3135_v23  ;;  %vm10291_vm15 = vmand %vm3148_vm9, %vm3165_vm5  ;;  %vm3169_vm8 = vcmp.lt.s32.totalorder %v9439_v55, %v9647_v3  ;;  %vm3170_vm5 = vcmp.lt.s32.totalorder %v9444_v59, %v9647_v3  ;;  %v3226_v35 = vsel %vm10250_vm11, %v13808_v54, -inf }
 0x2ca   : > { %vm10309_vm9 = vmand %vm3149_vm6, %vm3166_vm10  ;;  %v3227_v58 = vsel %vm10262_vm3, %v13809_v40, -inf  ;;  %v3228_v39 = vsel %vm10277_vm4, %v13814_v0, -inf  ;;  %vm3171_vm6 = vcmp.lt.s32.totalorder %v9447_v63, %v9647_v3  ;;  %v3229_v44 = vsel %vm10291_vm15, %v13815_v50, -inf }
 0x2cb   : > { %vm10318_vm12 = vmand %vm3150_vm1, %vm3167_vm2  ;;  %v3230_v52 = vsel %vm10309_vm9, %v13810_v48, -inf  ;;  %v3138_v38 = vmax.f32 %v3136_v15, %v3137_v43  ;;  %vm3172_vm11 = vcmp.lt.s32.totalorder %v9450_v56, %v9647_v3  ;;  %vm3173_vm10 = vcmp.lt.s32.totalorder %v9453_v33, %v9647_v3 }
 0x2cc   : > { %vm3184_vm1 = vmand %vm3151_vm14, %vm3168_vm0  ;;  %v3231_v42 = vsel %vm10318_vm12, %v13816_v36, -inf  ;;  %vm13926_vm3 = vcmp.ge.s32.totalorder %v9439_v55, %v9590_v16  ;;  %vm13927_vm15 = vcmp.ge.s32.totalorder %v9444_v59, %v9590_v16  ;;  %v3242_v23 = vmax.f32 %v3226_v35, %v3230_v52 }
 0x2cd   : > { %vm3185_vm14 = vmand %vm13926_vm3, %vm3169_vm8  ;;  %v3232_v32 = vsel %vm3184_vm1, %v13817_v2, -inf  ;;  %v3243_v13 = vmax.f32 %v3227_v58, %v3231_v42  ;;  %vm3158_vm8 = vcmp.ge.s32.totalorder %v9459_v41, %v9590_v16  ;;  %vm3174_vm4 = vcmp.lt.s32.totalorder %v9456_v37, %v9647_v3 }
 0x2ce   : > { %vm10363_vm2 = vmand %vm13927_vm15, %vm3170_vm5  ;;  %v3233_v46 = vsel %vm3185_vm14, %v13821_v60, -inf  ;;  %v3244_v18 = vmax.f32 %v3228_v39, %v3232_v32  ;;  %vm13930_vm12 = vcmp.ge.s32.totalorder %v9447_v63, %v9590_v16  ;;  %vm3159_vm9 = vcmp.ge.s32.totalorder %v9462_v45, %v9590_v16 }
 0x2cf   : > { %vm10378_vm0 = vmand %vm13930_vm12, %vm3171_vm6  ;;  %v3234_v43 = vsel %vm10363_vm2, %v13828_v61, -inf  ;;  %v3245_v21 = vmax.f32 %v3229_v44, %v3233_v46  ;;  %vm3160_vm5 = vcmp.ge.s32.totalorder %v9465_v49, %v9590_v16  ;;  %vm3175_vm1 = vcmp.lt.s32.totalorder %v9459_v41, %v9647_v3 }
 0x2d0   : > { %vm3188_vm6 = vmand %vm3155_vm13, %vm3172_vm11  ;;  %v3235_v57 = vsel %vm10378_vm0, %v13832_v47, -inf  ;;  %v3139_v31 = vrot.slane %v3138_v38, 4  ;;  %vm3176_vm3 = vcmp.lt.s32.totalorder %v9462_v45, %v9647_v3  ;;  %vm3177_vm14 = vcmp.lt.s32.totalorder %v9465_v49, %v9647_v3 }
 0x2d1   : > { %vm3189_vm15 = vmand %vm3156_vm7, %vm3173_vm10  ;;  %v3236_v35 = vsel %vm3188_vm6, %v13833_v62, -inf  ;;  %vm13933_vm13 = vcmp.ge.s32.totalorder %v9456_v37, %v9590_v16  ;;  %v3246_v44 = vmax.f32 %v3242_v23, %v3234_v43  ;;  %v3247_v52 = vmax.f32 %v3243_v13, %v3235_v57 }
 0x2d2   : > { %vm10419_vm11 = vmand %vm13933_vm13, %vm3174_vm4  ;;  %v3237_v39 = vsel %vm3189_vm15, %v13837_v30, -inf  ;;  %v3248_v42 = vmax.f32 %v3244_v18, %v3236_v35  ;;  %v3022_v32 = vmax.f32 %v10195_v19, %v3021_v26  ;;  %v10434_v15 = vmax.f32 %v10086_v22, %v2905_v24 }
 0x2d3   : > { %vm3191_vm7 = vmand %vm3158_vm8, %vm3175_vm1  ;;  %v3238_v20 = vsel %vm10419_vm11, %v13846_v27, -inf  ;;  %v3249_v46 = vmax.f32 %v3245_v21, %v3237_v39  ;;  %v3140_v26 = vmax.f32 %v3138_v38, %v3139_v31  ;;  %vm3263_vm8 = vcmp.ge.s32.totalorder %v9416_v29, %v9647_v3 }
 0x2d4   : > { %vm3192_vm10 = vmand %vm3159_vm9, %vm3176_vm3  ;;  %v3239_v19 = vsel %vm3191_vm7, %v13847_v1, -inf  ;;  %v3250_v24 = vmax.f32 %v3246_v44, %v3238_v20  ;;  %v3023_v43 = vrot.slane %v3022_v32, 2  ;;  %vm3264_vm4 = vcmp.ge.s32.totalorder %v9419_v28, %v9647_v3 }
 0x2d5   : > { %vm3193_vm2 = vmand %vm3160_vm5, %vm3177_vm14  ;;  %v3240_v23 = vsel %vm3192_vm10, %v13848_v25, -inf  ;;  %v3251_v13 = vmax.f32 %v3247_v52, %v3239_v19  ;;  %vm3265_vm12 = vcmp.ge.s32.totalorder %v13793_v4, %v9647_v3  ;;  %v10456_v16 = vstv %s10385_s6 }
 0x2d6   : > { %v3241_v22 = vsel %vm3193_vm2, %v13849_v51, -inf  ;;  %v3252_v18 = vmax.f32 %v3248_v42, %v3240_v23  ;;  %v3141_v57 = vrot.slane %v3140_v26, 2  ;;  %vm3280_vm0 = vcmp.lt.s32.totalorder %v9416_v29, %v10456_v16 }
 0x2d7   : > { %v3253_v21 = vmax.f32 %v3249_v46, %v3241_v22  ;;  %vm3281_vm9 = vcmp.lt.s32.totalorder %v9419_v28, %v10456_v16  ;;  %vm3282_vm5 = vcmp.lt.s32.totalorder %v13793_v4, %v10456_v16  ;;  %v3254_v31 = vmax.f32 %v3250_v24, %v3251_v13  ;;  %vm10469_vm3 = vmand %vm3263_vm8, %vm3280_vm0 }
 0x2d8   : > { %vm3266_vm1 = vcmp.ge.s32.totalorder %v9425_v34, %v9647_v3  ;;  %vm3283_vm6 = vcmp.lt.s32.totalorder %v9425_v34, %v10456_v16  ;;  %v10473_v39 = vmax.f32 %v3022_v32, %v3023_v43  ;;  %vm3267_vm14 = vcmp.ge.s32.totalorder %v13791_v17, %v9647_v3  ;;  %vm10484_vm11 = vmand %vm3264_vm4, %vm3281_vm9 }
 0x2d9   : > { %v3255_v35 = vmax.f32 %v3252_v18, %v3253_v21  ;;  %vm3268_vm15 = vcmp.ge.s32.totalorder %v13792_v14, %v9647_v3  ;;  %vm3284_vm13 = vcmp.lt.s32.totalorder %v13791_v17, %v10456_v16  ;;  %vm3269_vm7 = vcmp.ge.s32.totalorder %v9436_v53, %v9647_v3  ;;  %vm10502_vm4 = vmand %vm3265_vm12, %vm3282_vm5 }
 0x2da   : > { %vm3270_vm10 = vcmp.ge.s32.totalorder %v9439_v55, %v9647_v3  ;;  %vm3285_vm8 = vcmp.lt.s32.totalorder %v13792_v14, %v10456_v16  ;;  %v10508_v42 = vmax.f32 %v3140_v26, %v3141_v57  ;;  %vm3286_vm2 = vcmp.lt.s32.totalorder %v9436_v53, %v10456_v16  ;;  %vm10522_vm12 = vmand %vm3266_vm1, %vm3283_vm6 }
 0x2db   : > { %v3256_v20 = vmax.f32 %v3254_v31, %v3255_v35  ;;  %vm3274_vm5 = vcmp.ge.s32.totalorder %v9453_v33, %v9647_v3  ;;  %vm3287_vm0 = vcmp.lt.s32.totalorder %v9439_v55, %v10456_v16  ;;  %vm10538_vm1 = vmand %vm3267_vm14, %vm3284_vm13  ;;  %vm3288_vm6 = vcmp.lt.s32.totalorder %v9444_v59, %v10456_v16 }
 0x2dc   : > { %vm10547_vm9 = vmand %vm3268_vm15, %vm3285_vm8  ;;  %v3344_v26 = vsel %vm10469_vm3, %v13808_v54, -inf  ;;  %v3345_v23 = vsel %vm10484_vm11, %v13809_v40, -inf  ;;  %v3348_v22 = vsel %vm10538_vm1, %v13810_v48, -inf  ;;  %vm3289_vm14 = vcmp.lt.s32.totalorder %v9447_v63, %v10456_v16 }
 0x2dd   : > { %vm10565_vm15 = vmand %vm3269_vm7, %vm3286_vm2  ;;  %v3346_v13 = vsel %vm10502_vm4, %v13814_v0, -inf  ;;  %v3347_v18 = vsel %vm10522_vm12, %v13815_v50, -inf  ;;  %v3349_v43 = vsel %vm10547_vm9, %v13816_v36, -inf  ;;  %vm3276_vm3 = vcmp.ge.s32.totalorder %v9459_v41, %v9647_v3 }
 0x2de   : > { %vm3290_vm13 = vcmp.lt.s32.totalorder %v9450_v56, %v10456_v16  ;;  %vm3291_vm11 = vcmp.lt.s32.totalorder %v9453_v33, %v10456_v16  ;;  %vm3303_vm7 = vmand %vm3270_vm10, %vm3287_vm0  ;;  %v3350_v21 = vsel %vm10565_vm15, %v13817_v2, -inf  ;;  %vm3292_vm2 = vcmp.lt.s32.totalorder %v9456_v37, %v10456_v16 }
 0x2df   : > { %vm13950_vm8 = vcmp.ge.s32.totalorder %v9444_v59, %v9647_v3  ;;  %v3351_v31 = vsel %vm3303_vm7, %v13821_v60, -inf  ;;  %v3360_v35 = vmax.f32 %v3344_v26, %v3348_v22  ;;  %v3361_v58 = vmax.f32 %v3345_v23, %v3349_v43 }
 0x2e0   : > { %vm10601_vm4 = vmand %vm13950_vm8, %vm3288_vm6  ;;  %v3257_v44 = vrot.slane %v3256_v20, 4  ;;  %vm13953_vm10 = vcmp.ge.s32.totalorder %v9447_v63, %v9647_v3  ;;  %v3362_v46 = vmax.f32 %v3346_v13, %v3350_v21  ;;  %v3363_v19 = vmax.f32 %v3347_v18, %v3351_v31 }
 0x2e1   : > { %vm10612_vm0 = vmand %vm13953_vm10, %vm3289_vm14  ;;  %v3352_v32 = vsel %vm10601_vm4, %v13828_v61, -inf  ;;  %vm3277_vm9 = vcmp.ge.s32.totalorder %v9462_v45, %v9647_v3  ;;  %vm3278_vm12 = vcmp.ge.s32.totalorder %v9465_v49, %v9647_v3  ;;  %vm3293_vm1 = vcmp.lt.s32.totalorder %v9459_v41, %v10456_v16 }
 0x2e2   : > { %vm13956_vm6 = vcmp.ge.s32.totalorder %v9450_v56, %v9647_v3  ;;  %v3353_v26 = vsel %vm10612_vm0, %v13832_v47, -inf  ;;  %vm3294_vm15 = vcmp.lt.s32.totalorder %v9462_v45, %v10456_v16  ;;  %vm3295_vm7 = vcmp.lt.s32.totalorder %v9465_v49, %v10456_v16  ;;  %vm3307_vm8 = vmand %vm3274_vm5, %vm3291_vm11 }
 0x2e3   : > { %vm3306_vm14 = vmand %vm13956_vm6, %vm3290_vm13  ;;  %v10646_v22 = vstv %s10506_s8  ;;  %vm13957_vm13 = vcmp.ge.s32.totalorder %v9456_v37, %v9647_v3  ;;  %v3355_v13 = vsel %vm3307_vm8, %v13837_v30, -inf  ;;  %v3364_v18 = vmax.f32 %v3360_v35, %v3352_v32 }
 0x2e4   : > { %v3354_v23 = vsel %vm3306_vm14, %v13833_v62, -inf  ;;  %vm10654_vm4 = vmand %vm13957_vm13, %vm3292_vm2  ;;  %v3365_v43 = vmax.f32 %v3361_v58, %v3353_v26  ;;  %vm3381_vm5 = vcmp.ge.s32.totalorder %v9416_v29, %v10456_v16  ;;  %v10661_v21 = vmax.f32 %v3256_v20, %v3257_v44 }
 0x2e5   : > { %vm10666_vm11 = vmand %vm3276_vm3, %vm3293_vm1  ;;  %v3356_v31 = vsel %vm10654_vm4, %v13846_v27, -inf  ;;  %v3366_v52 = vmax.f32 %v3362_v46, %v3354_v23  ;;  %v3367_v38 = vmax.f32 %v3363_v19, %v3355_v13  ;;  %vm3382_vm3 = vcmp.ge.s32.totalorder %v9419_v28, %v10456_v16 }
 0x2e6   : > { %vm10679_vm2 = vmand %vm3277_vm9, %vm3294_vm15  ;;  %v3357_v35 = vsel %vm10666_vm11, %v13847_v1, -inf  ;;  %vm3383_vm10 = vcmp.ge.s32.totalorder %v13793_v4, %v10456_v16  ;;  %vm3398_vm0 = vcmp.lt.s32.totalorder %v9416_v29, %v10646_v22  ;;  %vm3384_vm1 = vcmp.ge.s32.totalorder %v9425_v34, %v10456_v16 }
 0x2e7   : > { %vm3311_vm9 = vmand %vm3278_vm12, %vm3295_vm7  ;;  %v3358_v58 = vsel %vm10679_vm2, %v13848_v25, -inf  ;;  %vm3399_vm6 = vcmp.lt.s32.totalorder %v9419_v28, %v10646_v22  ;;  %vm3400_vm14 = vcmp.lt.s32.totalorder %v13793_v4, %v10646_v22  ;;  %v3368_v32 = vmax.f32 %v3364_v18, %v3356_v31 }
 0x2e8   : > { %v3359_v44 = vsel %vm3311_vm9, %v13849_v51, -inf  ;;  %v3369_v46 = vmax.f32 %v3365_v43, %v3357_v35  ;;  %vm3401_vm12 = vcmp.lt.s32.totalorder %v9425_v34, %v10646_v22  ;;  %vm10713_vm15 = vmand %vm3381_vm5, %vm3398_vm0  ;;  %v3370_v19 = vmax.f32 %v3366_v52, %v3358_v58 }
 0x2e9   : > { %v3371_v26 = vmax.f32 %v3367_v38, %v3359_v44  ;;  %vm3385_vm7 = vcmp.ge.s32.totalorder %v13791_v17, %v10456_v16  ;;  %vm3402_vm8 = vcmp.lt.s32.totalorder %v13791_v17, %v10646_v22  ;;  %vm10724_vm13 = vmand %vm3382_vm3, %vm3399_vm6  ;;  %vm3386_vm4 = vcmp.ge.s32.totalorder %v13792_v14, %v10456_v16 }
 0x2ea   : > { %vm3387_vm5 = vcmp.ge.s32.totalorder %v9436_v53, %v10456_v16  ;;  %vm3403_vm2 = vcmp.lt.s32.totalorder %v13792_v14, %v10646_v22  ;;  %vm10743_vm3 = vmand %vm3383_vm10, %vm3400_vm14  ;;  %vm3389_vm0 = vcmp.ge.s32.totalorder %v9444_v59, %v10456_v16  ;;  %vm3404_vm11 = vcmp.lt.s32.totalorder %v9436_v53, %v10646_v22 }
 0x2eb   : > { %vm10761_vm10 = vmand %vm3384_vm1, %vm3401_vm12  ;;  %v3372_v13 = vmax.f32 %v3368_v32, %v3369_v46  ;;  %vm3405_vm14 = vcmp.lt.s32.totalorder %v9439_v55, %v10646_v22  ;;  %vm3406_vm6 = vcmp.lt.s32.totalorder %v9444_v59, %v10646_v22  ;;  %v3462_v43 = vsel %vm10713_vm15, %v13808_v54, -inf }
 0x2ec   : > { %vm10775_vm9 = vmand %vm3385_vm7, %vm3402_vm8  ;;  %v3373_v57 = vmax.f32 %v3370_v19, %v3371_v26  ;;  %v3463_v52 = vsel %vm10724_vm13, %v13809_v40, -inf  ;;  %v3464_v20 = vsel %vm10743_vm3, %v13814_v0, -inf  ;;  %vm3392_vm12 = vcmp.ge.s32.totalorder %v9453_v33, %v10456_v16 }
 0x2ed   : > { %vm10787_vm1 = vmand %vm3386_vm4, %vm3403_vm2  ;;  %v3466_v35 = vsel %vm10775_vm9, %v13810_v48, -inf  ;;  %vm3407_vm15 = vcmp.lt.s32.totalorder %v9447_v63, %v10646_v22  ;;  %v3465_v58 = vsel %vm10761_vm10, %v13815_v50, -inf  ;;  %vm3393_vm8 = vcmp.ge.s32.totalorder %v9456_v37, %v10456_v16 }
 0x2ee   : > { %vm3420_vm7 = vmand %vm3387_vm5, %vm3404_vm11  ;;  %v3467_v44 = vsel %vm10787_vm1, %v13816_v36, -inf  ;;  %vm3408_vm13 = vcmp.lt.s32.totalorder %v9450_v56, %v10646_v22  ;;  %vm13976_vm4 = vcmp.ge.s32.totalorder %v9439_v55, %v10456_v16  ;;  %v3478_v46 = vmax.f32 %v3462_v43, %v3466_v35 }
 0x2ef   : > { %vm3421_vm5 = vmand %vm13976_vm4, %vm3405_vm14  ;;  %v3468_v32 = vsel %vm3420_vm7, %v13817_v2, -inf  ;;  %vm3409_vm11 = vcmp.lt.s32.totalorder %v9453_v33, %v10646_v22  ;;  %v3479_v26 = vmax.f32 %v3463_v52, %v3467_v44  ;;  %v3374_v38 = vmax.f32 %v3372_v13, %v3373_v57 }
 0x2f0   : > { %vm10835_vm2 = vmand %vm3389_vm0, %vm3406_vm6  ;;  %v3469_v19 = vsel %vm3421_vm5, %v13821_v60, -inf  ;;  %v3480_v23 = vmax.f32 %v3464_v20, %v3468_v32  ;;  %vm3410_vm3 = vcmp.lt.s32.totalorder %v9456_v37, %v10646_v22  ;;  %vm13979_vm9 = vcmp.ge.s32.totalorder %v9447_v63, %v10456_v16 }
 0x2f1   : > { %vm10848_vm10 = vmand %vm13979_vm9, %vm3407_vm15  ;;  %v3470_v18 = vsel %vm10835_vm2, %v13828_v61, -inf  ;;  %v3481_v43 = vmax.f32 %v3465_v58, %v3469_v19  ;;  %vm3394_vm0 = vcmp.ge.s32.totalorder %v9459_v41, %v10456_v16  ;;  %vm3395_vm6 = vcmp.ge.s32.totalorder %v9462_v45, %v10456_v16 }
 0x2f2   : > { %vm3411_vm14 = vcmp.lt.s32.totalorder %v9459_v41, %v10646_v22  ;;  %vm13982_vm1 = vcmp.ge.s32.totalorder %v9450_v56, %v10456_v16  ;;  %v3471_v13 = vsel %vm10848_vm10, %v13832_v47, -inf  ;;  %vm3396_vm7 = vcmp.ge.s32.totalorder %v9465_v49, %v10456_v16  ;;  %vm3425_vm5 = vmand %vm3392_vm12, %vm3409_vm11 }
 0x2f3   : > { %vm3424_vm15 = vmand %vm13982_vm1, %vm3408_vm13  ;;  %vm3412_vm4 = vcmp.lt.s32.totalorder %v9462_v45, %v10646_v22  ;;  %v3482_v31 = vmax.f32 %v3478_v46, %v3470_v18  ;;  %vm3413_vm13 = vcmp.lt.s32.totalorder %v9465_v49, %v10646_v22  ;;  %v3473_v20 = vsel %vm3425_vm5, %v13837_v30, -inf }
 0x2f4   : > { %v3472_v57 = vsel %vm3424_vm15, %v13833_v62, -inf  ;;  %vm10889_vm2 = vmand %vm3393_vm8, %vm3410_vm3  ;;  %v3483_v35 = vmax.f32 %v3479_v26, %v3471_v13  ;;  %v3375_v44 = vrot.slane %v3374_v38, 4  ;;  %v3485_v46 = vmax.f32 %v3481_v43, %v3473_v20 }
 0x2f5   : > { %v3484_v58 = vmax.f32 %v3480_v23, %v3472_v57  ;;  %vm3427_vm12 = vmand %vm3394_vm0, %vm3411_vm14  ;;  %v3474_v32 = vsel %vm10889_vm2, %v13846_v27, -inf  ;;  %v10901_v3 = vstv %s10782_s10  ;;  %v3259_v19 = vrot.slane %v10661_v21, 2 }
 0x2f6   : > { %vm3428_vm8 = vmand %vm3395_vm6, %vm3412_vm4  ;;  %v3475_v26 = vsel %vm3427_vm12, %v13847_v1, -inf  ;;  %vm3499_vm11 = vcmp.ge.s32.totalorder %v9416_v29, %v10646_v22  ;;  %vm3500_vm3 = vcmp.ge.s32.totalorder %v9419_v28, %v10646_v22  ;;  %v3486_v24 = vmax.f32 %v3482_v31, %v3474_v32 }
 0x2f7   : > { %vm3429_vm9 = vmand %vm3396_vm7, %vm3413_vm13  ;;  %v3476_v23 = vsel %vm3428_vm8, %v13848_v25, -inf  ;;  %vm3501_vm10 = vcmp.ge.s32.totalorder %v13793_v4, %v10646_v22  ;;  %vm3502_vm0 = vcmp.ge.s32.totalorder %v9425_v34, %v10646_v22  ;;  %v3487_v43 = vmax.f32 %v3483_v35, %v3475_v26 }
 0x2f8   : > { %v3477_v18 = vsel %vm3429_vm9, %v13849_v51, -inf  ;;  %v3488_v13 = vmax.f32 %v3484_v58, %v3476_v23  ;;  %vm3516_vm6 = vcmp.lt.s32.totalorder %v9416_v29, %v10901_v3  ;;  %v10929_v57 = vmax.f32 %v3374_v38, %v3375_v44 }
 0x2f9   : > { %v3489_v16 = vmax.f32 %v3485_v46, %v3477_v18  ;;  %vm3503_vm14 = vcmp.ge.s32.totalorder %v13791_v17, %v10646_v22  ;;  %vm3517_vm1 = vcmp.lt.s32.totalorder %v9419_v28, %v10901_v3  ;;  %vm10938_vm15 = vmand %vm3499_vm11, %vm3516_vm6  ;;  %vm3504_vm7 = vcmp.ge.s32.totalorder %v13792_v14, %v10646_v22 }
 0x2fa   : > { %vm3518_vm4 = vcmp.lt.s32.totalorder %v13793_v4, %v10901_v3  ;;  %vm3519_vm5 = vcmp.lt.s32.totalorder %v9425_v34, %v10901_v3  ;;  %vm3520_vm13 = vcmp.lt.s32.totalorder %v13791_v17, %v10901_v3  ;;  %vm10953_vm2 = vmand %vm3500_vm3, %vm3517_vm1  ;;  %vm3505_vm12 = vcmp.ge.s32.totalorder %v9436_v53, %v10646_v22 }
 0x2fb   : > { %vm3521_vm9 = vcmp.lt.s32.totalorder %v13792_v14, %v10901_v3  ;;  %vm10968_vm6 = vmand %vm3501_vm10, %vm3518_vm4  ;;  %v3490_v20 = vmax.f32 %v3486_v24, %v3487_v43  ;;  %v3491_v35 = vmax.f32 %v3488_v13, %v3489_v16  ;;  %vm3522_vm1 = vcmp.lt.s32.totalorder %v9436_v53, %v10901_v3 }
 0x2fc   : > { %vm10980_vm11 = vmand %vm3502_vm0, %vm3519_vm5  ;;  %vm3509_vm10 = vcmp.ge.s32.totalorder %v9450_v56, %v10646_v22  ;;  %vm3523_vm8 = vcmp.lt.s32.totalorder %v9439_v55, %v10901_v3  ;;  %vm3524_vm3 = vcmp.lt.s32.totalorder %v9444_v59, %v10901_v3  ;;  %vm3525_vm5 = vcmp.lt.s32.totalorder %v9447_v63, %v10901_v3 }
 0x2fd   : > { %vm3536_vm0 = vmand %vm3503_vm14, %vm3520_vm13  ;;  %v3580_v44 = vsel %vm10938_vm15, %v13808_v54, -inf  ;;  %v3581_v32 = vsel %vm10953_vm2, %v13809_v40, -inf  ;;  %v3582_v46 = vsel %vm10968_vm6, %v13814_v0, -inf  ;;  %vm3526_vm14 = vcmp.lt.s32.totalorder %v9450_v56, %v10901_v3 }
 0x2fe   : > { %vm3537_vm4 = vmand %vm3504_vm7, %vm3521_vm9  ;;  %v3583_v26 = vsel %vm10980_vm11, %v13815_v50, -inf  ;;  %v3584_v23 = vsel %vm3536_vm0, %v13810_v48, -inf  ;;  %v3492_v18 = vmax.f32 %v3490_v20, %v3491_v35  ;;  %vm13993_vm15 = vcmp.ge.s32.totalorder %v9439_v55, %v10646_v22 }
 0x2ff   : > { %vm3538_vm7 = vmand %vm3505_vm12, %vm3522_vm1  ;;  %v3585_v24 = vsel %vm3537_vm4, %v13816_v36, -inf  ;;  %v3596_v13 = vmax.f32 %v3580_v44, %v3584_v23  ;;  %vm3511_vm2 = vcmp.ge.s32.totalorder %v9456_v37, %v10646_v22  ;;  %vm3527_vm12 = vcmp.lt.s32.totalorder %v9453_v33, %v10901_v3 }
 0x300   : > { %vm3539_vm13 = vmand %vm13993_vm15, %vm3523_vm8  ;;  %v3586_v43 = vsel %vm3538_vm7, %v13817_v2, -inf  ;;  %v3597_v16 = vmax.f32 %v3581_v32, %v3585_v24  ;;  %vm13994_vm11 = vcmp.ge.s32.totalorder %v9444_v59, %v10646_v22  ;;  %vm3512_vm8 = vcmp.ge.s32.totalorder %v9459_v41, %v10646_v22 }
 0x301   : > { %vm3540_vm9 = vmand %vm13994_vm11, %vm3524_vm3  ;;  %v3587_v31 = vsel %vm3539_vm13, %v13821_v60, -inf  ;;  %v3598_v38 = vmax.f32 %v3582_v46, %v3586_v43  ;;  %vm3528_vm6 = vcmp.lt.s32.totalorder %v9456_v37, %v10901_v3  ;;  %vm13995_vm1 = vcmp.ge.s32.totalorder %v9447_v63, %v10646_v22 }
 0x302   : > { %vm3541_vm4 = vmand %vm13995_vm1, %vm3525_vm5  ;;  %v3588_v52 = vsel %vm3540_vm9, %v13828_v61, -inf  ;;  %v3599_v20 = vmax.f32 %v3583_v26, %v3587_v31  ;;  %vm3513_vm3 = vcmp.ge.s32.totalorder %v9462_v45, %v10646_v22  ;;  %vm3529_vm0 = vcmp.lt.s32.totalorder %v9459_v41, %v10901_v3 }
 0x303   : > { %vm3542_vm7 = vmand %vm3509_vm10, %vm3526_vm14  ;;  %v3589_v35 = vsel %vm3541_vm4, %v13832_v47, -inf  ;;  %v3600_v58 = vmax.f32 %v3596_v13, %v3588_v52  ;;  %v3493_v44 = vrot.slane %v3492_v18, 4  ;;  %vm3530_vm5 = vcmp.lt.s32.totalorder %v9462_v45, %v10901_v3 }
 0x304   : > { %vm13996_vm15 = vcmp.ge.s32.totalorder %v9453_v33, %v10646_v22  ;;  %v3590_v32 = vsel %vm3542_vm7, %v13833_v62, -inf  ;;  %v3601_v46 = vmax.f32 %v3597_v16, %v3589_v35  ;;  %vm3514_vm10 = vcmp.ge.s32.totalorder %v9465_v49, %v10646_v22  ;;  %vm3544_vm11 = vmand %vm3511_vm2, %vm3528_vm6 }
 0x305   : > { %vm3543_vm13 = vmand %vm13996_vm15, %vm3527_vm12  ;;  %vm3531_vm14 = vcmp.lt.s32.totalorder %v9465_v49, %v10901_v3  ;;  %v3602_v23 = vmax.f32 %v3598_v38, %v3590_v32  ;;  %v3025_v24 = vrot.slane %v10473_v39, 1  ;;  %v3592_v13 = vsel %vm3544_vm11, %v13846_v27, -inf }
 0x306   : > { %v3591_v26 = vsel %vm3543_vm13, %v13837_v30, -inf  ;;  %vm3545_vm12 = vmand %vm3512_vm8, %vm3529_vm0  ;;  %v11096_v31 = vmax.f32 %v10661_v21, %v3259_v19  ;;  %v3604_v52 = vmax.f32 %v3600_v58, %v3592_v13  ;;  %v11106_v35 = vstv %s11012_s12 }
 0x307   : > { %v3603_v16 = vmax.f32 %v3599_v20, %v3591_v26  ;;  %vm3546_vm2 = vmand %vm3513_vm3, %vm3530_vm5  ;;  %v3593_v38 = vsel %vm3545_vm12, %v13847_v1, -inf  ;;  %v11108_v32 = vmax.f32 %v3492_v18, %v3493_v44  ;;  %vm3617_vm8 = vcmp.ge.s32.totalorder %v9416_v29, %v10901_v3 }
 0x308   : > { %vm3547_vm9 = vmand %vm3514_vm10, %vm3531_vm14  ;;  %v3594_v21 = vsel %vm3546_vm2, %v13848_v25, -inf  ;;  %v3605_v19 = vmax.f32 %v3601_v46, %v3593_v38  ;;  %v3377_v20 = vrot.slane %v10929_v57, 2  ;;  %vm3618_vm6 = vcmp.ge.s32.totalorder %v9419_v28, %v10901_v3 }
 0x309   : > { %v3595_v58 = vsel %vm3547_vm9, %v13849_v51, -inf  ;;  %v3606_v26 = vmax.f32 %v3602_v23, %v3594_v21  ;;  %vm3619_vm1 = vcmp.ge.s32.totalorder %v13793_v4, %v10901_v3  ;;  %vm3620_vm4 = vcmp.ge.s32.totalorder %v9425_v34, %v10901_v3 }
 0x30a   : > { %v3607_v18 = vmax.f32 %v3603_v16, %v3595_v58  ;;  %vm3634_vm3 = vcmp.lt.s32.totalorder %v9416_v29, %v11106_v35  ;;  %v3608_v22 = vmax.f32 %v3604_v52, %v3605_v19  ;;  %vm3635_vm0 = vcmp.lt.s32.totalorder %v9419_v28, %v11106_v35 }
 0x30b   : > { %vm3636_vm7 = vcmp.lt.s32.totalorder %v13793_v4, %v11106_v35  ;;  %vm3637_vm5 = vcmp.lt.s32.totalorder %v9425_v34, %v11106_v35  ;;  %vm11135_vm15 = vmand %vm3617_vm8, %vm3634_vm3  ;;  %vm3621_vm13 = vcmp.ge.s32.totalorder %v13791_v17, %v10901_v3  ;;  %vm3638_vm10 = vcmp.lt.s32.totalorder %v13791_v17, %v11106_v35 }
 0x30c   : > { %v3609_v23 = vmax.f32 %v3606_v26, %v3607_v18  ;;  %vm11144_vm14 = vmand %vm3618_vm6, %vm3635_vm0  ;;  %vm3622_vm11 = vcmp.ge.s32.totalorder %v13792_v14, %v10901_v3  ;;  %vm3623_vm12 = vcmp.ge.s32.totalorder %v9436_v53, %v10901_v3  ;;  %vm3639_vm9 = vcmp.lt.s32.totalorder %v13792_v14, %v11106_v35 }
 0x30d   : > { %vm11159_vm8 = vmand %vm3619_vm1, %vm3636_vm7  ;;  %vm3625_vm6 = vcmp.ge.s32.totalorder %v9444_v59, %v10901_v3  ;;  %vm3640_vm2 = vcmp.lt.s32.totalorder %v9436_v53, %v11106_v35  ;;  %vm3641_vm7 = vcmp.lt.s32.totalorder %v9439_v55, %v11106_v35  ;;  %v3698_v21 = vsel %vm11135_vm15, %v13808_v54, -inf }
 0x30e   : > { %vm11177_vm1 = vmand %vm3620_vm4, %vm3637_vm5  ;;  %v3610_v52 = vmax.f32 %v3608_v22, %v3609_v23  ;;  %v3699_v19 = vsel %vm11144_vm14, %v13809_v40, -inf  ;;  %vm3628_vm4 = vcmp.ge.s32.totalorder %v9453_v33, %v10901_v3  ;;  %vm3642_vm5 = vcmp.lt.s32.totalorder %v9444_v59, %v11106_v35 }
 0x30f   : > { %vm3654_vm0 = vmand %vm3621_vm13, %vm3638_vm10  ;;  %v3700_v58 = vsel %vm11159_vm8, %v13814_v0, -inf  ;;  %vm3643_vm15 = vcmp.lt.s32.totalorder %v9447_v63, %v11106_v35  ;;  %v3701_v18 = vsel %vm11177_vm1, %v13815_v50, -inf  ;;  %vm3629_vm10 = vcmp.ge.s32.totalorder %v9456_v37, %v10901_v3 }
 0x310   : > { %vm3655_vm3 = vmand %vm3622_vm11, %vm3639_vm9  ;;  %v3702_v26 = vsel %vm3654_vm0, %v13810_v48, -inf  ;;  %vm3644_vm14 = vcmp.lt.s32.totalorder %v9450_v56, %v11106_v35  ;;  %vm14005_vm11 = vcmp.ge.s32.totalorder %v9439_v55, %v10901_v3  ;;  %v3611_v16 = vrot.slane %v3610_v52, 4 }
 0x311   : > { %vm3656_vm13 = vmand %vm3623_vm12, %vm3640_vm2  ;;  %v3703_v22 = vsel %vm3655_vm3, %v13816_v36, -inf  ;;  %v3714_v44 = vmax.f32 %v3698_v21, %v3702_v26  ;;  %vm3645_vm2 = vcmp.lt.s32.totalorder %v9453_v33, %v11106_v35  ;;  %vm3630_vm8 = vcmp.ge.s32.totalorder %v9459_v41, %v10901_v3 }
 0x312   : > { %vm3657_vm12 = vmand %vm14005_vm11, %vm3641_vm7  ;;  %v3704_v23 = vsel %vm3656_vm13, %v13817_v2, -inf  ;;  %v3715_v13 = vmax.f32 %v3699_v19, %v3703_v22  ;;  %vm3646_vm3 = vcmp.lt.s32.totalorder %v9456_v37, %v11106_v35  ;;  %vm14006_vm0 = vcmp.ge.s32.totalorder %v9447_v63, %v10901_v3 }
 0x313   : > { %vm3658_vm9 = vmand %vm3625_vm6, %vm3642_vm5  ;;  %v3705_v38 = vsel %vm3657_vm12, %v13821_v60, -inf  ;;  %v3716_v21 = vmax.f32 %v3700_v58, %v3704_v23  ;;  %vm3631_vm6 = vcmp.ge.s32.totalorder %v9462_v45, %v10901_v3  ;;  %vm3647_vm7 = vcmp.lt.s32.totalorder %v9459_v41, %v11106_v35 }
 0x314   : > { %vm3659_vm1 = vmand %vm14006_vm0, %vm3643_vm15  ;;  %v3706_v19 = vsel %vm3658_vm9, %v13828_v61, -inf  ;;  %v3717_v26 = vmax.f32 %v3701_v18, %v3705_v38  ;;  %vm14007_vm5 = vcmp.ge.s32.totalorder %v9450_v56, %v10901_v3  ;;  %vm3632_vm15 = vcmp.ge.s32.totalorder %v9465_v49, %v10901_v3 }
 0x315   : > { %vm3660_vm13 = vmand %vm14007_vm5, %vm3644_vm14  ;;  %v3707_v58 = vsel %vm3659_vm1, %v13832_v47, -inf  ;;  %v3718_v22 = vmax.f32 %v3714_v44, %v3706_v19  ;;  %vm3648_vm11 = vcmp.lt.s32.totalorder %v9462_v45, %v11106_v35  ;;  %v3612_v38 = vmax.f32 %v3610_v52, %v3611_v16 }
 0x316   : > { %vm3661_vm12 = vmand %vm3628_vm4, %vm3645_vm2  ;;  %v3708_v18 = vsel %vm3660_vm13, %v13833_v62, -inf  ;;  %v3719_v23 = vmax.f32 %v3715_v13, %v3707_v58  ;;  %vm3649_vm14 = vcmp.lt.s32.totalorder %v9465_v49, %v11106_v35  ;;  %v14008_v46 = vrot.slane %v10434_v15, 1 }
 0x317   : > { %vm3662_vm9 = vmand %vm3629_vm10, %vm3646_vm3  ;;  %v3709_v44 = vsel %vm3661_vm12, %v13837_v30, -inf  ;;  %v3720_v19 = vmax.f32 %v3716_v21, %v3708_v18  ;;  %v3026_v52 = vmax.f32 %v10473_v39, %v3025_v24  ;;  %v3378_v21 = vmax.f32 %v10929_v57, %v3377_v20 }
 0x318   : > { %v2908_v43 = vmax.f32 %v10434_v15, %v14008_v46  ;;  %vm3663_vm4 = vmand %vm3630_vm8, %vm3647_vm7  ;;  %v3710_v13 = vsel %vm3662_vm9, %v13846_v27, -inf  ;;  %v3721_v16 = vmax.f32 %v3717_v26, %v3709_v44  ;;  %vm3735_vm2 = vcmask 1040384  }
 0x319   : > { %vm3664_vm10 = vmand %vm3631_vm6, %vm3648_vm11  ;;  %v3711_v15 = vsel %vm3663_vm4, %v13847_v1, -inf  ;;  %v3722_v39 = vmax.f32 %v3718_v22, %v3710_v13  ;;  %v14009_v24 = vrot.slane %v10508_v42, 1  ;;  %v3261_v26 = vrot.slane %v11096_v31, 1 }
 0x31a   : > { %vm3665_vm8 = vmand %vm3632_vm15, %vm3649_vm14  ;;  %v3712_v57 = vsel %vm3664_vm10, %v13848_v25, -inf  ;;  %v3723_v20 = vmax.f32 %v3719_v23, %v3711_v15  ;;  %v14010_v58 = vrot.slane %v11108_v32, 2  ;;  %v3613_v18 = vrot.slane %v3612_v38, 2 }
 0x31b   : > { %v3144_v46 = vmax.f32 %v10508_v42, %v14009_v24  ;;  %v3713_v44 = vsel %vm3665_vm8, %v13849_v51, -inf  ;;  %v3724_v42 = vmax.f32 %v3720_v19, %v3712_v57  ;;  %v3736_v0 = vsel %vm3735_vm2, %v2908_v43, %v3026_v52 }
 0x31c   : > { %v3496_v22 = vmax.f32 %v11108_v32, %v14010_v58  ;;  %v3725_v13 = vmax.f32 %v3721_v16, %v3713_v44  ;;  %v3726_v24 = vmax.f32 %v3722_v39, %v3723_v20  ;;  %vm3737_vm3 = vcmask 1041408  }
 0x31d   : > { %v3379_v35 = vrot.slane %v3378_v21, 1  ;;  %v3262_v1 = vmax.f32 %v11096_v31, %v3261_v26  ;;  %v3614_v2 = vmax.f32 %v3612_v38, %v3613_v18  ;;  %v3738_v4 = vsel %vm3737_vm3, %v3736_v0, %v3144_v46 }
 0x31e   : > { %v3727_v3 = vmax.f32 %v3724_v42, %v3725_v13  ;;  %vm3739_vm0 = vcmask 1042432   ;;  %v3497_v23 = vrot.slane %v3496_v22, 1  ;;  %vm3741_vm1 = vcmask 1043456  }
 0x31f   : > { %v3380_v14 = vmax.f32 %v3378_v21, %v3379_v35  ;;  %v3740_v58 = vsel %vm3739_vm0, %v3738_v4, %v3262_v1  ;;  %v3615_v17 = vrot.slane %v3614_v2, 1  ;;  %vm3743_vm6 = vcmask 1044480   ;;  %v3750_v4 = vld [vmem:[%s3749_s15] sm:$0xff] }
 0x320   : > { %v3728_v15 = vmax.f32 %v3726_v24, %v3727_v3  ;;  %v3498_v19 = vmax.f32 %v3496_v22, %v3497_v23  ;;  %vm3745_vm7 = vcmask 1045504   ;;  %vm3747_vm5 = vcmask 1046528  }
 0x321   : > { %v3742_v39 = vsel %vm3741_vm1, %v3740_v58, %v3380_v14  ;;  %v3616_v52 = vmax.f32 %v3614_v2, %v3615_v17 }
 0x322   : > { %v3729_v32 = vrot.slane %v3728_v15, 4  ;;  %v3744_v31 = vsel %vm3743_vm6, %v3742_v39, %v3498_v19 }
 0x323   : > { %v3746_v38 = vsel %vm3745_vm7, %v3744_v31, %v3616_v52 }
 0x324   : > { %v3730_v16 = vmax.f32 %v3728_v15, %v3729_v32 }
 0x326   : > { %v3731_v43 = vrot.slane %v3730_v16, 2 }
 0x328   : > { %v3732_v57 = vmax.f32 %v3730_v16, %v3731_v43 }
 0x32a   : > { %v3733_v0 = vrot.slane %v3732_v57, 1 }
 0x32c   : > { %v3734_v21 = vmax.f32 %v3732_v57, %v3733_v0 }
 0x32d   :  { %2770 = sbr.rel (!%p2767_p1) target bundleno = 651 (0x28b), region = 89 }
 0x32e   : > { %v3748_v1 = vsel %vm3747_vm5, %v3746_v38, %v3734_v21 }
 0x32f   : > { %v3751_v46 = vmax.f32 %v3750_v4, %v3748_v1 }
 0x331   : > { %3752 = vst [vmem:[%s3749_s15] sm:$0xff] %v3751_v46 }
 0x332 PF:  { %v11322_v17 = vadd.s32 384, %v5476_v5  ;;  %v11325_v14 = vadd.s32 384, %v5479_v6  ;;  %v11328_v2 = vadd.s32 384, %v5482_v7  ;;  %v11331_v26 = vadd.s32 384, %v5485_v8  ;;  %s11333_s16 = sld [smem:[#allocation3 + $0x6]]  ;;  %v14011_v7 = vld [vmem:[#allocation6_spill] sm:$0xff] }
 0x333   :  { %v11336_v20 = vadd.s32 384, %v5488_v9  ;;  %v11339_v22 = vadd.s32 384, %v5493_v10  ;;  %v11342_v5 = vadd.s32 384, %v5496_v11  ;;  %v11345_v6 = vadd.s32 384, %v5499_v12  ;;  %s11347_s17 = sld [smem:[#allocation3 + $0x7]]  ;;  %v14012_v8 = vld [vmem:[#allocation7_spill] sm:$0xff] }
 0x334   :  { %v11350_v29 = vadd.s32 384, %v14011_v7  ;;  %v11353_v28 = vadd.s32 384, %v14012_v8  ;;  %v14013_v34 = vld [vmem:[#allocation8_spill] sm:$0xff]  ;;  %v14014_v53 = vld [vmem:[#allocation9_spill] sm:$0xff]  ;;  %v14015_v55 = vld [vmem:[#allocation10_spill] sm:$0xff] }
 0x335   :  { %v11356_v9 = vadd.s32 384, %v14013_v34  ;;  %v11359_v10 = vadd.s32 384, %v14014_v53  ;;  %v11362_v11 = vadd.s32 384, %v14015_v55  ;;  %v14016_v59 = vld [vmem:[#allocation11_spill] sm:$0xff]  ;;  %v14017_v63 = vld [vmem:[#allocation12_spill] sm:$0xff]  ;;  %v14018_v33 = vld [vmem:[#allocation13_spill] sm:$0xff] }
 0x336   :  { %v11365_v12 = vadd.s32 384, %v14016_v59  ;;  %v11368_v56 = vadd.s32 384, %v14017_v63  ;;  %v11371_v37 = vadd.s32 384, %v14018_v33 }
 0x339   :  { %p4883_p2 = scmp.le.s32.totalorder %s11347_s17, 0 }
 0x33a   :  { %s11374_s18 = smov (!%p4883_p2), 0  }
 0x33b   :  { %4803 = sbr.rel (%p4883_p2) target bundleno = 999 (0x3e7), region = 94 }
 0x340 LB: > { %s3782_s19 = sadd.s32 %s5151_s18, %s11333_s16  ;;  %v14033_v62 = vld [vmem:[#allocation37_spill] sm:$0xff]  ;;  %v14034_v27 = vld [vmem:[#allocation36_spill] sm:$0xff]  ;;  %v14039_v42 = vld [vmem:[#allocation39_spill] sm:$0xff]  ;;  %s3779_s18 = sadd.s32 1, %s5151_s18   ;;  %s5151_s18 = sphi %s11374_s18, %s3779_s18  }
 0x341   : > { %s11381_s20 = sshll.u32 %s3782_s19, 3  ;;  %v14035_v51 = vld [vmem:[#allocation41_spill] sm:$0xff]  ;;  %v14040_v24 = vld [vmem:[#allocation38_spill] sm:$0xff]  ;;  %v14041_v3 = vld [vmem:[#allocation40_spill] sm:$0xff]  ;;  %p3778_p3 = scmp.ge.s32.totalorder %s3779_s18, %s11347_s17 }
 0x342   : > { %s3784_s21 = sld [smem:[#allocation4 + %s11381_s20]]  ;;  %s3785_s22 = sadd.s32 1, %s11381_s20  ;;  %v14042_v15 = vld [vmem:[#allocation45_spill] sm:$0xff]  ;;  %v14046_v19 = vld [vmem:[#allocation43_spill] sm:$0xff] }
 0x343   : > { %s3786_s23 = sld [smem:[#allocation4 + %s3785_s22]]  ;;  %s3787_s0 = sadd.s32 2, %s11381_s20  ;;  %v14053_v31 = vld [vmem:[#allocation49_spill] sm:$0xff]  ;;  %v14057_v46 = vld [vmem:[#allocation47_spill] sm:$0xff] }
 0x344   : > { %s3789_s3 = sadd.s32 3, %s11381_s20  ;;  %s11389_s1 = sld [smem:[#allocation4 + %s3787_s0]]  ;;  %v14058_v8 = vld [vmem:[#allocation53_spill] sm:$0xff]  ;;  %v14062_v55 = vld [vmem:[#allocation51_spill] sm:$0xff] }
 0x345   : > { %s11391_s24 = sld [smem:[#allocation4 + %s3789_s3]]  ;;  %s3791_s25 = sadd.s32 4, %s11381_s20  ;;  %v14071_v36 = vld [vmem:[#allocation57_spill] sm:$0xff] }
 0x346   : > { %s11408_s26 = sld [smem:[#allocation4 + %s3791_s25]]  ;;  %s3793_s27 = sadd.s32 5, %s11381_s20 }
 0x347   : > { %s12291_s2 = sld [smem:[#allocation4 + %s3793_s27]]  ;;  %s3795_s28 = sadd.s32 6, %s11381_s20 }
 0x348   : > { %v11387_v41 = vstv %s3784_s21  ;;  %s12412_s29 = sld [smem:[#allocation4 + %s3795_s28]]  ;;  %s3797_s30 = sadd.s32 7, %s11381_s20 }
 0x349   : > { %vm3802_vm13 = vcmp.ge.s32.totalorder %v11322_v17, %v11387_v41  ;;  %vm3803_vm15 = vcmp.ge.s32.totalorder %v11325_v14, %v11387_v41  ;;  %v11398_v45 = vstv %s3786_s23  ;;  %vm3804_vm11 = vcmp.ge.s32.totalorder %v11328_v2, %v11387_v41  ;;  %s12688_s5 = sld [smem:[#allocation4 + %s3797_s30]]  ;;  %s3799_s6 = sadd.s32 8, %s11381_s20 }
 0x34a   : > { %vm3819_vm12 = vcmp.lt.s32.totalorder %v11322_v17, %v11398_v45  ;;  %vm3820_vm14 = vcmp.lt.s32.totalorder %v11325_v14, %v11398_v45  ;;  %vm3821_vm9 = vcmp.lt.s32.totalorder %v11328_v2, %v11398_v45  ;;  %vm3805_vm4 = vcmp.ge.s32.totalorder %v11331_v26, %v11387_v41  ;;  %s12918_s7 = sld [smem:[#allocation4 + %s3799_s6]]  ;;  %s4760_s10 = scalar_lea.vmem %s13230_s4, %s11381_s20 }
 0x34b   : > { %vm3822_vm10 = vcmp.lt.s32.totalorder %v11331_v26, %v11398_v45  ;;  %vm11414_vm2 = vmand %vm3802_vm13, %vm3819_vm12  ;;  %vm3806_vm8 = vcmp.ge.s32.totalorder %v11336_v20, %v11387_v41  ;;  %vm3807_vm3 = vcmp.ge.s32.totalorder %v11339_v22, %v11387_v41  ;;  %vm3808_vm0 = vcmp.ge.s32.totalorder %v11342_v5, %v11387_v41 }
 0x34c   : > { %vm3823_vm1 = vcmp.lt.s32.totalorder %v11336_v20, %v11398_v45  ;;  %vm11426_vm6 = vmand %vm3803_vm15, %vm3820_vm14  ;;  %vm3824_vm12 = vcmp.lt.s32.totalorder %v11339_v22, %v11398_v45  ;;  %vm3825_vm7 = vcmp.lt.s32.totalorder %v11342_v5, %v11398_v45  ;;  %vm3826_vm14 = vcmp.lt.s32.totalorder %v11345_v6, %v11398_v45 }
 0x34d   : > { %vm11441_vm15 = vmand %vm3804_vm11, %vm3821_vm9  ;;  %vm3815_vm9 = vcmp.ge.s32.totalorder %v11365_v12, %v11387_v41  ;;  %vm3828_vm5 = vcmp.lt.s32.totalorder %v11353_v28, %v11398_v45  ;;  %v11493_v60 = vstv %s11389_s1  ;;  %v11496_v61 = vstv %s11391_s24 }
 0x34e   : > { %vm11459_vm11 = vmand %vm3805_vm4, %vm3822_vm10  ;;  %vm3827_vm10 = vcmp.lt.s32.totalorder %v11350_v29, %v11398_v45  ;;  %v3883_v30 = vsel %vm11414_vm2, %v14033_v62, -inf  ;;  %v3884_v25 = vsel %vm11426_vm6, %v14034_v27, -inf  ;;  %v3885_v13 = vsel %vm11441_vm15, %v14039_v42, -inf }
 0x34f   : > { %vm11477_vm4 = vmand %vm3806_vm8, %vm3823_vm1  ;;  %vm3829_vm8 = vcmp.lt.s32.totalorder %v11356_v9, %v11398_v45  ;;  %v3886_v35 = vsel %vm11459_vm11, %v14040_v24, -inf  ;;  %vm3830_vm2 = vcmp.lt.s32.totalorder %v11359_v10, %v11398_v45  ;;  %vm14043_vm6 = vcmp.ge.s32.totalorder %v11350_v29, %v11387_v41 }
 0x350   : > { %vm11488_vm13 = vmand %vm3807_vm3, %vm3824_vm12  ;;  %v3887_v18 = vsel %vm11477_vm4, %v14035_v51, -inf  ;;  %vm14036_vm3 = vcmp.ge.s32.totalorder %v11345_v6, %v11387_v41  ;;  %v11553_v39 = vstv %s11408_s26  ;;  %vm3833_vm15 = vcmp.lt.s32.totalorder %v11368_v56, %v11398_v45 }
 0x351   : > { %vm11503_vm1 = vmand %vm3808_vm0, %vm3825_vm7  ;;  %v3888_v23 = vsel %vm11488_vm13, %v14041_v3, -inf  ;;  %vm3831_vm0 = vcmp.lt.s32.totalorder %v11362_v11, %v11398_v45  ;;  %vm3832_vm13 = vcmp.lt.s32.totalorder %v11365_v12, %v11398_v45  ;;  %vm14047_vm11 = vcmp.ge.s32.totalorder %v11353_v28, %v11387_v41 }
 0x352   : > { %vm11519_vm12 = vmand %vm14036_vm3, %vm3826_vm14  ;;  %v3889_v32 = vsel %vm11503_vm1, %v14042_v15, -inf  ;;  %vm3834_vm14 = vcmp.lt.s32.totalorder %v11371_v37, %v11398_v45  ;;  %v3899_v52 = vmax.f32 %v3883_v30, %v3887_v18  ;;  %v3900_v38 = vmax.f32 %v3884_v25, %v3888_v23  ;;  %v14072_v30 = vld [vmem:[#allocation55_spill] sm:$0xff]  ;;  %v14073_v18 = vld [vmem:[#allocation61_spill] sm:$0xff] }
 0x353   : > { %vm11545_vm7 = vmand %vm14043_vm6, %vm3827_vm10  ;;  %v3890_v16 = vsel %vm11519_vm12, %v14046_v19, -inf  ;;  %vm14050_vm10 = vcmp.ge.s32.totalorder %v11356_v9, %v11387_v41  ;;  %v3901_v21 = vmax.f32 %v3885_v13, %v3889_v32  ;;  %vm3921_vm12 = vcmp.ge.s32.totalorder %v11325_v14, %v11398_v45 }
 0x354   : > { %vm11567_vm4 = vmand %vm14047_vm11, %vm3828_vm5  ;;  %v3891_v0 = vsel %vm11545_vm7, %v14053_v31, -inf  ;;  %v3902_v4 = vmax.f32 %v3886_v35, %v3890_v16  ;;  %vm14054_vm5 = vcmp.ge.s32.totalorder %v11359_v10, %v11387_v41  ;;  %vm3922_vm7 = vcmp.ge.s32.totalorder %v11328_v2, %v11398_v45 }
 0x355   : > { %vm11577_vm1 = vmand %vm14050_vm10, %vm3829_vm8  ;;  %v3892_v7 = vsel %vm11567_vm4, %v14057_v46, -inf  ;;  %vm3920_vm8 = vcmp.ge.s32.totalorder %v11322_v17, %v11398_v45  ;;  %vm3923_vm11 = vcmp.ge.s32.totalorder %v11331_v26, %v11398_v45  ;;  %vm3924_vm4 = vcmp.ge.s32.totalorder %v11336_v20, %v11398_v45 }
 0x356   : > { %vm11590_vm3 = vmand %vm14054_vm5, %vm3830_vm2  ;;  %v3893_v34 = vsel %vm11577_vm1, %v14058_v8, -inf  ;;  %vm14059_vm2 = vcmp.ge.s32.totalorder %v11362_v11, %v11387_v41  ;;  %v3903_v33 = vmax.f32 %v3899_v52, %v3891_v0  ;;  %vm3925_vm10 = vcmp.ge.s32.totalorder %v11339_v22, %v11398_v45 }
 0x357   : > { %vm11610_vm6 = vmand %vm14059_vm2, %vm3831_vm0  ;;  %v3894_v59 = vsel %vm11590_vm3, %v14062_v55, -inf  ;;  %vm3937_vm5 = vcmp.lt.s32.totalorder %v11322_v17, %v11493_v60  ;;  %vm14065_vm3 = vcmp.ge.s32.totalorder %v11368_v56, %v11387_v41  ;;  %v3904_v54 = vmax.f32 %v3900_v38, %v3892_v7 }
 0x358   : > { %vm11629_vm0 = vmand %vm3815_vm9, %vm3832_vm13  ;;  %v3905_v40 = vmax.f32 %v3901_v21, %v3893_v34  ;;  %v3906_v48 = vmax.f32 %v3902_v4, %v3894_v59  ;;  %vm3938_vm13 = vcmp.lt.s32.totalorder %v11325_v14, %v11493_v60  ;;  %vm14068_vm2 = vcmp.ge.s32.totalorder %v11371_v37, %v11387_v41  ;;  %v14074_v41 = vld [vmem:[#allocation59_spill] sm:$0xff] }
 0x359   : > { %vm11645_vm9 = vmand %vm14065_vm3, %vm3833_vm15  ;;  %v3895_v47 = vsel %vm11610_vm6, %v14071_v36, -inf  ;;  %v3896_v25 = vsel %vm11629_vm0, %v14072_v30, -inf  ;;  %vm3939_vm15 = vcmp.lt.s32.totalorder %v11328_v2, %v11493_v60  ;;  %vm3940_vm0 = vcmp.lt.s32.totalorder %v11331_v26, %v11493_v60 }
 0x35a   : > { %vm11657_vm1 = vmand %vm14068_vm2, %vm3834_vm14  ;;  %v3897_v44 = vsel %vm11645_vm9, %v14073_v18, -inf  ;;  %vm3927_vm14 = vcmp.ge.s32.totalorder %v11345_v6, %v11398_v45  ;;  %vm3941_vm2 = vcmp.lt.s32.totalorder %v11336_v20, %v11493_v60  ;;  %vm3942_vm6 = vcmp.lt.s32.totalorder %v11339_v22, %v11493_v60 }
 0x35b   : > { %v3898_v13 = vsel %vm11657_vm1, %v14074_v41, -inf  ;;  %vm11687_vm3 = vmand %vm3920_vm8, %vm3937_vm5  ;;  %v3907_v32 = vmax.f32 %v3903_v33, %v3895_v47  ;;  %v3908_v58 = vmax.f32 %v3904_v54, %v3896_v25  ;;  %v3909_v16 = vmax.f32 %v3905_v40, %v3897_v44 }
 0x35c   : > { %vm11705_vm8 = vmand %vm3921_vm12, %vm3938_vm13  ;;  %v3910_v43 = vmax.f32 %v3906_v48, %v3898_v13  ;;  %vm3943_vm1 = vcmp.lt.s32.totalorder %v11342_v5, %v11493_v60  ;;  %vm3944_vm9 = vcmp.lt.s32.totalorder %v11345_v6, %v11493_v60  ;;  %vm14087_vm12 = vcmp.ge.s32.totalorder %v11342_v5, %v11398_v45 }
 0x35d   : > { %vm11715_vm5 = vmand %vm3922_vm7, %vm3939_vm15  ;;  %v3911_v21 = vmax.f32 %v3907_v32, %v3908_v58  ;;  %vm3951_vm15 = vcmp.lt.s32.totalorder %v11368_v56, %v11493_v60  ;;  %v4001_v34 = vsel %vm11687_vm3, %v14033_v62, -inf  ;;  %v4002_v53 = vsel %vm11705_vm8, %v14034_v27, -inf }
 0x35e   : > { %vm11733_vm7 = vmand %vm3923_vm11, %vm3940_vm0  ;;  %vm3946_vm0 = vcmp.lt.s32.totalorder %v11353_v28, %v11493_v60  ;;  %v3912_v4 = vmax.f32 %v3909_v16, %v3910_v43  ;;  %vm14093_vm3 = vcmp.ge.s32.totalorder %v11350_v29, %v11398_v45  ;;  %v4003_v49 = vsel %vm11715_vm5, %v14039_v42, -inf }
 0x35f   : > { %vm11751_vm11 = vmand %vm3924_vm4, %vm3941_vm2  ;;  %vm3950_vm2 = vcmp.lt.s32.totalorder %v11365_v12, %v11493_v60  ;;  %vm14096_vm8 = vcmp.ge.s32.totalorder %v11353_v28, %v11398_v45  ;;  %v4004_v48 = vsel %vm11733_vm7, %v14040_v24, -inf  ;;  %vm4039_vm5 = vcmp.ge.s32.totalorder %v11325_v14, %v11493_v60 }
 0x360   : > { %vm11769_vm4 = vmand %vm3925_vm10, %vm3942_vm6  ;;  %v4005_v59 = vsel %vm11751_vm11, %v14035_v51, -inf  ;;  %vm14092_vm6 = vcmp.lt.s32.totalorder %v11350_v29, %v11493_v60  ;;  %v3913_v47 = vmax.f32 %v3911_v21, %v3912_v4  ;;  %vm14099_vm11 = vcmp.lt.s32.totalorder %v11356_v9, %v11493_v60 }
 0x361   : > { %vm11783_vm13 = vmand %vm14087_vm12, %vm3943_vm1  ;;  %v4006_v63 = vsel %vm11769_vm4, %v14041_v3, -inf  ;;  %v4017_v44 = vmax.f32 %v4001_v34, %v4005_v59  ;;  %vm4041_vm7 = vcmp.ge.s32.totalorder %v11331_v26, %v11493_v60 }
 0x362   : > { %vm11790_vm10 = vmand %vm3927_vm14, %vm3944_vm9  ;;  %vm3952_vm14 = vcmp.lt.s32.totalorder %v11371_v37, %v11493_v60  ;;  %v4007_v54 = vsel %vm11783_vm13, %v14042_v15, -inf  ;;  %vm4038_vm9 = vcmp.ge.s32.totalorder %v11322_v17, %v11493_v60  ;;  %vm4040_vm13 = vcmp.ge.s32.totalorder %v11328_v2, %v11493_v60 }
 0x363   : > { %vm11814_vm1 = vmand %vm14093_vm3, %vm14092_vm6  ;;  %v4008_v50 = vsel %vm11790_vm10, %v14046_v19, -inf  ;;  %v4018_v13 = vmax.f32 %v4002_v53, %v4006_v63  ;;  %vm14103_vm10 = vcmp.lt.s32.totalorder %v11359_v10, %v11493_v60  ;;  %vm14104_vm6 = vcmp.ge.s32.totalorder %v11359_v10, %v11398_v45 }
 0x364   : > { %vm11832_vm12 = vmand %vm14096_vm8, %vm3946_vm0  ;;  %vm14100_vm0 = vcmp.ge.s32.totalorder %v11356_v9, %v11398_v45  ;;  %v4009_v23 = vsel %vm11814_vm1, %v14053_v31, -inf  ;;  %v4019_v58 = vmax.f32 %v4003_v49, %v4007_v54  ;;  %vm4042_vm8 = vcmp.ge.s32.totalorder %v11336_v20, %v11493_v60 }
 0x365   : > { %vm11852_vm4 = vmand %vm14100_vm0, %vm14099_vm11  ;;  %v4010_v32 = vsel %vm11832_vm12, %v14057_v46, -inf  ;;  %vm14107_vm11 = vcmp.lt.s32.totalorder %v11362_v11, %v11493_v60  ;;  %vm14108_vm0 = vcmp.ge.s32.totalorder %v11362_v11, %v11398_v45  ;;  %v4020_v52 = vmax.f32 %v4004_v48, %v4008_v50 }
 0x366   : > { %vm11864_vm3 = vmand %vm14104_vm6, %vm14103_vm10  ;;  %v4011_v43 = vsel %vm11852_vm4, %v14058_v8, -inf  ;;  %vm4043_vm1 = vcmp.ge.s32.totalorder %v11339_v22, %v11493_v60  ;;  %vm14111_vm6 = vcmp.ge.s32.totalorder %v11365_v12, %v11398_v45  ;;  %vm4055_vm12 = vcmp.lt.s32.totalorder %v11322_v17, %v11496_v61 }
 0x367   : > { %vm11882_vm10 = vmand %vm14108_vm0, %vm14107_vm11  ;;  %v4012_v0 = vsel %vm11864_vm3, %v14062_v55, -inf  ;;  %v3914_v38 = vrot.slane %v3913_v47, 4  ;;  %v4021_v4 = vmax.f32 %v4017_v44, %v4009_v23  ;;  %v4022_v1 = vmax.f32 %v4018_v13, %v4010_v32 }
 0x368   : > { %vm11899_vm11 = vmand %vm14111_vm6, %vm3950_vm2  ;;  %vm14114_vm2 = vcmp.ge.s32.totalorder %v11368_v56, %v11398_v45  ;;  %vm4056_vm3 = vcmp.lt.s32.totalorder %v11325_v14, %v11496_v61  ;;  %vm14117_vm0 = vcmp.ge.s32.totalorder %v11371_v37, %v11398_v45  ;;  %v4013_v34 = vsel %vm11882_vm10, %v14071_v36, -inf }
 0x369   : > { %vm11918_vm6 = vmand %vm14114_vm2, %vm3951_vm15  ;;  %v4014_v53 = vsel %vm11899_vm11, %v14072_v30, -inf  ;;  %v4023_v59 = vmax.f32 %v4019_v58, %v4011_v43  ;;  %vm4057_vm15 = vcmp.lt.s32.totalorder %v11328_v2, %v11496_v61  ;;  %v4024_v63 = vmax.f32 %v4020_v52, %v4012_v0 }
 0x36a   : > { %vm11930_vm4 = vmand %vm14117_vm0, %vm3952_vm14  ;;  %v4015_v45 = vsel %vm11918_vm6, %v14073_v18, -inf  ;;  %vm4047_vm14 = vcmp.ge.s32.totalorder %v11353_v28, %v11493_v60  ;;  %vm4058_vm0 = vcmp.lt.s32.totalorder %v11331_v26, %v11496_v61  ;;  %vm4048_vm11 = vcmp.ge.s32.totalorder %v11356_v9, %v11493_v60 }
 0x36b   : > { %vm11955_vm10 = vmand %vm4038_vm9, %vm4055_vm12  ;;  %v4016_v49 = vsel %vm11930_vm4, %v14074_v41, -inf  ;;  %vm4059_vm6 = vcmp.lt.s32.totalorder %v11336_v20, %v11496_v61  ;;  %v4025_v40 = vmax.f32 %v4021_v4, %v4013_v34  ;;  %v4026_v48 = vmax.f32 %v4022_v1, %v4014_v53 }
 0x36c   : > { %vm11974_vm9 = vmand %vm4039_vm5, %vm4056_vm3  ;;  %vm4060_vm4 = vcmp.lt.s32.totalorder %v11339_v22, %v11496_v61  ;;  %v11992_v25 = vmax.f32 %v3913_v47, %v3914_v38  ;;  %v4027_v44 = vmax.f32 %v4023_v59, %v4015_v45  ;;  %vm4051_vm5 = vcmp.ge.s32.totalorder %v11365_v12, %v11493_v60 }
 0x36d   : > { %vm11988_vm2 = vmand %vm4040_vm13, %vm4057_vm15  ;;  %vm4061_vm3 = vcmp.lt.s32.totalorder %v11342_v5, %v11496_v61  ;;  %v4028_v35 = vmax.f32 %v4024_v63, %v4016_v49  ;;  %vm4062_vm13 = vcmp.lt.s32.totalorder %v11345_v6, %v11496_v61  ;;  %v4119_v23 = vsel %vm11955_vm10, %v14033_v62, -inf }
 0x36e   : > { %vm12004_vm12 = vmand %vm4041_vm7, %vm4058_vm0  ;;  %v4120_v32 = vsel %vm11974_vm9, %v14034_v27, -inf  ;;  %vm4052_vm7 = vcmp.ge.s32.totalorder %v11368_v56, %v11493_v60  ;;  %vm4063_vm0 = vcmp.lt.s32.totalorder %v11350_v29, %v11496_v61  ;;  %v4121_v58 = vsel %vm11988_vm2, %v14039_v42, -inf }
 0x36f   : > { %vm12013_vm15 = vmand %vm4042_vm8, %vm4059_vm6  ;;  %v4029_v43 = vmax.f32 %v4025_v40, %v4026_v48  ;;  %vm4064_vm10 = vcmp.lt.s32.totalorder %v11353_v28, %v11496_v61  ;;  %vm14130_vm6 = vcmp.ge.s32.totalorder %v11342_v5, %v11493_v60  ;;  %v4122_v52 = vsel %vm12004_vm12, %v14040_v24, -inf }
 0x370   : > { %vm4076_vm8 = vmand %vm4043_vm1, %vm4060_vm4  ;;  %v4123_v16 = vsel %vm12013_vm15, %v14035_v51, -inf  ;;  %vm4065_vm1 = vcmp.lt.s32.totalorder %v11356_v9, %v11496_v61  ;;  %vm14131_vm2 = vcmp.ge.s32.totalorder %v11345_v6, %v11493_v60  ;;  %v4030_v4 = vmax.f32 %v4027_v44, %v4028_v35 }
 0x371   : > { %vm4077_vm9 = vmand %vm14130_vm6, %vm4061_vm3  ;;  %v4124_v57 = vsel %vm4076_vm8, %v14041_v3, -inf  ;;  %v4135_v38 = vmax.f32 %v4119_v23, %v4123_v16  ;;  %vm4066_vm12 = vcmp.lt.s32.totalorder %v11359_v10, %v11496_v61  ;;  %vm14132_vm3 = vcmp.ge.s32.totalorder %v11350_v29, %v11493_v60 }
 0x372   : > { %vm4078_vm4 = vmand %vm14131_vm2, %vm4062_vm13  ;;  %v4125_v0 = vsel %vm4077_vm9, %v14042_v15, -inf  ;;  %v4136_v21 = vmax.f32 %v4120_v32, %v4124_v57  ;;  %vm4053_vm13 = vcmp.ge.s32.totalorder %v11371_v37, %v11493_v60  ;;  %vm4067_vm8 = vcmp.lt.s32.totalorder %v11362_v11, %v11496_v61 }
 0x373   : > { %vm12062_vm15 = vmand %vm14132_vm3, %vm4063_vm0  ;;  %v4126_v7 = vsel %vm4078_vm4, %v14046_v19, -inf  ;;  %v4137_v34 = vmax.f32 %v4121_v58, %v4125_v0  ;;  %v3916_v45 = vrot.slane %v11992_v25, 2  ;;  %vm4068_vm0 = vcmp.lt.s32.totalorder %v11365_v12, %v11496_v61 }
 0x374   : > { %vm4080_vm6 = vmand %vm4047_vm14, %vm4064_vm10  ;;  %v4127_v53 = vsel %vm12062_vm15, %v14053_v31, -inf  ;;  %v4138_v59 = vmax.f32 %v4122_v52, %v4126_v7  ;;  %vm4069_vm9 = vcmp.lt.s32.totalorder %v11368_v56, %v11496_v61  ;;  %vm4070_vm10 = vcmp.lt.s32.totalorder %v11371_v37, %v11496_v61 }
 0x375   : > { %vm4081_vm14 = vmand %vm4048_vm11, %vm4065_vm1  ;;  %v4128_v63 = vsel %vm4080_vm6, %v14057_v46, -inf  ;;  %vm14135_vm2 = vcmp.ge.s32.totalorder %v11359_v10, %v11493_v60  ;;  %v4139_v49 = vmax.f32 %v4135_v38, %v4127_v53  ;;  %v12101_v40 = vmax.f32 %v4029_v43, %v4030_v4 }
 0x376   : > { %vm4082_vm4 = vmand %vm14135_vm2, %vm4066_vm12  ;;  %v4129_v33 = vsel %vm4081_vm14, %v14058_v8, -inf  ;;  %v4140_v54 = vmax.f32 %v4136_v21, %v4128_v63  ;;  %vm14136_vm11 = vcmp.ge.s32.totalorder %v11362_v11, %v11493_v60  ;;  %vm4156_vm12 = vcmp.ge.s32.totalorder %v11322_v17, %v11496_v61 }
 0x377   : > { %vm12109_vm1 = vmand %vm14136_vm11, %vm4067_vm8  ;;  %v4130_v50 = vsel %vm4082_vm4, %v14062_v55, -inf  ;;  %v4141_v44 = vmax.f32 %v4137_v34, %v4129_v33  ;;  %vm4157_vm15 = vcmp.ge.s32.totalorder %v11325_v14, %v11496_v61  ;;  %vm4158_vm8 = vcmp.ge.s32.totalorder %v11328_v2, %v11496_v61 }
 0x378   : > { %vm4084_vm3 = vmand %vm4051_vm5, %vm4068_vm0  ;;  %v4131_v13 = vsel %vm12109_vm1, %v14071_v36, -inf  ;;  %v4142_v35 = vmax.f32 %v4138_v59, %v4130_v50  ;;  %vm4159_vm5 = vcmp.ge.s32.totalorder %v11331_v26, %v11496_v61  ;;  %vm4160_vm0 = vcmp.ge.s32.totalorder %v11336_v20, %v11496_v61 }
 0x379   : > { %vm4085_vm6 = vmand %vm4052_vm7, %vm4069_vm9  ;;  %v4132_v47 = vsel %vm4084_vm3, %v14072_v30, -inf  ;;  %vm4173_vm14 = vcmp.lt.s32.totalorder %v11322_v17, %v11553_v39  ;;  %v4143_v32 = vmax.f32 %v4139_v49, %v4131_v13  ;;  %vm4174_vm7 = vcmp.lt.s32.totalorder %v11325_v14, %v11553_v39 }
 0x37a   : > { %vm4086_vm2 = vmand %vm4053_vm13, %vm4070_vm10  ;;  %v4133_v23 = vsel %vm4085_vm6, %v14073_v18, -inf  ;;  %v4144_v58 = vmax.f32 %v4140_v54, %v4132_v47  ;;  %vm4175_vm9 = vcmp.lt.s32.totalorder %v11328_v2, %v11553_v39  ;;  %vm4176_vm4 = vcmp.lt.s32.totalorder %v11331_v26, %v11553_v39 }
 0x37b   : > { %v4134_v16 = vsel %vm4086_vm2, %v14074_v41, -inf  ;;  %v4145_v43 = vmax.f32 %v4141_v44, %v4133_v23  ;;  %vm12156_vm13 = vmand %vm4156_vm12, %vm4173_vm14  ;;  %v4032_v52 = vrot.slane %v12101_v40, 4  ;;  %vm4161_vm10 = vcmp.ge.s32.totalorder %v11339_v22, %v11496_v61 }
 0x37c   : > { %v4146_v57 = vmax.f32 %v4142_v35, %v4134_v16  ;;  %vm4177_vm11 = vcmp.lt.s32.totalorder %v11336_v20, %v11553_v39  ;;  %vm12168_vm1 = vmand %vm4157_vm15, %vm4174_vm7  ;;  %vm4162_vm12 = vcmp.ge.s32.totalorder %v11342_v5, %v11496_v61  ;;  %vm4178_vm14 = vcmp.lt.s32.totalorder %v11339_v22, %v11553_v39 }
 0x37d   : > { %vm12183_vm2 = vmand %vm4158_vm8, %vm4175_vm9  ;;  %v4147_v21 = vmax.f32 %v4143_v32, %v4144_v58  ;;  %vm4179_vm7 = vcmp.lt.s32.totalorder %v11342_v5, %v11553_v39  ;;  %vm4166_vm8 = vcmp.ge.s32.totalorder %v11356_v9, %v11496_v61  ;;  %vm4167_vm9 = vcmp.ge.s32.totalorder %v11359_v10, %v11496_v61 }
 0x37e   : > { %v4148_v4 = vmax.f32 %v4145_v43, %v4146_v57  ;;  %vm12197_vm6 = vmand %vm4159_vm5, %vm4176_vm4  ;;  %vm4180_vm3 = vcmp.lt.s32.totalorder %v11345_v6, %v11553_v39  ;;  %vm4181_vm4 = vcmp.lt.s32.totalorder %v11350_v29, %v11553_v39  ;;  %v4237_v53 = vsel %vm12156_vm13, %v14033_v62, -inf }
 0x37f   : > { %vm12215_vm5 = vmand %vm4160_vm0, %vm4177_vm11  ;;  %v4238_v59 = vsel %vm12168_vm1, %v14034_v27, -inf  ;;  %v4239_v63 = vsel %vm12183_vm2, %v14039_v42, -inf  ;;  %vm4182_vm0 = vcmp.lt.s32.totalorder %v11353_v28, %v11553_v39  ;;  %v4240_v33 = vsel %vm12197_vm6, %v14040_v24, -inf }
 0x380   : > { %vm12224_vm15 = vmand %vm4161_vm10, %vm4178_vm14  ;;  %v4241_v49 = vsel %vm12215_vm5, %v14035_v51, -inf  ;;  %v4149_v48 = vmax.f32 %v4147_v21, %v4148_v4  ;;  %vm4183_vm13 = vcmp.lt.s32.totalorder %v11356_v9, %v11553_v39  ;;  %vm4184_vm11 = vcmp.lt.s32.totalorder %v11359_v10, %v11553_v39 }
 0x381   : > { %vm4195_vm10 = vmand %vm4162_vm12, %vm4179_vm7  ;;  %v4242_v54 = vsel %vm12224_vm15, %v14041_v3, -inf  ;;  %vm14151_vm1 = vcmp.ge.s32.totalorder %v11345_v6, %v11496_v61  ;;  %vm14152_vm6 = vcmp.ge.s32.totalorder %v11350_v29, %v11496_v61  ;;  %v4253_v35 = vmax.f32 %v4237_v53, %v4241_v49 }
 0x382   : > { %vm4196_vm12 = vmand %vm14151_vm1, %vm4180_vm3  ;;  %v4243_v50 = vsel %vm4195_vm10, %v14042_v15, -inf  ;;  %v4254_v47 = vmax.f32 %v4238_v59, %v4242_v54  ;;  %vm4169_vm3 = vcmp.ge.s32.totalorder %v11365_v12, %v11496_v61  ;;  %vm4185_vm2 = vcmp.lt.s32.totalorder %v11362_v11, %v11553_v39 }
 0x383   : > { %vm12269_vm14 = vmand %vm14152_vm6, %vm4181_vm4  ;;  %v4244_v13 = vsel %vm4196_vm12, %v14046_v19, -inf  ;;  %v4255_v23 = vmax.f32 %v4239_v63, %v4243_v50  ;;  %vm14155_vm15 = vcmp.ge.s32.totalorder %v11353_v28, %v11496_v61  ;;  %vm4170_vm5 = vcmp.ge.s32.totalorder %v11368_v56, %v11496_v61 }
 0x384   : > { %vm12284_vm7 = vmand %vm14155_vm15, %vm4182_vm0  ;;  %v4245_v58 = vsel %vm12269_vm14, %v14053_v31, -inf  ;;  %v4256_v16 = vmax.f32 %v4240_v33, %v4244_v13  ;;  %vm4171_vm4 = vcmp.ge.s32.totalorder %v11371_v37, %v11496_v61  ;;  %vm4186_vm10 = vcmp.lt.s32.totalorder %v11365_v12, %v11553_v39 }
 0x385   : > { %vm4199_vm0 = vmand %vm4166_vm8, %vm4183_vm13  ;;  %v4246_v43 = vsel %vm12284_vm7, %v14057_v46, -inf  ;;  %v4150_v60 = vrot.slane %v4149_v48, 4  ;;  %vm4187_vm1 = vcmp.lt.s32.totalorder %v11368_v56, %v11553_v39  ;;  %vm4188_vm12 = vcmp.lt.s32.totalorder %v11371_v37, %v11553_v39 }
 0x386   : > { %vm4200_vm6 = vmand %vm4167_vm9, %vm4184_vm11  ;;  %v4247_v57 = vsel %vm4199_vm0, %v14058_v8, -inf  ;;  %vm14158_vm8 = vcmp.ge.s32.totalorder %v11362_v11, %v11496_v61  ;;  %v4257_v21 = vmax.f32 %v4253_v35, %v4245_v58  ;;  %v4258_v4 = vmax.f32 %v4254_v47, %v4246_v43 }
 0x387   : > { %vm12325_vm13 = vmand %vm14158_vm8, %vm4185_vm2  ;;  %v4248_v38 = vsel %vm4200_vm6, %v14062_v55, -inf  ;;  %v4259_v1 = vmax.f32 %v4255_v23, %v4247_v57  ;;  %v4033_v7 = vmax.f32 %v12101_v40, %v4032_v52  ;;  %v12340_v59 = vmax.f32 %v11992_v25, %v3916_v45 }
 0x388   : > { %vm4202_vm9 = vmand %vm4169_vm3, %vm4186_vm10  ;;  %v4249_v34 = vsel %vm12325_vm13, %v14071_v36, -inf  ;;  %v4260_v53 = vmax.f32 %v4256_v16, %v4248_v38  ;;  %v4151_v52 = vmax.f32 %v4149_v48, %v4150_v60  ;;  %vm4274_vm3 = vcmp.ge.s32.totalorder %v11322_v17, %v11553_v39 }
 0x389   : > { %vm4203_vm11 = vmand %vm4170_vm5, %vm4187_vm1  ;;  %v4250_v40 = vsel %vm4202_vm9, %v14072_v30, -inf  ;;  %v4261_v45 = vmax.f32 %v4257_v21, %v4249_v34  ;;  %v4034_v54 = vrot.slane %v4033_v7, 2  ;;  %v3918_v48 = vrot.slane %v12340_v59, 1 }
 0x38a   : > { %vm4204_vm14 = vmand %vm4171_vm4, %vm4188_vm12  ;;  %v4251_v63 = vsel %vm4203_vm11, %v14073_v18, -inf  ;;  %v4262_v33 = vmax.f32 %v4258_v4, %v4250_v40  ;;  %vm4275_vm2 = vcmp.ge.s32.totalorder %v11325_v14, %v11553_v39  ;;  %vm4276_vm15 = vcmp.ge.s32.totalorder %v11328_v2, %v11553_v39 }
 0x38b   : > { %v4252_v25 = vsel %vm4204_vm14, %v14074_v41, -inf  ;;  %v4263_v49 = vmax.f32 %v4259_v1, %v4251_v63  ;;  %v12362_v61 = vstv %s12291_s2  ;;  %v4152_v44 = vrot.slane %v4151_v52, 2 }
 0x38c   : > { %v4264_v50 = vmax.f32 %v4260_v53, %v4252_v25  ;;  %vm4291_vm7 = vcmp.lt.s32.totalorder %v11322_v17, %v12362_v61  ;;  %vm4292_vm5 = vcmp.lt.s32.totalorder %v11325_v14, %v12362_v61  ;;  %vm4293_vm4 = vcmp.lt.s32.totalorder %v11328_v2, %v12362_v61 }
 0x38d   : > { %v4265_v13 = vmax.f32 %v4261_v45, %v4262_v33  ;;  %vm4277_vm10 = vcmp.ge.s32.totalorder %v11331_v26, %v11553_v39  ;;  %vm4294_vm0 = vcmp.lt.s32.totalorder %v11331_v26, %v12362_v61  ;;  %vm12375_vm1 = vmand %vm4274_vm3, %vm4291_vm7  ;;  %v12379_v23 = vmax.f32 %v4033_v7, %v4034_v54 }
 0x38e   : > { %v4266_v35 = vmax.f32 %v4263_v49, %v4264_v50  ;;  %vm4278_vm12 = vcmp.ge.s32.totalorder %v11336_v20, %v11553_v39  ;;  %vm4279_vm6 = vcmp.ge.s32.totalorder %v11339_v22, %v11553_v39  ;;  %vm4295_vm8 = vcmp.lt.s32.totalorder %v11336_v20, %v12362_v61  ;;  %vm12390_vm13 = vmand %vm4275_vm2, %vm4292_vm5 }
 0x38f   : > { %vm4280_vm9 = vcmp.ge.s32.totalorder %v11342_v5, %v11553_v39  ;;  %vm4281_vm11 = vcmp.ge.s32.totalorder %v11345_v6, %v11553_v39  ;;  %vm4296_vm3 = vcmp.lt.s32.totalorder %v11339_v22, %v12362_v61  ;;  %vm12408_vm2 = vmand %vm4276_vm15, %vm4293_vm4  ;;  %v12414_v16 = vmax.f32 %v4151_v52, %v4152_v44 }
 0x390   : > { %vm4297_vm14 = vcmp.lt.s32.totalorder %v11342_v5, %v12362_v61  ;;  %vm12428_vm15 = vmand %vm4277_vm10, %vm4294_vm0  ;;  %v4267_v60 = vmax.f32 %v4265_v13, %v4266_v35  ;;  %vm4285_vm4 = vcmp.ge.s32.totalorder %v11359_v10, %v11553_v39  ;;  %vm4298_vm7 = vcmp.lt.s32.totalorder %v11345_v6, %v12362_v61 }
 0x391   : > { %vm12444_vm10 = vmand %vm4278_vm12, %vm4295_vm8  ;;  %vm4299_vm0 = vcmp.lt.s32.totalorder %v11350_v29, %v12362_v61  ;;  %v4355_v38 = vsel %vm12375_vm1, %v14033_v62, -inf  ;;  %v4356_v21 = vsel %vm12390_vm13, %v14034_v27, -inf  ;;  %vm4300_vm12 = vcmp.lt.s32.totalorder %v11353_v28, %v12362_v61 }
 0x392   : > { %vm12453_vm5 = vmand %vm4279_vm6, %vm4296_vm3  ;;  %v4359_v4 = vsel %vm12444_vm10, %v14035_v51, -inf  ;;  %v4357_v7 = vsel %vm12408_vm2, %v14039_v42, -inf  ;;  %v4358_v34 = vsel %vm12428_vm15, %v14040_v24, -inf  ;;  %vm4287_vm1 = vcmp.ge.s32.totalorder %v11365_v12, %v11553_v39 }
 0x393   : > { %vm12471_vm6 = vmand %vm4280_vm9, %vm4297_vm14  ;;  %v4360_v53 = vsel %vm12453_vm5, %v14041_v3, -inf  ;;  %vm4301_vm8 = vcmp.lt.s32.totalorder %v11356_v9, %v12362_v61  ;;  %vm4302_vm13 = vcmp.lt.s32.totalorder %v11359_v10, %v12362_v61  ;;  %vm4303_vm14 = vcmp.lt.s32.totalorder %v11362_v11, %v12362_v61 }
 0x394   : > { %vm4314_vm9 = vmand %vm4281_vm11, %vm4298_vm7  ;;  %v4361_v40 = vsel %vm12471_vm6, %v14042_v15, -inf  ;;  %vm14175_vm3 = vcmp.ge.s32.totalorder %v11350_v29, %v11553_v39  ;;  %v4371_v25 = vmax.f32 %v4355_v38, %v4359_v4  ;;  %v4372_v45 = vmax.f32 %v4356_v21, %v4360_v53 }
 0x395   : > { %vm12507_vm2 = vmand %vm14175_vm3, %vm4299_vm0  ;;  %v4362_v63 = vsel %vm4314_vm9, %v14046_v19, -inf  ;;  %v4268_v33 = vrot.slane %v4267_v60, 4  ;;  %vm14178_vm11 = vcmp.ge.s32.totalorder %v11353_v28, %v11553_v39  ;;  %v4373_v50 = vmax.f32 %v4357_v7, %v4361_v40 }
 0x396   : > { %vm12518_vm7 = vmand %vm14178_vm11, %vm4300_vm12  ;;  %v4363_v54 = vsel %vm12507_vm2, %v14053_v31, -inf  ;;  %v4374_v44 = vmax.f32 %v4358_v34, %v4362_v63  ;;  %vm4288_vm5 = vcmp.ge.s32.totalorder %v11368_v56, %v11553_v39  ;;  %vm4289_vm15 = vcmp.ge.s32.totalorder %v11371_v37, %v11553_v39 }
 0x397   : > { %vm4304_vm10 = vcmp.lt.s32.totalorder %v11365_v12, %v12362_v61  ;;  %vm14181_vm0 = vcmp.ge.s32.totalorder %v11356_v9, %v11553_v39  ;;  %v4364_v13 = vsel %vm12518_vm7, %v14057_v46, -inf  ;;  %vm4305_vm6 = vcmp.lt.s32.totalorder %v11368_v56, %v12362_v61  ;;  %vm4318_vm3 = vmand %vm4285_vm4, %vm4302_vm13 }
 0x398   : > { %vm4317_vm12 = vmand %vm14181_vm0, %vm4301_vm8  ;;  %vm4306_vm9 = vcmp.lt.s32.totalorder %v11371_v37, %v12362_v61  ;;  %v12552_v47 = vstv %s12412_s29  ;;  %vm14182_vm8 = vcmp.ge.s32.totalorder %v11362_v11, %v11553_v39  ;;  %v4366_v58 = vsel %vm4318_vm3, %v14062_v55, -inf }
 0x399   : > { %v4365_v35 = vsel %vm4317_vm12, %v14058_v8, -inf  ;;  %vm12560_vm2 = vmand %vm14182_vm8, %vm4303_vm14  ;;  %v4375_v43 = vmax.f32 %v4371_v25, %v4363_v54  ;;  %v4376_v57 = vmax.f32 %v4372_v45, %v4364_v13  ;;  %vm4392_vm4 = vcmp.ge.s32.totalorder %v11322_v17, %v12362_v61 }
 0x39a   : > { %v12567_v0 = vmax.f32 %v4267_v60, %v4268_v33  ;;  %vm12572_vm13 = vmand %vm4287_vm1, %vm4304_vm10  ;;  %v4367_v21 = vsel %vm12560_vm2, %v14071_v36, -inf  ;;  %v4377_v4 = vmax.f32 %v4373_v50, %v4365_v35  ;;  %v4378_v1 = vmax.f32 %v4374_v44, %v4366_v58 }
 0x39b   : > { %vm12585_vm14 = vmand %vm4288_vm5, %vm4305_vm6  ;;  %v4368_v7 = vsel %vm12572_vm13, %v14072_v30, -inf  ;;  %vm4393_vm1 = vcmp.ge.s32.totalorder %v11325_v14, %v12362_v61  ;;  %vm4394_vm11 = vcmp.ge.s32.totalorder %v11328_v2, %v12362_v61  ;;  %vm4409_vm7 = vcmp.lt.s32.totalorder %v11322_v17, %v12552_v47 }
 0x39c   : > { %vm4322_vm5 = vmand %vm4289_vm15, %vm4306_vm9  ;;  %v4369_v34 = vsel %vm12585_vm14, %v14073_v18, -inf  ;;  %vm4395_vm10 = vcmp.ge.s32.totalorder %v11331_v26, %v12362_v61  ;;  %vm4410_vm0 = vcmp.lt.s32.totalorder %v11325_v14, %v12552_v47  ;;  %vm4411_vm12 = vcmp.lt.s32.totalorder %v11328_v2, %v12552_v47 }
 0x39d   : > { %v4370_v53 = vsel %vm4322_vm5, %v14074_v41, -inf  ;;  %v4379_v40 = vmax.f32 %v4375_v43, %v4367_v21  ;;  %v4380_v52 = vmax.f32 %v4376_v57, %v4368_v7  ;;  %vm4412_vm15 = vcmp.lt.s32.totalorder %v11331_v26, %v12552_v47  ;;  %vm12619_vm6 = vmand %vm4392_vm4, %vm4409_vm7 }
 0x39e   : > { %v4381_v63 = vmax.f32 %v4377_v4, %v4369_v34  ;;  %v4382_v25 = vmax.f32 %v4378_v1, %v4370_v53  ;;  %vm4396_vm9 = vcmp.ge.s32.totalorder %v11336_v20, %v12362_v61  ;;  %vm4413_vm3 = vcmp.lt.s32.totalorder %v11336_v20, %v12552_v47  ;;  %vm12630_vm8 = vmand %vm4393_vm1, %vm4410_vm0 }
 0x39f   : > { %vm4397_vm2 = vcmp.ge.s32.totalorder %v11339_v22, %v12362_v61  ;;  %vm4398_vm4 = vcmp.ge.s32.totalorder %v11342_v5, %v12362_v61  ;;  %vm4414_vm14 = vcmp.lt.s32.totalorder %v11339_v22, %v12552_v47  ;;  %vm12649_vm1 = vmand %vm4394_vm11, %vm4411_vm12  ;;  %vm4400_vm7 = vcmp.ge.s32.totalorder %v11350_v29, %v12362_v61 }
 0x3a0   : > { %vm4415_vm13 = vcmp.lt.s32.totalorder %v11342_v5, %v12552_v47  ;;  %vm12667_vm11 = vmand %vm4395_vm10, %vm4412_vm15  ;;  %v4383_v54 = vmax.f32 %v4379_v40, %v4380_v52  ;;  %vm4416_vm12 = vcmp.lt.s32.totalorder %v11345_v6, %v12552_v47  ;;  %vm4417_vm0 = vcmp.lt.s32.totalorder %v11350_v29, %v12552_v47 }
 0x3a1   : > { %vm12681_vm5 = vmand %vm4396_vm9, %vm4413_vm3  ;;  %v4473_v44 = vsel %vm12619_vm6, %v14033_v62, -inf  ;;  %v4384_v13 = vmax.f32 %v4381_v63, %v4382_v25  ;;  %v4474_v32 = vsel %vm12630_vm8, %v14034_v27, -inf  ;;  %v4475_v58 = vsel %vm12649_vm1, %v14039_v42, -inf }
 0x3a2   : > { %vm12693_vm10 = vmand %vm4397_vm2, %vm4414_vm14  ;;  %v4477_v43 = vsel %vm12681_vm5, %v14035_v51, -inf  ;;  %vm4403_vm15 = vcmp.ge.s32.totalorder %v11359_v10, %v12362_v61  ;;  %vm4418_vm6 = vcmp.lt.s32.totalorder %v11353_v28, %v12552_v47  ;;  %v4476_v57 = vsel %vm12667_vm11, %v14040_v24, -inf }
 0x3a3   : > { %vm4431_vm9 = vmand %vm4398_vm4, %vm4415_vm13  ;;  %v4478_v38 = vsel %vm12693_vm10, %v14041_v3, -inf  ;;  %vm4404_vm3 = vcmp.ge.s32.totalorder %v11362_v11, %v12362_v61  ;;  %vm4419_vm8 = vcmp.lt.s32.totalorder %v11356_v9, %v12552_v47  ;;  %vm14201_vm2 = vcmp.ge.s32.totalorder %v11345_v6, %v12362_v61 }
 0x3a4   : > { %vm4432_vm4 = vmand %vm14201_vm2, %vm4416_vm12  ;;  %v4479_v21 = vsel %vm4431_vm9, %v14042_v15, -inf  ;;  %v4489_v4 = vmax.f32 %v4473_v44, %v4477_v43  ;;  %vm4420_vm13 = vcmp.lt.s32.totalorder %v11359_v10, %v12552_v47  ;;  %v4490_v7 = vmax.f32 %v4474_v32, %v4478_v38 }
 0x3a5   : > { %vm12741_vm14 = vmand %vm4400_vm7, %vm4417_vm0  ;;  %v4480_v60 = vsel %vm4432_vm4, %v14046_v19, -inf  ;;  %v4491_v34 = vmax.f32 %v4475_v58, %v4479_v21  ;;  %v4385_v53 = vmax.f32 %v4383_v54, %v4384_v13  ;;  %vm4421_vm1 = vcmp.lt.s32.totalorder %v11362_v11, %v12552_v47 }
 0x3a6   : > { %vm14204_vm5 = vcmp.ge.s32.totalorder %v11353_v28, %v12362_v61  ;;  %v4481_v52 = vsel %vm12741_vm14, %v14053_v31, -inf  ;;  %v4492_v39 = vmax.f32 %v4476_v57, %v4480_v60  ;;  %vm4405_vm7 = vcmp.ge.s32.totalorder %v11365_v12, %v12362_v61  ;;  %vm4436_vm4 = vmand %vm4403_vm15, %vm4420_vm13 }
 0x3a7   : > { %vm12754_vm11 = vmand %vm14204_vm5, %vm4418_vm6  ;;  %vm4406_vm0 = vcmp.ge.s32.totalorder %v11368_v56, %v12362_v61  ;;  %vm4422_vm12 = vcmp.lt.s32.totalorder %v11365_v12, %v12552_v47  ;;  %vm14207_vm10 = vcmp.ge.s32.totalorder %v11356_v9, %v12362_v61  ;;  %vm4407_vm9 = vcmp.ge.s32.totalorder %v11371_v37, %v12362_v61 }
 0x3a8   : > { %vm4435_vm6 = vmand %vm14207_vm10, %vm4419_vm8  ;;  %v4482_v63 = vsel %vm12754_vm11, %v14057_v46, -inf  ;;  %vm4423_vm2 = vcmp.lt.s32.totalorder %v11368_v56, %v12552_v47  ;;  %v4493_v45 = vmax.f32 %v4489_v4, %v4481_v52  ;;  %vm4424_vm8 = vcmp.lt.s32.totalorder %v11371_v37, %v12552_v47 }
 0x3a9   : > { %v4483_v25 = vsel %vm4435_vm6, %v14058_v8, -inf  ;;  %vm12795_vm14 = vmand %vm4404_vm3, %vm4421_vm1  ;;  %v4484_v49 = vsel %vm4436_vm4, %v14062_v55, -inf  ;;  %v4494_v54 = vmax.f32 %v4490_v7, %v4482_v63  ;;  %v4386_v44 = vrot.slane %v4385_v53, 4 }
 0x3aa   : > { %v4495_v50 = vmax.f32 %v4491_v34, %v4483_v25  ;;  %vm4438_vm15 = vmand %vm4405_vm7, %vm4422_vm12  ;;  %v4485_v13 = vsel %vm12795_vm14, %v14071_v36, -inf  ;;  %v4496_v35 = vmax.f32 %v4492_v39, %v4484_v49  ;;  %v12807_v32 = vstv %s12688_s5 }
 0x3ab   : > { %v4270_v58 = vrot.slane %v12567_v0, 2  ;;  %vm4439_vm3 = vmand %vm4406_vm0, %vm4423_vm2  ;;  %v4486_v43 = vsel %vm4438_vm15, %v14072_v30, -inf  ;;  %vm4510_vm13 = vcmp.ge.s32.totalorder %v11322_v17, %v12552_v47  ;;  %vm4511_vm1 = vcmp.ge.s32.totalorder %v11325_v14, %v12552_v47 }
 0x3ac   : > { %vm4440_vm5 = vmand %vm4407_vm9, %vm4424_vm8  ;;  %v4487_v57 = vsel %vm4439_vm3, %v14073_v18, -inf  ;;  %v4497_v38 = vmax.f32 %v4493_v45, %v4485_v13  ;;  %vm4512_vm11 = vcmp.ge.s32.totalorder %v11328_v2, %v12552_v47  ;;  %vm4513_vm7 = vcmp.ge.s32.totalorder %v11331_v26, %v12552_v47 }
 0x3ad   : > { %v4488_v21 = vsel %vm4440_vm5, %v14074_v41, -inf  ;;  %v4498_v4 = vmax.f32 %v4494_v54, %v4486_v43  ;;  %v4499_v1 = vmax.f32 %v4495_v50, %v4487_v57  ;;  %vm4527_vm0 = vcmp.lt.s32.totalorder %v11322_v17, %v12807_v32 }
 0x3ae   : > { %v12835_v60 = vmax.f32 %v4385_v53, %v4386_v44  ;;  %v4500_v61 = vmax.f32 %v4496_v35, %v4488_v21  ;;  %vm4514_vm12 = vcmp.ge.s32.totalorder %v11336_v20, %v12552_v47  ;;  %vm4528_vm10 = vcmp.lt.s32.totalorder %v11325_v14, %v12807_v32  ;;  %vm12844_vm6 = vmand %vm4510_vm13, %vm4527_vm0 }
 0x3af   : > { %vm4515_vm9 = vcmp.ge.s32.totalorder %v11339_v22, %v12552_v47  ;;  %vm4529_vm2 = vcmp.lt.s32.totalorder %v11328_v2, %v12807_v32  ;;  %vm4530_vm4 = vcmp.lt.s32.totalorder %v11331_v26, %v12807_v32  ;;  %vm4531_vm8 = vcmp.lt.s32.totalorder %v11336_v20, %v12807_v32  ;;  %vm12859_vm14 = vmand %vm4511_vm1, %vm4528_vm10 }
 0x3b0   : > { %vm4516_vm15 = vcmp.ge.s32.totalorder %v11342_v5, %v12552_v47  ;;  %vm4532_vm5 = vcmp.lt.s32.totalorder %v11339_v22, %v12807_v32  ;;  %vm12874_vm0 = vmand %vm4512_vm11, %vm4529_vm2  ;;  %v4501_v40 = vmax.f32 %v4497_v38, %v4498_v4  ;;  %v4502_v52 = vmax.f32 %v4499_v1, %v4500_v61 }
 0x3b1   : > { %vm4533_vm10 = vcmp.lt.s32.totalorder %v11342_v5, %v12807_v32  ;;  %vm12886_vm13 = vmand %vm4513_vm7, %vm4530_vm4  ;;  %vm4520_vm11 = vcmp.ge.s32.totalorder %v11356_v9, %v12552_v47  ;;  %vm4534_vm3 = vcmp.lt.s32.totalorder %v11345_v6, %v12807_v32  ;;  %vm4535_vm1 = vcmp.lt.s32.totalorder %v11350_v29, %v12807_v32 }
 0x3b2   : > { %vm4547_vm7 = vmand %vm4514_vm12, %vm4531_vm8  ;;  %vm4536_vm4 = vcmp.lt.s32.totalorder %v11353_v28, %v12807_v32  ;;  %v4591_v63 = vsel %vm12844_vm6, %v14033_v62, -inf  ;;  %v4592_v25 = vsel %vm12859_vm14, %v14034_v27, -inf  ;;  %v4593_v45 = vsel %vm12874_vm0, %v14039_v42, -inf }
 0x3b3   : > { %vm4548_vm2 = vmand %vm4515_vm9, %vm4532_vm5  ;;  %vm4537_vm12 = vcmp.lt.s32.totalorder %v11356_v9, %v12807_v32  ;;  %v4594_v33 = vsel %vm12886_vm13, %v14040_v24, -inf  ;;  %v4595_v49 = vsel %vm4547_vm7, %v14035_v51, -inf  ;;  %v4503_v50 = vmax.f32 %v4501_v40, %v4502_v52 }
 0x3b4   : > { %vm4549_vm9 = vmand %vm4516_vm15, %vm4533_vm10  ;;  %v4596_v54 = vsel %vm4548_vm2, %v14041_v3, -inf  ;;  %vm14218_vm6 = vcmp.ge.s32.totalorder %v11345_v6, %v12552_v47  ;;  %v4607_v13 = vmax.f32 %v4591_v63, %v4595_v49  ;;  %vm4522_vm14 = vcmp.ge.s32.totalorder %v11362_v11, %v12552_v47 }
 0x3b5   : > { %vm4550_vm8 = vmand %vm14218_vm6, %vm4534_vm3  ;;  %v4597_v44 = vsel %vm4549_vm9, %v14042_v15, -inf  ;;  %v4608_v35 = vmax.f32 %v4592_v25, %v4596_v54  ;;  %vm4538_vm15 = vcmp.lt.s32.totalorder %v11359_v10, %v12807_v32  ;;  %vm14219_vm13 = vcmp.ge.s32.totalorder %v11350_v29, %v12552_v47 }
 0x3b6   : > { %vm4551_vm5 = vmand %vm14219_vm13, %vm4535_vm1  ;;  %v4598_v43 = vsel %vm4550_vm8, %v14046_v19, -inf  ;;  %v4609_v57 = vmax.f32 %v4593_v45, %v4597_v44  ;;  %vm4523_vm3 = vcmp.ge.s32.totalorder %v11365_v12, %v12552_v47  ;;  %vm4539_vm0 = vcmp.lt.s32.totalorder %v11362_v11, %v12807_v32 }
 0x3b7   : > { %vm14220_vm10 = vcmp.ge.s32.totalorder %v11353_v28, %v12552_v47  ;;  %v4599_v38 = vsel %vm4551_vm5, %v14053_v31, -inf  ;;  %v4610_v21 = vmax.f32 %v4594_v33, %v4598_v43  ;;  %vm4524_vm1 = vcmp.ge.s32.totalorder %v11368_v56, %v12552_v47  ;;  %vm4553_vm9 = vmand %vm4520_vm11, %vm4537_vm12 }
 0x3b8   : > { %vm4552_vm2 = vmand %vm14220_vm10, %vm4536_vm4  ;;  %vm4540_vm7 = vcmp.lt.s32.totalorder %v11365_v12, %v12807_v32  ;;  %v4611_v1 = vmax.f32 %v4607_v13, %v4599_v38  ;;  %v4504_v61 = vrot.slane %v4503_v50, 4  ;;  %vm4541_vm4 = vcmp.lt.s32.totalorder %v11368_v56, %v12807_v32 }
 0x3b9   : > { %v4600_v4 = vsel %vm4552_vm2, %v14057_v46, -inf  ;;  %vm14221_vm6 = vcmp.ge.s32.totalorder %v11359_v10, %v12552_v47  ;;  %v4601_v7 = vsel %vm4553_vm9, %v14058_v8, -inf  ;;  %vm4525_vm11 = vcmp.ge.s32.totalorder %v11371_v37, %v12552_v47  ;;  %vm4555_vm13 = vmand %vm4522_vm14, %vm4539_vm0 }
 0x3ba   : > { %vm4554_vm8 = vmand %vm14221_vm6, %vm4538_vm15  ;;  %v4612_v34 = vmax.f32 %v4608_v35, %v4600_v4  ;;  %vm4542_vm12 = vcmp.lt.s32.totalorder %v11371_v37, %v12807_v32  ;;  %v4613_v40 = vmax.f32 %v4609_v57, %v4601_v7  ;;  %v4036_v52 = vrot.slane %v12379_v23, 1 }
 0x3bb   : > { %v4602_v53 = vsel %vm4554_vm8, %v14062_v55, -inf  ;;  %v4154_v39 = vrot.slane %v12414_v16, 1  ;;  %vm4556_vm15 = vmand %vm4523_vm3, %vm4540_vm7  ;;  %v4603_v63 = vsel %vm4555_vm13, %v14071_v36, -inf  ;;  %v13002_v45 = vmax.f32 %v12567_v0, %v4270_v58 }
 0x3bc   : > { %v4614_v25 = vmax.f32 %v4610_v21, %v4602_v53  ;;  %vm4557_vm14 = vmand %vm4524_vm1, %vm4541_vm4  ;;  %v4604_v33 = vsel %vm4556_vm15, %v14072_v30, -inf  ;;  %v4615_v49 = vmax.f32 %v4611_v1, %v4603_v63  ;;  %v13012_v54 = vstv %s12918_s7 }
 0x3bd   : > { %v13014_v44 = vmax.f32 %v4503_v50, %v4504_v61  ;;  %vm4558_vm5 = vmand %vm4525_vm11, %vm4542_vm12  ;;  %v4605_v0 = vsel %vm4557_vm14, %v14073_v18, -inf  ;;  %v4616_v58 = vmax.f32 %v4612_v34, %v4604_v33  ;;  %vm4628_vm3 = vcmp.ge.s32.totalorder %v11322_v17, %v12807_v32 }
 0x3be   : > { %v4388_v13 = vrot.slane %v12835_v60, 2  ;;  %v4606_v35 = vsel %vm4558_vm5, %v14074_v41, -inf  ;;  %v4617_v43 = vmax.f32 %v4613_v40, %v4605_v0  ;;  %vm4629_vm0 = vcmp.ge.s32.totalorder %v11325_v14, %v12807_v32 }
 0x3bf   : > { %v4618_v50 = vmax.f32 %v4614_v25, %v4606_v35  ;;  %vm4630_vm10 = vcmp.ge.s32.totalorder %v11328_v2, %v12807_v32  ;;  %vm4631_vm2 = vcmp.ge.s32.totalorder %v11331_v26, %v12807_v32  ;;  %vm4645_vm1 = vcmp.lt.s32.totalorder %v11322_v17, %v13012_v54 }
 0x3c0   : > { %v4619_v47 = vmax.f32 %v4615_v49, %v4616_v58  ;;  %vm4646_vm7 = vcmp.lt.s32.totalorder %v11325_v14, %v13012_v54  ;;  %vm4647_vm9 = vcmp.lt.s32.totalorder %v11328_v2, %v13012_v54  ;;  %vm4648_vm4 = vcmp.lt.s32.totalorder %v11331_v26, %v13012_v54  ;;  %vm13041_vm6 = vmand %vm4628_vm3, %vm4645_vm1 }
 0x3c1   : > { %v4506_v38 = vrot.slane %v13014_v44, 2  ;;  %v4620_v21 = vmax.f32 %v4617_v43, %v4618_v50  ;;  %vm4632_vm8 = vcmp.ge.s32.totalorder %v11336_v20, %v12807_v32  ;;  %vm4649_vm11 = vcmp.lt.s32.totalorder %v11336_v20, %v13012_v54  ;;  %vm13050_vm12 = vmand %vm4629_vm0, %vm4646_vm7 }
 0x3c2   : > { %vm4633_vm13 = vcmp.ge.s32.totalorder %v11339_v22, %v12807_v32  ;;  %vm4634_vm15 = vcmp.ge.s32.totalorder %v11342_v5, %v12807_v32  ;;  %vm4650_vm5 = vcmp.lt.s32.totalorder %v11339_v22, %v13012_v54  ;;  %vm13065_vm3 = vmand %vm4630_vm10, %vm4647_vm9  ;;  %vm4636_vm0 = vcmp.ge.s32.totalorder %v11350_v29, %v12807_v32 }
 0x3c3   : > { %vm4651_vm14 = vcmp.lt.s32.totalorder %v11342_v5, %v13012_v54  ;;  %vm13083_vm10 = vmand %vm4631_vm2, %vm4648_vm4  ;;  %v4621_v7 = vmax.f32 %v4619_v47, %v4620_v21  ;;  %vm4652_vm9 = vcmp.lt.s32.totalorder %v11345_v6, %v13012_v54  ;;  %v4709_v34 = vsel %vm13041_vm6, %v14033_v62, -inf }
 0x3c4   : > { %vm4665_vm7 = vmand %vm4632_vm8, %vm4649_vm11  ;;  %v4710_v53 = vsel %vm13050_vm12, %v14034_v27, -inf  ;;  %vm4639_vm2 = vcmp.ge.s32.totalorder %v11359_v10, %v12807_v32  ;;  %vm4653_vm4 = vcmp.lt.s32.totalorder %v11350_v29, %v13012_v54  ;;  %v4711_v40 = vsel %vm13065_vm3, %v14039_v42, -inf }
 0x3c5   : > { %vm4666_vm1 = vmand %vm4633_vm13, %vm4650_vm5  ;;  %v4713_v63 = vsel %vm4665_vm7, %v14035_v51, -inf  ;;  %vm4654_vm6 = vcmp.lt.s32.totalorder %v11353_v28, %v13012_v54  ;;  %v4712_v25 = vsel %vm13083_vm10, %v14040_v24, -inf  ;;  %vm4640_vm11 = vcmp.ge.s32.totalorder %v11362_v11, %v12807_v32 }
 0x3c6   : > { %vm4667_vm8 = vmand %vm4634_vm15, %vm4651_vm14  ;;  %v4714_v33 = vsel %vm4666_vm1, %v14041_v3, -inf  ;;  %v4725_v49 = vmax.f32 %v4709_v34, %v4713_v63  ;;  %vm4655_vm12 = vcmp.lt.s32.totalorder %v11356_v9, %v13012_v54  ;;  %vm14230_vm13 = vcmp.ge.s32.totalorder %v11345_v6, %v12807_v32 }
 0x3c7   : > { %vm4668_vm15 = vmand %vm14230_vm13, %vm4652_vm9  ;;  %v4715_v0 = vsel %vm4667_vm8, %v14042_v15, -inf  ;;  %v4726_v58 = vmax.f32 %v4710_v53, %v4714_v33  ;;  %v4622_v35 = vrot.slane %v4621_v7, 4  ;;  %vm4656_vm14 = vcmp.lt.s32.totalorder %v11359_v10, %v13012_v54 }
 0x3c8   : > { %vm4669_vm5 = vmand %vm4636_vm0, %vm4653_vm4  ;;  %v4716_v43 = vsel %vm4668_vm15, %v14046_v19, -inf  ;;  %v4727_v50 = vmax.f32 %v4711_v40, %v4715_v0  ;;  %vm4641_vm3 = vcmp.ge.s32.totalorder %v11365_v12, %v12807_v32  ;;  %vm4657_vm1 = vcmp.lt.s32.totalorder %v11362_v11, %v13012_v54 }
 0x3c9   : > { %vm14231_vm7 = vcmp.ge.s32.totalorder %v11353_v28, %v12807_v32  ;;  %v4717_v47 = vsel %vm4669_vm5, %v14053_v31, -inf  ;;  %v4728_v57 = vmax.f32 %v4712_v25, %v4716_v43  ;;  %vm4642_vm0 = vcmp.ge.s32.totalorder %v11368_v56, %v12807_v32  ;;  %vm4672_vm15 = vmand %vm4639_vm2, %vm4656_vm14 }
 0x3ca   : > { %vm4670_vm10 = vmand %vm14231_vm7, %vm4654_vm6  ;;  %vm4658_vm9 = vcmp.lt.s32.totalorder %v11365_v12, %v13012_v54  ;;  %vm14232_vm4 = vcmp.ge.s32.totalorder %v11356_v9, %v12807_v32  ;;  %v4729_v4 = vmax.f32 %v4725_v49, %v4717_v47  ;;  %vm4643_vm6 = vcmp.ge.s32.totalorder %v11371_v37, %v12807_v32 }
 0x3cb   : > { %vm4671_vm8 = vmand %vm14232_vm4, %vm4655_vm12  ;;  %v4718_v21 = vsel %vm4670_vm10, %v14057_v46, -inf  ;;  %vm4659_vm13 = vcmp.lt.s32.totalorder %v11368_v56, %v13012_v54  ;;  %v4623_v34 = vmax.f32 %v4621_v7, %v4622_v35  ;;  %vm4660_vm12 = vcmp.lt.s32.totalorder %v11371_v37, %v13012_v54 }
 0x3cc   : > { %v4719_v1 = vsel %vm4671_vm8, %v14058_v8, -inf  ;;  %v4730_v61 = vmax.f32 %v4726_v58, %v4718_v21  ;;  %vm4673_vm5 = vmand %vm4640_vm11, %vm4657_vm1  ;;  %v4720_v53 = vsel %vm4672_vm15, %v14062_v55, -inf  ;;  %v3919_v63 = vmax.f32 %v12340_v59, %v3918_v48 }
 0x3cd   : > { %v4731_v40 = vmax.f32 %v4727_v50, %v4719_v1  ;;  %v4037_v7 = vmax.f32 %v12379_v23, %v4036_v52  ;;  %vm4674_vm2 = vmand %vm4641_vm3, %vm4658_vm9  ;;  %v4721_v25 = vsel %vm4673_vm5, %v14071_v36, -inf  ;;  %v4732_v33 = vmax.f32 %v4728_v57, %v4720_v53 }
 0x3ce   : > { %v4389_v49 = vmax.f32 %v12835_v60, %v4388_v13  ;;  %vm4675_vm11 = vmand %vm4642_vm0, %vm4659_vm13  ;;  %v4722_v59 = vsel %vm4674_vm2, %v14072_v30, -inf  ;;  %v4733_v48 = vmax.f32 %v4729_v4, %v4721_v25  ;;  %vm4746_vm14 = vcmask 1040384  }
 0x3cf   : > { %v4155_v23 = vmax.f32 %v12414_v16, %v4154_v39  ;;  %v4272_v52 = vrot.slane %v13002_v45, 1  ;;  %vm4676_vm3 = vmand %vm4643_vm6, %vm4660_vm12  ;;  %v4723_v60 = vsel %vm4675_vm11, %v14073_v18, -inf  ;;  %v4734_v13 = vmax.f32 %v4730_v61, %v4722_v59 }
 0x3d0   : > { %v4507_v0 = vmax.f32 %v13014_v44, %v4506_v38  ;;  %v4624_v58 = vrot.slane %v4623_v34, 2  ;;  %v4724_v35 = vsel %vm4676_vm3, %v14074_v41, -inf  ;;  %v4735_v16 = vmax.f32 %v4731_v40, %v4723_v60 }
 0x3d1   : > { %v4736_v39 = vmax.f32 %v4732_v33, %v4724_v35  ;;  %v4737_v43 = vmax.f32 %v4733_v48, %v4734_v13  ;;  %v4747_v50 = vsel %vm4746_vm14, %v3919_v63, %v4037_v7  ;;  %vm4748_vm1 = vcmask 1041408  }
 0x3d2   : > { %v4390_v54 = vrot.slane %v4389_v49, 1  ;;  %v4273_v47 = vmax.f32 %v13002_v45, %v4272_v52  ;;  %v4625_v57 = vmax.f32 %v4623_v34, %v4624_v58  ;;  %v4749_v21 = vsel %vm4748_vm1, %v4747_v50, %v4155_v23  ;;  %v4761_v23 = vld [vmem:[%s4760_s10] sm:$0xff] }
 0x3d3   : > { %v4738_v32 = vmax.f32 %v4735_v16, %v4736_v39  ;;  %vm4750_vm7 = vcmask 1042432   ;;  %v4508_v4 = vrot.slane %v4507_v0, 1  ;;  %vm4752_vm10 = vcmask 1043456  }
 0x3d4   : > { %v4391_v61 = vmax.f32 %v4389_v49, %v4390_v54  ;;  %v4751_v38 = vsel %vm4750_vm7, %v4749_v21, %v4273_v47  ;;  %v4626_v53 = vrot.slane %v4625_v57, 1  ;;  %vm4754_vm0 = vcmask 1044480  }
 0x3d5   : > { %v4739_v1 = vmax.f32 %v4737_v43, %v4738_v32  ;;  %v4509_v40 = vmax.f32 %v4507_v0, %v4508_v4  ;;  %vm4756_vm9 = vcmask 1045504   ;;  %vm4758_vm4 = vcmask 1046528  }
 0x3d6   : > { %v4753_v33 = vsel %vm4752_vm10, %v4751_v38, %v4391_v61  ;;  %v4627_v7 = vmax.f32 %v4625_v57, %v4626_v53 }
 0x3d7   : > { %v4740_v44 = vrot.slane %v4739_v1, 4  ;;  %v4755_v45 = vsel %vm4754_vm0, %v4753_v33, %v4509_v40 }
 0x3d8   : > { %v4757_v48 = vsel %vm4756_vm9, %v4755_v45, %v4627_v7 }
 0x3d9   : > { %v4741_v25 = vmax.f32 %v4739_v1, %v4740_v44 }
 0x3db   : > { %v4742_v63 = vrot.slane %v4741_v25, 2 }
 0x3dd   : > { %v4743_v59 = vmax.f32 %v4741_v25, %v4742_v63 }
 0x3df   : > { %v4744_v34 = vrot.slane %v4743_v59, 1 }
 0x3e1   : > { %v4745_v49 = vmax.f32 %v4743_v59, %v4744_v34 }
 0x3e2   :  { %3781 = sbr.rel (!%p3778_p3) target bundleno = 832 (0x340), region = 100 }
 0x3e3   : > { %v4759_v52 = vsel %vm4758_vm4, %v4757_v48, %v4745_v49 }
 0x3e4   : > { %v4762_v60 = vmax.f32 %v4761_v23, %v4759_v52 }
 0x3e6   : > { %4763 = vst [vmem:[%s4760_s10] sm:$0xff] %v4762_v60 }
 0x3e7 PF:  {}

</bundles_post_ra>
